<compile_context>
chip_gen: v7x
topology: tpu7x:2x2x1
jax: 0.10.0
libtpu: 0.0.40
codegen_flags: <defaults>
</compile_context>

<pallas_src>
import numpy as np
import jax
import jax.numpy as jnp
from jax.experimental import pallas as pl
from jax.experimental.pallas import tpu as pltpu


# ---------------------------------------------------------------------------
# The single fused Pallas kernel (runs once per grid step == per state chunk)
# ---------------------------------------------------------------------------
def _fused_net_kernel(x_ref,
                      c1_ref, s1_ref, b1_ref,
                      c2_ref, s2_ref, b2_ref,
                      c3_ref, s3_ref, b3_ref,
                      wf_ref, sf_ref, bf_ref,
                      wh_ref, bh_ref,
                      out_ref):
    """Whole forward pass; all intermediates live on-chip as values."""
    f32 = jnp.float32

    def conv(xw, c_ref, s_ref, b_ref):
        # xw     : (N*H_in , W_in*Cin)        bf16 activation, rows=(n,h), cols=(w,c)
        # s_ref  : (3, N*H_out, N*H_in)       bf16 0/1 row selection (picks 2*ho+i)
        # c_ref  : (3, W_in*Cin, W_out*Cout)  bf16 banded conv weights per row-tap i
        # b_ref  : (1, W_out*Cout)            f32 bias tiled over W_out
        acc = None
        for i in range(3):
            # selection FIRST (cheap, shrinks M of the big tap matmul); result is an
            # exact row pick of bf16 values, so the bf16 round-trip is lossless.
            sel = jnp.dot(s_ref[i], xw, preferred_element_type=f32).astype(xw.dtype)
            y = jnp.dot(sel, c_ref[i], preferred_element_type=f32)   # (N*H_out, Wout*Cout)
            acc = y if acc is None else acc + y
        return jnp.maximum(acc + b_ref[...], 0.0).astype(xw.dtype)

    a = conv(x_ref[...], c1_ref, s1_ref, b1_ref)   # (N*20, 20*32) bf16
    a = conv(a, c2_ref, s2_ref, b2_ref)            # (N*9 ,  9*32)
    a = conv(a, c3_ref, s3_ref, b3_ref)            # (N*4 ,  4*32) = (N*4, 128)

    # fc1 with PyTorch's NCHW flatten folded into a per-row (h) weight stack;
    # select-first keeps the tap matmuls at M = N.
    h = None
    for k in range(4):
        sel = jnp.dot(sf_ref[k], a, preferred_element_type=f32).astype(a.dtype)  # (N,128)
        y = jnp.dot(sel, wf_ref[k], preferred_element_type=f32)                  # (N,128)
        h = y if h is None else h + y
    h = jnp.maximum(h + bf_ref[...], 0.0)                                        # (N,128) f32

    # merged + zero-padded actor/critic head: one lane-dense (128,128) matmul.
    out = jnp.dot(h.astype(wh_ref.dtype), wh_ref[...],
                  preferred_element_type=f32) + bh_ref[...]
    out_ref[...] = out.astype(out_ref.dtype)


# ---------------------------------------------------------------------------
# One-time parameter preparation (outside the hot path)
# ---------------------------------------------------------------------------
def _banded_conv_weights(w_oihw, w_in, w_out, stride=2):
    """Per row-tap i: C_i[(w1*Cin+c), (wo*Cout+co)] = w[co,c,i,w1-2*wo]."""
    w = np.asarray(w_oihw, np.float32)
    c_out, c_in, kh, kw = w.shape
    band = np.zeros((kh, w_in * c_in, w_out * c_out), np.float32)
    for i in range(kh):
        for wo in range(w_out):
            for j in range(kw):
                w1 = stride * wo + j
                band[i, w1 * c_in:(w1 + 1) * c_in,
                     wo * c_out:(wo + 1) * c_out] = w[:, :, i, j].T
    return band


def _row_select(kh, n, h_in, h_out, stride=2):
    """S_i[n*H_out+ho, n*H_in + stride*ho + i] = 1."""
    s = np.zeros((kh, n * h_out, n * h_in), np.float32)
    for i in range(kh):
        for b in range(n):
            for ho in range(h_out):
                s[i, b * h_out + ho, b * h_in + stride * ho + i] = 1.0
    return s


def prepare_network(params, block_batch=8, weight_dtype=jnp.bfloat16):
    """Fold transposes / flatten permutation / head concat into the weights.

    block_batch is the per-grid-step batch baked into the selection matrices.
    NOTE (review): the banded c2 is ~85% structural zeros; with VMEM-resident
    weights (constant index_map across the grid) those zeros only cost VMEM,
    not per-step HBM bandwidth, so no denser factorization is needed.
    """
    n = block_batch
    # conv layers: 42 -> 20 -> 9 -> 4 spatially, 4 -> 32 -> 32 -> 32 channels.
    c1 = _banded_conv_weights(params["conv1_w"], 42, 20)
    c2 = _banded_conv_weights(params["conv2_w"], 20, 9)
    c3 = _banded_conv_weights(params["conv3_w"], 9, 4)
    s1 = _row_select(3, n, 42, 20)
    s2 = _row_select(3, n, 20, 9)
    s3 = _row_select(3, n, 9, 4)
    b1 = np.tile(np.asarray(params["conv1_b"], np.float32), 20).reshape(1, 20 * 32)
    b2 = np.tile(np.asarray(params["conv2_b"], np.float32), 9).reshape(1, 9 * 32)
    b3 = np.tile(np.asarray(params["conv3_b"], np.float32), 4).reshape(1, 4 * 32)

    # fc1: PyTorch flatten index is c*16 + h*4 + w; our activation layout is
    # rows=(n,h), cols=(w*32+c).  Fold the permutation into a per-h weight stack
    # wp[h, w*32+c, f] = fc1_w[f, c*16 + h*4 + w].
    wf = np.asarray(params["fc1_w"], np.float32).reshape(128, 32, 4, 4)  # (f,c,h,w)
    wf = np.transpose(wf, (2, 3, 1, 0)).reshape(4, 4 * 32, 128)          # (h, w*32+c, f)
    sf = np.zeros((4, n, n * 4), np.float32)
    for h in range(4):
        for b in range(n):
            sf[h, b, b * 4 + h] = 1.0
    bf = np.asarray(params["fc1_b"], np.float32).reshape(1, 128)

    # merged actor + critic head, zero-padded to 128 lanes for lane-dense stores:
    # columns [0:A) = actor, column A = critic, rest = 0.
    a_size = np.asarray(params["fc2a_w"]).shape[0]
    wh = np.zeros((128, 128), np.float32)
    wh[:, :a_size] = np.asarray(params["fc2a_w"], np.float32).T
    wh[:, a_size] = np.asarray(params["fc2s_w"], np.float32)[0]
    bh = np.zeros((1, 128), np.float32)
    bh[0, :a_size] = np.asarray(params["fc2a_b"], np.float32)
    bh[0, a_size] = np.asarray(params["fc2s_b"], np.float32)[0]

    wd = weight_dtype
    return {
        # banded conv weights + 0/1 selection matrices all in bf16 (native MXU path)
        "c1": jnp.asarray(c1, wd), "s1": jnp.asarray(s1, wd), "b1": jnp.asarray(b1),
        "c2": jnp.asarray(c2, wd), "s2": jnp.asarray(s2, wd), "b2": jnp.asarray(b2),
        "c3": jnp.asarray(c3, wd), "s3": jnp.asarray(s3, wd), "b3": jnp.asarray(b3),
        "wf": jnp.asarray(wf, wd), "sf": jnp.asarray(sf, wd), "bf": jnp.asarray(bf),
        "wh": jnp.asarray(wh, wd), "bh": jnp.asarray(bh),
    }


def _cost_flops(bb):
    """Rough MXU flop count per grid step (selection + tap matmuls)."""
    f = 0
    for ho, hi, kin, kout in ((20, 42, 168, 640), (9, 20, 640, 288), (4, 9, 288, 128)):
        f += 3 * 2 * (bb * ho) * (bb * hi) * kin   # row-selection matmuls
        f += 3 * 2 * (bb * ho) * kin * kout        # banded tap matmuls
    f += 4 * 2 * bb * (bb * 4) * 128 + 4 * 2 * bb * 128 * 128   # fc1 select + tap
    f += 2 * bb * 128 * 128                                     # merged head
    return f


# ---------------------------------------------------------------------------
# Forward pass: single pallas_call, grid over state chunks, resident weights
# ---------------------------------------------------------------------------
def network_forward(prep, state_nchw, *, action_size):
    wd = prep["c1"].dtype
    bb = prep["s1"].shape[1] // 20          # per-step batch baked into selection mats
    n, c, hh, ww = state_nchw.shape

    n_pad = -(-n // bb) * bb                # pad batch up to a multiple of bb
    if n_pad != n:
        state_nchw = jnp.pad(state_nchw,
                             ((0, n_pad - n), (0, 0), (0, 0), (0, 0)))
    num_chunks = n_pad // bb

    # Only per-step layout glue: NCHW -> (N*H, W*C) slab, cast to bf16 once.
    x2d = jnp.transpose(state_nchw, (0, 2, 3, 1)).reshape(n_pad * hh, ww * c).astype(wd)

    weight_names = ("c1", "s1", "b1", "c2", "s2", "b2", "c3", "s3", "b3",
                    "wf", "sf", "bf", "wh", "bh")
    weights = [prep[k] for k in weight_names]

    def resident_spec(arr):
        # Constant index_map -> block never changes -> DMA'd once, stays in VMEM.
        nd = arr.ndim
        return pl.BlockSpec(arr.shape, lambda t, _nd=nd: (0,) * _nd)

    in_specs = ([pl.BlockSpec((bb * hh, ww * c), lambda t: (t, 0))]
                + [resident_spec(w) for w in weights])
    out_spec = pl.BlockSpec((bb, 128), lambda t: (t, 0))

    flops = _cost_flops(bb) * num_chunks
    bytes_accessed = (int(x2d.size) * x2d.dtype.itemsize
                      + sum(int(w.size) * w.dtype.itemsize for w in weights)
                      + n_pad * 128 * 4)

    out = pl.pallas_call(
        _fused_net_kernel,
        out_shape=jax.ShapeDtypeStruct((n_pad, 128), jnp.float32),
        grid_spec=pltpu.PrefetchScalarGridSpec(
            num_scalar_prefetch=0,
            grid=(num_chunks,),
            in_specs=in_specs,
            out_specs=out_spec),
        compiler_params=pltpu.CompilerParams(
            dimension_semantics=("parallel",)),        # shards chunks across v7x TCs
        cost_estimate=pl.CostEstimate(flops=flops, transcendentals=0,
                                      bytes_accessed=bytes_accessed),
    )(x2d, *weights)

    action_values = out[:n, :action_size]
    state_value = out[:n, action_size]                  # (N,) — avoids 0-d when N==1
    return action_values, state_value


# ---------------------------------------------------------------------------
# PyTorch-layout parameters + plain-JAX reference (for verification)
# ---------------------------------------------------------------------------
def init_params(key, action_size):
    ks = jax.random.split(key, 12)

    def u(k, shape, fan_in):
        bound = 1.0 / (fan_in ** 0.5)
        return jax.random.uniform(k, shape, jnp.float32, -bound, bound)

    return {
        "conv1_w": u(ks[0], (32, 4, 3, 3), 4 * 9),
        "conv1_b": u(ks[1], (32,), 4 * 9),
        "conv2_w": u(ks[2], (32, 32, 3, 3), 32 * 9),
        "conv2_b": u(ks[3], (32,), 32 * 9),
        "conv3_w": u(ks[4], (32, 32, 3, 3), 32 * 9),
        "conv3_b": u(ks[5], (32,), 32 * 9),
        "fc1_w": u(ks[6], (128, 512), 512),
        "fc1_b": u(ks[7], (128,), 512),
        "fc2a_w": u(ks[8], (action_size, 128), 128),
        "fc2a_b": u(ks[9], (action_size,), 128),
        "fc2s_w": u(ks[10], (1, 128), 128),
        "fc2s_b": u(ks[11], (1,), 128),
    }


def reference_forward(params, state):
    def conv(x, w, b):
        y = jax.lax.conv_general_dilated(
            x, w, (2, 2), "VALID", dimension_numbers=("NCHW", "OIHW", "NCHW"))
        return jax.nn.relu(y + b.reshape(1, -1, 1, 1))
    x = conv(state, params["conv1_w"], params["conv1_b"])
    x = conv(x, params["conv2_w"], params["conv2_b"])
    x = conv(x, params["conv3_w"], params["conv3_b"])
    x = x.reshape(x.shape[0], -1)                                   # NCHW flatten
    h = jax.nn.relu(x @ params["fc1_w"].T + params["fc1_b"])
    a = h @ params["fc2a_w"].T + params["fc2a_b"]
    s = h @ params["fc2s_w"].T + params["fc2s_b"]
    return a, s[:, 0]


if __name__ == "__main__":
    key = jax.random.PRNGKey(0)
    pkey, xkey = jax.random.split(key)

    ACTION_SIZE = 6
    BLOCK_BATCH = 8          # per-grid-step batch folded into the selection matrices
    BATCH = 16               # 2 grid steps; weights stay VMEM-resident across them
    # 42x42 input: 42 -> 20 -> 9 -> 4 spatially, 32*4*4 = 512 = fc1 in-features.
    state = jax.random.normal(xkey, (BATCH, 4, 42, 42), dtype=jnp.float32)

    params = init_params(pkey, ACTION_SIZE)
    prep = prepare_network(params, block_batch=BLOCK_BATCH)  # one-time, off hot path

    fwd = jax.jit(network_forward, static_argnames=("action_size",))
    action_values, state_value = fwd(prep, state, action_size=ACTION_SIZE)
    jax.block_until_ready((action_values, state_value))

    assert action_values.shape == (BATCH, ACTION_SIZE)
    assert state_value.shape == (BATCH,)

    # Verify against a plain-JAX reference (loose tol: kernel uses bf16 weights).
    ref_a, ref_s = jax.jit(reference_forward)(params, state)
    np.testing.assert_allclose(np.asarray(action_values), np.asarray(ref_a),
                               rtol=2e-2, atol=2e-2)
    np.testing.assert_allclose(np.asarray(state_value), np.asarray(ref_s),
                               rtol=2e-2, atol=2e-2)

    print("KERNEL_OK")
</pallas_src>

<mosaic_0001>
module attributes {stable_mosaic.version = 11 : i64} {
  func.func @_fused_net_kernel(%arg0: i32, %arg1: memref<336x168xbf16, #tpu.memory_space<vmem>>, %arg2: memref<3x168x640xbf16, #tpu.memory_space<vmem>>, %arg3: memref<3x160x336xbf16, #tpu.memory_space<vmem>>, %arg4: memref<1x640xf32, #tpu.memory_space<vmem>>, %arg5: memref<3x640x288xbf16, #tpu.memory_space<vmem>>, %arg6: memref<3x72x160xbf16, #tpu.memory_space<vmem>>, %arg7: memref<1x288xf32, #tpu.memory_space<vmem>>, %arg8: memref<3x288x128xbf16, #tpu.memory_space<vmem>>, %arg9: memref<3x32x72xbf16, #tpu.memory_space<vmem>>, %arg10: memref<1x128xf32, #tpu.memory_space<vmem>>, %arg11: memref<4x128x128xbf16, #tpu.memory_space<vmem>>, %arg12: memref<4x8x32xbf16, #tpu.memory_space<vmem>>, %arg13: memref<1x128xf32, #tpu.memory_space<vmem>>, %arg14: memref<128x128xbf16, #tpu.memory_space<vmem>>, %arg15: memref<1x128xf32, #tpu.memory_space<vmem>>, %arg16: memref<8x128xf32, #tpu.memory_space<vmem>>) attributes {dimension_semantics = [#tpu.dimension_semantics<parallel>], iteration_bounds = array<i64: 2>, scalar_prefetch = 0 : i64, scratch_operands = 0 : i64, tpu.core_type = #tpu.core_type<tc>, window_params = [{transform_indices = @transform_0, window_bounds = array<i64: 336, 168>}, {pipeline_mode = #tpu.pipeline_mode<synchronous>, transform_indices = @transform_1, window_bounds = array<i64: 3, 168, 640>}, {pipeline_mode = #tpu.pipeline_mode<synchronous>, transform_indices = @transform_2, window_bounds = array<i64: 3, 160, 336>}, {pipeline_mode = #tpu.pipeline_mode<synchronous>, transform_indices = @transform_3, window_bounds = array<i64: 1, 640>}, {pipeline_mode = #tpu.pipeline_mode<synchronous>, transform_indices = @transform_4, window_bounds = array<i64: 3, 640, 288>}, {pipeline_mode = #tpu.pipeline_mode<synchronous>, transform_indices = @transform_5, window_bounds = array<i64: 3, 72, 160>}, {pipeline_mode = #tpu.pipeline_mode<synchronous>, transform_indices = @transform_6, window_bounds = array<i64: 1, 288>}, {pipeline_mode = #tpu.pipeline_mode<synchronous>, transform_indices = @transform_7, window_bounds = array<i64: 3, 288, 128>}, {pipeline_mode = #tpu.pipeline_mode<synchronous>, transform_indices = @transform_8, window_bounds = array<i64: 3, 32, 72>}, {pipeline_mode = #tpu.pipeline_mode<synchronous>, transform_indices = @transform_9, window_bounds = array<i64: 1, 128>}, {pipeline_mode = #tpu.pipeline_mode<synchronous>, transform_indices = @transform_10, window_bounds = array<i64: 4, 128, 128>}, {pipeline_mode = #tpu.pipeline_mode<synchronous>, transform_indices = @transform_11, window_bounds = array<i64: 4, 8, 32>}, {pipeline_mode = #tpu.pipeline_mode<synchronous>, transform_indices = @transform_12, window_bounds = array<i64: 1, 128>}, {pipeline_mode = #tpu.pipeline_mode<synchronous>, transform_indices = @transform_13, window_bounds = array<i64: 128, 128>}, {pipeline_mode = #tpu.pipeline_mode<synchronous>, transform_indices = @transform_14, window_bounds = array<i64: 1, 128>}, {transform_indices = @transform_15, window_bounds = array<i64: 8, 128>}]} {
    %c0 = arith.constant 0 : index
    %c0_0 = arith.constant 0 : index
    %0 = vector.load %arg1[%c0, %c0_0] : memref<336x168xbf16, #tpu.memory_space<vmem>>, vector<336x168xbf16>
    %c0_1 = arith.constant 0 : index
    %c0_2 = arith.constant 0 : index
    %c0_3 = arith.constant 0 : index
    %1 = vector.load %arg3[%c0_1, %c0_2, %c0_3] : memref<3x160x336xbf16, #tpu.memory_space<vmem>>, vector<1x160x336xbf16>
    %2 = vector.shape_cast %1 : vector<1x160x336xbf16> to vector<160x336xbf16>
    %cst = arith.constant dense<0.000000e+00> : vector<160x168xf32>
    %3 = tpu.matmul %2, %0, %cst {dimension_numbers = #tpu.dot_dimension_numbers<[1], [0], [0], [1], [0, 0, 1, 1], [], []>} : vector<160x336xbf16>, vector<336x168xbf16>, vector<160x168xf32> -> vector<160x168xf32>
    %4 = arith.truncf %3 : vector<160x168xf32> to vector<160x168xbf16>
    %c0_4 = arith.constant 0 : index
    %c0_5 = arith.constant 0 : index
    %c0_6 = arith.constant 0 : index
    %5 = vector.load %arg2[%c0_4, %c0_5, %c0_6] : memref<3x168x640xbf16, #tpu.memory_space<vmem>>, vector<1x168x640xbf16>
    %6 = vector.shape_cast %5 : vector<1x168x640xbf16> to vector<168x640xbf16>
    %cst_7 = arith.constant dense<0.000000e+00> : vector<160x640xf32>
    %7 = tpu.matmul %4, %6, %cst_7 {dimension_numbers = #tpu.dot_dimension_numbers<[1], [0], [0], [1], [0, 0, 1, 1], [], []>} : vector<160x168xbf16>, vector<168x640xbf16>, vector<160x640xf32> -> vector<160x640xf32>
    %c1 = arith.constant 1 : index
    %c0_8 = arith.constant 0 : index
    %c0_9 = arith.constant 0 : index
    %8 = vector.load %arg3[%c1, %c0_8, %c0_9] : memref<3x160x336xbf16, #tpu.memory_space<vmem>>, vector<1x160x336xbf16>
    %9 = vector.shape_cast %8 : vector<1x160x336xbf16> to vector<160x336xbf16>
    %cst_10 = arith.constant dense<0.000000e+00> : vector<160x168xf32>
    %10 = tpu.matmul %9, %0, %cst_10 {dimension_numbers = #tpu.dot_dimension_numbers<[1], [0], [0], [1], [0, 0, 1, 1], [], []>} : vector<160x336xbf16>, vector<336x168xbf16>, vector<160x168xf32> -> vector<160x168xf32>
    %11 = arith.truncf %10 : vector<160x168xf32> to vector<160x168xbf16>
    %c1_11 = arith.constant 1 : index
    %c0_12 = arith.constant 0 : index
    %c0_13 = arith.constant 0 : index
    %12 = vector.load %arg2[%c1_11, %c0_12, %c0_13] : memref<3x168x640xbf16, #tpu.memory_space<vmem>>, vector<1x168x640xbf16>
    %13 = vector.shape_cast %12 : vector<1x168x640xbf16> to vector<168x640xbf16>
    %cst_14 = arith.constant dense<0.000000e+00> : vector<160x640xf32>
    %14 = tpu.matmul %11, %13, %cst_14 {dimension_numbers = #tpu.dot_dimension_numbers<[1], [0], [0], [1], [0, 0, 1, 1], [], []>} : vector<160x168xbf16>, vector<168x640xbf16>, vector<160x640xf32> -> vector<160x640xf32>
    %15 = arith.addf %7, %14 : vector<160x640xf32>
    %c2 = arith.constant 2 : index
    %c0_15 = arith.constant 0 : index
    %c0_16 = arith.constant 0 : index
    %16 = vector.load %arg3[%c2, %c0_15, %c0_16] : memref<3x160x336xbf16, #tpu.memory_space<vmem>>, vector<1x160x336xbf16>
    %17 = vector.shape_cast %16 : vector<1x160x336xbf16> to vector<160x336xbf16>
    %cst_17 = arith.constant dense<0.000000e+00> : vector<160x168xf32>
    %18 = tpu.matmul %17, %0, %cst_17 {dimension_numbers = #tpu.dot_dimension_numbers<[1], [0], [0], [1], [0, 0, 1, 1], [], []>} : vector<160x336xbf16>, vector<336x168xbf16>, vector<160x168xf32> -> vector<160x168xf32>
    %19 = arith.truncf %18 : vector<160x168xf32> to vector<160x168xbf16>
    %c2_18 = arith.constant 2 : index
    %c0_19 = arith.constant 0 : index
    %c0_20 = arith.constant 0 : index
    %20 = vector.load %arg2[%c2_18, %c0_19, %c0_20] : memref<3x168x640xbf16, #tpu.memory_space<vmem>>, vector<1x168x640xbf16>
    %21 = vector.shape_cast %20 : vector<1x168x640xbf16> to vector<168x640xbf16>
    %cst_21 = arith.constant dense<0.000000e+00> : vector<160x640xf32>
    %22 = tpu.matmul %19, %21, %cst_21 {dimension_numbers = #tpu.dot_dimension_numbers<[1], [0], [0], [1], [0, 0, 1, 1], [], []>} : vector<160x168xbf16>, vector<168x640xbf16>, vector<160x640xf32> -> vector<160x640xf32>
    %23 = arith.addf %15, %22 : vector<160x640xf32>
    %c0_22 = arith.constant 0 : index
    %c0_23 = arith.constant 0 : index
    %24 = vector.load %arg4[%c0_22, %c0_23] : memref<1x640xf32, #tpu.memory_space<vmem>>, vector<1x640xf32>
    %25 = vector.broadcast %24 : vector<1x640xf32> to vector<160x640xf32>
    %26 = arith.addf %23, %25 : vector<160x640xf32>
    %cst_24 = arith.constant 0.000000e+00 : f32
    %27 = vector.broadcast %cst_24 : f32 to vector<160x640xf32>
    %28 = arith.maximumf %26, %27 : vector<160x640xf32>
    %29 = arith.truncf %28 : vector<160x640xf32> to vector<160x640xbf16>
    %c0_25 = arith.constant 0 : index
    %c0_26 = arith.constant 0 : index
    %c0_27 = arith.constant 0 : index
    %30 = vector.load %arg6[%c0_25, %c0_26, %c0_27] : memref<3x72x160xbf16, #tpu.memory_space<vmem>>, vector<1x72x160xbf16>
    %31 = vector.shape_cast %30 : vector<1x72x160xbf16> to vector<72x160xbf16>
    %cst_28 = arith.constant dense<0.000000e+00> : vector<72x640xf32>
    %32 = tpu.matmul %31, %29, %cst_28 {dimension_numbers = #tpu.dot_dimension_numbers<[1], [0], [0], [1], [0, 0, 1, 1], [], []>} : vector<72x160xbf16>, vector<160x640xbf16>, vector<72x640xf32> -> vector<72x640xf32>
    %33 = arith.truncf %32 : vector<72x640xf32> to vector<72x640xbf16>
    %c0_29 = arith.constant 0 : index
    %c0_30 = arith.constant 0 : index
    %c0_31 = arith.constant 0 : index
    %34 = vector.load %arg5[%c0_29, %c0_30, %c0_31] : memref<3x640x288xbf16, #tpu.memory_space<vmem>>, vector<1x640x288xbf16>
    %35 = vector.shape_cast %34 : vector<1x640x288xbf16> to vector<640x288xbf16>
    %cst_32 = arith.constant dense<0.000000e+00> : vector<72x288xf32>
    %36 = tpu.matmul %33, %35, %cst_32 {dimension_numbers = #tpu.dot_dimension_numbers<[1], [0], [0], [1], [0, 0, 1, 1], [], []>} : vector<72x640xbf16>, vector<640x288xbf16>, vector<72x288xf32> -> vector<72x288xf32>
    %c1_33 = arith.constant 1 : index
    %c0_34 = arith.constant 0 : index
    %c0_35 = arith.constant 0 : index
    %37 = vector.load %arg6[%c1_33, %c0_34, %c0_35] : memref<3x72x160xbf16, #tpu.memory_space<vmem>>, vector<1x72x160xbf16>
    %38 = vector.shape_cast %37 : vector<1x72x160xbf16> to vector<72x160xbf16>
    %cst_36 = arith.constant dense<0.000000e+00> : vector<72x640xf32>
    %39 = tpu.matmul %38, %29, %cst_36 {dimension_numbers = #tpu.dot_dimension_numbers<[1], [0], [0], [1], [0, 0, 1, 1], [], []>} : vector<72x160xbf16>, vector<160x640xbf16>, vector<72x640xf32> -> vector<72x640xf32>
    %40 = arith.truncf %39 : vector<72x640xf32> to vector<72x640xbf16>
    %c1_37 = arith.constant 1 : index
    %c0_38 = arith.constant 0 : index
    %c0_39 = arith.constant 0 : index
    %41 = vector.load %arg5[%c1_37, %c0_38, %c0_39] : memref<3x640x288xbf16, #tpu.memory_space<vmem>>, vector<1x640x288xbf16>
    %42 = vector.shape_cast %41 : vector<1x640x288xbf16> to vector<640x288xbf16>
    %cst_40 = arith.constant dense<0.000000e+00> : vector<72x288xf32>
    %43 = tpu.matmul %40, %42, %cst_40 {dimension_numbers = #tpu.dot_dimension_numbers<[1], [0], [0], [1], [0, 0, 1, 1], [], []>} : vector<72x640xbf16>, vector<640x288xbf16>, vector<72x288xf32> -> vector<72x288xf32>
    %44 = arith.addf %36, %43 : vector<72x288xf32>
    %c2_41 = arith.constant 2 : index
    %c0_42 = arith.constant 0 : index
    %c0_43 = arith.constant 0 : index
    %45 = vector.load %arg6[%c2_41, %c0_42, %c0_43] : memref<3x72x160xbf16, #tpu.memory_space<vmem>>, vector<1x72x160xbf16>
    %46 = vector.shape_cast %45 : vector<1x72x160xbf16> to vector<72x160xbf16>
    %cst_44 = arith.constant dense<0.000000e+00> : vector<72x640xf32>
    %47 = tpu.matmul %46, %29, %cst_44 {dimension_numbers = #tpu.dot_dimension_numbers<[1], [0], [0], [1], [0, 0, 1, 1], [], []>} : vector<72x160xbf16>, vector<160x640xbf16>, vector<72x640xf32> -> vector<72x640xf32>
    %48 = arith.truncf %47 : vector<72x640xf32> to vector<72x640xbf16>
    %c2_45 = arith.constant 2 : index
    %c0_46 = arith.constant 0 : index
    %c0_47 = arith.constant 0 : index
    %49 = vector.load %arg5[%c2_45, %c0_46, %c0_47] : memref<3x640x288xbf16, #tpu.memory_space<vmem>>, vector<1x640x288xbf16>
    %50 = vector.shape_cast %49 : vector<1x640x288xbf16> to vector<640x288xbf16>
    %cst_48 = arith.constant dense<0.000000e+00> : vector<72x288xf32>
    %51 = tpu.matmul %48, %50, %cst_48 {dimension_numbers = #tpu.dot_dimension_numbers<[1], [0], [0], [1], [0, 0, 1, 1], [], []>} : vector<72x640xbf16>, vector<640x288xbf16>, vector<72x288xf32> -> vector<72x288xf32>
    %52 = arith.addf %44, %51 : vector<72x288xf32>
    %c0_49 = arith.constant 0 : index
    %c0_50 = arith.constant 0 : index
    %53 = vector.load %arg7[%c0_49, %c0_50] : memref<1x288xf32, #tpu.memory_space<vmem>>, vector<1x288xf32>
    %54 = vector.broadcast %53 : vector<1x288xf32> to vector<72x288xf32>
    %55 = arith.addf %52, %54 : vector<72x288xf32>
    %cst_51 = arith.constant 0.000000e+00 : f32
    %56 = vector.broadcast %cst_51 : f32 to vector<72x288xf32>
    %57 = arith.maximumf %55, %56 : vector<72x288xf32>
    %58 = arith.truncf %57 : vector<72x288xf32> to vector<72x288xbf16>
    %c0_52 = arith.constant 0 : index
    %c0_53 = arith.constant 0 : index
    %c0_54 = arith.constant 0 : index
    %59 = vector.load %arg9[%c0_52, %c0_53, %c0_54] : memref<3x32x72xbf16, #tpu.memory_space<vmem>>, vector<1x32x72xbf16>
    %60 = vector.shape_cast %59 : vector<1x32x72xbf16> to vector<32x72xbf16>
    %cst_55 = arith.constant dense<0.000000e+00> : vector<32x288xf32>
    %61 = tpu.matmul %60, %58, %cst_55 {dimension_numbers = #tpu.dot_dimension_numbers<[1], [0], [0], [1], [0, 0, 1, 1], [], []>} : vector<32x72xbf16>, vector<72x288xbf16>, vector<32x288xf32> -> vector<32x288xf32>
    %62 = arith.truncf %61 : vector<32x288xf32> to vector<32x288xbf16>
    %c0_56 = arith.constant 0 : index
    %c0_57 = arith.constant 0 : index
    %c0_58 = arith.constant 0 : index
    %63 = vector.load %arg8[%c0_56, %c0_57, %c0_58] : memref<3x288x128xbf16, #tpu.memory_space<vmem>>, vector<1x288x128xbf16>
    %64 = vector.shape_cast %63 : vector<1x288x128xbf16> to vector<288x128xbf16>
    %cst_59 = arith.constant dense<0.000000e+00> : vector<32x128xf32>
    %65 = tpu.matmul %62, %64, %cst_59 {dimension_numbers = #tpu.dot_dimension_numbers<[1], [0], [0], [1], [0, 0, 1, 1], [], []>} : vector<32x288xbf16>, vector<288x128xbf16>, vector<32x128xf32> -> vector<32x128xf32>
    %c1_60 = arith.constant 1 : index
    %c0_61 = arith.constant 0 : index
    %c0_62 = arith.constant 0 : index
    %66 = vector.load %arg9[%c1_60, %c0_61, %c0_62] : memref<3x32x72xbf16, #tpu.memory_space<vmem>>, vector<1x32x72xbf16>
    %67 = vector.shape_cast %66 : vector<1x32x72xbf16> to vector<32x72xbf16>
    %cst_63 = arith.constant dense<0.000000e+00> : vector<32x288xf32>
    %68 = tpu.matmul %67, %58, %cst_63 {dimension_numbers = #tpu.dot_dimension_numbers<[1], [0], [0], [1], [0, 0, 1, 1], [], []>} : vector<32x72xbf16>, vector<72x288xbf16>, vector<32x288xf32> -> vector<32x288xf32>
    %69 = arith.truncf %68 : vector<32x288xf32> to vector<32x288xbf16>
    %c1_64 = arith.constant 1 : index
    %c0_65 = arith.constant 0 : index
    %c0_66 = arith.constant 0 : index
    %70 = vector.load %arg8[%c1_64, %c0_65, %c0_66] : memref<3x288x128xbf16, #tpu.memory_space<vmem>>, vector<1x288x128xbf16>
    %71 = vector.shape_cast %70 : vector<1x288x128xbf16> to vector<288x128xbf16>
    %cst_67 = arith.constant dense<0.000000e+00> : vector<32x128xf32>
    %72 = tpu.matmul %69, %71, %cst_67 {dimension_numbers = #tpu.dot_dimension_numbers<[1], [0], [0], [1], [0, 0, 1, 1], [], []>} : vector<32x288xbf16>, vector<288x128xbf16>, vector<32x128xf32> -> vector<32x128xf32>
    %73 = arith.addf %65, %72 : vector<32x128xf32>
    %c2_68 = arith.constant 2 : index
    %c0_69 = arith.constant 0 : index
    %c0_70 = arith.constant 0 : index
    %74 = vector.load %arg9[%c2_68, %c0_69, %c0_70] : memref<3x32x72xbf16, #tpu.memory_space<vmem>>, vector<1x32x72xbf16>
    %75 = vector.shape_cast %74 : vector<1x32x72xbf16> to vector<32x72xbf16>
    %cst_71 = arith.constant dense<0.000000e+00> : vector<32x288xf32>
    %76 = tpu.matmul %75, %58, %cst_71 {dimension_numbers = #tpu.dot_dimension_numbers<[1], [0], [0], [1], [0, 0, 1, 1], [], []>} : vector<32x72xbf16>, vector<72x288xbf16>, vector<32x288xf32> -> vector<32x288xf32>
    %77 = arith.truncf %76 : vector<32x288xf32> to vector<32x288xbf16>
    %c2_72 = arith.constant 2 : index
    %c0_73 = arith.constant 0 : index
    %c0_74 = arith.constant 0 : index
    %78 = vector.load %arg8[%c2_72, %c0_73, %c0_74] : memref<3x288x128xbf16, #tpu.memory_space<vmem>>, vector<1x288x128xbf16>
    %79 = vector.shape_cast %78 : vector<1x288x128xbf16> to vector<288x128xbf16>
    %cst_75 = arith.constant dense<0.000000e+00> : vector<32x128xf32>
    %80 = tpu.matmul %77, %79, %cst_75 {dimension_numbers = #tpu.dot_dimension_numbers<[1], [0], [0], [1], [0, 0, 1, 1], [], []>} : vector<32x288xbf16>, vector<288x128xbf16>, vector<32x128xf32> -> vector<32x128xf32>
    %81 = arith.addf %73, %80 : vector<32x128xf32>
    %c0_76 = arith.constant 0 : index
    %c0_77 = arith.constant 0 : index
    %82 = vector.load %arg10[%c0_76, %c0_77] : memref<1x128xf32, #tpu.memory_space<vmem>>, vector<1x128xf32>
    %83 = vector.broadcast %82 : vector<1x128xf32> to vector<32x128xf32>
    %84 = arith.addf %81, %83 : vector<32x128xf32>
    %cst_78 = arith.constant 0.000000e+00 : f32
    %85 = vector.broadcast %cst_78 : f32 to vector<32x128xf32>
    %86 = arith.maximumf %84, %85 : vector<32x128xf32>
    %87 = arith.truncf %86 : vector<32x128xf32> to vector<32x128xbf16>
    %c0_79 = arith.constant 0 : index
    %c0_80 = arith.constant 0 : index
    %c0_81 = arith.constant 0 : index
    %88 = vector.load %arg12[%c0_79, %c0_80, %c0_81] : memref<4x8x32xbf16, #tpu.memory_space<vmem>>, vector<1x8x32xbf16>
    %89 = vector.shape_cast %88 : vector<1x8x32xbf16> to vector<8x32xbf16>
    %cst_82 = arith.constant dense<0.000000e+00> : vector<8x128xf32>
    %90 = tpu.matmul %89, %87, %cst_82 {dimension_numbers = #tpu.dot_dimension_numbers<[1], [0], [0], [1], [0, 0, 1, 1], [], []>} : vector<8x32xbf16>, vector<32x128xbf16>, vector<8x128xf32> -> vector<8x128xf32>
    %91 = arith.truncf %90 : vector<8x128xf32> to vector<8x128xbf16>
    %c0_83 = arith.constant 0 : index
    %c0_84 = arith.constant 0 : index
    %c0_85 = arith.constant 0 : index
    %92 = vector.load %arg11[%c0_83, %c0_84, %c0_85] : memref<4x128x128xbf16, #tpu.memory_space<vmem>>, vector<1x128x128xbf16>
    %93 = vector.shape_cast %92 : vector<1x128x128xbf16> to vector<128x128xbf16>
    %cst_86 = arith.constant dense<0.000000e+00> : vector<8x128xf32>
    %94 = tpu.matmul %91, %93, %cst_86 {dimension_numbers = #tpu.dot_dimension_numbers<[1], [0], [0], [1], [0, 0, 1, 1], [], []>} : vector<8x128xbf16>, vector<128x128xbf16>, vector<8x128xf32> -> vector<8x128xf32>
    %c1_87 = arith.constant 1 : index
    %c0_88 = arith.constant 0 : index
    %c0_89 = arith.constant 0 : index
    %95 = vector.load %arg12[%c1_87, %c0_88, %c0_89] : memref<4x8x32xbf16, #tpu.memory_space<vmem>>, vector<1x8x32xbf16>
    %96 = vector.shape_cast %95 : vector<1x8x32xbf16> to vector<8x32xbf16>
    %cst_90 = arith.constant dense<0.000000e+00> : vector<8x128xf32>
    %97 = tpu.matmul %96, %87, %cst_90 {dimension_numbers = #tpu.dot_dimension_numbers<[1], [0], [0], [1], [0, 0, 1, 1], [], []>} : vector<8x32xbf16>, vector<32x128xbf16>, vector<8x128xf32> -> vector<8x128xf32>
    %98 = arith.truncf %97 : vector<8x128xf32> to vector<8x128xbf16>
    %c1_91 = arith.constant 1 : index
    %c0_92 = arith.constant 0 : index
    %c0_93 = arith.constant 0 : index
    %99 = vector.load %arg11[%c1_91, %c0_92, %c0_93] : memref<4x128x128xbf16, #tpu.memory_space<vmem>>, vector<1x128x128xbf16>
    %100 = vector.shape_cast %99 : vector<1x128x128xbf16> to vector<128x128xbf16>
    %cst_94 = arith.constant dense<0.000000e+00> : vector<8x128xf32>
    %101 = tpu.matmul %98, %100, %cst_94 {dimension_numbers = #tpu.dot_dimension_numbers<[1], [0], [0], [1], [0, 0, 1, 1], [], []>} : vector<8x128xbf16>, vector<128x128xbf16>, vector<8x128xf32> -> vector<8x128xf32>
    %102 = arith.addf %94, %101 : vector<8x128xf32>
    %c2_95 = arith.constant 2 : index
    %c0_96 = arith.constant 0 : index
    %c0_97 = arith.constant 0 : index
    %103 = vector.load %arg12[%c2_95, %c0_96, %c0_97] : memref<4x8x32xbf16, #tpu.memory_space<vmem>>, vector<1x8x32xbf16>
    %104 = vector.shape_cast %103 : vector<1x8x32xbf16> to vector<8x32xbf16>
    %cst_98 = arith.constant dense<0.000000e+00> : vector<8x128xf32>
    %105 = tpu.matmul %104, %87, %cst_98 {dimension_numbers = #tpu.dot_dimension_numbers<[1], [0], [0], [1], [0, 0, 1, 1], [], []>} : vector<8x32xbf16>, vector<32x128xbf16>, vector<8x128xf32> -> vector<8x128xf32>
    %106 = arith.truncf %105 : vector<8x128xf32> to vector<8x128xbf16>
    %c2_99 = arith.constant 2 : index
    %c0_100 = arith.constant 0 : index
    %c0_101 = arith.constant 0 : index
    %107 = vector.load %arg11[%c2_99, %c0_100, %c0_101] : memref<4x128x128xbf16, #tpu.memory_space<vmem>>, vector<1x128x128xbf16>
    %108 = vector.shape_cast %107 : vector<1x128x128xbf16> to vector<128x128xbf16>
    %cst_102 = arith.constant dense<0.000000e+00> : vector<8x128xf32>
    %109 = tpu.matmul %106, %108, %cst_102 {dimension_numbers = #tpu.dot_dimension_numbers<[1], [0], [0], [1], [0, 0, 1, 1], [], []>} : vector<8x128xbf16>, vector<128x128xbf16>, vector<8x128xf32> -> vector<8x128xf32>
    %110 = arith.addf %102, %109 : vector<8x128xf32>
    %c3 = arith.constant 3 : index
    %c0_103 = arith.constant 0 : index
    %c0_104 = arith.constant 0 : index
    %111 = vector.load %arg12[%c3, %c0_103, %c0_104] : memref<4x8x32xbf16, #tpu.memory_space<vmem>>, vector<1x8x32xbf16>
    %112 = vector.shape_cast %111 : vector<1x8x32xbf16> to vector<8x32xbf16>
    %cst_105 = arith.constant dense<0.000000e+00> : vector<8x128xf32>
    %113 = tpu.matmul %112, %87, %cst_105 {dimension_numbers = #tpu.dot_dimension_numbers<[1], [0], [0], [1], [0, 0, 1, 1], [], []>} : vector<8x32xbf16>, vector<32x128xbf16>, vector<8x128xf32> -> vector<8x128xf32>
    %114 = arith.truncf %113 : vector<8x128xf32> to vector<8x128xbf16>
    %c3_106 = arith.constant 3 : index
    %c0_107 = arith.constant 0 : index
    %c0_108 = arith.constant 0 : index
    %115 = vector.load %arg11[%c3_106, %c0_107, %c0_108] : memref<4x128x128xbf16, #tpu.memory_space<vmem>>, vector<1x128x128xbf16>
    %116 = vector.shape_cast %115 : vector<1x128x128xbf16> to vector<128x128xbf16>
    %cst_109 = arith.constant dense<0.000000e+00> : vector<8x128xf32>
    %117 = tpu.matmul %114, %116, %cst_109 {dimension_numbers = #tpu.dot_dimension_numbers<[1], [0], [0], [1], [0, 0, 1, 1], [], []>} : vector<8x128xbf16>, vector<128x128xbf16>, vector<8x128xf32> -> vector<8x128xf32>
    %118 = arith.addf %110, %117 : vector<8x128xf32>
    %c0_110 = arith.constant 0 : index
    %c0_111 = arith.constant 0 : index
    %119 = vector.load %arg13[%c0_110, %c0_111] : memref<1x128xf32, #tpu.memory_space<vmem>>, vector<1x128xf32>
    %120 = vector.broadcast %119 : vector<1x128xf32> to vector<8x128xf32>
    %121 = arith.addf %118, %120 : vector<8x128xf32>
    %cst_112 = arith.constant 0.000000e+00 : f32
    %122 = vector.broadcast %cst_112 : f32 to vector<8x128xf32>
    %123 = arith.maximumf %121, %122 : vector<8x128xf32>
    %124 = arith.truncf %123 : vector<8x128xf32> to vector<8x128xbf16>
    %c0_113 = arith.constant 0 : index
    %c0_114 = arith.constant 0 : index
    %125 = vector.load %arg14[%c0_113, %c0_114] : memref<128x128xbf16, #tpu.memory_space<vmem>>, vector<128x128xbf16>
    %cst_115 = arith.constant dense<0.000000e+00> : vector<8x128xf32>
    %126 = tpu.matmul %124, %125, %cst_115 {dimension_numbers = #tpu.dot_dimension_numbers<[1], [0], [0], [1], [0, 0, 1, 1], [], []>} : vector<8x128xbf16>, vector<128x128xbf16>, vector<8x128xf32> -> vector<8x128xf32>
    %c0_116 = arith.constant 0 : index
    %c0_117 = arith.constant 0 : index
    %127 = vector.load %arg15[%c0_116, %c0_117] : memref<1x128xf32, #tpu.memory_space<vmem>>, vector<1x128xf32>
    %128 = vector.broadcast %127 : vector<1x128xf32> to vector<8x128xf32>
    %129 = arith.addf %126, %128 : vector<8x128xf32>
    %c0_118 = arith.constant 0 : index
    %c0_119 = arith.constant 0 : index
    %130 = vector.load %arg16[%c0_118, %c0_119] : memref<8x128xf32, #tpu.memory_space<vmem>>, vector<8x128xf32>
    tpu.vector_store %arg16[%c0_118, %c0_119], %129 {strides = array<i32>} : memref<8x128xf32, #tpu.memory_space<vmem>>, vector<8x128xf32>,
    return
  }
  func.func @transform_0(%arg0: i32) -> (i32, i32) {
    %c0_i32 = arith.constant 0 : i32
    %c0_i32_0 = arith.constant 0 : i32
    return %arg0, %c0_i32 : i32, i32
  }
  func.func @transform_1(%arg0: i32) -> (i32, i32, i32) {
    %c0_i32 = arith.constant 0 : i32
    %c0_i32_0 = arith.constant 0 : i32
    %c0_i32_1 = arith.constant 0 : i32
    %c0_i32_2 = arith.constant 0 : i32
    return %c0_i32, %c0_i32_0, %c0_i32_1 : i32, i32, i32
  }
  func.func @transform_2(%arg0: i32) -> (i32, i32, i32) {
    %c0_i32 = arith.constant 0 : i32
    %c0_i32_0 = arith.constant 0 : i32
    %c0_i32_1 = arith.constant 0 : i32
    %c0_i32_2 = arith.constant 0 : i32
    return %c0_i32, %c0_i32_0, %c0_i32_1 : i32, i32, i32
  }
  func.func @transform_3(%arg0: i32) -> (i32, i32) {
    %c0_i32 = arith.constant 0 : i32
    %c0_i32_0 = arith.constant 0 : i32
    %c0_i32_1 = arith.constant 0 : i32
    return %c0_i32, %c0_i32_0 : i32, i32
  }
  func.func @transform_4(%arg0: i32) -> (i32, i32, i32) {
    %c0_i32 = arith.constant 0 : i32
    %c0_i32_0 = arith.constant 0 : i32
    %c0_i32_1 = arith.constant 0 : i32
    %c0_i32_2 = arith.constant 0 : i32
    return %c0_i32, %c0_i32_0, %c0_i32_1 : i32, i32, i32
  }
  func.func @transform_5(%arg0: i32) -> (i32, i32, i32) {
    %c0_i32 = arith.constant 0 : i32
    %c0_i32_0 = arith.constant 0 : i32
    %c0_i32_1 = arith.constant 0 : i32
    %c0_i32_2 = arith.constant 0 : i32
    return %c0_i32, %c0_i32_0, %c0_i32_1 : i32, i32, i32
  }
  func.func @transform_6(%arg0: i32) -> (i32, i32) {
    %c0_i32 = arith.constant 0 : i32
    %c0_i32_0 = arith.constant 0 : i32
    %c0_i32_1 = arith.constant 0 : i32
    return %c0_i32, %c0_i32_0 : i32, i32
  }
  func.func @transform_7(%arg0: i32) -> (i32, i32, i32) {
    %c0_i32 = arith.constant 0 : i32
    %c0_i32_0 = arith.constant 0 : i32
    %c0_i32_1 = arith.constant 0 : i32
    %c0_i32_2 = arith.constant 0 : i32
    return %c0_i32, %c0_i32_0, %c0_i32_1 : i32, i32, i32
  }
  func.func @transform_8(%arg0: i32) -> (i32, i32, i32) {
    %c0_i32 = arith.constant 0 : i32
    %c0_i32_0 = arith.constant 0 : i32
    %c0_i32_1 = arith.constant 0 : i32
    %c0_i32_2 = arith.constant 0 : i32
    return %c0_i32, %c0_i32_0, %c0_i32_1 : i32, i32, i32
  }
  func.func @transform_9(%arg0: i32) -> (i32, i32) {
    %c0_i32 = arith.constant 0 : i32
    %c0_i32_0 = arith.constant 0 : i32
    %c0_i32_1 = arith.constant 0 : i32
    return %c0_i32, %c0_i32_0 : i32, i32
  }
  func.func @transform_10(%arg0: i32) -> (i32, i32, i32) {
    %c0_i32 = arith.constant 0 : i32
    %c0_i32_0 = arith.constant 0 : i32
    %c0_i32_1 = arith.constant 0 : i32
    %c0_i32_2 = arith.constant 0 : i32
    return %c0_i32, %c0_i32_0, %c0_i32_1 : i32, i32, i32
  }
  func.func @transform_11(%arg0: i32) -> (i32, i32, i32) {
    %c0_i32 = arith.constant 0 : i32
    %c0_i32_0 = arith.constant 0 : i32
    %c0_i32_1 = arith.constant 0 : i32
    %c0_i32_2 = arith.constant 0 : i32
    return %c0_i32, %c0_i32_0, %c0_i32_1 : i32, i32, i32
  }
  func.func @transform_12(%arg0: i32) -> (i32, i32) {
    %c0_i32 = arith.constant 0 : i32
    %c0_i32_0 = arith.constant 0 : i32
    %c0_i32_1 = arith.constant 0 : i32
    return %c0_i32, %c0_i32_0 : i32, i32
  }
  func.func @transform_13(%arg0: i32) -> (i32, i32) {
    %c0_i32 = arith.constant 0 : i32
    %c0_i32_0 = arith.constant 0 : i32
    %c0_i32_1 = arith.constant 0 : i32
    return %c0_i32, %c0_i32_0 : i32, i32
  }
  func.func @transform_14(%arg0: i32) -> (i32, i32) {
    %c0_i32 = arith.constant 0 : i32
    %c0_i32_0 = arith.constant 0 : i32
    %c0_i32_1 = arith.constant 0 : i32
    return %c0_i32, %c0_i32_0 : i32, i32
  }
  func.func @transform_15(%arg0: i32) -> (i32, i32) {
    %c0_i32 = arith.constant 0 : i32
    %c0_i32_0 = arith.constant 0 : i32
    return %arg0, %c0_i32 : i32, i32
  }
}

</mosaic_0001>

<bundles_post_ra>
// kernel: network_forward.1
= control target key start
LH: loop header
LB: loop body
LE: loop exit
PB: predicated region body
PF: predicated region fallthrough
CT: control target
= control target key end

     0   :  { %s15843_s18 = smov 0   ;;  %s20220_s0 = inlined_call_operand.vmem [shape: bf16[672,168], index: 0, kind: input, shape index: {}]   ;;  %s20221_s1 = inlined_call_operand.vmem [shape: bf16[3,168,640], index: 1, kind: input, shape index: {}]   ;;  %s20222_s2 = inlined_call_operand.vmem [shape: bf16[3,160,336], index: 2, kind: input, shape index: {}]   ;;  %s20223_s3 = inlined_call_operand.vmem [shape: f32[1,640], index: 3, kind: input, shape index: {}]   ;;  %s20224_s4 = inlined_call_operand.vmem [shape: bf16[3,640,288], index: 4, kind: input, shape index: {}]   ;;  %s20225_s5 = inlined_call_operand.vmem [shape: bf16[3,72,160], index: 5, kind: input, shape index: {}]   ;;  %s20226_s6 = inlined_call_operand.vmem [shape: f32[1,288], index: 6, kind: input, shape index: {}]   ;;  %s20227_s7 = inlined_call_operand.vmem [shape: bf16[3,288,128], index: 7, kind: input, shape index: {}]   ;;  %s20228_s8 = inlined_call_operand.vmem [shape: bf16[3,32,72], index: 8, kind: input, shape index: {}]   ;;  %s20229_s9 = inlined_call_operand.vmem [shape: f32[1,128], index: 9, kind: input, shape index: {}]   ;;  %s20230_s10 = inlined_call_operand.vmem [shape: bf16[4,128,128], index: 10, kind: input, shape index: {}]   ;;  %s20231_s11 = inlined_call_operand.vmem [shape: bf16[4,8,32], index: 11, kind: input, shape index: {}]   ;;  %s20232_s12 = inlined_call_operand.vmem [shape: f32[1,128], index: 12, kind: input, shape index: {}]   ;;  %s20233_s13 = inlined_call_operand.vmem [shape: bf16[128,128], index: 13, kind: input, shape index: {}]   ;;  %s20234_s14 = inlined_call_operand.vmem [shape: f32[1,128], index: 14, kind: input, shape index: {}]   ;;  %s20235_s15 = inlined_call_operand.vmem [shape: f32[16,128], index: 15, kind: output, shape index: {}]  }
   0x1 LB: > { %s15849_s19 = sadd.s32 4294967295, %s15758_s18   ;;  %p11749_p0 = scmp.ge.s32.totalorder %s15758_s18, 1  ;;  %s15758_s18 = sphi %s15843_s18, %s25_s18  }
   0x2   : > { %p439_p1 = scmp.lt.s32.totalorder %s15758_s18, 3 }
   0x4   : > { %p440_p2 = pnand %p11749_p0, %p439_p1 }
   0x6   : > { %443 = sbr.rel (%p440_p2) target bundleno = 3952 (0xf70), region = 80 }
   0xd   : > { %s487_s20 = smul.u32 42, %s15849_s19  ;;  %v20239_v0 = vmov 0   ;;  %v14747_v1 = vld [vmem:[%s20222_s2 + $0x4] ss:$12 sps:$4 sm:$0xff]   ;;  %vm941_vm0 = vcmask 654336   ;;  %vm2196_vm1 = vcmask 1043456  }
   0xe   : > { %1197 = vmatprep.mubr.bf16.mxu1 %v20239_v0  ;;  %1004 = vmatprep.mubr.bf16.mxu0 %v14747_v1  ;;  %v14712_v23 = vld [vmem:[%s20222_s2 + $0x98] ss:$12 sps:$4 sm:$0xff]   ;;  %v14741_v28 = vld [vmem:[%s20222_s2 + $0xb0] ss:$12 sps:$4 sm:$0xff]   ;;  %v14748_v33 = vld [vmem:[%s20222_s2 + $0xc8] ss:$12 sps:$4 sm:$0xff]  }
   0xf   : > { %p488_p3 = scmp.lt.s32.totalorder %s487_s20, 83  ;;  %v14752_v38 = vld [vmem:[%s20222_s2 + $0xe0] ss:$12 sps:$4 sm:$0xff]   ;;  %v14749_v50 = vld [vmem:[%s20222_s2 + $0x1c] ss:$12 sps:$4 sm:$0xff]   ;;  %vm2165_vm2 = vcmask 326656  }
  0x10   : > { %v14758_v41 = vld [vmem:[%s20222_s2 + $0xf4] ss:$12 sps:$4 sm:$0xff]   ;;  %v14751_v51 = vld [vmem:[%s20222_s2 + $0x18] ss:$12 sps:$4 sm:$0xff]   ;;  %v14755_v53 = vld [vmem:[%s20222_s2 + $0x30] ss:$12 sps:$4 sm:$0xff]  }
  0x11   : > { %s20412_s20 = smov (!%p488_p3, %s487_s20), 83  ;;  %v14745_v49 = vld [vmem:[%s20222_s2] ss:$12 sps:$4 sm:$0xff]   ;;  %v14756_v55 = vld [vmem:[%s20222_s2 + $0xf0] ss:$12 sps:$4 sm:$0xff]   ;;  %vm4984_vm3 = vcmask 261120  }
  0x12   : > { %s13416_s23 = sshll.u32 %s20412_s20, 3  ;;  %v14753_v52 = vld [vmem:[%s20222_s2 + $0x34] ss:$12 sps:$4 sm:$0xff]   ;;  %v14759_v54 = vld [vmem:[%s20222_s2 + $0x4c] ss:$12 sps:$4 sm:$0xff]   ;;  %vm15762_vm4 = vmmov 0  }
  0x13   : > { %s15861_s26 = scalar_lea.vmem %s20220_s0, %s13416_s23  ;;  %v14762_v56 = vld [vmem:[%s20222_s2 + $0x10c] ss:$12 sps:$4 sm:$0xff]   ;;  %v14761_v57 = vld [vmem:[%s20222_s2 + $0x48] ss:$12 sps:$4 sm:$0xff]   ;;  %v14765_v58 = vld [vmem:[%s20222_s2 + $0x64] ss:$12 sps:$4 sm:$0xff]  }
  0x14   : > { %v14680_v2 = vld [vmem:[%s15861_s26 + $0x4] ss:$8 sps:$4 sm:$0xff]   ;;  %v14684_v4 = vld [vmem:[%s15861_s26] ss:$8 sps:$4 sm:$0xff]   ;;  %v14686_v6 = vld [vmem:[%s15861_s26 + $0x14] ss:$8 sps:$4 sm:$0xff]  }
  0x15   : > { %v15865_v3 = vld [vmem:[%s15861_s26 + $0x104] ss:$8 sps:$4 sm:$0xff]   ;;  %972 = vmatprep.subr.bf16.mxu0 %v14680_v2  ;;  %v15869_v5 = vld [vmem:[%s15861_s26 + $0x100] ss:$8 sps:$4 sm:$0xff]   ;;  %v15875_v7 = vld [vmem:[%s15861_s26 + $0x114] ss:$8 sps:$4 sm:$0xff]  }
  0x16   : > { %14212 = vmatprep.subr.bf16.mxu1 %v15865_v3  ;;  %973 = vmatpush1.bf16.msra.mxu0 %v14684_v4  ;;  %v14690_v8 = vld [vmem:[%s15861_s26 + $0x10] ss:$8 sps:$4 sm:$0xff]   ;;  %v14692_v10 = vld [vmem:[%s15861_s26 + $0x24] ss:$8 sps:$4 sm:$0xff]   ;;  %v14696_v12 = vld [vmem:[%s15861_s26 + $0x20] ss:$8 sps:$4 sm:$0xff]  }
  0x17   : > { %14217 = vmatpush1.bf16.msra.mxu1 %v15869_v5  ;;  %974 = vmatprep.subr.bf16.mxu0 %v14686_v6  ;;  %v15879_v9 = vld [vmem:[%s15861_s26 + $0x110] ss:$8 sps:$4 sm:$0xff]   ;;  %v15884_v11 = vld [vmem:[%s15861_s26 + $0x124] ss:$8 sps:$4 sm:$0xff]   ;;  %v15888_v13 = vld [vmem:[%s15861_s26 + $0x120] ss:$8 sps:$4 sm:$0xff]  }
  0x18   : > { %14213 = vmatprep.subr.bf16.mxu1 %v15875_v7  ;;  %v14698_v14 = vld [vmem:[%s15861_s26 + $0x34] ss:$8 sps:$4 sm:$0xff]   ;;  %v14702_v16 = vld [vmem:[%s15861_s26 + $0x30] ss:$8 sps:$4 sm:$0xff]   ;;  %v14704_v18 = vld [vmem:[%s15861_s26 + $0x44] ss:$8 sps:$4 sm:$0xff]  }
  0x19   : > { %v15894_v15 = vld [vmem:[%s15861_s26 + $0x134] ss:$8 sps:$4 sm:$0xff]   ;;  %v15899_v17 = vld [vmem:[%s15861_s26 + $0x130] ss:$8 sps:$4 sm:$0xff]   ;;  %v15904_v19 = vld [vmem:[%s15861_s26 + $0x144] ss:$8 sps:$4 sm:$0xff]  }
  0x1a   : > { %975 = vmatpush1.bf16.msra.mxu0 %v14690_v8  ;;  %v14708_v20 = vld [vmem:[%s15861_s26 + $0x40] ss:$8 sps:$4 sm:$0xff]   ;;  %v14710_v22 = vld [vmem:[%s15861_s26 + $0x54] ss:$8 sps:$4 sm:$0xff]   ;;  %v14713_v24 = vld [vmem:[%s15861_s26 + $0x50] ss:$8 sps:$4 sm:$0xff]  }
  0x1b   : > { %14218 = vmatpush1.bf16.msra.mxu1 %v15879_v9  ;;  %976 = vmatprep.subr.bf16.mxu0 %v14692_v10  ;;  %v15909_v21 = vld [vmem:[%s15861_s26 + $0x140] ss:$8 sps:$4 sm:$0xff]   ;;  %v14714_v25 = vld [vmem:[%s15861_s26 + $0x64] ss:$8 sps:$4 sm:$0xff]   ;;  %v14717_v27 = vld [vmem:[%s15861_s26 + $0x74] ss:$8 sps:$4 sm:$0xff]  }
  0x1c   : > { %14214 = vmatprep.subr.bf16.mxu1 %v15884_v11  ;;  %v14716_v26 = vld [vmem:[%s15861_s26 + $0x60] ss:$8 sps:$4 sm:$0xff]   ;;  %v14719_v29 = vld [vmem:[%s15861_s26 + $0x70] ss:$8 sps:$4 sm:$0xff]   ;;  %v14720_v30 = vld [vmem:[%s15861_s26 + $0x84] ss:$8 sps:$4 sm:$0xff]  }
  0x1d   : > { %v14722_v31 = vld [vmem:[%s15861_s26 + $0x80] ss:$8 sps:$4 sm:$0xff]   ;;  %v14723_v32 = vld [vmem:[%s15861_s26 + $0x94] ss:$8 sps:$4 sm:$0xff]   ;;  %v14725_v34 = vld [vmem:[%s15861_s26 + $0x90] ss:$8 sps:$4 sm:$0xff]  }
  0x1e   : > { %977 = vmatpush1.bf16.msra.mxu0 %v14696_v12  ;;  %v14726_v35 = vld [vmem:[%s15861_s26 + $0xa4] ss:$8 sps:$4 sm:$0xff]   ;;  %v14728_v36 = vld [vmem:[%s15861_s26 + $0xa0] ss:$8 sps:$4 sm:$0xff]   ;;  %v14729_v37 = vld [vmem:[%s15861_s26 + $0xb4] ss:$8 sps:$4 sm:$0xff]  }
  0x1f   : > { %14219 = vmatpush1.bf16.msra.mxu1 %v15888_v13  ;;  %978 = vmatprep.subr.bf16.mxu0 %v14698_v14  ;;  %v14731_v39 = vld [vmem:[%s15861_s26 + $0xb0] ss:$8 sps:$4 sm:$0xff]   ;;  %v14732_v40 = vld [vmem:[%s15861_s26 + $0xc4] ss:$8 sps:$4 sm:$0xff]   ;;  %v14734_v42 = vld [vmem:[%s15861_s26 + $0xc0] ss:$8 sps:$4 sm:$0xff]  }
  0x20   : > { %14215 = vmatprep.subr.bf16.mxu1 %v15894_v15  ;;  %v14735_v43 = vld [vmem:[%s15861_s26 + $0xd4] ss:$8 sps:$4 sm:$0xff]   ;;  %v14737_v44 = vld [vmem:[%s15861_s26 + $0xd0] ss:$8 sps:$4 sm:$0xff]   ;;  %v14738_v45 = vld [vmem:[%s15861_s26 + $0xe4] ss:$8 sps:$4 sm:$0xff]  }
  0x21   : > { %v14740_v46 = vld [vmem:[%s15861_s26 + $0xe0] ss:$8 sps:$4 sm:$0xff]   ;;  %v14742_v47 = vld [vmem:[%s15861_s26 + $0xf4] ss:$8 sps:$4 sm:$0xff]   ;;  %v14744_v48 = vld [vmem:[%s15861_s26 + $0xf0] ss:$8 sps:$4 sm:$0xff]  }
  0x22   : > { %979 = vmatpush1.bf16.msra.mxu0 %v14702_v16  ;;  %v14764_v59 = vld [vmem:[%s20222_s2 + $0x108] ss:$12 sps:$4 sm:$0xff]   ;;  %v14768_v60 = vld [vmem:[%s20222_s2 + $0x124] ss:$12 sps:$4 sm:$0xff]   ;;  %v14767_v61 = vld [vmem:[%s20222_s2 + $0x60] ss:$12 sps:$4 sm:$0xff]  }
  0x23   : > { %14220 = vmatpush1.bf16.msra.mxu1 %v15899_v17  ;;  %980 = vmatprep.subr.bf16.mxu0 %v14704_v18  ;;  %v14771_v62 = vld [vmem:[%s20222_s2 + $0x7c] ss:$12 sps:$4 sm:$0xff]   ;;  %v14770_v63 = vld [vmem:[%s20222_s2 + $0x120] ss:$12 sps:$4 sm:$0xff]   ;;  %vm9817_vm5 = vcmask 588800   ;;  %p494_p4 = scmp.lt.s32.totalorder %s15849_s19, 1 }
  0x24   : > { %14216 = vmatprep.subr.bf16.mxu1 %v15904_v19  ;;  %v14774_v1 = vld [vmem:[%s20222_s2 + $0x13c] ss:$12 sps:$4 sm:$0xff]  }
  0x25   : > { %s20414_s19 = smov (!%p494_p4, %s15849_s19), 1 }
  0x26   : > { %981 = vmatpush1.bf16.msra.mxu0 %v14708_v20  ;;  %s11752_s20 = sshll.u32 %s20414_s19, 3 }
  0x27   : > { %14221 = vmatpush1.bf16.msra.mxu1 %v15909_v21  ;;  %982 = vmatprep.subr.bf16.mxu0 %v14710_v22  ;;  %s497_s25 = scalar_lea.vmem %s20235_s15, %s11752_s20 }
  0x28   : > { %1542 = vmatprep.subr.bf16.mxu1 %v14680_v2  ;;  %v14773_v2 = vld [vmem:[%s20222_s2 + $0x78] ss:$12 sps:$4 sm:$0xff]  }
  0x2a   : > { %11831 = vmatmul.mubr.msk.bf16.vlgmr.msra.gmra.mrb[0].mxu1 %vm941_vm0, %v14712_v23  ;;  %983 = vmatpush1.bf16.msra.mxu0 %v14713_v24  ;;  %v14804_v23 = vld [vmem:[%s20222_s2 + $0x1cc] ss:$12 sps:$4 sm:$0xff]  }
  0x2b   : > { %1543 = vmatpush1.bf16.msra.mxu1 %v14684_v4  ;;  %984 = vmatprep.subr.bf16.mxu0 %v14714_v25  ;;  %v14776_v4 = vld [vmem:[%s20222_s2 + $0x138] ss:$12 sps:$4 sm:$0xff]  }
  0x2c   : > { %1544 = vmatprep.subr.bf16.mxu1 %v14686_v6  ;;  %1207 = vmatprep.mubr.bf16.mxu1 %v20239_v0  ;;  %v14779_v6 = vld [vmem:[%s20222_s2 + $0x90] ss:$12 sps:$4 sm:$0xff]  }
  0x2e   : > { %985 = vmatpush1.bf16.msra.mxu0 %v14716_v26 }
  0x2f   : > { %1545 = vmatpush1.bf16.msra.mxu1 %v14690_v8  ;;  %986 = vmatprep.subr.bf16.mxu0 %v14717_v27  ;;  %v14782_v8 = vld [vmem:[%s20222_s2 + $0x150] ss:$12 sps:$4 sm:$0xff]  }
  0x30   : > { %1546 = vmatprep.subr.bf16.mxu1 %v14692_v10  ;;  %v14785_v10 = vld [vmem:[%s20222_s2 + $0xa8] ss:$12 sps:$4 sm:$0xff]  }
  0x32   : > { %11832 = vmatmul.mubr.msk.bf16.gmra.mrb[4].mxu1 %vm941_vm0, %v14741_v28  ;;  %987 = vmatpush1.bf16.msra.mxu0 %v14719_v29  ;;  %v14820_v28 = vld [vmem:[%s20222_s2 + $0x50] ss:$12 sps:$4 sm:$0xff]  }
  0x33   : > { %1547 = vmatpush1.bf16.msra.mxu1 %v14696_v12  ;;  %988 = vmatprep.subr.bf16.mxu0 %v14720_v30  ;;  %v14788_v12 = vld [vmem:[%s20222_s2 + $0x168] ss:$12 sps:$4 sm:$0xff]  }
  0x34   : > { %1548 = vmatprep.subr.bf16.mxu1 %v14698_v14  ;;  %1217 = vmatprep.mubr.bf16.mxu1 %v20239_v0  ;;  %v14791_v14 = vld [vmem:[%s20222_s2 + $0xc0] ss:$12 sps:$4 sm:$0xff]  }
  0x36   : > { %989 = vmatpush1.bf16.msra.mxu0 %v14722_v31 }
  0x37   : > { %1549 = vmatpush1.bf16.msra.mxu1 %v14702_v16  ;;  %990 = vmatprep.subr.bf16.mxu0 %v14723_v32  ;;  %v14794_v16 = vld [vmem:[%s20222_s2 + $0x180] ss:$12 sps:$4 sm:$0xff]  }
  0x38   : > { %1550 = vmatprep.subr.bf16.mxu1 %v14704_v18  ;;  %v14797_v18 = vld [vmem:[%s20222_s2 + $0xd8] ss:$12 sps:$4 sm:$0xff]  }
  0x3a   : > { %11833 = vmatmul.mubr.msk.bf16.gmra.mrb[8].mxu1 %vm941_vm0, %v14748_v33  ;;  %991 = vmatpush1.bf16.msra.mxu0 %v14725_v34  ;;  %v14810_v33 = vld [vmem:[%s20222_s2 + $0x140] ss:$12 sps:$4 sm:$0xff]  }
  0x3b   : > { %1551 = vmatpush1.bf16.msra.mxu1 %v14708_v20  ;;  %992 = vmatprep.subr.bf16.mxu0 %v14726_v35  ;;  %v14801_v20 = vld [vmem:[%s20222_s2 + $0x1b4] ss:$12 sps:$4 sm:$0xff]  }
  0x3c   : > { %1552 = vmatprep.subr.bf16.mxu1 %v14710_v22  ;;  %1227 = vmatprep.mubr.bf16.mxu1 %v20239_v0  ;;  %v14803_v22 = vld [vmem:[%s20222_s2 + $0x1b0] ss:$12 sps:$4 sm:$0xff]  }
  0x3e   : > { %993 = vmatpush1.bf16.msra.mxu0 %v14728_v36 }
  0x3f   : > { %1553 = vmatpush1.bf16.msra.mxu1 %v14713_v24  ;;  %994 = vmatprep.subr.bf16.mxu0 %v14729_v37  ;;  %v14818_v24 = vld [vmem:[%s20222_s2 + $0x20] ss:$12 sps:$4 sm:$0xff]  }
  0x40   : > { %1554 = vmatprep.subr.bf16.mxu1 %v14714_v25  ;;  %v14806_v25 = vld [vmem:[%s20222_s2 + $0x1c8] ss:$12 sps:$4 sm:$0xff]  }
  0x42   : > { %11834 = vmatmul.mubr.msk.bf16.gmra.mrb[12].mxu1 %vm941_vm0, %v14752_v38  ;;  %995 = vmatpush1.bf16.msra.mxu0 %v14731_v39  ;;  %v14828_v38 = vld [vmem:[%s20221_s1 + $0x1b0] ss:$20 sps:$4 sm:$0xff]  }
  0x43   : > { %1555 = vmatpush1.bf16.msra.mxu1 %v14716_v26  ;;  %996 = vmatprep.subr.bf16.mxu0 %v14732_v40  ;;  %v14819_v26 = vld [vmem:[%s20222_s2 + $0x38] ss:$12 sps:$4 sm:$0xff]  }
  0x44   : > { %1556 = vmatprep.subr.bf16.mxu1 %v14717_v27  ;;  %1574 = vmatprep.mubr.bf16.mxu1 %v14758_v41  ;;  %v14807_v27 = vld [vmem:[%s20222_s2 + $0xf8] ss:$12 sps:$4 sm:$0xff]  }
  0x45   : > { %v14831_v41 = vld [vmem:[%s20221_s1 + $0x1d0] ss:$20 sps:$4 sm:$0xff]  }
  0x46   : > { %997 = vmatpush1.bf16.msra.mxu0 %v14734_v42 }
  0x47   : > { %1557 = vmatpush1.bf16.msra.mxu1 %v14719_v29  ;;  %998 = vmatprep.subr.bf16.mxu0 %v14735_v43  ;;  %v14808_v29 = vld [vmem:[%s20222_s2 + $0x110] ss:$12 sps:$4 sm:$0xff]  }
  0x48   : > { %1558 = vmatprep.subr.bf16.mxu1 %v14720_v30  ;;  %v14821_v30 = vld [vmem:[%s20222_s2 + $0x68] ss:$12 sps:$4 sm:$0xff]  }
  0x4a   : > { %999 = vmatpush1.bf16.msra.mxu0 %v14737_v44 }
  0x4b   : > { %1559 = vmatpush1.bf16.msra.mxu1 %v14722_v31  ;;  %1000 = vmatprep.subr.bf16.mxu0 %v14738_v45  ;;  %v14809_v31 = vld [vmem:[%s20222_s2 + $0x128] ss:$12 sps:$4 sm:$0xff]  }
  0x4c   : > { %1560 = vmatprep.subr.bf16.mxu1 %v14723_v32  ;;  %v14822_v32 = vld [vmem:[%s20222_s2 + $0x80] ss:$12 sps:$4 sm:$0xff]  }
  0x4e   : > { %1001 = vmatpush1.bf16.msra.mxu0 %v14740_v46 }
  0x4f   : > { %1561 = vmatpush1.bf16.msra.mxu1 %v14725_v34  ;;  %1002 = vmatprep.subr.bf16.mxu0 %v14742_v47  ;;  %v14811_v34 = vld [vmem:[%s20222_s2 + $0x158] ss:$12 sps:$4 sm:$0xff]  }
  0x50   : > { %1562 = vmatprep.subr.bf16.mxu1 %v14726_v35  ;;  %v14812_v35 = vld [vmem:[%s20222_s2 + $0x170] ss:$12 sps:$4 sm:$0xff]  }
  0x52   : > { %1003 = vmatpush1.bf16.msra.mxu0 %v14744_v48 }
  0x53   : > { %1563 = vmatpush1.bf16.msra.mxu1 %v14728_v36  ;;  %1105 = vmatprep.subr.bf16.mxu0 %v15865_v3  ;;  %v14813_v36 = vld [vmem:[%s20222_s2 + $0x188] ss:$12 sps:$4 sm:$0xff]  }
  0x54   : > { %1564 = vmatprep.subr.bf16.mxu1 %v14729_v37  ;;  %v14825_v37 = vld [vmem:[%s20221_s1 + $0x1a8] ss:$20 sps:$4 sm:$0xff]  }
  0x55   : > { %1005 = vmatmul.mubr.bf16.vlgmr.msra.gmra.mrb[0].mxu0 %v14745_v49  ;;  %v14838_v49 = vld [vmem:[%s20221_s1 + $0x1fc] ss:$20 sps:$4 sm:$0xff]  }
  0x56   : > { %1014 = vmatprep.mubr.bf16.mxu0 %v14749_v50  ;;  %1106 = vmatpush1.bf16.msra.mxu0 %v15869_v5  ;;  %v14843_v50 = vld [vmem:[%s20221_s1 + $0x220] ss:$20 sps:$4 sm:$0xff]  }
  0x57   : > { %1565 = vmatpush1.bf16.msra.mxu1 %v14731_v39  ;;  %1107 = vmatprep.subr.bf16.mxu0 %v15875_v7  ;;  %v14823_v39 = vld [vmem:[%s20221_s1 + $0x1a4] ss:$20 sps:$4 sm:$0xff]  }
  0x58   : > { %1566 = vmatprep.subr.bf16.mxu1 %v14732_v40  ;;  %v14826_v40 = vld [vmem:[%s20221_s1 + $0x1ac] ss:$20 sps:$4 sm:$0xff]  }
  0x5a   : > { %1108 = vmatpush1.bf16.msra.mxu0 %v15879_v9 }
  0x5b   : > { %1567 = vmatpush1.bf16.msra.mxu1 %v14734_v42  ;;  %1109 = vmatprep.subr.bf16.mxu0 %v15884_v11  ;;  %v14834_v42 = vld [vmem:[%s20221_s1 + $0x1d8] ss:$20 sps:$4 sm:$0xff]  }
  0x5c   : > { %1568 = vmatprep.subr.bf16.mxu1 %v14735_v43  ;;  %v14829_v43 = vld [vmem:[%s20221_s1 + $0x1cc] ss:$20 sps:$4 sm:$0xff]  }
  0x5d   : > { %1015 = vmatmul.mubr.bf16.gmra.mrb[4].mxu0 %v14751_v51  ;;  %v14846_v51 = vld [vmem:[%s20221_s1 + $0x228] ss:$20 sps:$4 sm:$0xff]  }
  0x5e   : > { %1024 = vmatprep.mubr.bf16.mxu0 %v14753_v52  ;;  %1110 = vmatpush1.bf16.msra.mxu0 %v15888_v13  ;;  %v14841_v52 = vld [vmem:[%s20221_s1 + $0x21c] ss:$20 sps:$4 sm:$0xff]  }
  0x5f   : > { %1569 = vmatpush1.bf16.msra.mxu1 %v14737_v44  ;;  %1111 = vmatprep.subr.bf16.mxu0 %v15894_v15  ;;  %v14832_v44 = vld [vmem:[%s20221_s1 + $0x1d4] ss:$20 sps:$4 sm:$0xff]  }
  0x60   : > { %1570 = vmatprep.subr.bf16.mxu1 %v14738_v45  ;;  %v14814_v45 = vld [vmem:[%s20222_s2 + $0x1a0] ss:$12 sps:$4 sm:$0xff]  }
  0x62   : > { %1112 = vmatpush1.bf16.msra.mxu0 %v15899_v17 }
  0x63   : > { %1571 = vmatpush1.bf16.msra.mxu1 %v14740_v46  ;;  %1113 = vmatprep.subr.bf16.mxu0 %v15904_v19  ;;  %v14837_v46 = vld [vmem:[%s20221_s1 + $0x1f8] ss:$20 sps:$4 sm:$0xff]  }
  0x64   : > { %1572 = vmatprep.subr.bf16.mxu1 %v14742_v47  ;;  %v14840_v47 = vld [vmem:[%s20221_s1 + $0x200] ss:$20 sps:$4 sm:$0xff]  }
  0x65   : > { %1025 = vmatmul.mubr.bf16.gmra.mrb[8].mxu0 %v14755_v53  ;;  %v14844_v53 = vld [vmem:[%s20221_s1 + $0x224] ss:$20 sps:$4 sm:$0xff]  }
  0x66   : > { %1034 = vmatprep.mubr.bf16.mxu0 %v14759_v54  ;;  %1114 = vmatpush1.bf16.msra.mxu0 %v15909_v21  ;;  %v14815_v54 = vld [vmem:[%s20222_s2 + $0x1b8] ss:$12 sps:$4 sm:$0xff]  }
  0x67   : > { %1573 = vmatpush1.bf16.msra.mxu1 %v14744_v48  ;;  %2212 = vmatprep.subr.bf16.mxu0 %v14825_v37  ;;  %v14835_v48 = vld [vmem:[%s20221_s1 + $0x1f4] ss:$20 sps:$4 sm:$0xff]  }
  0x68   : > { %1675 = vmatprep.subr.bf16.mxu1 %v15865_v3  ;;  %v14777_v3 = vld [vmem:[%s20222_s2 + $0x94] ss:$12 sps:$4 sm:$0xff]  }
  0x6a   : > { %1575 = vmatmul.mubr.bf16.vlgmr.msra.gmra.mrb[16].mxu1 %v14756_v55  ;;  %v14849_v55 = vld [vmem:[%s20221_s1 + $0x248] ss:$20 sps:$4 sm:$0xff]  }
  0x6b   : > { %1676 = vmatpush1.bf16.msra.mxu1 %v15869_v5  ;;  %1584 = vmatprep.mubr.bf16.mxu1 %v14762_v56  ;;  %v14780_v5 = vld [vmem:[%s20222_s2 + $0x154] ss:$12 sps:$4 sm:$0xff]   ;;  %v14852_v56 = vld [vmem:[%s20221_s1 + $0x250] ss:$20 sps:$4 sm:$0xff]  }
  0x6c   : > { %1677 = vmatprep.subr.bf16.mxu1 %v15875_v7  ;;  %v14783_v7 = vld [vmem:[%s20222_s2 + $0xac] ss:$12 sps:$4 sm:$0xff]  }
  0x6d   : > { %1035 = vmatmul.mubr.bf16.gmra.mrb[12].mxu0 %v14761_v57  ;;  %v14847_v57 = vld [vmem:[%s20221_s1 + $0x244] ss:$20 sps:$4 sm:$0xff]  }
  0x6e   : > { %1044 = vmatprep.mubr.bf16.mxu0 %v14765_v58  ;;  %v14850_v58 = vld [vmem:[%s20221_s1 + $0x24c] ss:$20 sps:$4 sm:$0xff]  }
  0x6f   : > { %1678 = vmatpush1.bf16.msra.mxu1 %v15879_v9  ;;  %v14786_v9 = vld [vmem:[%s20222_s2 + $0x16c] ss:$12 sps:$4 sm:$0xff]  }
  0x70   : > { %1679 = vmatprep.subr.bf16.mxu1 %v15884_v11  ;;  %v14789_v11 = vld [vmem:[%s20222_s2 + $0xc4] ss:$12 sps:$4 sm:$0xff]  }
  0x72   : > { %1585 = vmatmul.mubr.bf16.gmra.mrb[20].mxu1 %v14764_v59  ;;  %v14855_v59 = vld [vmem:[%s20221_s1 + $0x270] ss:$20 sps:$4 sm:$0xff]  }
  0x73   : > { %1594 = vmatprep.mubr.bf16.mxu1 %v14768_v60  ;;  %1680 = vmatpush1.bf16.msra.mxu1 %v15888_v13  ;;  %v14792_v13 = vld [vmem:[%s20222_s2 + $0x184] ss:$12 sps:$4 sm:$0xff]   ;;  %v14858_v60 = vld [vmem:[%s20221_s1 + $0x278] ss:$20 sps:$4 sm:$0xff]  }
  0x74   : > { %1681 = vmatprep.subr.bf16.mxu1 %v15894_v15  ;;  %v14795_v15 = vld [vmem:[%s20222_s2 + $0xdc] ss:$12 sps:$4 sm:$0xff]  }
  0x75   : > { %1045 = vmatmul.mubr.bf16.gmra.mrb[16].mxu0 %v14767_v61  ;;  %v14853_v61 = vld [vmem:[%s20221_s1 + $0x26c] ss:$20 sps:$4 sm:$0xff]  }
  0x76   : > { %1054 = vmatprep.mubr.bf16.mxu0 %v14771_v62  ;;  %v14856_v62 = vld [vmem:[%s20221_s1 + $0x274] ss:$20 sps:$4 sm:$0xff]  }
  0x77   : > { %1682 = vmatpush1.bf16.msra.mxu1 %v15899_v17  ;;  %v14798_v17 = vld [vmem:[%s20222_s2 + $0x19c] ss:$12 sps:$4 sm:$0xff]  }
  0x78   : > { %1683 = vmatprep.subr.bf16.mxu1 %v15904_v19  ;;  %v14800_v19 = vld [vmem:[%s20222_s2 + $0x198] ss:$12 sps:$4 sm:$0xff]  }
  0x7a   : > { %1595 = vmatmul.mubr.bf16.gmra.mrb[24].mxu1 %v14770_v63  ;;  %v14861_v63 = vld [vmem:[%s20221_s1 + $0x298] ss:$20 sps:$4 sm:$0xff]  }
  0x7b   : > { %1604 = vmatprep.mubr.bf16.mxu1 %v14774_v1  ;;  %1684 = vmatpush1.bf16.msra.mxu1 %v15909_v21  ;;  %v14817_v21 = vld [vmem:[%s20222_s2 + $0x8] ss:$12 sps:$4 sm:$0xff]  }
  0x7c   : > { %2345 = vmatprep.subr.bf16.mxu1 %v14828_v38  ;;  %v14864_v1 = vld [vmem:[%s20221_s1 + $0x2a0] ss:$20 sps:$4 sm:$0xff]  }
  0x7d   : > { %1055 = vmatmul.mubr.bf16.gmra.mrb[20].mxu0 %v14773_v2  ;;  %v14816_v2 = vld [vmem:[%s20222_s2 + $0x1d0] ss:$12 sps:$4 sm:$0xff]  }
  0x7e   : > { %1064 = vmatprep.mubr.bf16.mxu0 %v14777_v3 }
  0x82   : > { %1605 = vmatmul.mubr.bf16.gmra.mrb[28].mxu1 %v14776_v4  ;;  %v14859_v4 = vld [vmem:[%s20221_s1 + $0x294] ss:$20 sps:$4 sm:$0xff]  }
  0x83   : > { %1614 = vmatprep.mubr.bf16.mxu1 %v14780_v5  ;;  %v14862_v5 = vld [vmem:[%s20221_s1 + $0x29c] ss:$20 sps:$4 sm:$0xff]  }
  0x85   : > { %1065 = vmatmul.mubr.bf16.gmra.mrb[24].mxu0 %v14779_v6 }
  0x86   : > { %1074 = vmatprep.mubr.bf16.mxu0 %v14783_v7  ;;  %v14867_v7 = vld [vmem:[%s20221_s1 + $0x2c0] ss:$20 sps:$4 sm:$0xff]  }
  0x8a   : > { %1615 = vmatmul.mubr.bf16.gmra.mrb[32].mxu1 %v14782_v8  ;;  %v14870_v8 = vld [vmem:[%s20221_s1 + $0x2c8] ss:$20 sps:$4 sm:$0xff]  }
  0x8b   : > { %1624 = vmatprep.mubr.bf16.mxu1 %v14786_v9 }
  0x8d   : > { %1075 = vmatmul.mubr.bf16.gmra.mrb[28].mxu0 %v14785_v10  ;;  %v14865_v10 = vld [vmem:[%s20221_s1 + $0x2bc] ss:$20 sps:$4 sm:$0xff]  }
  0x8e   : > { %1084 = vmatprep.mubr.bf16.mxu0 %v14789_v11  ;;  %v14868_v11 = vld [vmem:[%s20221_s1 + $0x2c4] ss:$20 sps:$4 sm:$0xff]  }
  0x92   : > { %1625 = vmatmul.mubr.bf16.gmra.mrb[36].mxu1 %v14788_v12 }
  0x93   : > { %1634 = vmatprep.mubr.bf16.mxu1 %v14792_v13  ;;  %v14873_v13 = vld [vmem:[%s20221_s1 + $0x2e8] ss:$20 sps:$4 sm:$0xff]  }
  0x95   : > { %1085 = vmatmul.mubr.bf16.gmra.mrb[32].mxu0 %v14791_v14  ;;  %v14876_v14 = vld [vmem:[%s20221_s1 + $0x2f0] ss:$20 sps:$4 sm:$0xff]  }
  0x96   : > { %1094 = vmatprep.mubr.bf16.mxu0 %v14795_v15  ;;  %v14871_v15 = vld [vmem:[%s20221_s1 + $0x2e4] ss:$20 sps:$4 sm:$0xff]  }
  0x9a   : > { %1635 = vmatmul.mubr.bf16.gmra.mrb[40].mxu1 %v14794_v16  ;;  %v14874_v16 = vld [vmem:[%s20221_s1 + $0x2ec] ss:$20 sps:$4 sm:$0xff]  }
  0x9b   : > { %1644 = vmatprep.mubr.bf16.mxu1 %v14798_v17  ;;  %v14879_v17 = vld [vmem:[%s20221_s1 + $0x310] ss:$20 sps:$4 sm:$0xff]  }
  0x9d   : > { %1095 = vmatmul.mubr.bf16.gmra.mrb[36].mxu0 %v14797_v18  ;;  %v14882_v18 = vld [vmem:[%s20221_s1 + $0x318] ss:$20 sps:$4 sm:$0xff]  }
  0x9e   : > { %1137 = vmatprep.mubr.bf16.mxu0 %v20239_v0 }
  0xa2   : > { %1645 = vmatmul.mubr.bf16.gmra.mrb[44].mxu1 %v14800_v19 }
  0xa3   : > { %1654 = vmatprep.mubr.bf16.mxu1 %v14801_v20 }
  0xa5   : > { %11825 = vmatmul.mubr.msk.bf16.vlgmr.msra.gmra.mrb[0].mxu0 %vm941_vm0, %v14817_v21 }
  0xa6   : > { %1147 = vmatprep.mubr.bf16.mxu0 %v20239_v0  ;;  %2213 = vmatpush1.bf16.msra.mxu0 %v14823_v39 }
  0xa7   : > { %2214 = vmatprep.subr.bf16.mxu0 %v14831_v41  ;;  %v14894_v41 = vld [vmem:[%s20221_s1 + $0xc] ss:$20 sps:$4 sm:$0xff]  }
  0xaa   : > { %1655 = vmatmul.mubr.bf16.gmra.mrb[48].mxu1 %v14803_v22  ;;  %2215 = vmatpush1.bf16.msra.mxu0 %v14829_v43  ;;  %v14877_v22 = vld [vmem:[%s20221_s1 + $0x30c] ss:$20 sps:$4 sm:$0xff]  }
  0xab   : > { %1664 = vmatprep.mubr.bf16.mxu1 %v14804_v23  ;;  %2216 = vmatprep.subr.bf16.mxu0 %v14837_v46  ;;  %v14880_v23 = vld [vmem:[%s20221_s1 + $0x314] ss:$20 sps:$4 sm:$0xff]  }
  0xad   : > { %11826 = vmatmul.mubr.msk.bf16.gmra.mrb[4].mxu0 %vm941_vm0, %v14818_v24 }
  0xae   : > { %1157 = vmatprep.mubr.bf16.mxu0 %v20239_v0  ;;  %2217 = vmatpush1.bf16.msra.mxu0 %v14835_v48 }
  0xaf   : > { %2218 = vmatprep.subr.bf16.mxu0 %v14843_v50 }
  0xb2   : > { %1665 = vmatmul.mubr.bf16.gmra.mrb[52].mxu1 %v14806_v25  ;;  %2219 = vmatpush1.bf16.msra.mxu0 %v14841_v52 }
  0xb3   : > { %1707 = vmatprep.mubr.bf16.mxu1 %v20239_v0  ;;  %2220 = vmatprep.subr.bf16.mxu0 %v14849_v55 }
  0xb5   : > { %11827 = vmatmul.mubr.msk.bf16.gmra.mrb[8].mxu0 %vm941_vm0, %v14819_v26  ;;  %v11975_v26 = vld [vmem:[%s20221_s1 + $0x334] sm:$0xff] }
  0xb6   : > { %1167 = vmatprep.mubr.bf16.mxu0 %v20239_v0  ;;  %2221 = vmatpush1.bf16.msra.mxu0 %v14847_v57 }
  0xb7   : > { %2222 = vmatprep.subr.bf16.mxu0 %v14855_v59 }
  0xba   : > { %11905 = vmatmul.mubr.msk.bf16.vlgmr.msra.gmra.mrb[16].mxu1 %vm941_vm0, %v14807_v27  ;;  %2223 = vmatpush1.bf16.msra.mxu0 %v14853_v61  ;;  %v11976_v27 = vld [vmem:[%s20221_s1 + $0x33c] sm:$0xff] }
  0xbb   : > { %1717 = vmatprep.mubr.bf16.mxu1 %v20239_v0  ;;  %2346 = vmatpush1.bf16.msra.mxu1 %v14826_v40 }
  0xbc   : > { %2347 = vmatprep.subr.bf16.mxu1 %v14834_v42  ;;  %2224 = vmatprep.subr.bf16.mxu0 %v14861_v63 }
  0xbd   : > { %11828 = vmatmul.mubr.msk.bf16.gmra.mrb[12].mxu0 %vm941_vm0, %v14820_v28 }
  0xbe   : > { %1177 = vmatprep.mubr.bf16.mxu0 %v20239_v0  ;;  %2225 = vmatpush1.bf16.msra.mxu0 %v14859_v4 }
  0xbf   : > { %2348 = vmatpush1.bf16.msra.mxu1 %v14832_v44  ;;  %2226 = vmatprep.subr.bf16.mxu0 %v14867_v7 }
  0xc0   : > { %2349 = vmatprep.subr.bf16.mxu1 %v14840_v47 }
  0xc2   : > { %11906 = vmatmul.mubr.msk.bf16.gmra.mrb[20].mxu1 %vm941_vm0, %v14808_v29  ;;  %2227 = vmatpush1.bf16.msra.mxu0 %v14865_v10  ;;  %v12029_v29 = vcombine.high %v11975_v26, %v11975_v26 }
  0xc3   : > { %1727 = vmatprep.mubr.bf16.mxu1 %v20239_v0  ;;  %2350 = vmatpush1.bf16.msra.mxu1 %v14838_v49 }
  0xc4   : > { %2351 = vmatprep.subr.bf16.mxu1 %v14846_v51  ;;  %2228 = vmatprep.subr.bf16.mxu0 %v14873_v13 }
  0xc5   : > { %11829 = vmatmul.mubr.msk.bf16.gmra.mrb[16].mxu0 %vm941_vm0, %v14821_v30  ;;  %v12031_v30 = vcombine.high %v11976_v27, %v11976_v27 }
  0xc6   : > { %1187 = vmatprep.mubr.bf16.mxu0 %v20239_v0  ;;  %2229 = vmatpush1.bf16.msra.mxu0 %v14871_v15 }
  0xc7   : > { %2352 = vmatpush1.bf16.msra.mxu1 %v14844_v53  ;;  %2230 = vmatprep.subr.bf16.mxu0 %v14879_v17 }
  0xc8   : > { %2353 = vmatprep.subr.bf16.mxu1 %v14852_v56 }
  0xca   : > { %11907 = vmatmul.mubr.msk.bf16.gmra.mrb[24].mxu1 %vm941_vm0, %v14809_v31  ;;  %2231 = vmatpush1.bf16.msra.mxu0 %v14877_v22  ;;  %v12028_v31 = vcombine.low %v11975_v26, %v11975_v26 }
  0xcb   : > { %1737 = vmatprep.mubr.bf16.mxu1 %v20239_v0  ;;  %2354 = vmatpush1.bf16.msra.mxu1 %v14850_v58 }
  0xcc   : > { %2355 = vmatprep.subr.bf16.mxu1 %v14858_v60  ;;  %12033 = vmatprep.subr.msk.bf16.mxu0 %vm2196_vm1, %v12029_v29 }
  0xcd   : > { %11830 = vmatmul.mubr.msk.bf16.gmra.mrb[20].mxu0 %vm941_vm0, %v14822_v32  ;;  %v12030_v32 = vcombine.low %v11976_v27, %v11976_v27 }
  0xcf   : > { %2356 = vmatpush1.bf16.msra.mxu1 %v14856_v62 }
  0xd0   : > { %2357 = vmatprep.subr.bf16.mxu1 %v14864_v1 }
  0xd2   : > { %11908 = vmatmul.mubr.msk.bf16.gmra.mrb[28].mxu1 %vm941_vm0, %v14810_v33 }
  0xd3   : > { %1747 = vmatprep.mubr.bf16.mxu1 %v20239_v0  ;;  %2358 = vmatpush1.bf16.msra.mxu1 %v14862_v5 }
  0xd4   : > { %2359 = vmatprep.subr.bf16.mxu1 %v14870_v8 }
  0xd7   : > { %2360 = vmatpush1.bf16.msra.mxu1 %v14868_v11 }
  0xd8   : > { %2361 = vmatprep.subr.bf16.mxu1 %v14876_v14 }
  0xda   : > { %11909 = vmatmul.mubr.msk.bf16.gmra.mrb[32].mxu1 %vm941_vm0, %v14811_v34 }
  0xdb   : > { %1757 = vmatprep.mubr.bf16.mxu1 %v20239_v0  ;;  %2362 = vmatpush1.bf16.msra.mxu1 %v14874_v16 }
  0xdc   : > { %2363 = vmatprep.subr.bf16.mxu1 %v14882_v18 }
  0xdf   : > { %2364 = vmatpush1.bf16.msra.mxu1 %v14880_v23 }
  0xe0   : > { %12044 = vmatprep.subr.msk.bf16.mxu1 %vm2196_vm1, %v12031_v30 }
  0xe2   : > { %11910 = vmatmul.mubr.msk.bf16.gmra.mrb[36].mxu1 %vm941_vm0, %v14812_v35  ;;  %v2198_v35 = vsel %vm2196_vm1, %v12028_v31, 0 }
  0xe3   : > { %1767 = vmatprep.mubr.bf16.mxu1 %v20239_v0  ;;  %2233 = vmatpush1.bf16.msra.mxu0 %v2198_v35 }
  0xe4   : > { %2478 = vmatprep.subr.bf16.mxu0 %v20239_v0 }
  0xea   : > { %11911 = vmatmul.mubr.msk.bf16.gmra.mrb[40].mxu1 %vm941_vm0, %v14813_v36  ;;  %v2204_v36 = vsel %vm2196_vm1, %v12030_v32, 0 }
  0xeb   : > { %1777 = vmatprep.mubr.bf16.mxu1 %v20239_v0  ;;  %2366 = vmatpush1.bf16.msra.mxu1 %v2204_v36 }
  0xec   : > { %3042 = vmatprep.subr.bf16.mxu1 %v14894_v41  ;;  %v14892_v41 = vld [vmem:[%s20221_s1 + $0x8] ss:$20 sps:$4 sm:$0xff]  }
  0xf2   : > { %11912 = vmatmul.mubr.msk.bf16.gmra.mrb[44].mxu1 %vm941_vm0, %v14814_v45 }
  0xf3   : > { %1787 = vmatprep.mubr.bf16.mxu1 %v20239_v0 }
  0xfa   : > { %11913 = vmatmul.mubr.msk.bf16.gmra.mrb[48].mxu1 %vm941_vm0, %v14815_v54 }
  0xfb   : > { %1797 = vmatprep.mubr.bf16.mxu1 %v20239_v0 }
  0xfd   : > { %v16248_v3 = vpop.f32.mrb[0].mxu1 }
  0xfe   : > { %v16256_v6 = vpop.f32.mrb[1].mxu1 }
  0xff   : > { %v1203_v9 = vpop.f32.mrb[2].mxu1 }
 0x100   : > { %v1205_v12 = vpop.f32.mrb[3].mxu1 }
 0x102   : > { %11914 = vmatmul.mubr.msk.bf16.gmra.mrb[52].mxu1 %vm941_vm0, %v14816_v2 }
 0x105   : > { %v1209_v19 = vpop.f32.mrb[4].mxu1 }
 0x106   : > { %v1211_v20 = vpop.f32.mrb[5].mxu1 }
 0x107   : > { %v1213_v21 = vpop.f32.mrb[6].mxu1 }
 0x108   : > { %v1215_v24 = vpop.f32.mrb[7].mxu1 }
 0x10d   : > { %v1219_v25 = vpop.f32.mrb[8].mxu1 }
 0x10e   : > { %v1221_v28 = vpop.f32.mrb[9].mxu1 }
 0x10f   : > { %v1223_v33 = vpop.f32.mrb[10].mxu1 }
 0x110   : > { %v1225_v34 = vpop.f32.mrb[11].mxu1 }
 0x115   : > { %v1229_v37 = vpop.f32.mrb[12].mxu1 }
 0x116   : > { %v1231_v38 = vpop.f32.mrb[13].mxu1 }
 0x117   : > { %v1233_v39 = vpop.f32.mrb[14].mxu1 }
 0x118   : > { %v1235_v40 = vpop.f32.mrb[15].mxu1 }
 0x158   : > { %v1066_v42 = vpop.f32.mrb[24].mxu0 }
 0x159   : > { %v1200_v43 = vadd.f32 %v16248_v3, %v1066_v42  ;;  %v1068_v44 = vpop.f32.mrb[25].mxu0 }
 0x15a   : > { %v1202_v45 = vadd.f32 %v16256_v6, %v1068_v44  ;;  %v1070_v46 = vpop.f32.mrb[26].mxu0  ;;  %v14897_v44 = vld [vmem:[%s20221_s1 + $0x34] ss:$20 sps:$4 sm:$0xff]  }
 0x15b   : > { %v1204_v47 = vadd.f32 %v1203_v9, %v1070_v46  ;;  %v1072_v48 = vpop.f32.mrb[27].mxu0 }
 0x15c   : > { %v1206_v49 = vadd.f32 %v1205_v12, %v1072_v48 }
 0x15d   : > { %v16311_v50 = vpack.c.bf16 %v1204_v47, %v1200_v43 }
 0x15e   : > { %v16313_v51 = vpack.c.bf16 %v1206_v49, %v1202_v45 }
 0x160   : > { %v1076_v52 = vpop.f32.mrb[28].mxu0 }
 0x161   : > { %v1210_v53 = vadd.f32 %v1209_v19, %v1076_v52  ;;  %v1078_v54 = vpop.f32.mrb[29].mxu0 }
 0x162   : > { %v1212_v55 = vadd.f32 %v1211_v20, %v1078_v54  ;;  %v1080_v56 = vpop.f32.mrb[30].mxu0  ;;  %v14888_v54 = vld [vmem:[%s20221_s1 + $0x1dc] ss:$20 sps:$4 sm:$0xff]  }
 0x163   : > { %v1214_v57 = vadd.f32 %v1213_v21, %v1080_v56  ;;  %v1082_v58 = vpop.f32.mrb[31].mxu0 }
 0x164   : > { %v1216_v59 = vadd.f32 %v1215_v24, %v1082_v58  ;;  %v14901_v58 = vld [vmem:[%s20221_s1 + $0x5c] ss:$20 sps:$4 sm:$0xff]  }
 0x165   : > { %v16315_v60 = vpack.c.bf16 %v1214_v57, %v1210_v53 }
 0x166   : > { %v16317_v61 = vpack.c.bf16 %v1216_v59, %v1212_v55  ;;  %v14895_v55 = vld [vmem:[%s20221_s1 + $0x30] ss:$20 sps:$4 sm:$0xff]  }
 0x168   : > { %v1086_v62 = vpop.f32.mrb[32].mxu0 }
 0x169   : > { %v1220_v63 = vadd.f32 %v1219_v25, %v1086_v62  ;;  %v1088_v1 = vpop.f32.mrb[33].mxu0  ;;  %v14889_v62 = vld [vmem:[%s20221_s1 + $0x204] ss:$20 sps:$4 sm:$0xff]  }
 0x16a   : > { %v1222_v2 = vadd.f32 %v1221_v28, %v1088_v1  ;;  %v1090_v3 = vpop.f32.mrb[34].mxu0 }
 0x16b   : > { %v1224_v4 = vadd.f32 %v1223_v33, %v1090_v3  ;;  %v1092_v5 = vpop.f32.mrb[35].mxu0  ;;  %v14904_v3 = vld [vmem:[%s20221_s1 + $0x84] ss:$20 sps:$4 sm:$0xff]  }
 0x16c   : > { %v1226_v6 = vadd.f32 %v1225_v34, %v1092_v5 }
 0x16d   : > { %v16319_v7 = vpack.c.bf16 %v1224_v4, %v1220_v63  ;;  %v14899_v63 = vld [vmem:[%s20221_s1 + $0x58] ss:$20 sps:$4 sm:$0xff]  }
 0x16e   : > { %v16321_v8 = vpack.c.bf16 %v1226_v6, %v1222_v2 }
 0x170   : > { %v1096_v9 = vpop.f32.mrb[36].mxu0 }
 0x171   : > { %v1230_v10 = vadd.f32 %v1229_v37, %v1096_v9  ;;  %v1098_v11 = vpop.f32.mrb[37].mxu0 }
 0x172   : > { %v1232_v12 = vadd.f32 %v1231_v38, %v1098_v11  ;;  %v1100_v13 = vpop.f32.mrb[38].mxu0 }
 0x173   : > { %v1234_v14 = vadd.f32 %v1233_v39, %v1100_v13  ;;  %v1102_v15 = vpop.f32.mrb[39].mxu0  ;;  %v14890_v13 = vld [vmem:[%s20221_s1 + $0x22c] ss:$20 sps:$4 sm:$0xff]  }
 0x174   : > { %v1236_v16 = vadd.f32 %v1235_v40, %v1102_v15  ;;  %v14887_v40 = vld [vmem:[%s20221_s1 + $0x1b4] ss:$20 sps:$4 sm:$0xff]  }
 0x175   : > { %v16323_v17 = vpack.c.bf16 %v1234_v14, %v1230_v10  ;;  %v14902_v14 = vld [vmem:[%s20221_s1 + $0x80] ss:$20 sps:$4 sm:$0xff]  }
 0x176   : > { %v16325_v18 = vpack.c.bf16 %v1236_v16, %v1232_v12 }
 0x178   : > { %v1139_v19 = vpop.f32.mrb[0].mxu0 }
 0x179   : > { %v1141_v20 = vpop.f32.mrb[1].mxu0 }
 0x17a   : > { %v1143_v21 = vpop.f32.mrb[2].mxu0 }
 0x17b   : > { %v16327_v22 = vpack.c.bf16 %v1143_v21, %v1139_v19  ;;  %v1145_v23 = vpop.f32.mrb[3].mxu0  ;;  %v14908_v19 = vld [vmem:[%s20221_s1 + $0xac] ss:$20 sps:$4 sm:$0xff]   ;;  %v14891_v21 = vld [vmem:[%s20221_s1 + $0x254] ss:$20 sps:$4 sm:$0xff]  }
 0x17c   : > { %v16329_v24 = vpack.c.bf16 %v1145_v23, %v1141_v20  ;;  %v14906_v23 = vld [vmem:[%s20221_s1 + $0xa8] ss:$20 sps:$4 sm:$0xff]  }
 0x180   : > { %v1149_v25 = vpop.f32.mrb[4].mxu0 }
 0x181   : > { %v1151_v26 = vpop.f32.mrb[5].mxu0 }
 0x182   : > { %v1153_v27 = vpop.f32.mrb[6].mxu0 }
 0x183   : > { %v16331_v28 = vpack.c.bf16 %v1153_v27, %v1149_v25  ;;  %v1155_v29 = vpop.f32.mrb[7].mxu0  ;;  %v14912_v27 = vld [vmem:[%s20221_s1 + $0xd4] ss:$20 sps:$4 sm:$0xff]  }
 0x184   : > { %v16333_v30 = vpack.c.bf16 %v1155_v29, %v1151_v26 }
 0x188   : > { %v1159_v31 = vpop.f32.mrb[8].mxu0 }
 0x189   : > { %v1161_v32 = vpop.f32.mrb[9].mxu0 }
 0x18a   : > { %v1163_v33 = vpop.f32.mrb[10].mxu0 }
 0x18b   : > { %v16335_v34 = vpack.c.bf16 %v1163_v33, %v1159_v31  ;;  %v1165_v35 = vpop.f32.mrb[11].mxu0 }
 0x18c   : > { %v16337_v37 = vpack.c.bf16 %v1165_v35, %v1161_v32 }
 0x18d   : > { %v1709_v36 = vpop.f32.mrb[16].mxu1 }
 0x18e   : > { %v1711_v38 = vpop.f32.mrb[17].mxu1 }
 0x18f   : > { %v1713_v39 = vpop.f32.mrb[18].mxu1 }
 0x190   : > { %v16345_v42 = vpack.c.bf16 %v1713_v39, %v1709_v36  ;;  %v1715_v43 = vpop.f32.mrb[19].mxu1  ;;  %v1169_v46 = vpop.f32.mrb[12].mxu0  ;;  %v14898_v39 = vld [vmem:[%s20221_s1 + $0x27c] ss:$20 sps:$4 sm:$0xff]  }
 0x191   : > { %v16350_v45 = vpack.c.bf16 %v1715_v43, %v1711_v38  ;;  %v1171_v47 = vpop.f32.mrb[13].mxu0 }
 0x192   : > { %v1173_v48 = vpop.f32.mrb[14].mxu0 }
 0x193   : > { %12034 = vmatprep.mubr.msk.bf16.mxu0 %vm2165_vm2, %v16350_v45  ;;  %12045 = vmatprep.mubr.msk.bf16.mxu1 %vm2165_vm2, %v16350_v45  ;;  %v16358_v49 = vpack.c.bf16 %v1173_v48, %v1169_v46  ;;  %v1175_v52 = vpop.f32.mrb[15].mxu0  ;;  %v14913_v48 = vld [vmem:[%s20221_s1 + $0xf8] ss:$20 sps:$4 sm:$0xff]  }
 0x194   : > { %2245 = vmatmul.mubr.bf16.vlgmr.msra.gmra.mrb[40].mxu0 %v16345_v42  ;;  %2378 = vmatmul.mubr.bf16.vlgmr.msra.gmra.mrb[56].mxu1 %v16345_v42  ;;  %v16366_v56 = vpack.c.bf16 %v1175_v52, %v1171_v47  ;;  %v14905_v47 = vld [vmem:[%s20221_s1 + $0x2a4] ss:$20 sps:$4 sm:$0xff]  }
 0x195   : > { %v1719_v53 = vpop.f32.mrb[20].mxu1  ;;  %2479 = vmatpush1.bf16.msra.mxu0 %v14887_v40  ;;  %3043 = vmatpush1.bf16.msra.mxu1 %v14892_v41  ;;  %v14910_v40 = vld [vmem:[%s20221_s1 + $0xd0] ss:$20 sps:$4 sm:$0xff]  }
 0x196   : > { %v1721_v57 = vpop.f32.mrb[21].mxu1  ;;  %2480 = vmatprep.subr.bf16.mxu0 %v20239_v0  ;;  %3044 = vmatprep.subr.bf16.mxu1 %v14897_v44  ;;  %v14915_v44 = vld [vmem:[%s20221_s1 + $0xfc] ss:$20 sps:$4 sm:$0xff]  }
 0x197   : > { %v1723_v59 = vpop.f32.mrb[22].mxu1 }
 0x198   : > { %v16378_v1 = vpack.c.bf16 %v1723_v59, %v1719_v53  ;;  %v1725_v2 = vpop.f32.mrb[23].mxu1  ;;  %v1179_v5 = vpop.f32.mrb[16].mxu0 }
 0x199   : > { %v16383_v4 = vpack.c.bf16 %v1725_v2, %v1721_v57  ;;  %2481 = vmatpush1.bf16.msra.mxu0 %v14888_v54  ;;  %3045 = vmatpush1.bf16.msra.mxu1 %v14895_v55  ;;  %v1181_v6 = vpop.f32.mrb[17].mxu0  ;;  %v14919_v54 = vld [vmem:[%s20221_s1 + $0x124] ss:$20 sps:$4 sm:$0xff]   ;;  %v14909_v57 = vld [vmem:[%s20221_s1 + $0x2cc] ss:$20 sps:$4 sm:$0xff]  }
 0x19a   : > { %2482 = vmatprep.subr.bf16.mxu0 %v20239_v0  ;;  %3046 = vmatprep.subr.bf16.mxu1 %v14901_v58  ;;  %v1183_v9 = vpop.f32.mrb[18].mxu0  ;;  %v14917_v58 = vld [vmem:[%s20221_s1 + $0x120] ss:$20 sps:$4 sm:$0xff]  }
 0x19b   : > { %12035 = vmatprep.mubr.msk.bf16.mxu0 %vm2165_vm2, %v16383_v4  ;;  %12046 = vmatprep.mubr.msk.bf16.mxu1 %vm2165_vm2, %v16383_v4  ;;  %v16392_v10 = vpack.c.bf16 %v1183_v9, %v1179_v5  ;;  %v1185_v11 = vpop.f32.mrb[19].mxu0  ;;  %v14920_v5 = vld [vmem:[%s20221_s1 + $0x148] ss:$20 sps:$4 sm:$0xff]  }
 0x19c   : > { %2255 = vmatmul.mubr.bf16.gmra.mrb[44].mxu0 %v16378_v1  ;;  %2388 = vmatmul.mubr.bf16.gmra.mrb[60].mxu1 %v16378_v1  ;;  %v16400_v15 = vpack.c.bf16 %v1185_v11, %v1181_v6  ;;  %v14926_v11 = vld [vmem:[%s20221_s1 + $0x174] ss:$20 sps:$4 sm:$0xff]  }
 0x19d   : > { %v1729_v12 = vpop.f32.mrb[24].mxu1  ;;  %2483 = vmatpush1.bf16.msra.mxu0 %v14889_v62  ;;  %3047 = vmatpush1.bf16.msra.mxu1 %v14899_v63  ;;  %v14922_v62 = vld [vmem:[%s20221_s1 + $0x14c] ss:$20 sps:$4 sm:$0xff]  }
 0x19e   : > { %v1731_v16 = vpop.f32.mrb[25].mxu1  ;;  %2484 = vmatprep.subr.bf16.mxu0 %v20239_v0  ;;  %3048 = vmatprep.subr.bf16.mxu1 %v14904_v3  ;;  %v14916_v3 = vld [vmem:[%s20221_s1 + $0x2f4] ss:$20 sps:$4 sm:$0xff]  }
 0x19f   : > { %v1733_v20 = vpop.f32.mrb[26].mxu1 }
 0x1a0   : > { %v16412_v25 = vpack.c.bf16 %v1733_v20, %v1729_v12  ;;  %v1735_v26 = vpop.f32.mrb[27].mxu1  ;;  %v1189_v31 = vpop.f32.mrb[20].mxu0  ;;  %v1319_v12 = vld [vmem:[%s20221_s1 + $0x198] sm:$0xff] }
 0x1a1   : > { %v16417_v29 = vpack.c.bf16 %v1735_v26, %v1731_v16  ;;  %2485 = vmatpush1.bf16.msra.mxu0 %v14890_v13  ;;  %3049 = vmatpush1.bf16.msra.mxu1 %v14902_v14  ;;  %v1191_v32 = vpop.f32.mrb[21].mxu0  ;;  %v14928_v14 = vld [vmem:[%s20221_s1 + $0x344] ss:$0 sps:$4 sm:$0xff]   ;;  %v14923_v16 = vld [vmem:[%s20221_s1 + $0x31c] ss:$20 sps:$4 sm:$0xff]   ;;  %v12117_v20 = vcombine.low %v1319_v12, %v1319_v12  ;;  %v12118_v26 = vcombine.high %v1319_v12, %v1319_v12 }
 0x1a2   : > { %2486 = vmatprep.subr.bf16.mxu0 %v20239_v0  ;;  %3050 = vmatprep.subr.bf16.mxu1 %v14908_v19  ;;  %v1193_v33 = vpop.f32.mrb[22].mxu0  ;;  %v14924_v19 = vld [vmem:[%s20221_s1 + $0x170] ss:$20 sps:$4 sm:$0xff]  }
 0x1a3   : > { %12036 = vmatprep.mubr.msk.bf16.mxu0 %vm2165_vm2, %v16417_v29  ;;  %12047 = vmatprep.mubr.msk.bf16.mxu1 %vm2165_vm2, %v16417_v29  ;;  %v16426_v35 = vpack.c.bf16 %v1193_v33, %v1189_v31  ;;  %v1195_v36 = vpop.f32.mrb[23].mxu0  ;;  %v2210_v31 = vsel %vm2196_vm1, %v14928_v14, 0 }
 0x1a4   : > { %2265 = vmatmul.mubr.bf16.gmra.mrb[48].mxu0 %v16412_v25  ;;  %2398 = vmatmul.mubr.bf16.gmra.mrb[64].mxu1 %v16412_v25  ;;  %v16434_v41 = vpack.c.bf16 %v1195_v36, %v1191_v32  ;;  %v2901_v36 = vsel %vm2196_vm1, %v12117_v20, 0 }
 0x1a5   : > { %v1739_v38 = vpop.f32.mrb[28].mxu1  ;;  %2487 = vmatpush1.bf16.msra.mxu0 %v14891_v21  ;;  %3051 = vmatpush1.bf16.msra.mxu1 %v14906_v23 }
 0x1a6   : > { %v1741_v43 = vpop.f32.mrb[29].mxu1  ;;  %2488 = vmatprep.subr.bf16.mxu0 %v20239_v0  ;;  %3052 = vmatprep.subr.bf16.mxu1 %v14912_v27 }
 0x1a7   : > { %v1743_v46 = vpop.f32.mrb[30].mxu1 }
 0x1a8   : > { %v16446_v52 = vpack.c.bf16 %v1743_v46, %v1739_v38  ;;  %v1745_v53 = vpop.f32.mrb[31].mxu1  ;;  %v14932_v38 = vld [vmem:[%s20221_s1 + $0x4] ss:$20 sps:$4 sm:$0xff]  }
 0x1a9   : > { %v16451_v55 = vpack.c.bf16 %v1745_v53, %v1741_v43  ;;  %2489 = vmatpush1.bf16.msra.mxu0 %v14898_v39  ;;  %3053 = vmatpush1.bf16.msra.mxu1 %v14910_v40 }
 0x1aa   : > { %2490 = vmatprep.subr.bf16.mxu0 %v20239_v0  ;;  %3054 = vmatprep.subr.bf16.mxu1 %v14915_v44 }
 0x1ab   : > { %12037 = vmatprep.mubr.msk.bf16.mxu0 %vm2165_vm2, %v16451_v55  ;;  %12048 = vmatprep.mubr.msk.bf16.mxu1 %vm2165_vm2, %v16451_v55 }
 0x1ac   : > { %2275 = vmatmul.mubr.bf16.gmra.mrb[52].mxu0 %v16446_v52  ;;  %2408 = vmatmul.mubr.bf16.gmra.mrb[68].mxu1 %v16446_v52 }
 0x1ad   : > { %v1749_v59 = vpop.f32.mrb[32].mxu1  ;;  %2491 = vmatpush1.bf16.msra.mxu0 %v14905_v47  ;;  %3055 = vmatpush1.bf16.msra.mxu1 %v14913_v48 }
 0x1ae   : > { %v1751_v63 = vpop.f32.mrb[33].mxu1  ;;  %2492 = vmatprep.subr.bf16.mxu0 %v20239_v0  ;;  %3056 = vmatprep.subr.bf16.mxu1 %v14919_v54 }
 0x1af   : > { %v1753_v2 = vpop.f32.mrb[34].mxu1 }
 0x1b0   : > { %v16476_v6 = vpack.c.bf16 %v1753_v2, %v1749_v59  ;;  %v1755_v9 = vpop.f32.mrb[35].mxu1 }
 0x1b1   : > { %v16484_v13 = vpack.c.bf16 %v1755_v9, %v1751_v63  ;;  %2493 = vmatpush1.bf16.msra.mxu0 %v14909_v57  ;;  %3057 = vmatpush1.bf16.msra.mxu1 %v14917_v58 }
 0x1b2   : > { %2494 = vmatprep.subr.bf16.mxu0 %v20239_v0  ;;  %3058 = vmatprep.subr.bf16.mxu1 %v14922_v62 }
 0x1b3   : > { %12038 = vmatprep.mubr.msk.bf16.mxu0 %vm2165_vm2, %v16484_v13  ;;  %12049 = vmatprep.mubr.msk.bf16.mxu1 %vm2165_vm2, %v16484_v13 }
 0x1b4   : > { %2285 = vmatmul.mubr.bf16.gmra.mrb[56].mxu0 %v16476_v6  ;;  %2418 = vmatmul.mubr.bf16.gmra.mrb[72].mxu1 %v16476_v6 }
 0x1b5   : > { %v1759_v21 = vpop.f32.mrb[36].mxu1  ;;  %2495 = vmatpush1.bf16.msra.mxu0 %v14916_v3  ;;  %3059 = vmatpush1.bf16.msra.mxu1 %v14920_v5 }
 0x1b6   : > { %v1761_v23 = vpop.f32.mrb[37].mxu1  ;;  %2496 = vmatprep.subr.bf16.mxu0 %v20239_v0  ;;  %3060 = vmatprep.subr.bf16.mxu1 %v14926_v11 }
 0x1b7   : > { %v1763_v27 = vpop.f32.mrb[38].mxu1 }
 0x1b8   : > { %v16504_v32 = vpack.c.bf16 %v1763_v27, %v1759_v21  ;;  %v1765_v33 = vpop.f32.mrb[39].mxu1  ;;  %v14935_v27 = vld [vmem:[%s20221_s1 + $0x2c] ss:$20 sps:$4 sm:$0xff]  }
 0x1b9   : > { %v16510_v39 = vpack.c.bf16 %v1765_v33, %v1761_v23  ;;  %2497 = vmatpush1.bf16.msra.mxu0 %v14923_v16  ;;  %3061 = vmatpush1.bf16.msra.mxu1 %v14924_v19  ;;  %v14930_v23 = vld [vmem:[%s20221_s1] ss:$20 sps:$4 sm:$0xff]  }
 0x1ba   : > { %2498 = vmatprep.subr.bf16.mxu0 %v20239_v0  ;;  %12131 = vmatprep.subr.msk.bf16.mxu1 %vm2196_vm1, %v12118_v26  ;;  %v14945_v26 = vld [vmem:[%s20221_s1 + $0x10] ss:$20 sps:$4 sm:$0xff]   ;;  %v14950_v33 = vld [vmem:[%s20221_s1 + $0x60] ss:$20 sps:$4 sm:$0xff]  }
 0x1bb   : > { %12039 = vmatprep.mubr.msk.bf16.mxu0 %vm2165_vm2, %v16510_v39  ;;  %12050 = vmatprep.mubr.msk.bf16.mxu1 %vm2165_vm2, %v16510_v39 }
 0x1bc   : > { %2295 = vmatmul.mubr.bf16.gmra.mrb[60].mxu0 %v16504_v32  ;;  %2428 = vmatmul.mubr.bf16.gmra.mrb[76].mxu1 %v16504_v32 }
 0x1bd   : > { %v1769_v40 = vpop.f32.mrb[40].mxu1  ;;  %2499 = vmatpush1.bf16.msra.mxu0 %v2210_v31  ;;  %3063 = vmatpush1.bf16.msra.mxu1 %v2901_v36  ;;  %v14949_v31 = vld [vmem:[%s20221_s1 + $0x38] ss:$20 sps:$4 sm:$0xff]   ;;  %v14941_v36 = vld [vmem:[%s20221_s1 + $0x7c] ss:$20 sps:$4 sm:$0xff]  }
 0x1be   : > { %v1771_v43 = vpop.f32.mrb[41].mxu1  ;;  %2909 = vmatprep.subr.bf16.mxu0 %v14932_v38  ;;  %3175 = vmatprep.subr.bf16.mxu1 %v20239_v0  ;;  %v14939_v38 = vld [vmem:[%s20221_s1 + $0x78] ss:$20 sps:$4 sm:$0xff]  }
 0x1bf   : > { %v1773_v44 = vpop.f32.mrb[42].mxu1 }
 0x1c0   : > { %v16521_v46 = vpack.c.bf16 %v1773_v44, %v1769_v40  ;;  %v1775_v47 = vpop.f32.mrb[43].mxu1  ;;  %v14954_v40 = vld [vmem:[%s20221_s1 + $0x88] ss:$20 sps:$4 sm:$0xff]   ;;  %v14948_v44 = vld [vmem:[%s20221_s1 + $0xcc] ss:$20 sps:$4 sm:$0xff]  }
 0x1c1   : > { %v16523_v48 = vpack.c.bf16 %v1775_v47, %v1771_v43  ;;  %v14955_v43 = vld [vmem:[%s20221_s1 + $0xb0] ss:$20 sps:$4 sm:$0xff]   ;;  %v14946_v47 = vld [vmem:[%s20221_s1 + $0xc8] ss:$20 sps:$4 sm:$0xff]  }
 0x1c3   : > { %12040 = vmatprep.mubr.msk.bf16.mxu0 %vm2165_vm2, %v16523_v48  ;;  %12051 = vmatprep.mubr.msk.bf16.mxu1 %vm2165_vm2, %v16523_v48 }
 0x1c4   : > { %2305 = vmatmul.mubr.bf16.gmra.mrb[64].mxu0 %v16521_v46  ;;  %2438 = vmatmul.mubr.bf16.gmra.mrb[80].mxu1 %v16521_v46 }
 0x1c5   : > { %v1779_v53 = vpop.f32.mrb[44].mxu1 }
 0x1c6   : > { %v1781_v54 = vpop.f32.mrb[45].mxu1 }
 0x1c7   : > { %v1783_v57 = vpop.f32.mrb[46].mxu1 }
 0x1c8   : > { %v16531_v58 = vpack.c.bf16 %v1783_v57, %v1779_v53  ;;  %v1785_v59 = vpop.f32.mrb[47].mxu1  ;;  %v14959_v53 = vld [vmem:[%s20221_s1 + $0xd8] ss:$20 sps:$4 sm:$0xff]   ;;  %v14958_v57 = vld [vmem:[%s20221_s1 + $0x11c] ss:$20 sps:$4 sm:$0xff]  }
 0x1c9   : > { %v16533_v62 = vpack.c.bf16 %v1785_v59, %v1781_v54  ;;  %v14960_v54 = vld [vmem:[%s20221_s1 + $0x100] ss:$20 sps:$4 sm:$0xff]   ;;  %v14956_v59 = vld [vmem:[%s20221_s1 + $0x118] ss:$20 sps:$4 sm:$0xff]  }
 0x1cb   : > { %12041 = vmatprep.mubr.msk.bf16.mxu0 %vm2165_vm2, %v16533_v62  ;;  %12052 = vmatprep.mubr.msk.bf16.mxu1 %vm2165_vm2, %v16533_v62 }
 0x1cc   : > { %2315 = vmatmul.mubr.bf16.gmra.mrb[68].mxu0 %v16531_v58  ;;  %2448 = vmatmul.mubr.bf16.gmra.mrb[84].mxu1 %v16531_v58 }
 0x1cd   : > { %v1789_v63 = vpop.f32.mrb[48].mxu1 }
 0x1ce   : > { %v1791_v2 = vpop.f32.mrb[49].mxu1 }
 0x1cf   : > { %v1793_v3 = vpop.f32.mrb[50].mxu1 }
 0x1d0   : > { %v16541_v5 = vpack.c.bf16 %v1793_v3, %v1789_v63  ;;  %v1795_v9 = vpop.f32.mrb[51].mxu1  ;;  %v14964_v63 = vld [vmem:[%s20221_s1 + $0x128] ss:$20 sps:$4 sm:$0xff]   ;;  %v14968_v3 = vld [vmem:[%s20221_s1 + $0x16c] ss:$20 sps:$4 sm:$0xff]  }
 0x1d1   : > { %v16543_v11 = vpack.c.bf16 %v1795_v9, %v1791_v2  ;;  %v14965_v2 = vld [vmem:[%s20221_s1 + $0x150] ss:$20 sps:$4 sm:$0xff]  }
 0x1d2   : > { %v1318_v9 = vld [vmem:[%s20221_s1 + $0x190] sm:$0xff] }
 0x1d3   : > { %12042 = vmatprep.mubr.msk.bf16.mxu0 %vm2165_vm2, %v16543_v11  ;;  %12053 = vmatprep.mubr.msk.bf16.mxu1 %vm2165_vm2, %v16543_v11 }
 0x1d4   : > { %2325 = vmatmul.mubr.bf16.gmra.mrb[72].mxu0 %v16541_v5  ;;  %2458 = vmatmul.mubr.bf16.gmra.mrb[88].mxu1 %v16541_v5 }
 0x1d5   : > { %v1799_v12 = vpop.f32.mrb[52].mxu1 }
 0x1d6   : > { %v1801_v14 = vpop.f32.mrb[53].mxu1 }
 0x1d7   : > { %v1803_v16 = vpop.f32.mrb[54].mxu1 }
 0x1d8   : > { %v16551_v19 = vpack.c.bf16 %v1803_v16, %v1799_v12  ;;  %v1805_v20 = vpop.f32.mrb[55].mxu1  ;;  %v14966_v12 = vld [vmem:[%s20221_s1 + $0x168] ss:$20 sps:$4 sm:$0xff]   ;;  %v12115_v16 = vcombine.low %v1318_v9, %v1318_v9 }
 0x1d9   : > { %v16553_v21 = vpack.c.bf16 %v1805_v20, %v1801_v14  ;;  %v12116_v14 = vcombine.high %v1318_v9, %v1318_v9  ;;  %v14993_v9 = vld [vmem:[%s20222_s2 + $0x270] ss:$12 sps:$4 sm:$0xff]  }
 0x1da   : > { %v2895_v20 = vsel %vm2196_vm1, %v12115_v16, 0  ;;  %v14996_v16 = vld [vmem:[%s20222_s2 + $0x288] ss:$12 sps:$4 sm:$0xff]  }
 0x1db   : > { %12043 = vmatprep.mubr.msk.bf16.mxu0 %vm2165_vm2, %v16553_v21  ;;  %12054 = vmatprep.mubr.msk.bf16.mxu1 %vm2165_vm2, %v16553_v21 }
 0x1dc   : > { %2335 = vmatmul.mubr.bf16.gmra.mrb[76].mxu0 %v16551_v19  ;;  %2468 = vmatmul.mubr.bf16.gmra.mrb[92].mxu1 %v16551_v19 }
 0x1dd   : > { %12055 = vmatprep.mubr.msk.bf16.mxu0 %vm2165_vm2, %v16350_v45  ;;  %12132 = vmatprep.mubr.msk.bf16.mxu1 %vm2165_vm2, %v16329_v24  ;;  %v14933_v45 = vld [vmem:[%s20221_s1 + $0x28] ss:$20 sps:$4 sm:$0xff]  }
 0x1e4   : > { %2511 = vmatmul.mubr.bf16.vlgmr.msra.gmra.mrb[80].mxu0 %v16345_v42  ;;  %3075 = vmatmul.mubr.bf16.vlgmr.msra.gmra.mrb[56].mxu1 %v16327_v22  ;;  %v14938_v42 = vld [vmem:[%s20221_s1 + $0x54] ss:$20 sps:$4 sm:$0xff]  }
 0x1e5   : > { %12056 = vmatprep.mubr.msk.bf16.mxu0 %vm2165_vm2, %v16383_v4  ;;  %12133 = vmatprep.mubr.msk.bf16.mxu1 %vm2165_vm2, %v16333_v30  ;;  %v14936_v4 = vld [vmem:[%s20221_s1 + $0x50] ss:$20 sps:$4 sm:$0xff]  }
 0x1e6   : > { %2910 = vmatpush1.bf16.msra.mxu0 %v14930_v23  ;;  %3176 = vmatpush1.bf16.msra.mxu1 %v14945_v26  ;;  %v15710_v26 = vld [vmem:[%s15861_s26 + $0x4] ss:$8 sps:$4 sm:$0xff]  }
 0x1e7   : > { %2911 = vmatprep.subr.bf16.mxu0 %v14935_v27  ;;  %3177 = vmatprep.subr.bf16.mxu1 %v20239_v0  ;;  %v15729_v27 = vld [vmem:[%s15861_s26 + $0x90] ss:$8 sps:$4 sm:$0xff]  }
 0x1ea   : > { %2912 = vmatpush1.bf16.msra.mxu0 %v14933_v45  ;;  %3178 = vmatpush1.bf16.msra.mxu1 %v14949_v31  ;;  %v15730_v45 = vld [vmem:[%s15861_s26 + $0xa4] ss:$8 sps:$4 sm:$0xff]   ;;  %v15733_v31 = vld [vmem:[%s15861_s26 + $0xb0] ss:$8 sps:$4 sm:$0xff]  }
 0x1eb   : > { %2913 = vmatprep.subr.bf16.mxu0 %v14938_v42  ;;  %3179 = vmatprep.subr.bf16.mxu1 %v20239_v0  ;;  %v15734_v42 = vld [vmem:[%s15861_s26 + $0xc4] ss:$8 sps:$4 sm:$0xff]  }
 0x1ec   : > { %2519 = vmatmul.mubr.bf16.gmra.mrb[84].mxu0 %v16378_v1  ;;  %3085 = vmatmul.mubr.bf16.gmra.mrb[60].mxu1 %v16331_v28  ;;  %v14944_v1 = vld [vmem:[%s20221_s1 + $0xa4] ss:$20 sps:$4 sm:$0xff]  }
 0x1ed   : > { %12057 = vmatprep.mubr.msk.bf16.mxu0 %vm2165_vm2, %v16417_v29  ;;  %12134 = vmatprep.mubr.msk.bf16.mxu1 %vm2165_vm2, %v16337_v37  ;;  %v14942_v29 = vld [vmem:[%s20221_s1 + $0xa0] ss:$20 sps:$4 sm:$0xff]  }
 0x1ee   : > { %2914 = vmatpush1.bf16.msra.mxu0 %v14936_v4  ;;  %3180 = vmatpush1.bf16.msra.mxu1 %v14950_v33  ;;  %v15737_v4 = vld [vmem:[%s15861_s26 + $0xd0] ss:$8 sps:$4 sm:$0xff]   ;;  %v15738_v33 = vld [vmem:[%s15861_s26 + $0xe4] ss:$8 sps:$4 sm:$0xff]  }
 0x1ef   : > { %2915 = vmatprep.subr.bf16.mxu0 %v14941_v36  ;;  %3181 = vmatprep.subr.bf16.mxu1 %v20239_v0  ;;  %v15741_v36 = vld [vmem:[%s15861_s26 + $0xf0] ss:$8 sps:$4 sm:$0xff]  }
 0x1f2   : > { %2916 = vmatpush1.bf16.msra.mxu0 %v14939_v38  ;;  %3182 = vmatpush1.bf16.msra.mxu1 %v14954_v40  ;;  %v15742_v38 = vld [vmem:[%s15861_s26 + $0x104] ss:$8 sps:$4 sm:$0xff]   ;;  %v15744_v40 = vld [vmem:[%s15861_s26 + $0x114] ss:$8 sps:$4 sm:$0xff]  }
 0x1f3   : > { %2917 = vmatprep.subr.bf16.mxu0 %v14944_v1  ;;  %3183 = vmatprep.subr.bf16.mxu1 %v20239_v0  ;;  %v14979_v1 = vld [vmem:[%s20222_s2 + $0x214] ss:$12 sps:$4 sm:$0xff]  }
 0x1f4   : > { %2527 = vmatmul.mubr.bf16.gmra.mrb[88].mxu0 %v16412_v25  ;;  %3095 = vmatmul.mubr.bf16.gmra.mrb[64].mxu1 %v16335_v34  ;;  %v14953_v25 = vld [vmem:[%s20221_s1 + $0xf4] ss:$20 sps:$4 sm:$0xff]  }
 0x1f5   : > { %12058 = vmatprep.mubr.msk.bf16.mxu0 %vm2165_vm2, %v16451_v55  ;;  %12135 = vmatprep.mubr.msk.bf16.mxu1 %vm2165_vm2, %v16366_v56  ;;  %v14951_v55 = vld [vmem:[%s20221_s1 + $0xf0] ss:$20 sps:$4 sm:$0xff]  }
 0x1f6   : > { %2918 = vmatpush1.bf16.msra.mxu0 %v14942_v29  ;;  %3184 = vmatpush1.bf16.msra.mxu1 %v14955_v43  ;;  %v15745_v29 = vld [vmem:[%s15861_s26 + $0x110] ss:$8 sps:$4 sm:$0xff]   ;;  %v15746_v43 = vld [vmem:[%s15861_s26 + $0x124] ss:$8 sps:$4 sm:$0xff]  }
 0x1f7   : > { %2919 = vmatprep.subr.bf16.mxu0 %v14948_v44  ;;  %3185 = vmatprep.subr.bf16.mxu1 %v20239_v0  ;;  %v15747_v44 = vld [vmem:[%s15861_s26 + $0x120] ss:$8 sps:$4 sm:$0xff]  }
 0x1fa   : > { %2920 = vmatpush1.bf16.msra.mxu0 %v14946_v47  ;;  %3186 = vmatpush1.bf16.msra.mxu1 %v14959_v53  ;;  %v15748_v47 = vld [vmem:[%s15861_s26 + $0x134] ss:$8 sps:$4 sm:$0xff]  }
 0x1fb   : > { %2921 = vmatprep.subr.bf16.mxu0 %v14953_v25  ;;  %3187 = vmatprep.subr.bf16.mxu1 %v20239_v0  ;;  %v14981_v53 = vld [vmem:[%s20222_s2 + $0x210] ss:$12 sps:$4 sm:$0xff]   ;;  %v14982_v25 = vld [vmem:[%s20222_s2 + $0x22c] ss:$12 sps:$4 sm:$0xff]  }
 0x1fc   : > { %2535 = vmatmul.mubr.bf16.gmra.mrb[92].mxu0 %v16446_v52  ;;  %3105 = vmatmul.mubr.bf16.gmra.mrb[68].mxu1 %v16358_v49  ;;  %v14963_v52 = vld [vmem:[%s20221_s1 + $0x144] ss:$20 sps:$4 sm:$0xff]  }
 0x1fd   : > { %12059 = vmatprep.mubr.msk.bf16.mxu0 %vm2165_vm2, %v16484_v13  ;;  %12136 = vmatprep.mubr.msk.bf16.mxu1 %vm2165_vm2, %v16400_v15  ;;  %v14961_v13 = vld [vmem:[%s20221_s1 + $0x140] ss:$20 sps:$4 sm:$0xff]  }
 0x1fe   : > { %2922 = vmatpush1.bf16.msra.mxu0 %v14951_v55  ;;  %3188 = vmatpush1.bf16.msra.mxu1 %v14960_v54  ;;  %v15749_v55 = vld [vmem:[%s15861_s26 + $0x130] ss:$8 sps:$4 sm:$0xff]   ;;  %v15750_v54 = vld [vmem:[%s15861_s26 + $0x144] ss:$8 sps:$4 sm:$0xff]  }
 0x1ff   : > { %2923 = vmatprep.subr.bf16.mxu0 %v14958_v57  ;;  %3189 = vmatprep.subr.bf16.mxu1 %v20239_v0  ;;  %v15751_v57 = vld [vmem:[%s15861_s26 + $0x140] ss:$8 sps:$4 sm:$0xff]  }
 0x202   : > { %2924 = vmatpush1.bf16.msra.mxu0 %v14956_v59  ;;  %3190 = vmatpush1.bf16.msra.mxu1 %v14964_v63  ;;  %v14984_v59 = vld [vmem:[%s20222_s2 + $0x228] ss:$12 sps:$4 sm:$0xff]   ;;  %v14985_v63 = vld [vmem:[%s20222_s2 + $0x244] ss:$12 sps:$4 sm:$0xff]  }
 0x203   : > { %2925 = vmatprep.subr.bf16.mxu0 %v14963_v52  ;;  %3191 = vmatprep.subr.bf16.mxu1 %v20239_v0  ;;  %v14987_v52 = vld [vmem:[%s20222_s2 + $0x240] ss:$12 sps:$4 sm:$0xff]  }
 0x204   : > { %2543 = vmatmul.mubr.bf16.gmra.mrb[96].mxu0 %v16476_v6  ;;  %3115 = vmatmul.mubr.bf16.gmra.mrb[72].mxu1 %v16392_v10  ;;  %v14969_v6 = vld [vmem:[%s20221_s1 + $0x178] ss:$20 sps:$4 sm:$0xff]  }
 0x205   : > { %12060 = vmatprep.mubr.msk.bf16.mxu0 %vm2165_vm2, %v16510_v39  ;;  %12137 = vmatprep.mubr.msk.bf16.mxu1 %vm2165_vm2, %v16434_v41  ;;  %v14972_v39 = vld [vmem:[%s20221_s1 + $0x1a0] ss:$0 sps:$4 sm:$0xff]  }
 0x206   : > { %2926 = vmatpush1.bf16.msra.mxu0 %v14961_v13  ;;  %3192 = vmatpush1.bf16.msra.mxu1 %v14965_v2  ;;  %v2907_v23 = vsel %vm2196_vm1, %v14972_v39, 0  ;;  %v14988_v13 = vld [vmem:[%s20222_s2 + $0x25c] ss:$12 sps:$4 sm:$0xff]   ;;  %v14990_v2 = vld [vmem:[%s20222_s2 + $0x258] ss:$12 sps:$4 sm:$0xff]  }
 0x207   : > { %2927 = vmatprep.subr.bf16.mxu0 %v14968_v3  ;;  %3193 = vmatprep.subr.bf16.mxu1 %v20239_v0  ;;  %v14991_v3 = vld [vmem:[%s20222_s2 + $0x274] ss:$12 sps:$4 sm:$0xff]  }
 0x20a   : > { %2928 = vmatpush1.bf16.msra.mxu0 %v14966_v12  ;;  %3194 = vmatpush1.bf16.msra.mxu1 %v14969_v6  ;;  %v14994_v12 = vld [vmem:[%s20222_s2 + $0x28c] ss:$12 sps:$4 sm:$0xff]  }
 0x20b   : > { %12120 = vmatprep.subr.msk.bf16.mxu0 %vm2196_vm1, %v12116_v14  ;;  %3195 = vmatprep.subr.bf16.mxu1 %v20239_v0 }
 0x20c   : > { %2551 = vmatmul.mubr.bf16.gmra.mrb[100].mxu0 %v16504_v32  ;;  %3125 = vmatmul.mubr.bf16.gmra.mrb[76].mxu1 %v16426_v35  ;;  %v15711_v32 = vld [vmem:[%s15861_s26] ss:$8 sps:$4 sm:$0xff]  }
 0x20d   : > { %12061 = vmatprep.mubr.msk.bf16.mxu0 %vm2165_vm2, %v16523_v48  ;;  %12138 = vmatprep.mubr.msk.bf16.mxu1 %vm2165_vm2, %v16313_v51  ;;  %v15713_v48 = vld [vmem:[%s15861_s26 + $0x10] ss:$8 sps:$4 sm:$0xff]  }
 0x20e   : > { %2930 = vmatpush1.bf16.msra.mxu0 %v2895_v20  ;;  %3196 = vmatpush1.bf16.msra.mxu1 %v2907_v23  ;;  %v14997_v20 = vld [vmem:[%s20222_s2 + $0x2a4] ss:$12 sps:$4 sm:$0xff]  }
 0x20f   : > { %3509 = vmatprep.subr.bf16.mxu0 %v15710_v26 }
 0x214   : > { %2559 = vmatmul.mubr.bf16.gmra.mrb[104].mxu0 %v16521_v46  ;;  %3135 = vmatmul.mubr.bf16.gmra.mrb[80].mxu1 %v16311_v50  ;;  %v15712_v46 = vld [vmem:[%s15861_s26 + $0x14] ss:$8 sps:$4 sm:$0xff]  }
 0x215   : > { %12062 = vmatprep.mubr.msk.bf16.mxu0 %vm2165_vm2, %v16533_v62  ;;  %12139 = vmatprep.mubr.msk.bf16.mxu1 %vm2165_vm2, %v16317_v61  ;;  %v15718_v62 = vld [vmem:[%s15861_s26 + $0x44] ss:$8 sps:$4 sm:$0xff]  }
 0x21c   : > { %2567 = vmatmul.mubr.bf16.gmra.mrb[108].mxu0 %v16531_v58  ;;  %3145 = vmatmul.mubr.bf16.gmra.mrb[84].mxu1 %v16315_v60  ;;  %v15717_v58 = vld [vmem:[%s15861_s26 + $0x30] ss:$8 sps:$4 sm:$0xff]  }
 0x21d   : > { %12063 = vmatprep.mubr.msk.bf16.mxu0 %vm2165_vm2, %v16543_v11  ;;  %12140 = vmatprep.mubr.msk.bf16.mxu1 %vm2165_vm2, %v16321_v8  ;;  %v15722_v11 = vld [vmem:[%s15861_s26 + $0x64] ss:$8 sps:$4 sm:$0xff]  }
 0x224   : > { %2575 = vmatmul.mubr.bf16.gmra.mrb[112].mxu0 %v16541_v5  ;;  %3155 = vmatmul.mubr.bf16.gmra.mrb[88].mxu1 %v16319_v7  ;;  %v15721_v5 = vld [vmem:[%s15861_s26 + $0x50] ss:$8 sps:$4 sm:$0xff]  }
 0x225   : > { %12064 = vmatprep.mubr.msk.bf16.mxu0 %vm2165_vm2, %v16553_v21  ;;  %12141 = vmatprep.mubr.msk.bf16.mxu1 %vm2165_vm2, %v16325_v18  ;;  %v15726_v21 = vld [vmem:[%s15861_s26 + $0x84] ss:$8 sps:$4 sm:$0xff]  }
 0x22c   : > { %2583 = vmatmul.mubr.bf16.gmra.mrb[116].mxu0 %v16551_v19  ;;  %3165 = vmatmul.mubr.bf16.gmra.mrb[92].mxu1 %v16323_v17  ;;  %v15725_v19 = vld [vmem:[%s15861_s26 + $0x70] ss:$8 sps:$4 sm:$0xff]  }
 0x22d   : > { %12121 = vmatprep.mubr.msk.bf16.mxu0 %vm2165_vm2, %v16329_v24  ;;  %12142 = vmatprep.mubr.msk.bf16.mxu1 %vm2165_vm2, %v16329_v24  ;;  %v15714_v24 = vld [vmem:[%s15861_s26 + $0x24] ss:$8 sps:$4 sm:$0xff]  }
 0x234   : > { %2942 = vmatmul.mubr.bf16.vlgmr.msra.gmra.mrb[40].mxu0 %v16327_v22  ;;  %3208 = vmatmul.mubr.bf16.vlgmr.msra.gmra.mrb[96].mxu1 %v16327_v22  ;;  %v15715_v22 = vld [vmem:[%s15861_s26 + $0x20] ss:$8 sps:$4 sm:$0xff]  }
 0x235   : > { %12122 = vmatprep.mubr.msk.bf16.mxu0 %vm2165_vm2, %v16333_v30  ;;  %12143 = vmatprep.mubr.msk.bf16.mxu1 %vm2165_vm2, %v16333_v30  ;;  %v15716_v30 = vld [vmem:[%s15861_s26 + $0x34] ss:$8 sps:$4 sm:$0xff]  }
 0x236   : > { %3510 = vmatpush1.bf16.msra.mxu0 %v15711_v32 }
 0x237   : > { %3511 = vmatprep.subr.bf16.mxu0 %v15712_v46  ;;  %v14999_v46 = vld [vmem:[%s20222_s2 + $0x2a0] ss:$12 sps:$4 sm:$0xff]  }
 0x23a   : > { %3512 = vmatpush1.bf16.msra.mxu0 %v15713_v48 }
 0x23b   : > { %3513 = vmatprep.subr.bf16.mxu0 %v15714_v24  ;;  %v15000_v24 = vld [vmem:[%s20222_s2 + $0x2bc] ss:$12 sps:$4 sm:$0xff]  }
 0x23c   : > { %2952 = vmatmul.mubr.bf16.gmra.mrb[44].mxu0 %v16331_v28  ;;  %3216 = vmatmul.mubr.bf16.gmra.mrb[100].mxu1 %v16331_v28  ;;  %v15719_v28 = vld [vmem:[%s15861_s26 + $0x40] ss:$8 sps:$4 sm:$0xff]  }
 0x23d   : > { %12123 = vmatprep.mubr.msk.bf16.mxu0 %vm2165_vm2, %v16337_v37  ;;  %12144 = vmatprep.mubr.msk.bf16.mxu1 %vm2165_vm2, %v16337_v37  ;;  %v15720_v37 = vld [vmem:[%s15861_s26 + $0x54] ss:$8 sps:$4 sm:$0xff]  }
 0x23e   : > { %3514 = vmatpush1.bf16.msra.mxu0 %v15715_v22 }
 0x23f   : > { %3515 = vmatprep.subr.bf16.mxu0 %v15716_v30 }
 0x242   : > { %3516 = vmatpush1.bf16.msra.mxu0 %v15717_v58 }
 0x243   : > { %3517 = vmatprep.subr.bf16.mxu0 %v15718_v62  ;;  %v15002_v62 = vld [vmem:[%s20222_s2 + $0x2b8] ss:$12 sps:$4 sm:$0xff]  }
 0x244   : > { %2962 = vmatmul.mubr.bf16.gmra.mrb[48].mxu0 %v16335_v34  ;;  %3224 = vmatmul.mubr.bf16.gmra.mrb[104].mxu1 %v16335_v34  ;;  %v15723_v34 = vld [vmem:[%s15861_s26 + $0x60] ss:$8 sps:$4 sm:$0xff]  }
 0x245   : > { %12124 = vmatprep.mubr.msk.bf16.mxu0 %vm2165_vm2, %v16366_v56  ;;  %12145 = vmatprep.mubr.msk.bf16.mxu1 %vm2165_vm2, %v16366_v56  ;;  %v15724_v56 = vld [vmem:[%s15861_s26 + $0x74] ss:$8 sps:$4 sm:$0xff]  }
 0x246   : > { %3518 = vmatpush1.bf16.msra.mxu0 %v15719_v28 }
 0x247   : > { %3519 = vmatprep.subr.bf16.mxu0 %v15720_v37 }
 0x24a   : > { %3520 = vmatpush1.bf16.msra.mxu0 %v15721_v5 }
 0x24b   : > { %3521 = vmatprep.subr.bf16.mxu0 %v15722_v11 }
 0x24c   : > { %2972 = vmatmul.mubr.bf16.gmra.mrb[52].mxu0 %v16358_v49  ;;  %3232 = vmatmul.mubr.bf16.gmra.mrb[108].mxu1 %v16358_v49  ;;  %v15727_v49 = vld [vmem:[%s15861_s26 + $0x80] ss:$8 sps:$4 sm:$0xff]  }
 0x24d   : > { %12125 = vmatprep.mubr.msk.bf16.mxu0 %vm2165_vm2, %v16400_v15  ;;  %12146 = vmatprep.mubr.msk.bf16.mxu1 %vm2165_vm2, %v16400_v15  ;;  %v15728_v15 = vld [vmem:[%s15861_s26 + $0x94] ss:$8 sps:$4 sm:$0xff]  }
 0x24e   : > { %3522 = vmatpush1.bf16.msra.mxu0 %v15723_v34  ;;  %v15003_v34 = vld [vmem:[%s20222_s2 + $0x1e8] ss:$12 sps:$4 sm:$0xff]  }
 0x24f   : > { %3523 = vmatprep.subr.bf16.mxu0 %v15724_v56 }
 0x252   : > { %3524 = vmatpush1.bf16.msra.mxu0 %v15725_v19 }
 0x253   : > { %3525 = vmatprep.subr.bf16.mxu0 %v15726_v21  ;;  %v15013_v21 = vld [vmem:[%s20221_s1 + $0x348] ss:$20 sps:$4 sm:$0xff]  }
 0x254   : > { %2982 = vmatmul.mubr.bf16.gmra.mrb[56].mxu0 %v16392_v10  ;;  %3240 = vmatmul.mubr.bf16.gmra.mrb[112].mxu1 %v16392_v10  ;;  %v15731_v10 = vld [vmem:[%s15861_s26 + $0xa0] ss:$8 sps:$4 sm:$0xff]  }
 0x255   : > { %12126 = vmatprep.mubr.msk.bf16.mxu0 %vm2165_vm2, %v16434_v41  ;;  %12147 = vmatprep.mubr.msk.bf16.mxu1 %vm2165_vm2, %v16434_v41  ;;  %v15732_v41 = vld [vmem:[%s15861_s26 + $0xb4] ss:$8 sps:$4 sm:$0xff]  }
 0x256   : > { %3526 = vmatpush1.bf16.msra.mxu0 %v15727_v49  ;;  %v15015_v49 = vld [vmem:[%s20221_s1 + $0x34c] ss:$20 sps:$4 sm:$0xff]  }
 0x257   : > { %3527 = vmatprep.subr.bf16.mxu0 %v15728_v15  ;;  %v15016_v15 = vld [vmem:[%s20221_s1 + $0x350] ss:$20 sps:$4 sm:$0xff]  }
 0x25a   : > { %3528 = vmatpush1.bf16.msra.mxu0 %v15729_v27  ;;  %v15018_v27 = vld [vmem:[%s20221_s1 + $0x354] ss:$20 sps:$4 sm:$0xff]  }
 0x25b   : > { %3529 = vmatprep.subr.bf16.mxu0 %v15730_v45  ;;  %v15021_v45 = vld [vmem:[%s20221_s1 + $0x374] ss:$20 sps:$4 sm:$0xff]   ;;  %4310 = vmatprep.subr.bf16.mxu1 %v15018_v27  ;;  %v15067_v27 = vld [vmem:[%s20221_s1 + $0x4b0] ss:$20 sps:$4 sm:$0xff]  }
 0x25c   : > { %2992 = vmatmul.mubr.bf16.gmra.mrb[60].mxu0 %v16426_v35  ;;  %3248 = vmatmul.mubr.bf16.gmra.mrb[116].mxu1 %v16426_v35  ;;  %v15736_v35 = vld [vmem:[%s15861_s26 + $0xd4] ss:$8 sps:$4 sm:$0xff]  }
 0x25d   : > { %12127 = vmatprep.mubr.msk.bf16.mxu0 %vm2165_vm2, %v16313_v51  ;;  %12148 = vmatprep.mubr.msk.bf16.mxu1 %vm2165_vm2, %v16313_v51  ;;  %v15735_v51 = vld [vmem:[%s15861_s26 + $0xc0] ss:$8 sps:$4 sm:$0xff]  }
 0x25e   : > { %3530 = vmatpush1.bf16.msra.mxu0 %v15731_v10  ;;  %v15024_v10 = vld [vmem:[%s20221_s1 + $0x37c] ss:$20 sps:$4 sm:$0xff]   ;;  %4311 = vmatpush1.bf16.msra.mxu1 %v15016_v15 }
 0x25f   : > { %3531 = vmatprep.subr.bf16.mxu0 %v15732_v41  ;;  %v15019_v41 = vld [vmem:[%s20221_s1 + $0x370] ss:$20 sps:$4 sm:$0xff]   ;;  %4312 = vmatprep.subr.bf16.mxu1 %v15024_v10 }
 0x260   : > { %v15072_v15 = vld [vmem:[%s20221_s1 + $0x4bc] ss:$20 sps:$4 sm:$0xff]  }
 0x262   : > { %3532 = vmatpush1.bf16.msra.mxu0 %v15733_v31  ;;  %v15022_v31 = vld [vmem:[%s20221_s1 + $0x378] ss:$20 sps:$4 sm:$0xff]  }
 0x263   : > { %3533 = vmatprep.subr.bf16.mxu0 %v15734_v42  ;;  %4313 = vmatpush1.bf16.msra.mxu1 %v15022_v31  ;;  %v15008_v31 = vld [vmem:[%s20222_s2 + $0x260] ss:$12 sps:$4 sm:$0xff]  }
 0x264   : > { %3002 = vmatmul.mubr.bf16.gmra.mrb[64].mxu0 %v16311_v50  ;;  %3256 = vmatmul.mubr.bf16.gmra.mrb[120].mxu1 %v16311_v50  ;;  %v15739_v50 = vld [vmem:[%s15861_s26 + $0xe0] ss:$8 sps:$4 sm:$0xff]  }
 0x265   : > { %12128 = vmatprep.mubr.msk.bf16.mxu0 %vm2165_vm2, %v16317_v61  ;;  %12149 = vmatprep.mubr.msk.bf16.mxu1 %vm2165_vm2, %v16317_v61  ;;  %v15740_v61 = vld [vmem:[%s15861_s26 + $0xf4] ss:$8 sps:$4 sm:$0xff]  }
 0x266   : > { %3534 = vmatpush1.bf16.msra.mxu0 %v15735_v51  ;;  %v15027_v51 = vld [vmem:[%s20221_s1 + $0x39c] ss:$20 sps:$4 sm:$0xff]  }
 0x267   : > { %3535 = vmatprep.subr.bf16.mxu0 %v15736_v35  ;;  %v15030_v35 = vld [vmem:[%s20221_s1 + $0x3a4] ss:$20 sps:$4 sm:$0xff]  }
 0x268   : > { %4314 = vmatprep.subr.bf16.mxu1 %v15030_v35 }
 0x26a   : > { %3536 = vmatpush1.bf16.msra.mxu0 %v15737_v4 }
 0x26b   : > { %3537 = vmatprep.subr.bf16.mxu0 %v15738_v33  ;;  %v15004_v33 = vld [vmem:[%s20222_s2 + $0x200] ss:$12 sps:$4 sm:$0xff]  }
 0x26c   : > { %3012 = vmatmul.mubr.bf16.gmra.mrb[68].mxu0 %v16315_v60  ;;  %3264 = vmatmul.mubr.bf16.gmra.mrb[124].mxu1 %v16315_v60  ;;  %v14975_v60 = vld [vmem:[%s20222_s2 + $0x1e4] ss:$12 sps:$4 sm:$0xff]  }
 0x26d   : > { %12129 = vmatprep.mubr.msk.bf16.mxu0 %vm2165_vm2, %v16321_v8  ;;  %12150 = vmatprep.mubr.msk.bf16.mxu1 %vm2165_vm2, %v16321_v8  ;;  %v14976_v8 = vld [vmem:[%s20222_s2 + $0x1fc] ss:$12 sps:$4 sm:$0xff]  }
 0x26e   : > { %3538 = vmatpush1.bf16.msra.mxu0 %v15739_v50 }
 0x26f   : > { %3539 = vmatprep.subr.bf16.mxu0 %v15740_v61 }
 0x272   : > { %3540 = vmatpush1.bf16.msra.mxu0 %v15741_v36  ;;  %v15025_v36 = vld [vmem:[%s20221_s1 + $0x398] ss:$20 sps:$4 sm:$0xff]  }
 0x273   : > { %3642 = vmatprep.subr.bf16.mxu0 %v15742_v38  ;;  %v15028_v38 = vld [vmem:[%s20221_s1 + $0x3a0] ss:$20 sps:$4 sm:$0xff]  }
 0x274   : > { %3022 = vmatmul.mubr.bf16.gmra.mrb[72].mxu0 %v16319_v7  ;;  %3272 = vmatmul.mubr.bf16.gmra.mrb[128].mxu1 %v16319_v7  ;;  %v14973_v7 = vld [vmem:[%s20222_s2 + $0x1e0] ss:$12 sps:$4 sm:$0xff]  }
 0x275   : > { %12130 = vmatprep.mubr.msk.bf16.mxu0 %vm2165_vm2, %v16325_v18  ;;  %12151 = vmatprep.mubr.msk.bf16.mxu1 %vm2165_vm2, %v16325_v18  ;;  %v15743_v18 = vld [vmem:[%s15861_s26 + $0x100] ss:$8 sps:$4 sm:$0xff]  }
 0x276   : > { %4315 = vmatpush1.bf16.msra.mxu1 %v15028_v38 }
 0x27c   : > { %3032 = vmatmul.mubr.bf16.gmra.mrb[76].mxu0 %v16323_v17  ;;  %3280 = vmatmul.mubr.bf16.gmra.mrb[132].mxu1 %v16323_v17  ;;  %v14978_v17 = vld [vmem:[%s20222_s2 + $0x1f8] ss:$12 sps:$4 sm:$0xff]  }
 0x27d   : > { %3541 = vmatprep.mubr.bf16.mxu0 %v14975_v60  ;;  %v15033_v60 = vld [vmem:[%s20221_s1 + $0x3c4] ss:$20 sps:$4 sm:$0xff]  }
 0x284   : > { %3542 = vmatmul.mubr.bf16.vlgmr.msra.gmra.mrb[120].mxu0 %v14973_v7  ;;  %v15036_v7 = vld [vmem:[%s20221_s1 + $0x3cc] ss:$20 sps:$4 sm:$0xff]  }
 0x285   : > { %3643 = vmatpush1.bf16.msra.mxu0 %v15743_v18  ;;  %3551 = vmatprep.mubr.bf16.mxu0 %v14976_v8  ;;  %v15031_v8 = vld [vmem:[%s20221_s1 + $0x3c0] ss:$20 sps:$4 sm:$0xff]   ;;  %v15034_v18 = vld [vmem:[%s20221_s1 + $0x3c8] ss:$20 sps:$4 sm:$0xff]  }
 0x286   : > { %3644 = vmatprep.subr.bf16.mxu0 %v15744_v40  ;;  %4316 = vmatprep.subr.bf16.mxu1 %v15036_v7 }
 0x287   : > { %4317 = vmatpush1.bf16.msra.mxu1 %v15034_v18  ;;  %v15010_v18 = vld [vmem:[%s20222_s2 + $0x290] ss:$12 sps:$4 sm:$0xff]  }
 0x289   : > { %3645 = vmatpush1.bf16.msra.mxu0 %v15745_v29 }
 0x28a   : > { %3646 = vmatprep.subr.bf16.mxu0 %v15746_v43  ;;  %v15005_v43 = vld [vmem:[%s20222_s2 + $0x218] ss:$12 sps:$4 sm:$0xff]  }
 0x28c   : > { %3552 = vmatmul.mubr.bf16.gmra.mrb[124].mxu0 %v14978_v17  ;;  %v15039_v17 = vld [vmem:[%s20221_s1 + $0x3ec] ss:$20 sps:$4 sm:$0xff]  }
 0x28d   : > { %3561 = vmatprep.mubr.bf16.mxu0 %v14979_v1  ;;  %3647 = vmatpush1.bf16.msra.mxu0 %v15747_v44  ;;  %v15042_v1 = vld [vmem:[%s20221_s1 + $0x3f4] ss:$20 sps:$4 sm:$0xff]  }
 0x28e   : > { %3648 = vmatprep.subr.bf16.mxu0 %v15748_v47  ;;  %4318 = vmatprep.subr.bf16.mxu1 %v15042_v1 }
 0x291   : > { %3649 = vmatpush1.bf16.msra.mxu0 %v15749_v55  ;;  %v15045_v55 = vld [vmem:[%s20221_s1 + $0x414] ss:$20 sps:$4 sm:$0xff]  }
 0x292   : > { %3650 = vmatprep.subr.bf16.mxu0 %v15750_v54  ;;  %v15048_v54 = vld [vmem:[%s20221_s1 + $0x41c] ss:$20 sps:$4 sm:$0xff]  }
 0x294   : > { %3562 = vmatmul.mubr.bf16.gmra.mrb[128].mxu0 %v14981_v53  ;;  %v15037_v53 = vld [vmem:[%s20221_s1 + $0x3e8] ss:$20 sps:$4 sm:$0xff]  }
 0x295   : > { %3571 = vmatprep.mubr.bf16.mxu0 %v14982_v25  ;;  %3651 = vmatpush1.bf16.msra.mxu0 %v15751_v57  ;;  %v15040_v25 = vld [vmem:[%s20221_s1 + $0x3f0] ss:$20 sps:$4 sm:$0xff]  }
 0x296   : > { %4177 = vmatprep.subr.bf16.mxu0 %v15015_v49  ;;  %4319 = vmatpush1.bf16.msra.mxu1 %v15040_v25  ;;  %v15043_v57 = vld [vmem:[%s20221_s1 + $0x410] ss:$20 sps:$4 sm:$0xff]   ;;  %v15069_v49 = vld [vmem:[%s20221_s1 + $0x4b4] ss:$20 sps:$4 sm:$0xff]  }
 0x297   : > { %4320 = vmatprep.subr.bf16.mxu1 %v15048_v54 }
 0x29c   : > { %3572 = vmatmul.mubr.bf16.gmra.mrb[132].mxu0 %v14984_v59  ;;  %v15046_v59 = vld [vmem:[%s20221_s1 + $0x418] ss:$20 sps:$4 sm:$0xff]  }
 0x29d   : > { %3581 = vmatprep.mubr.bf16.mxu0 %v14985_v63  ;;  %4321 = vmatpush1.bf16.msra.mxu1 %v15046_v59  ;;  %v15012_v59 = vld [vmem:[%s20222_s2 + $0x2c0] ss:$12 sps:$4 sm:$0xff]  }
 0x2a4   : > { %3582 = vmatmul.mubr.bf16.gmra.mrb[136].mxu0 %v14987_v52  ;;  %v15051_v52 = vld [vmem:[%s20221_s1 + $0x43c] ss:$20 sps:$4 sm:$0xff]  }
 0x2a5   : > { %3591 = vmatprep.mubr.bf16.mxu0 %v14988_v13  ;;  %v15054_v13 = vld [vmem:[%s20221_s1 + $0x444] ss:$20 sps:$4 sm:$0xff]  }
 0x2a6   : > { %4322 = vmatprep.subr.bf16.mxu1 %v15054_v13 }
 0x2ac   : > { %3592 = vmatmul.mubr.bf16.gmra.mrb[140].mxu0 %v14990_v2 }
 0x2ad   : > { %3601 = vmatprep.mubr.bf16.mxu0 %v14991_v3  ;;  %v15006_v3 = vld [vmem:[%s20222_s2 + $0x230] ss:$12 sps:$4 sm:$0xff]  }
 0x2b4   : > { %3602 = vmatmul.mubr.bf16.gmra.mrb[144].mxu0 %v14993_v9 }
 0x2b5   : > { %3611 = vmatprep.mubr.bf16.mxu0 %v14994_v12 }
 0x2b7   : > { %v16874_v6 = vpop.f32.mrb[80].mxu0 }
 0x2b8   : > { %v2514_v14 = vpop.f32.mrb[81].mxu0 }
 0x2b9   : > { %v16879_v39 = vpop.f32.mrb[82].mxu0  ;;  %v15049_v14 = vld [vmem:[%s20221_s1 + $0x438] ss:$20 sps:$4 sm:$0xff]  }
 0x2ba   : > { %v2517_v23 = vpop.f32.mrb[83].mxu0 }
 0x2bb   : > { %v15060_v23 = vld [vmem:[%s20221_s1 + $0x46c] ss:$20 sps:$4 sm:$0xff]  }
 0x2bc   : > { %3612 = vmatmul.mubr.bf16.gmra.mrb[148].mxu0 %v14996_v16  ;;  %v15052_v16 = vld [vmem:[%s20221_s1 + $0x440] ss:$20 sps:$4 sm:$0xff]  }
 0x2bd   : > { %3621 = vmatprep.mubr.bf16.mxu0 %v14997_v20  ;;  %v15057_v20 = vld [vmem:[%s20221_s1 + $0x464] ss:$20 sps:$4 sm:$0xff]   ;;  %4323 = vmatpush1.bf16.msra.mxu1 %v15052_v16 }
 0x2be   : > { %4324 = vmatprep.subr.bf16.mxu1 %v15060_v23  ;;  %v12292_v23 = vld [vmem:[%s20221_s1 + $0x4d8] sm:$0xff] }
 0x2bf   : > { %v16884_v26 = vpop.f32.mrb[84].mxu0 }
 0x2c0   : > { %v2522_v32 = vpop.f32.mrb[85].mxu0 }
 0x2c1   : > { %v16889_v48 = vpop.f32.mrb[86].mxu0  ;;  %v15055_v32 = vld [vmem:[%s20221_s1 + $0x460] ss:$20 sps:$4 sm:$0xff]  }
 0x2c2   : > { %v2525_v22 = vpop.f32.mrb[87].mxu0 }
 0x2c3   : > { %v15063_v22 = vld [vmem:[%s20221_s1 + $0x48c] ss:$20 sps:$4 sm:$0xff]  }
 0x2c4   : > { %3622 = vmatmul.mubr.bf16.gmra.mrb[152].mxu0 %v14999_v46  ;;  %v15058_v46 = vld [vmem:[%s20221_s1 + $0x468] ss:$20 sps:$4 sm:$0xff]  }
 0x2c5   : > { %3631 = vmatprep.mubr.bf16.mxu0 %v15000_v24  ;;  %4325 = vmatpush1.bf16.msra.mxu1 %v15058_v46  ;;  %v12346_v46 = vcombine.high %v12292_v23, %v12292_v23 }
 0x2c7   : > { %v16894_v30 = vpop.f32.mrb[88].mxu0 }
 0x2c8   : > { %v2530_v58 = vpop.f32.mrb[89].mxu0 }
 0x2c9   : > { %v16899_v28 = vpop.f32.mrb[90].mxu0  ;;  %v15066_v58 = vld [vmem:[%s20221_s1 + $0x494] ss:$20 sps:$4 sm:$0xff]  }
 0x2ca   : > { %v2533_v37 = vpop.f32.mrb[91].mxu0  ;;  %4326 = vmatprep.subr.bf16.mxu1 %v15066_v58  ;;  %v12345_v58 = vcombine.low %v12292_v23, %v12292_v23 }
 0x2cb   : > { %v15007_v37 = vld [vmem:[%s20222_s2 + $0x248] ss:$12 sps:$4 sm:$0xff]  }
 0x2cc   : > { %3632 = vmatmul.mubr.bf16.gmra.mrb[156].mxu0 %v15002_v62 }
 0x2cd   : > { %3674 = vmatprep.mubr.bf16.mxu0 %v20239_v0 }
 0x2cf   : > { %v16902_v5 = vpop.f32.mrb[92].mxu0 }
 0x2d0   : > { %v2538_v11 = vpop.f32.mrb[93].mxu0 }
 0x2d1   : > { %v16907_v56 = vpop.f32.mrb[94].mxu0 }
 0x2d2   : > { %v2541_v19 = vpop.f32.mrb[95].mxu0 }
 0x2d3   : > { %v15061_v19 = vld [vmem:[%s20221_s1 + $0x488] ss:$20 sps:$4 sm:$0xff]  }
 0x2d4   : > { %12222 = vmatmul.mubr.msk.bf16.vlgmr.msra.gmra.mrb[120].mxu0 %vm941_vm0, %v15003_v34 }
 0x2d5   : > { %3684 = vmatprep.mubr.bf16.mxu0 %v20239_v0  ;;  %4178 = vmatpush1.bf16.msra.mxu0 %v15013_v21  ;;  %v15064_v21 = vld [vmem:[%s20221_s1 + $0x490] ss:$20 sps:$4 sm:$0xff]  }
 0x2d6   : > { %4179 = vmatprep.subr.bf16.mxu0 %v15021_v45  ;;  %4327 = vmatpush1.bf16.msra.mxu1 %v15064_v21  ;;  %v15070_v45 = vld [vmem:[%s20221_s1 + $0x4b8] ss:$20 sps:$4 sm:$0xff]  }
 0x2d7   : > { %v16935_v42 = vpop.f32.mrb[96].mxu0  ;;  %4328 = vmatprep.subr.bf16.mxu1 %v15072_v15 }
 0x2d8   : > { %v2546_v4 = vpop.f32.mrb[97].mxu0 }
 0x2d9   : > { %v16946_v50 = vpop.f32.mrb[98].mxu0  ;;  %4180 = vmatpush1.bf16.msra.mxu0 %v15019_v41 }
 0x2da   : > { %v2549_v61 = vpop.f32.mrb[99].mxu0  ;;  %4181 = vmatprep.subr.bf16.mxu0 %v15027_v51  ;;  %4329 = vmatpush1.bf16.msra.mxu1 %v15070_v45 }
 0x2db   : > { %v15009_v61 = vld [vmem:[%s20222_s2 + $0x278] ss:$12 sps:$4 sm:$0xff]  }
 0x2dc   : > { %12223 = vmatmul.mubr.msk.bf16.gmra.mrb[124].mxu0 %vm941_vm0, %v15004_v33 }
 0x2dd   : > { %3694 = vmatprep.mubr.bf16.mxu0 %v20239_v0  ;;  %4182 = vmatpush1.bf16.msra.mxu0 %v15025_v36 }
 0x2de   : > { %4183 = vmatprep.subr.bf16.mxu0 %v15033_v60 }
 0x2df   : > { %v16968_v40 = vpop.f32.mrb[100].mxu0 }
 0x2e0   : > { %v2554_v29 = vpop.f32.mrb[101].mxu0 }
 0x2e1   : > { %v16979_v44 = vpop.f32.mrb[102].mxu0  ;;  %4184 = vmatpush1.bf16.msra.mxu0 %v15031_v8 }
 0x2e2   : > { %v2557_v47 = vpop.f32.mrb[103].mxu0  ;;  %4185 = vmatprep.subr.bf16.mxu0 %v15039_v17 }
 0x2e4   : > { %12224 = vmatmul.mubr.msk.bf16.gmra.mrb[128].mxu0 %vm941_vm0, %v15005_v43 }
 0x2e5   : > { %3704 = vmatprep.mubr.bf16.mxu0 %v20239_v0  ;;  %4186 = vmatpush1.bf16.msra.mxu0 %v15037_v53  ;;  %v15011_v53 = vld [vmem:[%s20222_s2 + $0x2a8] ss:$12 sps:$4 sm:$0xff]  }
 0x2e6   : > { %4187 = vmatprep.subr.bf16.mxu0 %v15045_v55 }
 0x2e7   : > { %v17001_v63 = vpop.f32.mrb[104].mxu0 }
 0x2e8   : > { %v2562_v2 = vpop.f32.mrb[105].mxu0 }
 0x2e9   : > { %v17012_v9 = vpop.f32.mrb[106].mxu0  ;;  %4188 = vmatpush1.bf16.msra.mxu0 %v15043_v57 }
 0x2ea   : > { %v2565_v12 = vpop.f32.mrb[107].mxu0  ;;  %4189 = vmatprep.subr.bf16.mxu0 %v15051_v52 }
 0x2ec   : > { %12225 = vmatmul.mubr.msk.bf16.gmra.mrb[132].mxu0 %vm941_vm0, %v15006_v3 }
 0x2ed   : > { %3714 = vmatprep.mubr.bf16.mxu0 %v20239_v0  ;;  %4190 = vmatpush1.bf16.msra.mxu0 %v15049_v14 }
 0x2ee   : > { %4191 = vmatprep.subr.bf16.mxu0 %v15057_v20 }
 0x2ef   : > { %v17034_v24 = vpop.f32.mrb[108].mxu0 }
 0x2f0   : > { %v2570_v62 = vpop.f32.mrb[109].mxu0 }
 0x2f1   : > { %v17045_v11 = vpop.f32.mrb[110].mxu0  ;;  %4192 = vmatpush1.bf16.msra.mxu0 %v15055_v32 }
 0x2f2   : > { %v2573_v34 = vpop.f32.mrb[111].mxu0  ;;  %4193 = vmatprep.subr.bf16.mxu0 %v15063_v22 }
 0x2f4   : > { %12226 = vmatmul.mubr.msk.bf16.gmra.mrb[136].mxu0 %vm941_vm0, %v15007_v37 }
 0x2f5   : > { %3724 = vmatprep.mubr.bf16.mxu0 %v20239_v0  ;;  %4194 = vmatpush1.bf16.msra.mxu0 %v15061_v19  ;;  %v4163_v19 = vsel %vm2196_vm1, %v12345_v58, 0 }
 0x2f6   : > { %4195 = vmatprep.subr.bf16.mxu0 %v15069_v49 }
 0x2f7   : > { %v17067_v10 = vpop.f32.mrb[112].mxu0 }
 0x2f8   : > { %v2578_v41 = vpop.f32.mrb[113].mxu0 }
 0x2f9   : > { %v17072_v51 = vpop.f32.mrb[114].mxu0  ;;  %4196 = vmatpush1.bf16.msra.mxu0 %v15067_v27 }
 0x2fa   : > { %v2581_v35 = vpop.f32.mrb[115].mxu0  ;;  %12350 = vmatprep.subr.msk.bf16.mxu0 %vm2196_vm1, %v12346_v46 }
 0x2fc   : > { %12227 = vmatmul.mubr.msk.bf16.gmra.mrb[140].mxu0 %vm941_vm0, %v15008_v31 }
 0x2fd   : > { %3734 = vmatprep.mubr.bf16.mxu0 %v20239_v0  ;;  %4198 = vmatpush1.bf16.msra.mxu0 %v4163_v19 }
 0x2fe   : > { %5162 = vmatprep.subr.bf16.mxu0 %v20239_v0 }
 0x2ff   : > { %v17076_v4 = vpop.f32.mrb[116].mxu0 }
 0x300   : > { %v2586_v33 = vpop.f32.mrb[117].mxu0 }
 0x301   : > { %v17081_v36 = vpop.f32.mrb[118].mxu0 }
 0x302   : > { %v2589_v38 = vpop.f32.mrb[119].mxu0 }
 0x304   : > { %12228 = vmatmul.mubr.msk.bf16.gmra.mrb[144].mxu0 %vm941_vm0, %v15009_v61 }
 0x305   : > { %3744 = vmatprep.mubr.bf16.mxu0 %v20239_v0 }
 0x307   : > { %v3209_v60 = vpop.f32.mrb[96].mxu1 }
 0x308   : > { %v17086_v7 = vadd.f32 %v3209_v60, %v16874_v6  ;;  %v3211_v8 = vpop.f32.mrb[97].mxu1 }
 0x309   : > { %v3212_v17 = vpop.f32.mrb[98].mxu1 }
 0x30a   : > { %v17092_v1 = vadd.f32 %v3212_v17, %v16879_v39  ;;  %v3214_v29 = vpop.f32.mrb[99].mxu1 }
 0x30c   : > { %12229 = vmatmul.mubr.msk.bf16.gmra.mrb[148].mxu0 %vm941_vm0, %v15010_v18 }
 0x30d   : > { %3754 = vmatprep.mubr.bf16.mxu0 %v20239_v0 }
 0x30f   : > { %v3217_v43 = vpop.f32.mrb[100].mxu1 }
 0x310   : > { %v17097_v47 = vadd.f32 %v3217_v43, %v16884_v26  ;;  %v3219_v6 = vpop.f32.mrb[101].mxu1 }
 0x311   : > { %v3220_v25 = vpop.f32.mrb[102].mxu1 }
 0x312   : > { %v17103_v55 = vadd.f32 %v3220_v25, %v16889_v48  ;;  %v3222_v39 = vpop.f32.mrb[103].mxu1 }
 0x314   : > { %12230 = vmatmul.mubr.msk.bf16.gmra.mrb[152].mxu0 %vm941_vm0, %v15011_v53 }
 0x315   : > { %3764 = vmatprep.mubr.bf16.mxu0 %v20239_v0 }
 0x317   : > { %v3225_v54 = vpop.f32.mrb[104].mxu1 }
 0x318   : > { %v17108_v57 = vadd.f32 %v3225_v54, %v16894_v30  ;;  %v3227_v26 = vpop.f32.mrb[105].mxu1 }
 0x319   : > { %v3228_v52 = vpop.f32.mrb[106].mxu1 }
 0x31a   : > { %v17114_v13 = vadd.f32 %v3228_v52, %v16899_v28  ;;  %v3230_v48 = vpop.f32.mrb[107].mxu1  ;;  %v12293_v28 = vld [vmem:[%s20221_s1 + $0x4e0] sm:$0xff] }
 0x31b   : > { %v12348_v22 = vcombine.high %v12293_v28, %v12293_v28 }
 0x31c   : > { %12231 = vmatmul.mubr.msk.bf16.gmra.mrb[156].mxu0 %vm941_vm0, %v15012_v59 }
 0x31d   : > { %12361 = vmatprep.subr.msk.bf16.mxu1 %vm2196_vm1, %v12348_v22  ;;  %v15080_v22 = vld [vmem:[%s20221_s1 + $0x3d0] ss:$20 sps:$4 sm:$0xff]  }
 0x31f   : > { %v3233_v2 = vpop.f32.mrb[108].mxu1 }
 0x320   : > { %v17118_v3 = vadd.f32 %v3233_v2, %v16902_v5  ;;  %v3235_v12 = vpop.f32.mrb[109].mxu1 }
 0x321   : > { %v3236_v14 = vpop.f32.mrb[110].mxu1 }
 0x322   : > { %v17121_v30 = vadd.f32 %v3236_v14, %v16907_v56  ;;  %v3238_v16 = vpop.f32.mrb[111].mxu1  ;;  %v12347_v56 = vcombine.low %v12293_v28, %v12293_v28 }
 0x327   : > { %v3241_v20 = vpop.f32.mrb[112].mxu1 }
 0x328   : > { %v17130_v32 = vadd.f32 %v3241_v20, %v16935_v42  ;;  %v3243_v5 = vpop.f32.mrb[113].mxu1  ;;  %v4169_v42 = vsel %vm2196_vm1, %v12347_v56, 0 }
 0x329   : > { %v3244_v62 = vpop.f32.mrb[114].mxu1  ;;  %4331 = vmatpush1.bf16.msra.mxu1 %v4169_v42  ;;  %v15079_v5 = vld [vmem:[%s20221_s1 + $0x3a8] ss:$20 sps:$4 sm:$0xff]   ;;  %v15081_v42 = vld [vmem:[%s20221_s1 + $0x3f8] ss:$20 sps:$4 sm:$0xff]  }
 0x32a   : > { %v17133_v37 = vadd.f32 %v3244_v62, %v16946_v50  ;;  %v3246_v34 = vpop.f32.mrb[115].mxu1  ;;  %4443 = vmatprep.subr.bf16.mxu1 %v20239_v0 }
 0x32f   : > { %v3249_v21 = vpop.f32.mrb[116].mxu1 }
 0x330   : > { %v17142_v49 = vadd.f32 %v3249_v21, %v16968_v40  ;;  %v3251_v50 = vpop.f32.mrb[117].mxu1 }
 0x331   : > { %v3252_v15 = vpop.f32.mrb[118].mxu1  ;;  %v15082_v50 = vld [vmem:[%s20221_s1 + $0x420] ss:$20 sps:$4 sm:$0xff]  }
 0x332   : > { %v17145_v27 = vadd.f32 %v3252_v15, %v16979_v44  ;;  %v3254_v45 = vpop.f32.mrb[119].mxu1 }
 0x337   : > { %v3257_v41 = vpop.f32.mrb[120].mxu1 }
 0x338   : > { %v17148_v31 = vadd.f32 %v3257_v41, %v17001_v63  ;;  %v3259_v35 = vpop.f32.mrb[121].mxu1 }
 0x339   : > { %v3260_v33 = vpop.f32.mrb[122].mxu1 }
 0x33a   : > { %v17151_v61 = vadd.f32 %v3260_v33, %v17012_v9  ;;  %v3262_v38 = vpop.f32.mrb[123].mxu1 }
 0x33b   : > { %v15083_v38 = vld [vmem:[%s20221_s1 + $0x448] ss:$20 sps:$4 sm:$0xff]  }
 0x33f   : > { %v3265_v60 = vpop.f32.mrb[124].mxu1 }
 0x340   : > { %v17154_v40 = vadd.f32 %v3265_v60, %v17034_v24  ;;  %v3267_v8 = vpop.f32.mrb[125].mxu1 }
 0x341   : > { %v3268_v18 = vpop.f32.mrb[126].mxu1  ;;  %v15084_v8 = vld [vmem:[%s20221_s1 + $0x470] ss:$20 sps:$4 sm:$0xff]  }
 0x342   : > { %20300 = vst [vmem:[#allocation2_spill] sm:$0xff] %v17154_v40  ;;  %v17157_v44 = vadd.f32 %v3268_v18, %v17045_v11  ;;  %v3270_v17 = vpop.f32.mrb[127].mxu1 }
 0x344   : > { %20301 = vst [vmem:[#allocation3_spill] sm:$0xff] %v17157_v44 }
 0x347   : > { %v3273_v29 = vpop.f32.mrb[128].mxu1 }
 0x348   : > { %v17160_v63 = vadd.f32 %v3273_v29, %v17067_v10  ;;  %v3275_v43 = vpop.f32.mrb[129].mxu1 }
 0x349   : > { %v3276_v6 = vpop.f32.mrb[130].mxu1 }
 0x34a   : > { %20302 = vst [vmem:[#allocation4_spill] sm:$0xff] %v17160_v63  ;;  %v17163_v9 = vadd.f32 %v3276_v6, %v17072_v51  ;;  %v3278_v53 = vpop.f32.mrb[131].mxu1  ;;  %v15077_v51 = vld [vmem:[%s20221_s1 + $0x358] ss:$20 sps:$4 sm:$0xff]  }
 0x34b   : > { %v15085_v53 = vld [vmem:[%s20221_s1 + $0x498] ss:$20 sps:$4 sm:$0xff]  }
 0x34c   : > { %20303 = vst [vmem:[#allocation5_spill] sm:$0xff] %v17163_v9 }
 0x34f   : > { %v3281_v25 = vpop.f32.mrb[132].mxu1 }
 0x350   : > { %v17166_v24 = vadd.f32 %v3281_v25, %v17076_v4  ;;  %v3283_v39 = vpop.f32.mrb[133].mxu1 }
 0x351   : > { %v3284_v54 = vpop.f32.mrb[134].mxu1  ;;  %v15086_v39 = vld [vmem:[%s20221_s1 + $0x4c0] ss:$20 sps:$4 sm:$0xff]  }
 0x352   : > { %20304 = vst [vmem:[#allocation6_spill] sm:$0xff] %v17166_v24  ;;  %v17169_v11 = vadd.f32 %v3284_v54, %v17081_v36  ;;  %v3286_v26 = vpop.f32.mrb[135].mxu1  ;;  %v15078_v36 = vld [vmem:[%s20221_s1 + $0x380] ss:$20 sps:$4 sm:$0xff]  }
 0x353   : > { %v15087_v26 = vld [vmem:[%s20221_s1 + $0x4e8] ss:$0 sps:$4 sm:$0xff]  }
 0x354   : > { %20305 = vst [vmem:[#allocation7_spill] sm:$0xff] %v17169_v11 }
 0x3a7   : > { %v3676_v59 = vpop.f32.mrb[120].mxu0 }
 0x3a8   : > { %v3678_v52 = vpop.f32.mrb[121].mxu0 }
 0x3a9   : > { %v3680_v10 = vpop.f32.mrb[122].mxu0 }
 0x3aa   : > { %v17171_v48 = vpack.c.bf16 %v3680_v10, %v3676_v59  ;;  %v3682_v2 = vpop.f32.mrb[123].mxu0 }
 0x3ab   : > { %v17173_v12 = vpack.c.bf16 %v3682_v2, %v3678_v52 }
 0x3ad   : > { %12351 = vmatprep.mubr.msk.bf16.mxu0 %vm2165_vm2, %v17173_v12  ;;  %12362 = vmatprep.mubr.msk.bf16.mxu1 %vm2165_vm2, %v17173_v12 }
 0x3ae   : > { %4210 = vmatmul.mubr.bf16.vlgmr.msra.gmra.mrb[40].mxu0 %v17171_v48  ;;  %4343 = vmatmul.mubr.bf16.vlgmr.msra.gmra.mrb[56].mxu1 %v17171_v48 }
 0x3af   : > { %v3686_v4 = vpop.f32.mrb[124].mxu0  ;;  %4444 = vmatpush1.bf16.msra.mxu1 %v15077_v51  ;;  %v4175_v51 = vsel %vm2196_vm1, %v15087_v26, 0 }
 0x3b0   : > { %v3688_v14 = vpop.f32.mrb[125].mxu0  ;;  %4445 = vmatprep.subr.bf16.mxu1 %v20239_v0 }
 0x3b1   : > { %v3690_v16 = vpop.f32.mrb[126].mxu0 }
 0x3b2   : > { %v17188_v20 = vpack.c.bf16 %v3690_v16, %v3686_v4  ;;  %v3692_v23 = vpop.f32.mrb[127].mxu0 }
 0x3b3   : > { %v17190_v28 = vpack.c.bf16 %v3692_v23, %v3688_v14  ;;  %4446 = vmatpush1.bf16.msra.mxu1 %v15078_v36 }
 0x3b4   : > { %4447 = vmatprep.subr.bf16.mxu1 %v20239_v0 }
 0x3b5   : > { %12352 = vmatprep.mubr.msk.bf16.mxu0 %vm2165_vm2, %v17190_v28  ;;  %12363 = vmatprep.mubr.msk.bf16.mxu1 %vm2165_vm2, %v17190_v28 }
 0x3b6   : > { %4220 = vmatmul.mubr.bf16.gmra.mrb[44].mxu0 %v17188_v20  ;;  %4353 = vmatmul.mubr.bf16.gmra.mrb[60].mxu1 %v17188_v20 }
 0x3b7   : > { %v3696_v46 = vpop.f32.mrb[128].mxu0  ;;  %4448 = vmatpush1.bf16.msra.mxu1 %v15079_v5 }
 0x3b8   : > { %v3698_v58 = vpop.f32.mrb[129].mxu0  ;;  %4449 = vmatprep.subr.bf16.mxu1 %v20239_v0 }
 0x3b9   : > { %v3700_v62 = vpop.f32.mrb[130].mxu0 }
 0x3ba   : > { %v17206_v56 = vpack.c.bf16 %v3700_v62, %v3696_v46  ;;  %v3702_v34 = vpop.f32.mrb[131].mxu0 }
 0x3bb   : > { %v17208_v19 = vpack.c.bf16 %v3702_v34, %v3698_v58  ;;  %4450 = vmatpush1.bf16.msra.mxu1 %v15080_v22 }
 0x3bc   : > { %4451 = vmatprep.subr.bf16.mxu1 %v20239_v0 }
 0x3bd   : > { %12353 = vmatprep.mubr.msk.bf16.mxu0 %vm2165_vm2, %v17208_v19  ;;  %12364 = vmatprep.mubr.msk.bf16.mxu1 %vm2165_vm2, %v17208_v19 }
 0x3be   : > { %4230 = vmatmul.mubr.bf16.gmra.mrb[48].mxu0 %v17206_v56  ;;  %4363 = vmatmul.mubr.bf16.gmra.mrb[64].mxu1 %v17206_v56 }
 0x3bf   : > { %v3706_v21 = vpop.f32.mrb[132].mxu0  ;;  %4452 = vmatpush1.bf16.msra.mxu1 %v15081_v42 }
 0x3c0   : > { %v3708_v15 = vpop.f32.mrb[133].mxu0  ;;  %4453 = vmatprep.subr.bf16.mxu1 %v20239_v0 }
 0x3c1   : > { %v3710_v45 = vpop.f32.mrb[134].mxu0 }
 0x3c2   : > { %v17224_v41 = vpack.c.bf16 %v3710_v45, %v3706_v21  ;;  %v3712_v35 = vpop.f32.mrb[135].mxu0 }
 0x3c3   : > { %v17226_v33 = vpack.c.bf16 %v3712_v35, %v3708_v15  ;;  %4454 = vmatpush1.bf16.msra.mxu1 %v15082_v50 }
 0x3c4   : > { %4455 = vmatprep.subr.bf16.mxu1 %v20239_v0 }
 0x3c5   : > { %12354 = vmatprep.mubr.msk.bf16.mxu0 %vm2165_vm2, %v17226_v33  ;;  %12365 = vmatprep.mubr.msk.bf16.mxu1 %vm2165_vm2, %v17226_v33 }
 0x3c6   : > { %4240 = vmatmul.mubr.bf16.gmra.mrb[52].mxu0 %v17224_v41  ;;  %4373 = vmatmul.mubr.bf16.gmra.mrb[68].mxu1 %v17224_v41 }
 0x3c7   : > { %v3716_v60 = vpop.f32.mrb[136].mxu0  ;;  %4456 = vmatpush1.bf16.msra.mxu1 %v15083_v38 }
 0x3c8   : > { %v3718_v18 = vpop.f32.mrb[137].mxu0  ;;  %4457 = vmatprep.subr.bf16.mxu1 %v20239_v0 }
 0x3c9   : > { %v3720_v17 = vpop.f32.mrb[138].mxu0 }
 0x3ca   : > { %v17242_v29 = vpack.c.bf16 %v3720_v17, %v3716_v60  ;;  %v3722_v43 = vpop.f32.mrb[139].mxu0 }
 0x3cb   : > { %v17244_v6 = vpack.c.bf16 %v3722_v43, %v3718_v18  ;;  %4458 = vmatpush1.bf16.msra.mxu1 %v15084_v8 }
 0x3cc   : > { %4459 = vmatprep.subr.bf16.mxu1 %v20239_v0 }
 0x3cd   : > { %12355 = vmatprep.mubr.msk.bf16.mxu0 %vm2165_vm2, %v17244_v6  ;;  %12366 = vmatprep.mubr.msk.bf16.mxu1 %vm2165_vm2, %v17244_v6 }
 0x3ce   : > { %4250 = vmatmul.mubr.bf16.gmra.mrb[56].mxu0 %v17242_v29  ;;  %4383 = vmatmul.mubr.bf16.gmra.mrb[72].mxu1 %v17242_v29 }
 0x3cf   : > { %v3726_v25 = vpop.f32.mrb[140].mxu0  ;;  %4460 = vmatpush1.bf16.msra.mxu1 %v15085_v53 }
 0x3d0   : > { %v3728_v54 = vpop.f32.mrb[141].mxu0  ;;  %4461 = vmatprep.subr.bf16.mxu1 %v20239_v0 }
 0x3d1   : > { %v3730_v59 = vpop.f32.mrb[142].mxu0 }
 0x3d2   : > { %v3785_v52 = vpack.c.bf16 %v3730_v59, %v3726_v25  ;;  %v3732_v10 = vpop.f32.mrb[143].mxu0 }
 0x3d3   : > { %v3786_v2 = vpack.c.bf16 %v3732_v10, %v3728_v54  ;;  %4462 = vmatpush1.bf16.msra.mxu1 %v15086_v39 }
 0x3d4   : > { %4463 = vmatprep.subr.bf16.mxu1 %v20239_v0 }
 0x3d5   : > { %12356 = vmatprep.mubr.msk.bf16.mxu0 %vm2165_vm2, %v3786_v2  ;;  %12367 = vmatprep.mubr.msk.bf16.mxu1 %vm2165_vm2, %v3786_v2 }
 0x3d6   : > { %4260 = vmatmul.mubr.bf16.gmra.mrb[60].mxu0 %v3785_v52  ;;  %4393 = vmatmul.mubr.bf16.gmra.mrb[76].mxu1 %v3785_v52 }
 0x3d7   : > { %v3736_v4 = vpop.f32.mrb[144].mxu0  ;;  %4464 = vmatpush1.bf16.msra.mxu1 %v4175_v51 }
 0x3d8   : > { %v3738_v36 = vpop.f32.mrb[145].mxu0 }
 0x3d9   : > { %v3740_v14 = vpop.f32.mrb[146].mxu0 }
 0x3da   : > { %v3787_v16 = vpack.c.bf16 %v3740_v14, %v3736_v4  ;;  %v3742_v23 = vpop.f32.mrb[147].mxu0 }
 0x3db   : > { %v3788_v5 = vpack.c.bf16 %v3742_v23, %v3738_v36 }
 0x3dd   : > { %12357 = vmatprep.mubr.msk.bf16.mxu0 %vm2165_vm2, %v3788_v5  ;;  %12368 = vmatprep.mubr.msk.bf16.mxu1 %vm2165_vm2, %v3788_v5 }
 0x3de   : > { %4270 = vmatmul.mubr.bf16.gmra.mrb[64].mxu0 %v3787_v16  ;;  %4403 = vmatmul.mubr.bf16.gmra.mrb[80].mxu1 %v3787_v16 }
 0x3df   : > { %v3746_v46 = vpop.f32.mrb[148].mxu0 }
 0x3e0   : > { %v3748_v22 = vpop.f32.mrb[149].mxu0 }
 0x3e1   : > { %v3750_v58 = vpop.f32.mrb[150].mxu0 }
 0x3e2   : > { %v3789_v62 = vpack.c.bf16 %v3750_v58, %v3746_v46  ;;  %v3752_v34 = vpop.f32.mrb[151].mxu0 }
 0x3e3   : > { %v3790_v42 = vpack.c.bf16 %v3752_v34, %v3748_v22 }
 0x3e5   : > { %12358 = vmatprep.mubr.msk.bf16.mxu0 %vm2165_vm2, %v3790_v42  ;;  %12369 = vmatprep.mubr.msk.bf16.mxu1 %vm2165_vm2, %v3790_v42 }
 0x3e6   : > { %4280 = vmatmul.mubr.bf16.gmra.mrb[68].mxu0 %v3789_v62  ;;  %4413 = vmatmul.mubr.bf16.gmra.mrb[84].mxu1 %v3789_v62 }
 0x3e7   : > { %v3756_v21 = vpop.f32.mrb[152].mxu0 }
 0x3e8   : > { %v3758_v50 = vpop.f32.mrb[153].mxu0 }
 0x3e9   : > { %v3760_v15 = vpop.f32.mrb[154].mxu0 }
 0x3ea   : > { %v3791_v45 = vpack.c.bf16 %v3760_v15, %v3756_v21  ;;  %v3762_v35 = vpop.f32.mrb[155].mxu0 }
 0x3eb   : > { %v3792_v38 = vpack.c.bf16 %v3762_v35, %v3758_v50 }
 0x3ed   : > { %12359 = vmatprep.mubr.msk.bf16.mxu0 %vm2165_vm2, %v3792_v38  ;;  %12370 = vmatprep.mubr.msk.bf16.mxu1 %vm2165_vm2, %v3792_v38 }
 0x3ee   : > { %4290 = vmatmul.mubr.bf16.gmra.mrb[72].mxu0 %v3791_v45  ;;  %4423 = vmatmul.mubr.bf16.gmra.mrb[88].mxu1 %v3791_v45 }
 0x3ef   : > { %v3766_v60 = vpop.f32.mrb[156].mxu0 }
 0x3f0   : > { %v3768_v8 = vpop.f32.mrb[157].mxu0 }
 0x3f1   : > { %v3770_v18 = vpop.f32.mrb[158].mxu0 }
 0x3f2   : > { %v3793_v17 = vpack.c.bf16 %v3770_v18, %v3766_v60  ;;  %v3772_v43 = vpop.f32.mrb[159].mxu0 }
 0x3f3   : > { %v3794_v53 = vpack.c.bf16 %v3772_v43, %v3768_v8 }
 0x3f5   : > { %12360 = vmatprep.mubr.msk.bf16.mxu0 %vm2165_vm2, %v3794_v53  ;;  %12371 = vmatprep.mubr.msk.bf16.mxu1 %vm2165_vm2, %v3794_v53 }
 0x3f6   : > { %4300 = vmatmul.mubr.bf16.gmra.mrb[76].mxu0 %v3793_v17  ;;  %4433 = vmatmul.mubr.bf16.gmra.mrb[92].mxu1 %v3793_v17 }
 0x3f7   : > { %12372 = vmatprep.mubr.msk.bf16.mxu1 %vm2165_vm2, %v17173_v12  ;;  %v4658_v12 = vlaneseq }
 0x3fe   : > { %4476 = vmatmul.mubr.bf16.vlgmr.msra.gmra.mrb[136].mxu1 %v17171_v48  ;;  %v17298_v48 = vld [vmem:[%s20225_s5 + $0x4] ss:$8 sps:$4 sm:$0xff]  }
 0x3ff   : > { %12373 = vmatprep.mubr.msk.bf16.mxu1 %vm2165_vm2, %v17190_v28  ;;  %12402 = vmatprep.mubr.msk.bf16.mxu0 %vm4984_vm3, %v17298_v48 }
 0x406   : > { %4484 = vmatmul.mubr.bf16.gmra.mrb[140].mxu1 %v17188_v20  ;;  %v17304_v20 = vshrl.u32 %v4658_v12, 7 }
 0x407   : > { %12374 = vmatprep.mubr.msk.bf16.mxu1 %vm2165_vm2, %v17208_v19  ;;  %v17311_v19 = vld [vmem:[%s20223_s3] sm:$0x1f] }
 0x408   : > { %20306 = vst [vmem:[#allocation8_spill] sm:$0xff] %v17304_v20  ;;  %v20237_v28 = vsub.s32 0, %v17304_v20 }
 0x40e   : > { %4492 = vmatmul.mubr.bf16.gmra.mrb[144].mxu1 %v17206_v56  ;;  %v20238_v56 = vsub.s32 2, %v17304_v20 }
 0x40f   : > { %12375 = vmatprep.mubr.msk.bf16.mxu1 %vm2165_vm2, %v17226_v33  ;;  %v4672_v33 = vsub.s32 3, %v17304_v20 }
 0x411   : > { %v17331_v39 = vrot.slane %v17311_v19, %v4672_v33 }
 0x416   : > { %4500 = vmatmul.mubr.bf16.gmra.mrb[148].mxu1 %v17224_v41  ;;  %v20236_v41 = vsub.s32 1, %v17304_v20 }
 0x417   : > { %12376 = vmatprep.mubr.msk.bf16.mxu1 %vm2165_vm2, %v17244_v6  ;;  %v17323_v6 = vrot.slane %v17311_v19, %v20238_v56 }
 0x418   : > { %v17328_v25 = vrot.slane %v17311_v19, %v20236_v41 }
 0x41e   : > { %4508 = vmatmul.mubr.bf16.gmra.mrb[152].mxu1 %v17242_v29  ;;  %v17318_v29 = vrot.slane %v17311_v19, %v20237_v28 }
 0x41f   : > { %12377 = vmatprep.mubr.msk.bf16.mxu1 %vm2165_vm2, %v3786_v2 }
 0x426   : > { %4516 = vmatmul.mubr.bf16.gmra.mrb[156].mxu1 %v3785_v52 }
 0x427   : > { %12378 = vmatprep.mubr.msk.bf16.mxu1 %vm2165_vm2, %v3788_v5 }
 0x42e   : > { %4524 = vmatmul.mubr.bf16.gmra.mrb[160].mxu1 %v3787_v16 }
 0x42f   : > { %12379 = vmatprep.mubr.msk.bf16.mxu1 %vm2165_vm2, %v3790_v42 }
 0x436   : > { %4532 = vmatmul.mubr.bf16.gmra.mrb[164].mxu1 %v3789_v62 }
 0x437   : > { %12380 = vmatprep.mubr.msk.bf16.mxu1 %vm2165_vm2, %v3792_v38 }
 0x43e   : > { %4540 = vmatmul.mubr.bf16.gmra.mrb[168].mxu1 %v3791_v45 }
 0x43f   : > { %12381 = vmatprep.mubr.msk.bf16.mxu1 %vm2165_vm2, %v3794_v53 }
 0x446   : > { %4548 = vmatmul.mubr.bf16.gmra.mrb[172].mxu1 %v3793_v17 }
 0x447   : > { %12392 = vmatprep.mubr.msk.bf16.mxu1 %vm4984_vm3, %v17298_v48 }
 0x481   : > { %v4211_v54 = vpop.f32.mrb[40].mxu0  ;;  %v4344_v26 = vpop.f32.mrb[56].mxu1 }
 0x482   : > { %v4683_v59 = vadd.f32 %v17318_v29, %v4211_v54  ;;  %v4685_v52 = vadd.f32 %v17323_v6, %v4344_v26  ;;  %v4213_v10 = vpop.f32.mrb[41].mxu0  ;;  %v4346_v2 = vpop.f32.mrb[57].mxu1 }
 0x483   : > { %v4684_v51 = vadd.f32 %v17328_v25, %v4213_v10  ;;  %v4686_v4 = vadd.f32 %v17331_v39, %v4346_v2  ;;  %v4215_v36 = vpop.f32.mrb[42].mxu0  ;;  %v4348_v14 = vpop.f32.mrb[58].mxu1 }
 0x484   : > { %v4688_v16 = vadd.f32 %v17318_v29, %v4215_v36  ;;  %v4690_v23 = vadd.f32 %v17323_v6, %v4348_v14  ;;  %v4217_v5 = vpop.f32.mrb[43].mxu0  ;;  %v4350_v46 = vpop.f32.mrb[59].mxu1  ;;  %v4783_v62 = vmax.f32 %v4683_v59, 0.0  ;;  %v4785_v34 = vmax.f32 %v4685_v52, 0.0 }
 0x485   : > { %v4689_v22 = vadd.f32 %v17328_v25, %v4217_v5  ;;  %v4691_v58 = vadd.f32 %v17331_v39, %v4350_v46  ;;  %v4784_v50 = vmax.f32 %v4684_v51, 0.0  ;;  %v4786_v15 = vmax.f32 %v4686_v4, 0.0 }
 0x486   : > { %v4788_v42 = vmax.f32 %v4688_v16, 0.0  ;;  %v4790_v21 = vmax.f32 %v4690_v23, 0.0 }
 0x487   : > { %v4789_v45 = vmax.f32 %v4689_v22, 0.0  ;;  %v4791_v35 = vmax.f32 %v4691_v58, 0.0 }
 0x488   : > { %v17341_v38 = vpack.c.bf16 %v4788_v42, %v4783_v62  ;;  %v17343_v60 = vpack.c.bf16 %v4790_v21, %v4785_v34 }
 0x489   : > { %v17345_v8 = vpack.c.bf16 %v4789_v45, %v4784_v50  ;;  %v4221_v18 = vpop.f32.mrb[44].mxu0  ;;  %v4354_v17 = vpop.f32.mrb[60].mxu1  ;;  %v17347_v43 = vpack.c.bf16 %v4791_v35, %v4786_v15 }
 0x48a   : > { %20307 = vst [vmem:[#allocation9_spill] sm:$0xff] %v17343_v60  ;;  %v4693_v53 = vadd.f32 %v17318_v29, %v4221_v18  ;;  %v4695_v12 = vadd.f32 %v17323_v6, %v4354_v17  ;;  %v4223_v33 = vpop.f32.mrb[45].mxu0  ;;  %v4356_v54 = vpop.f32.mrb[61].mxu1 }
 0x48b   : > { %v4694_v26 = vadd.f32 %v17328_v25, %v4223_v33  ;;  %v4696_v59 = vadd.f32 %v17331_v39, %v4356_v54  ;;  %v4225_v52 = vpop.f32.mrb[46].mxu0  ;;  %v4358_v10 = vpop.f32.mrb[62].mxu1  ;;  %5000 = vmatprep.subr.bf16.mxu1 %v17345_v8 }
 0x48c   : > { %v4698_v2 = vadd.f32 %v17318_v29, %v4225_v52  ;;  %v4700_v51 = vadd.f32 %v17323_v6, %v4358_v10  ;;  %v4227_v4 = vpop.f32.mrb[47].mxu0  ;;  %v4360_v36 = vpop.f32.mrb[63].mxu1  ;;  %5001 = vmatpush1.bf16.msra.mxu1 %v17341_v38  ;;  %v4793_v23 = vmax.f32 %v4693_v53, 0.0  ;;  %v4795_v5 = vmax.f32 %v4695_v12, 0.0 }
 0x48d   : > { %v4699_v14 = vadd.f32 %v17328_v25, %v4227_v4  ;;  %v4701_v16 = vadd.f32 %v17331_v39, %v4360_v36  ;;  %v4794_v58 = vmax.f32 %v4694_v26, 0.0  ;;  %v4796_v62 = vmax.f32 %v4696_v59, 0.0 }
 0x48e   : > { %v4798_v46 = vmax.f32 %v4698_v2, 0.0  ;;  %v4800_v22 = vmax.f32 %v4700_v51, 0.0 }
 0x48f   : > { %v4799_v34 = vmax.f32 %v4699_v14, 0.0  ;;  %v4801_v42 = vmax.f32 %v4701_v16, 0.0 }
 0x490   : > { %v17359_v21 = vpack.c.bf16 %v4798_v46, %v4793_v23  ;;  %v17361_v50 = vpack.c.bf16 %v4800_v22, %v4795_v5 }
 0x491   : > { %v17363_v15 = vpack.c.bf16 %v4799_v34, %v4794_v58  ;;  %v4231_v45 = vpop.f32.mrb[48].mxu0  ;;  %v4364_v35 = vpop.f32.mrb[64].mxu1  ;;  %v17365_v18 = vpack.c.bf16 %v4801_v42, %v4796_v62 }
 0x492   : > { %20308 = vst [vmem:[#allocation10_spill] sm:$0xff] %v17359_v21  ;;  %20309 = vst [vmem:[#allocation11_spill] sm:$0xff] %v17361_v50  ;;  %v4703_v17 = vadd.f32 %v17318_v29, %v4231_v45  ;;  %v4705_v53 = vadd.f32 %v17323_v6, %v4364_v35  ;;  %v4233_v12 = vpop.f32.mrb[49].mxu0  ;;  %v4366_v33 = vpop.f32.mrb[65].mxu1 }
 0x493   : > { %20310 = vst [vmem:[#allocation12_spill] sm:$0xff] %v17365_v18  ;;  %v4704_v54 = vadd.f32 %v17328_v25, %v4233_v12  ;;  %v4706_v26 = vadd.f32 %v17331_v39, %v4366_v33  ;;  %v4235_v59 = vpop.f32.mrb[50].mxu0  ;;  %v4368_v52 = vpop.f32.mrb[66].mxu1  ;;  %5002 = vmatprep.subr.bf16.mxu1 %v17363_v15 }
 0x494   : > { %v4708_v10 = vadd.f32 %v17318_v29, %v4235_v59  ;;  %v4710_v2 = vadd.f32 %v17323_v6, %v4368_v52  ;;  %v4237_v51 = vpop.f32.mrb[51].mxu0  ;;  %v4370_v4 = vpop.f32.mrb[67].mxu1  ;;  %5003 = vmatpush1.bf16.msra.mxu1 %v17359_v21  ;;  %v4803_v16 = vmax.f32 %v4703_v17, 0.0  ;;  %v4805_v23 = vmax.f32 %v4705_v53, 0.0 }
 0x495   : > { %v4709_v36 = vadd.f32 %v17328_v25, %v4237_v51  ;;  %v4711_v14 = vadd.f32 %v17331_v39, %v4370_v4  ;;  %v4804_v22 = vmax.f32 %v4704_v54, 0.0  ;;  %v4806_v58 = vmax.f32 %v4706_v26, 0.0 }
 0x496   : > { %v4808_v5 = vmax.f32 %v4708_v10, 0.0  ;;  %v4810_v46 = vmax.f32 %v4710_v2, 0.0 }
 0x497   : > { %v4809_v62 = vmax.f32 %v4709_v36, 0.0  ;;  %v4811_v34 = vmax.f32 %v4711_v14, 0.0 }
 0x498   : > { %v17377_v42 = vpack.c.bf16 %v4808_v5, %v4803_v16  ;;  %v17379_v45 = vpack.c.bf16 %v4810_v46, %v4805_v23 }
 0x499   : > { %v17381_v35 = vpack.c.bf16 %v4809_v62, %v4804_v22  ;;  %v4241_v12 = vpop.f32.mrb[52].mxu0  ;;  %v4374_v33 = vpop.f32.mrb[68].mxu1  ;;  %v17383_v59 = vpack.c.bf16 %v4811_v34, %v4806_v58 }
 0x49a   : > { %20311 = vst [vmem:[#allocation13_spill] sm:$0xff] %v17377_v42  ;;  %20312 = vst [vmem:[#allocation14_spill] sm:$0xff] %v17379_v45  ;;  %v4713_v52 = vadd.f32 %v17318_v29, %v4241_v12  ;;  %v4715_v17 = vadd.f32 %v17323_v6, %v4374_v33  ;;  %v4243_v53 = vpop.f32.mrb[53].mxu0  ;;  %v4376_v10 = vpop.f32.mrb[69].mxu1 }
 0x49b   : > { %20313 = vst [vmem:[#allocation15_spill] sm:$0xff] %v17381_v35  ;;  %20314 = vst [vmem:[#allocation16_spill] sm:$0xff] %v17383_v59  ;;  %v4714_v54 = vadd.f32 %v17328_v25, %v4243_v53  ;;  %v4716_v26 = vadd.f32 %v17331_v39, %v4376_v10  ;;  %v4245_v2 = vpop.f32.mrb[54].mxu0  ;;  %v4378_v51 = vpop.f32.mrb[70].mxu1  ;;  %5004 = vmatprep.subr.bf16.mxu1 %v17381_v35 }
 0x49c   : > { %v4718_v4 = vadd.f32 %v17318_v29, %v4245_v2  ;;  %v4720_v36 = vadd.f32 %v17323_v6, %v4378_v51  ;;  %v4247_v14 = vpop.f32.mrb[55].mxu0  ;;  %v4380_v16 = vpop.f32.mrb[71].mxu1  ;;  %5005 = vmatpush1.bf16.msra.mxu1 %v17377_v42  ;;  %v4813_v46 = vmax.f32 %v4713_v52, 0.0  ;;  %v4815_v22 = vmax.f32 %v4715_v17, 0.0 }
 0x49d   : > { %v4719_v23 = vadd.f32 %v17328_v25, %v4247_v14  ;;  %v4721_v5 = vadd.f32 %v17331_v39, %v4380_v16  ;;  %v4814_v34 = vmax.f32 %v4714_v54, 0.0  ;;  %v4816_v12 = vmax.f32 %v4716_v26, 0.0 }
 0x49e   : > { %v4818_v58 = vmax.f32 %v4718_v4, 0.0  ;;  %v4820_v62 = vmax.f32 %v4720_v36, 0.0 }
 0x49f   : > { %v4819_v33 = vmax.f32 %v4719_v23, 0.0  ;;  %v4821_v53 = vmax.f32 %v4721_v5, 0.0 }
 0x4a0   : > { %v17395_v10 = vpack.c.bf16 %v4818_v58, %v4813_v46  ;;  %v17397_v2 = vpack.c.bf16 %v4820_v62, %v4815_v22 }
 0x4a1   : > { %v17399_v51 = vpack.c.bf16 %v4819_v33, %v4814_v34  ;;  %v4251_v41 = vpop.f32.mrb[56].mxu0  ;;  %v4384_v28 = vpop.f32.mrb[72].mxu1  ;;  %v17401_v56 = vpack.c.bf16 %v4821_v53, %v4816_v12 }
 0x4a2   : > { %20315 = vst [vmem:[#allocation17_spill] sm:$0xff] %v17395_v10  ;;  %20316 = vst [vmem:[#allocation18_spill] sm:$0xff] %v17397_v2  ;;  %v4723_v14 = vadd.f32 %v17318_v29, %v4251_v41  ;;  %v4725_v52 = vadd.f32 %v17323_v6, %v4384_v28  ;;  %v4253_v17 = vpop.f32.mrb[57].mxu0  ;;  %v4386_v4 = vpop.f32.mrb[73].mxu1 }
 0x4a3   : > { %20317 = vst [vmem:[#allocation19_spill] sm:$0xff] %v17399_v51  ;;  %20318 = vst [vmem:[#allocation20_spill] sm:$0xff] %v17401_v56  ;;  %v4724_v54 = vadd.f32 %v17328_v25, %v4253_v17  ;;  %v4726_v26 = vadd.f32 %v17331_v39, %v4386_v4  ;;  %v4255_v36 = vpop.f32.mrb[58].mxu0  ;;  %v4388_v16 = vpop.f32.mrb[74].mxu1  ;;  %5006 = vmatprep.subr.bf16.mxu1 %v17399_v51 }
 0x4a4   : > { %v4728_v23 = vadd.f32 %v17318_v29, %v4255_v36  ;;  %v4730_v5 = vadd.f32 %v17323_v6, %v4388_v16  ;;  %v4257_v46 = vpop.f32.mrb[59].mxu0  ;;  %v4390_v22 = vpop.f32.mrb[75].mxu1  ;;  %5007 = vmatpush1.bf16.msra.mxu1 %v17395_v10  ;;  %v4823_v58 = vmax.f32 %v4723_v14, 0.0  ;;  %v4825_v62 = vmax.f32 %v4725_v52, 0.0 }
 0x4a5   : > { %v4729_v28 = vadd.f32 %v17328_v25, %v4257_v46  ;;  %v4731_v41 = vadd.f32 %v17331_v39, %v4390_v22  ;;  %v4824_v33 = vmax.f32 %v4724_v54, 0.0  ;;  %v4826_v53 = vmax.f32 %v4726_v26, 0.0 }
 0x4a6   : > { %v4828_v34 = vmax.f32 %v4728_v23, 0.0  ;;  %v4830_v12 = vmax.f32 %v4730_v5, 0.0 }
 0x4a7   : > { %v4829_v17 = vmax.f32 %v4729_v28, 0.0  ;;  %v4831_v4 = vmax.f32 %v4731_v41, 0.0 }
 0x4a8   : > { %v17413_v0 = vpack.c.bf16 %v4828_v34, %v4823_v58  ;;  %v17415_v36 = vpack.c.bf16 %v4830_v12, %v4825_v62 }
 0x4a9   : > { %v17417_v16 = vpack.c.bf16 %v4829_v17, %v4824_v33  ;;  %v4261_v11 = vpop.f32.mrb[60].mxu0  ;;  %v4394_v24 = vpop.f32.mrb[76].mxu1  ;;  %v17419_v9 = vpack.c.bf16 %v4831_v4, %v4826_v53 }
 0x4aa   : > { %20319 = vst [vmem:[#allocation21_spill] sm:$0xff] %v17413_v0  ;;  %20320 = vst [vmem:[#allocation22_spill] sm:$0xff] %v17415_v36  ;;  %v4733_v46 = vadd.f32 %v17318_v29, %v4261_v11  ;;  %v4735_v14 = vadd.f32 %v17323_v6, %v4394_v24  ;;  %v4263_v52 = vpop.f32.mrb[61].mxu0  ;;  %v4396_v23 = vpop.f32.mrb[77].mxu1 }
 0x4ab   : > { %20321 = vst [vmem:[#allocation23_spill] sm:$0xff] %v17417_v16  ;;  %20322 = vst [vmem:[#allocation24_spill] sm:$0xff] %v17419_v9  ;;  %v4734_v54 = vadd.f32 %v17328_v25, %v4263_v52  ;;  %v4736_v26 = vadd.f32 %v17331_v39, %v4396_v23  ;;  %v4265_v5 = vpop.f32.mrb[62].mxu0  ;;  %v4398_v22 = vpop.f32.mrb[78].mxu1  ;;  %5008 = vmatprep.subr.bf16.mxu1 %v17417_v16 }
 0x4ac   : > { %v4738_v28 = vadd.f32 %v17318_v29, %v4265_v5  ;;  %v4740_v41 = vadd.f32 %v17323_v6, %v4398_v22  ;;  %v4267_v58 = vpop.f32.mrb[63].mxu0  ;;  %v4400_v62 = vpop.f32.mrb[79].mxu1  ;;  %5009 = vmatpush1.bf16.msra.mxu1 %v17413_v0  ;;  %v4833_v34 = vmax.f32 %v4733_v46, 0.0  ;;  %v4835_v12 = vmax.f32 %v4735_v14, 0.0 }
 0x4ad   : > { %v4739_v24 = vadd.f32 %v17328_v25, %v4267_v58  ;;  %v4741_v11 = vadd.f32 %v17331_v39, %v4400_v62  ;;  %v4834_v17 = vmax.f32 %v4734_v54, 0.0  ;;  %v4836_v4 = vmax.f32 %v4736_v26, 0.0 }
 0x4ae   : > { %v4838_v33 = vmax.f32 %v4738_v28, 0.0  ;;  %v4840_v53 = vmax.f32 %v4740_v41, 0.0 }
 0x4af   : > { %v4839_v52 = vmax.f32 %v4739_v24, 0.0  ;;  %v4841_v23 = vmax.f32 %v4741_v11, 0.0 }
 0x4b0   : > { %v17431_v63 = vpack.c.bf16 %v4838_v33, %v4833_v34  ;;  %v17433_v5 = vpack.c.bf16 %v4840_v53, %v4835_v12 }
 0x4b1   : > { %v17435_v22 = vpack.c.bf16 %v4839_v52, %v4834_v17  ;;  %v4271_v16 = vpop.f32.mrb[64].mxu0  ;;  %v4404_v0 = vpop.f32.mrb[80].mxu1  ;;  %v17437_v10 = vpack.c.bf16 %v4841_v23, %v4836_v4 }
 0x4b2   : > { %20323 = vst [vmem:[#allocation25_spill] sm:$0xff] %v17431_v63  ;;  %20324 = vst [vmem:[#allocation26_spill] sm:$0xff] %v17433_v5  ;;  %v4743_v58 = vadd.f32 %v17318_v29, %v4271_v16  ;;  %v4745_v46 = vadd.f32 %v17323_v6, %v4404_v0  ;;  %v4273_v14 = vpop.f32.mrb[65].mxu0  ;;  %v4406_v28 = vpop.f32.mrb[81].mxu1 }
 0x4b3   : > { %20325 = vst [vmem:[#allocation27_spill] sm:$0xff] %v17435_v22  ;;  %20326 = vst [vmem:[#allocation28_spill] sm:$0xff] %v17437_v10  ;;  %v4744_v54 = vadd.f32 %v17328_v25, %v4273_v14  ;;  %v4746_v26 = vadd.f32 %v17331_v39, %v4406_v28  ;;  %v4275_v41 = vpop.f32.mrb[66].mxu0  ;;  %v4408_v62 = vpop.f32.mrb[82].mxu1  ;;  %5010 = vmatprep.subr.bf16.mxu1 %v17435_v22 }
 0x4b4   : > { %v4748_v24 = vadd.f32 %v17318_v29, %v4275_v41  ;;  %v4750_v11 = vadd.f32 %v17323_v6, %v4408_v62  ;;  %v4277_v34 = vpop.f32.mrb[67].mxu0  ;;  %v4410_v12 = vpop.f32.mrb[83].mxu1  ;;  %5011 = vmatpush1.bf16.msra.mxu1 %v17431_v63  ;;  %v4843_v33 = vmax.f32 %v4743_v58, 0.0  ;;  %v4845_v53 = vmax.f32 %v4745_v46, 0.0 }
 0x4b5   : > { %v4749_v0 = vadd.f32 %v17328_v25, %v4277_v34  ;;  %v4751_v16 = vadd.f32 %v17331_v39, %v4410_v12  ;;  %v4844_v52 = vmax.f32 %v4744_v54, 0.0  ;;  %v4846_v23 = vmax.f32 %v4746_v26, 0.0 }
 0x4b6   : > { %v4848_v17 = vmax.f32 %v4748_v24, 0.0  ;;  %v4850_v4 = vmax.f32 %v4750_v11, 0.0 }
 0x4b7   : > { %v4849_v14 = vmax.f32 %v4749_v0, 0.0  ;;  %v4851_v28 = vmax.f32 %v4751_v16, 0.0 }
 0x4b8   : > { %v17449_v22 = vpack.c.bf16 %v4848_v17, %v4843_v33  ;;  %v17451_v41 = vpack.c.bf16 %v4850_v4, %v4845_v53 }
 0x4b9   : > { %v17453_v62 = vpack.c.bf16 %v4849_v14, %v4844_v52  ;;  %v4281_v44 = vpop.f32.mrb[68].mxu0  ;;  %v4414_v63 = vpop.f32.mrb[84].mxu1  ;;  %v17455_v40 = vpack.c.bf16 %v4851_v28, %v4846_v23 }
 0x4ba   : > { %20327 = vst [vmem:[#allocation29_spill] sm:$0xff] %v17449_v22  ;;  %20328 = vst [vmem:[#allocation30_spill] sm:$0xff] %v17451_v41  ;;  %v4753_v34 = vadd.f32 %v17318_v29, %v4281_v44  ;;  %v4755_v58 = vadd.f32 %v17323_v6, %v4414_v63  ;;  %v4283_v46 = vpop.f32.mrb[69].mxu0  ;;  %v4416_v24 = vpop.f32.mrb[85].mxu1 }
 0x4bb   : > { %20329 = vst [vmem:[#allocation31_spill] sm:$0xff] %v17453_v62  ;;  %20330 = vst [vmem:[#allocation32_spill] sm:$0xff] %v17455_v40  ;;  %v4754_v54 = vadd.f32 %v17328_v25, %v4283_v46  ;;  %v4756_v26 = vadd.f32 %v17331_v39, %v4416_v24  ;;  %v4285_v11 = vpop.f32.mrb[70].mxu0  ;;  %v4418_v12 = vpop.f32.mrb[86].mxu1  ;;  %5012 = vmatprep.subr.bf16.mxu1 %v17453_v62 }
 0x4bc   : > { %v4758_v0 = vadd.f32 %v17318_v29, %v4285_v11  ;;  %v4760_v16 = vadd.f32 %v17323_v6, %v4418_v12  ;;  %v4287_v33 = vpop.f32.mrb[71].mxu0  ;;  %v4420_v53 = vpop.f32.mrb[87].mxu1  ;;  %5013 = vmatpush1.bf16.msra.mxu1 %v17449_v22  ;;  %v4853_v17 = vmax.f32 %v4753_v34, 0.0  ;;  %v4855_v4 = vmax.f32 %v4755_v58, 0.0 }
 0x4bd   : > { %v4759_v44 = vadd.f32 %v17328_v25, %v4287_v33  ;;  %v4761_v63 = vadd.f32 %v17331_v39, %v4420_v53  ;;  %v4854_v14 = vmax.f32 %v4754_v54, 0.0  ;;  %v4856_v28 = vmax.f32 %v4756_v26, 0.0 }
 0x4be   : > { %v4858_v52 = vmax.f32 %v4758_v0, 0.0  ;;  %v4860_v23 = vmax.f32 %v4760_v16, 0.0 }
 0x4bf   : > { %v4859_v46 = vmax.f32 %v4759_v44, 0.0  ;;  %v4861_v24 = vmax.f32 %v4761_v63, 0.0 }
 0x4c0   : > { %v17467_v62 = vpack.c.bf16 %v4858_v52, %v4853_v17  ;;  %v17469_v11 = vpack.c.bf16 %v4860_v23, %v4855_v4 }
 0x4c1   : > { %v17471_v12 = vpack.c.bf16 %v4859_v46, %v4854_v14  ;;  %v4291_v51 = vpop.f32.mrb[72].mxu0  ;;  %v4424_v22 = vpop.f32.mrb[88].mxu1  ;;  %v17473_v42 = vpack.c.bf16 %v4861_v24, %v4856_v28 }
 0x4c2   : > { %20331 = vst [vmem:[#allocation33_spill] sm:$0xff] %v17467_v62  ;;  %20332 = vst [vmem:[#allocation34_spill] sm:$0xff] %v17469_v11  ;;  %v4763_v33 = vadd.f32 %v17318_v29, %v4291_v51  ;;  %v4765_v34 = vadd.f32 %v17323_v6, %v4424_v22  ;;  %v4293_v58 = vpop.f32.mrb[73].mxu0  ;;  %v4426_v0 = vpop.f32.mrb[89].mxu1 }
 0x4c3   : > { %20333 = vst [vmem:[#allocation35_spill] sm:$0xff] %v17471_v12  ;;  %20334 = vst [vmem:[#allocation36_spill] sm:$0xff] %v17473_v42  ;;  %v4764_v54 = vadd.f32 %v17328_v25, %v4293_v58  ;;  %v4766_v26 = vadd.f32 %v17331_v39, %v4426_v0  ;;  %v4295_v16 = vpop.f32.mrb[74].mxu0  ;;  %v4428_v53 = vpop.f32.mrb[90].mxu1  ;;  %5014 = vmatprep.subr.bf16.mxu1 %v17471_v12 }
 0x4c4   : > { %v4768_v44 = vadd.f32 %v17318_v29, %v4295_v16  ;;  %v4770_v63 = vadd.f32 %v17323_v6, %v4428_v53  ;;  %v4297_v17 = vpop.f32.mrb[75].mxu0  ;;  %v4430_v4 = vpop.f32.mrb[91].mxu1  ;;  %5015 = vmatpush1.bf16.msra.mxu1 %v17467_v62  ;;  %v4863_v52 = vmax.f32 %v4763_v33, 0.0  ;;  %v4865_v23 = vmax.f32 %v4765_v34, 0.0 }
 0x4c5   : > { %v4769_v51 = vadd.f32 %v17328_v25, %v4297_v17  ;;  %v4771_v22 = vadd.f32 %v17331_v39, %v4430_v4  ;;  %v4864_v46 = vmax.f32 %v4764_v54, 0.0  ;;  %v4866_v24 = vmax.f32 %v4766_v26, 0.0 }
 0x4c6   : > { %v4868_v14 = vmax.f32 %v4768_v44, 0.0  ;;  %v4870_v28 = vmax.f32 %v4770_v63, 0.0 }
 0x4c7   : > { %v4869_v58 = vmax.f32 %v4769_v51, 0.0  ;;  %v4871_v0 = vmax.f32 %v4771_v22, 0.0 }
 0x4c8   : > { %v17485_v12 = vpack.c.bf16 %v4868_v14, %v4863_v52  ;;  %v17487_v16 = vpack.c.bf16 %v4870_v28, %v4865_v23 }
 0x4c9   : > { %v17489_v53 = vpack.c.bf16 %v4869_v58, %v4864_v46  ;;  %v4301_v35 = vpop.f32.mrb[76].mxu0  ;;  %v4434_v62 = vpop.f32.mrb[92].mxu1  ;;  %v17491_v21 = vpack.c.bf16 %v4871_v0, %v4866_v24 }
 0x4ca   : > { %20335 = vst [vmem:[#allocation37_spill] sm:$0xff] %v17487_v16  ;;  %v4773_v17 = vadd.f32 %v17318_v29, %v4301_v35  ;;  %v4775_v33 = vadd.f32 %v17323_v6, %v4434_v62  ;;  %v4303_v34 = vpop.f32.mrb[77].mxu0  ;;  %v4436_v44 = vpop.f32.mrb[93].mxu1  ;;  %v4676_v35 = vsub.s32 4, %v17304_v20 }
 0x4cb   : > { %20336 = vst [vmem:[#allocation38_spill] sm:$0xff] %v17491_v21  ;;  %v4774_v54 = vadd.f32 %v17328_v25, %v4303_v34  ;;  %v4776_v26 = vadd.f32 %v17331_v39, %v4436_v44  ;;  %v4305_v63 = vpop.f32.mrb[78].mxu0  ;;  %v4438_v4 = vpop.f32.mrb[94].mxu1  ;;  %5016 = vmatprep.subr.bf16.mxu1 %v17489_v53 }
 0x4cc   : > { %v4778_v51 = vadd.f32 %v17318_v29, %v4305_v63  ;;  %v4780_v22 = vadd.f32 %v17323_v6, %v4438_v4  ;;  %v4307_v52 = vpop.f32.mrb[79].mxu0  ;;  %v4440_v23 = vpop.f32.mrb[95].mxu1  ;;  %5017 = vmatpush1.bf16.msra.mxu1 %v17485_v12  ;;  %v4873_v28 = vmax.f32 %v4773_v17, 0.0  ;;  %v4875_v46 = vmax.f32 %v4775_v33, 0.0 }
 0x4cd   : > { %v4779_v62 = vadd.f32 %v17328_v25, %v4307_v52  ;;  %v4781_v14 = vadd.f32 %v17331_v39, %v4440_v23  ;;  %v4874_v0 = vmax.f32 %v4774_v54, 0.0  ;;  %v4876_v34 = vmax.f32 %v4776_v26, 0.0  ;;  %v17520_v54 = vld [vmem:[%s20225_s5] ss:$8 sps:$4 sm:$0xff]  }
 0x4ce   : > { %v4878_v24 = vmax.f32 %v4778_v51, 0.0  ;;  %v4880_v58 = vmax.f32 %v4780_v22, 0.0  ;;  %v17509_v4 = vrot.slane %v17311_v19, %v4676_v35 }
 0x4cf   : > { %v4879_v44 = vmax.f32 %v4779_v62, 0.0  ;;  %v4881_v29 = vmax.f32 %v4781_v14, 0.0 }
 0x4d0   : > { %v17504_v63 = vpack.c.bf16 %v4878_v24, %v4873_v28  ;;  %v17506_v6 = vpack.c.bf16 %v4880_v58, %v4875_v46  ;;  %v17543_v24 = vld [vmem:[%s20225_s5 + $0x10] ss:$8 sps:$4 sm:$0xff]  }
 0x4d1   : > { %v17511_v20 = vpack.c.bf16 %v4879_v44, %v4874_v0  ;;  %v4477_v25 = vpop.f32.mrb[136].mxu1  ;;  %v17513_v52 = vpack.c.bf16 %v4881_v29, %v4876_v34  ;;  %v20340_v44 = vmov 0  }
 0x4d2   : > { %20337 = vst [vmem:[#allocation39_spill] sm:$0xff] %v17506_v6  ;;  %v4560_v39 = vadd.f32 %v4477_v25, %v17086_v7  ;;  %v4479_v17 = vpop.f32.mrb[137].mxu1  ;;  %v17528_v7 = vld [vmem:[%s20225_s5 + $0x14] ss:$8 sps:$4 sm:$0xff]  }
 0x4d3   : > { %20338 = vst [vmem:[#allocation40_spill] sm:$0xff] %v17513_v52  ;;  %v4480_v33 = vpop.f32.mrb[138].mxu1  ;;  %5018 = vmatprep.subr.bf16.mxu1 %v17511_v20 }
 0x4d4   : > { %v4687_v26 = vadd.f32 %v17509_v4, %v4560_v39  ;;  %v4565_v19 = vadd.f32 %v4480_v33, %v17092_v1  ;;  %v4482_v51 = vpop.f32.mrb[139].mxu1  ;;  %5019 = vmatpush1.bf16.msra.mxu1 %v17504_v63 }
 0x4d5   : > { %5081 = vmatprep.subr.bf16.mxu1 %v17347_v43  ;;  %v17568_v51 = vld [vmem:[%s20225_s5 + $0x20] ss:$8 sps:$4 sm:$0xff]  }
 0x4d6   : > { %v4692_v22 = vadd.f32 %v17509_v4, %v4565_v19  ;;  %v4787_v23 = vmax.f32 %v4687_v26, 0.0 }
 0x4d7   : > { %5033 = vmatmul.mubr.bf16.vlgmr.msra.gmra.mrb[176].mxu1 %v17520_v54 }
 0x4d8   : > { %v4792_v35 = vmax.f32 %v4692_v22, 0.0  ;;  %5082 = vmatpush1.bf16.msra.mxu1 %v17343_v60  ;;  %12393 = vmatprep.mubr.msk.bf16.mxu1 %vm4984_vm3, %v17528_v7 }
 0x4d9   : > { %v4485_v1 = vpop.f32.mrb[140].mxu1  ;;  %5083 = vmatprep.subr.bf16.mxu1 %v17365_v18 }
 0x4da   : > { %v4570_v62 = vadd.f32 %v4485_v1, %v17097_v47  ;;  %v4487_v14 = vpop.f32.mrb[141].mxu1  ;;  %v17538_v28 = vpack.c.bf16 %v4792_v35, %v4787_v23  ;;  %v17552_v47 = vld [vmem:[%s20225_s5 + $0x24] ss:$8 sps:$4 sm:$0xff]  }
 0x4db   : > { %v4488_v46 = vpop.f32.mrb[142].mxu1 }
 0x4dc   : > { %20339 = vst [vmem:[#allocation41_spill] sm:$0xff] %v17538_v28  ;;  %v4697_v58 = vadd.f32 %v17509_v4, %v4570_v62  ;;  %v4575_v0 = vadd.f32 %v4488_v46, %v17103_v55  ;;  %v4490_v34 = vpop.f32.mrb[143].mxu1  ;;  %5084 = vmatpush1.bf16.msra.mxu1 %v17361_v50  ;;  %5163 = vmatpush1.bf16.msra.mxu0 %v17538_v28  ;;  %v4941_v46 = vld [vmem:[%s20225_s5 + $0x40] sm:$0xff] }
 0x4dd   : > { %5085 = vmatprep.subr.bf16.mxu1 %v17383_v59  ;;  %5164 = vmatprep.subr.bf16.mxu0 %v20340_v44 }
 0x4de   : > { %v4702_v29 = vadd.f32 %v17509_v4, %v4575_v0  ;;  %v4797_v25 = vmax.f32 %v4697_v58, 0.0 }
 0x4df   : > { %5043 = vmatmul.mubr.bf16.gmra.mrb[180].mxu1 %v17543_v24 }
 0x4e0   : > { %v4802_v55 = vmax.f32 %v4702_v29, 0.0  ;;  %5086 = vmatpush1.bf16.msra.mxu1 %v17379_v45  ;;  %12394 = vmatprep.mubr.msk.bf16.mxu1 %vm4984_vm3, %v17552_v47 }
 0x4e1   : > { %v4493_v39 = vpop.f32.mrb[144].mxu1  ;;  %5087 = vmatprep.subr.bf16.mxu1 %v17401_v56 }
 0x4e2   : > { %v4580_v17 = vadd.f32 %v4493_v39, %v17108_v57  ;;  %v4495_v33 = vpop.f32.mrb[145].mxu1  ;;  %v17563_v26 = vpack.c.bf16 %v4802_v55, %v4797_v25  ;;  %v17577_v57 = vld [vmem:[%s20225_s5 + $0x34] ss:$8 sps:$4 sm:$0xff]   ;;  %v17596_v25 = vld [vmem:[%s20225_s5 + $0x30] ss:$8 sps:$4 sm:$0xff]  }
 0x4e3   : > { %v4496_v19 = vpop.f32.mrb[146].mxu1  ;;  %v17602_v33 = vcombine.high %v4941_v46, %v4941_v46 }
 0x4e4   : > { %20341 = vst [vmem:[#allocation42_spill] sm:$0xff] %v17563_v26  ;;  %v4707_v22 = vadd.f32 %v17509_v4, %v4580_v17  ;;  %v4585_v23 = vadd.f32 %v4496_v19, %v17114_v13  ;;  %v4498_v35 = vpop.f32.mrb[147].mxu1  ;;  %5088 = vmatpush1.bf16.msra.mxu1 %v17397_v2  ;;  %5165 = vmatpush1.bf16.msra.mxu0 %v17563_v26 }
 0x4e5   : > { %5089 = vmatprep.subr.bf16.mxu1 %v17419_v9  ;;  %5166 = vmatprep.subr.bf16.mxu0 %v20340_v44 }
 0x4e6   : > { %v4712_v1 = vadd.f32 %v17509_v4, %v4585_v23  ;;  %v4807_v62 = vmax.f32 %v4707_v22, 0.0 }
 0x4e7   : > { %5053 = vmatmul.mubr.bf16.gmra.mrb[184].mxu1 %v17568_v51 }
 0x4e8   : > { %v4812_v13 = vmax.f32 %v4712_v1, 0.0  ;;  %5090 = vmatpush1.bf16.msra.mxu1 %v17415_v36  ;;  %12395 = vmatprep.mubr.msk.bf16.mxu1 %vm4984_vm3, %v17577_v57 }
 0x4e9   : > { %v4501_v14 = vpop.f32.mrb[148].mxu1  ;;  %5091 = vmatprep.subr.bf16.mxu1 %v17437_v10 }
 0x4ea   : > { %v4590_v58 = vadd.f32 %v4501_v14, %v17118_v3  ;;  %v4503_v0 = vpop.f32.mrb[149].mxu1  ;;  %v17591_v34 = vpack.c.bf16 %v4812_v13, %v4807_v62  ;;  %v17615_v13 = vcombine.low %v4941_v46, %v4941_v46 }
 0x4eb   : > { %v4504_v29 = vpop.f32.mrb[150].mxu1 }
 0x4ec   : > { %20342 = vst [vmem:[#allocation43_spill] sm:$0xff] %v17591_v34  ;;  %v4717_v55 = vadd.f32 %v17509_v4, %v4590_v58  ;;  %v4595_v39 = vadd.f32 %v4504_v29, %v17121_v30  ;;  %v4506_v17 = vpop.f32.mrb[151].mxu1  ;;  %5092 = vmatpush1.bf16.msra.mxu1 %v17433_v5  ;;  %5167 = vmatpush1.bf16.msra.mxu0 %v17591_v34 }
 0x4ed   : > { %5093 = vmatprep.subr.bf16.mxu1 %v17455_v40  ;;  %5168 = vmatprep.subr.bf16.mxu0 %v20340_v44 }
 0x4ee   : > { %v4722_v3 = vadd.f32 %v17509_v4, %v4595_v39  ;;  %v4817_v19 = vmax.f32 %v4717_v55, 0.0 }
 0x4ef   : > { %5063 = vmatmul.mubr.bf16.gmra.mrb[188].mxu1 %v17596_v25 }
 0x4f0   : > { %v4822_v22 = vmax.f32 %v4722_v3, 0.0  ;;  %5094 = vmatpush1.bf16.msra.mxu1 %v17451_v41  ;;  %12396 = vmatprep.mubr.msk.bf16.mxu1 %vm4984_vm3, %v17602_v33 }
 0x4f1   : > { %v4509_v30 = vpop.f32.mrb[152].mxu1  ;;  %5095 = vmatprep.subr.bf16.mxu1 %v17473_v42 }
 0x4f2   : > { %v4600_v23 = vadd.f32 %v4509_v30, %v17130_v32  ;;  %v4511_v35 = vpop.f32.mrb[153].mxu1  ;;  %v17613_v1 = vpack.c.bf16 %v4822_v22, %v4817_v19 }
 0x4f3   : > { %v4512_v62 = vpop.f32.mrb[154].mxu1 }
 0x4f4   : > { %20343 = vst [vmem:[#allocation44_spill] sm:$0xff] %v17613_v1  ;;  %v4727_v14 = vadd.f32 %v17509_v4, %v4600_v23  ;;  %v4605_v58 = vadd.f32 %v4512_v62, %v17133_v37  ;;  %v4514_v0 = vpop.f32.mrb[155].mxu1  ;;  %5096 = vmatpush1.bf16.msra.mxu1 %v17469_v11  ;;  %5169 = vmatpush1.bf16.msra.mxu0 %v17613_v1 }
 0x4f5   : > { %5097 = vmatprep.subr.bf16.mxu1 %v17491_v21  ;;  %5170 = vmatprep.subr.bf16.mxu0 %v20340_v44 }
 0x4f6   : > { %v4732_v32 = vadd.f32 %v17509_v4, %v4605_v58  ;;  %v4827_v29 = vmax.f32 %v4727_v14, 0.0 }
 0x4f7   : > { %5073 = vmatmul.mubr.bf16.gmra.mrb[192].mxu1 %v17615_v13 }
 0x4f8   : > { %v4832_v46 = vmax.f32 %v4732_v32, 0.0  ;;  %5098 = vmatpush1.bf16.msra.mxu1 %v17487_v16  ;;  %12397 = vmatprep.mubr.msk.bf16.mxu1 %vm4984_vm3, %v17298_v48 }
 0x4f9   : > { %v4517_v37 = vpop.f32.mrb[156].mxu1  ;;  %5099 = vmatprep.subr.bf16.mxu1 %v17513_v52 }
 0x4fa   : > { %v4610_v55 = vadd.f32 %v4517_v37, %v17142_v49  ;;  %v4519_v39 = vpop.f32.mrb[157].mxu1  ;;  %v17630_v17 = vpack.c.bf16 %v4832_v46, %v4827_v29  ;;  %v20346_v46 = vld [vmem:[#allocation10_spill] sm:$0xff]  ;;  %v20347_v37 = vld [vmem:[#allocation15_spill] sm:$0xff] }
 0x4fb   : > { %v4520_v3 = vpop.f32.mrb[158].mxu1 }
 0x4fc   : > { %20344 = vst [vmem:[#allocation45_spill] sm:$0xff] %v17630_v17  ;;  %v4737_v19 = vadd.f32 %v17509_v4, %v4610_v55  ;;  %v4615_v22 = vadd.f32 %v4520_v3, %v17145_v27  ;;  %v4522_v30 = vpop.f32.mrb[159].mxu1  ;;  %5100 = vmatpush1.bf16.msra.mxu1 %v17506_v6  ;;  %5171 = vmatpush1.bf16.msra.mxu0 %v17630_v17  ;;  %v20348_v3 = vld [vmem:[#allocation13_spill] sm:$0xff] }
 0x4fd   : > { %5486 = vmatprep.subr.bf16.mxu1 %v17345_v8  ;;  %5172 = vmatprep.subr.bf16.mxu0 %v20340_v44 }
 0x4fe   : > { %v4742_v48 = vadd.f32 %v17509_v4, %v4615_v22  ;;  %v4837_v49 = vmax.f32 %v4737_v19, 0.0  ;;  %v20349_v19 = vld [vmem:[#allocation19_spill] sm:$0xff]  ;;  %v20350_v22 = vld [vmem:[#allocation2_spill] sm:$0xff] }
 0x4ff   : > { %5114 = vmatmul.mubr.bf16.vlgmr.msra.gmra.mrb[196].mxu1 %v17520_v54 }
 0x500   : > { %v4842_v23 = vmax.f32 %v4742_v48, 0.0  ;;  %5487 = vmatpush1.bf16.msra.mxu1 %v17341_v38  ;;  %12398 = vmatprep.mubr.msk.bf16.mxu1 %vm4984_vm3, %v17528_v7 }
 0x501   : > { %v4525_v27 = vpop.f32.mrb[160].mxu1  ;;  %5488 = vmatprep.subr.bf16.mxu1 %v17363_v15 }
 0x502   : > { %v4620_v35 = vadd.f32 %v4525_v27, %v17148_v31  ;;  %v4527_v62 = vpop.f32.mrb[161].mxu1  ;;  %v17645_v14 = vpack.c.bf16 %v4842_v23, %v4837_v49 }
 0x503   : > { %v4528_v58 = vpop.f32.mrb[162].mxu1 }
 0x504   : > { %20345 = vst [vmem:[#allocation46_spill] sm:$0xff] %v17645_v14  ;;  %v4747_v0 = vadd.f32 %v17509_v4, %v4620_v35  ;;  %v4625_v32 = vadd.f32 %v4528_v58, %v17151_v61  ;;  %v4530_v29 = vpop.f32.mrb[163].mxu1  ;;  %5173 = vmatpush1.bf16.msra.mxu0 %v17645_v14  ;;  %5489 = vmatpush1.bf16.msra.mxu1 %v20346_v46  ;;  %v20352_v35 = vld [vmem:[#allocation3_spill] sm:$0xff] }
 0x505   : > { %5490 = vmatprep.subr.bf16.mxu1 %v20347_v37  ;;  %5174 = vmatprep.subr.bf16.mxu0 %v20340_v44 }
 0x506   : > { %v4752_v55 = vadd.f32 %v17509_v4, %v4625_v32  ;;  %v4847_v31 = vmax.f32 %v4747_v0, 0.0  ;;  %v20353_v0 = vld [vmem:[#allocation17_spill] sm:$0xff]  ;;  %v20354_v32 = vld [vmem:[#allocation23_spill] sm:$0xff] }
 0x507   : > { %5124 = vmatmul.mubr.bf16.gmra.mrb[200].mxu1 %v17543_v24 }
 0x508   : > { %v4852_v39 = vmax.f32 %v4752_v55, 0.0  ;;  %5491 = vmatpush1.bf16.msra.mxu1 %v20348_v3  ;;  %12399 = vmatprep.mubr.msk.bf16.mxu1 %vm4984_vm3, %v17552_v47 }
 0x509   : > { %v4533_v61 = vpop.f32.mrb[164].mxu1  ;;  %5492 = vmatprep.subr.bf16.mxu1 %v20349_v19 }
 0x50a   : > { %v4630_v30 = vadd.f32 %v4533_v61, %v20350_v22  ;;  %v4535_v48 = vpop.f32.mrb[165].mxu1  ;;  %v17660_v49 = vpack.c.bf16 %v4852_v39, %v4847_v31  ;;  %v20355_v39 = vld [vmem:[#allocation21_spill] sm:$0xff]  ;;  %v20356_v22 = vld [vmem:[#allocation27_spill] sm:$0xff] }
 0x50b   : > { %v4536_v23 = vpop.f32.mrb[166].mxu1 }
 0x50c   : > { %20351 = vst [vmem:[#allocation10_spill] sm:$0xff] %v17660_v49  ;;  %v4757_v27 = vadd.f32 %v17509_v4, %v4630_v30  ;;  %v4635_v62 = vadd.f32 %v4536_v23, %v20352_v35  ;;  %v4538_v58 = vpop.f32.mrb[167].mxu1  ;;  %5175 = vmatpush1.bf16.msra.mxu0 %v17660_v49  ;;  %5493 = vmatpush1.bf16.msra.mxu1 %v20353_v0  ;;  %v20357_v30 = vld [vmem:[#allocation4_spill] sm:$0xff] }
 0x50d   : > { %5494 = vmatprep.subr.bf16.mxu1 %v20354_v32  ;;  %5176 = vmatprep.subr.bf16.mxu0 %v20340_v44  ;;  %v20359_v32 = vld [vmem:[#allocation5_spill] sm:$0xff] }
 0x50e   : > { %v4762_v29 = vadd.f32 %v17509_v4, %v4635_v62  ;;  %v4857_v55 = vmax.f32 %v4757_v27, 0.0 }
 0x50f   : > { %5134 = vmatmul.mubr.bf16.gmra.mrb[204].mxu1 %v17568_v51 }
 0x510   : > { %v4862_v31 = vmax.f32 %v4762_v29, 0.0  ;;  %5495 = vmatpush1.bf16.msra.mxu1 %v20355_v39  ;;  %12400 = vmatprep.mubr.msk.bf16.mxu1 %vm4984_vm3, %v17577_v57  ;;  %v20360_v29 = vld [vmem:[#allocation25_spill] sm:$0xff]  ;;  %v20361_v39 = vld [vmem:[#allocation31_spill] sm:$0xff] }
 0x511   : > { %v4541_v61 = vpop.f32.mrb[168].mxu1  ;;  %5496 = vmatprep.subr.bf16.mxu1 %v20356_v22 }
 0x512   : > { %v4640_v48 = vadd.f32 %v4541_v61, %v20357_v30  ;;  %v4543_v23 = vpop.f32.mrb[169].mxu1  ;;  %v17675_v35 = vpack.c.bf16 %v4862_v31, %v4857_v55  ;;  %v20362_v61 = vld [vmem:[#allocation29_spill] sm:$0xff]  ;;  %v20363_v30 = vld [vmem:[#allocation35_spill] sm:$0xff] }
 0x513   : > { %v4544_v58 = vpop.f32.mrb[170].mxu1 }
 0x514   : > { %20358 = vst [vmem:[#allocation15_spill] sm:$0xff] %v17675_v35  ;;  %v4767_v62 = vadd.f32 %v17509_v4, %v4640_v48  ;;  %v4645_v0 = vadd.f32 %v4544_v58, %v20359_v32  ;;  %v4546_v27 = vpop.f32.mrb[171].mxu1  ;;  %5177 = vmatpush1.bf16.msra.mxu0 %v17675_v35  ;;  %5497 = vmatpush1.bf16.msra.mxu1 %v20360_v29  ;;  %v20364_v48 = vld [vmem:[#allocation6_spill] sm:$0xff]  ;;  %v20366_v29 = vld [vmem:[#allocation7_spill] sm:$0xff] }
 0x515   : > { %5498 = vmatprep.subr.bf16.mxu1 %v20361_v39  ;;  %5178 = vmatprep.subr.bf16.mxu0 %v20340_v44 }
 0x516   : > { %v4772_v22 = vadd.f32 %v17509_v4, %v4645_v0  ;;  %v4867_v55 = vmax.f32 %v4767_v62, 0.0 }
 0x517   : > { %5144 = vmatmul.mubr.bf16.gmra.mrb[208].mxu1 %v17596_v25 }
 0x518   : > { %v4872_v31 = vmax.f32 %v4772_v22, 0.0  ;;  %5499 = vmatpush1.bf16.msra.mxu1 %v20362_v61  ;;  %12401 = vmatprep.mubr.msk.bf16.mxu1 %vm4984_vm3, %v17602_v33  ;;  %v20367_v22 = vld [vmem:[#allocation33_spill] sm:$0xff]  ;;  %v17699_v61 = vld [vmem:[%s20225_s5 + $0x4c] ss:$8 sps:$4 sm:$0xff]  }
 0x519   : > { %v4549_v32 = vpop.f32.mrb[172].mxu1  ;;  %5500 = vmatprep.subr.bf16.mxu1 %v20363_v30 }
 0x51a   : > { %v4650_v23 = vadd.f32 %v4549_v32, %v20364_v48  ;;  %v4551_v58 = vpop.f32.mrb[173].mxu1  ;;  %v17690_v27 = vpack.c.bf16 %v4872_v31, %v4867_v55  ;;  %v17714_v32 = vld [vmem:[%s20225_s5 + $0x48] ss:$8 sps:$4 sm:$0xff]  }
 0x51b   : > { %v4552_v39 = vpop.f32.mrb[174].mxu1  ;;  %v15122_v58 = vld [vmem:[%s20224_s4 + $0x3f0] ss:$12 sps:$4 sm:$0xff]  }
 0x51c   : > { %20365 = vst [vmem:[#allocation13_spill] sm:$0xff] %v17690_v27  ;;  %v4777_v0 = vadd.f32 %v17509_v4, %v4650_v23  ;;  %v4655_v19 = vadd.f32 %v4552_v39, %v20366_v29  ;;  %v4554_v62 = vpop.f32.mrb[175].mxu1  ;;  %5179 = vmatpush1.bf16.msra.mxu0 %v17690_v27  ;;  %5501 = vmatpush1.bf16.msra.mxu1 %v20367_v22  ;;  %v15124_v23 = vld [vmem:[%s20224_s4 + $0x3f4] ss:$12 sps:$4 sm:$0xff]  }
 0x51d   : > { %5502 = vmatprep.subr.bf16.mxu1 %v17489_v53  ;;  %5180 = vmatprep.subr.bf16.mxu0 %v20340_v44  ;;  %v15125_v62 = vld [vmem:[%s20224_s4 + $0x408] ss:$12 sps:$4 sm:$0xff]  }
 0x51e   : > { %v4782_v55 = vadd.f32 %v17509_v4, %v4655_v19  ;;  %v4877_v31 = vmax.f32 %v4777_v0, 0.0  ;;  %v17723_v4 = vld [vmem:[%s20225_s5 + $0x5c] ss:$8 sps:$4 sm:$0xff]   ;;  %v12415_v19 = vld [vmem:[%s20225_s5 + $0x88] sm:$0xff] }
 0x51f   : > { %5154 = vmatmul.mubr.bf16.gmra.mrb[212].mxu1 %v17615_v13  ;;  %v17807_v48 = vcombine.low %v12415_v19, %v12415_v19  ;;  %v15127_v0 = vld [vmem:[%s20224_s4 + $0x40c] ss:$12 sps:$4 sm:$0xff]  }
 0x520   : > { %v4882_v39 = vmax.f32 %v4782_v55, 0.0  ;;  %5503 = vmatpush1.bf16.msra.mxu1 %v17485_v12  ;;  %12426 = vmatprep.mubr.msk.bf16.mxu1 %vm4984_vm3, %v17699_v61  ;;  %v15130_v55 = vld [vmem:[%s20224_s4 + $0x424] ss:$12 sps:$4 sm:$0xff]  }
 0x521   : > { %5504 = vmatprep.subr.bf16.mxu1 %v17511_v20 }
 0x522   : > { %v17709_v29 = vpack.c.bf16 %v4882_v39, %v4877_v31  ;;  %v15128_v31 = vld [vmem:[%s20224_s4 + $0x420] ss:$12 sps:$4 sm:$0xff]   ;;  %v15140_v39 = vld [vmem:[%s20224_s4 + $0x488] ss:$12 sps:$4 sm:$0xff]  }
 0x524   : > { %20368 = vst [vmem:[#allocation2_spill] sm:$0xff] %v17709_v29  ;;  %5181 = vmatpush1.bf16.msra.mxu0 %v17709_v29  ;;  %5505 = vmatpush1.bf16.msra.mxu1 %v17504_v63 }
 0x525   : > { %5567 = vmatprep.subr.bf16.mxu0 %v17347_v43  ;;  %5648 = vmatprep.subr.bf16.mxu1 %v20340_v44 }
 0x527   : > { %5195 = vmatmul.mubr.bf16.vlgmr.msra.gmra.mrb[160].mxu0 %v17520_v54  ;;  %5519 = vmatmul.mubr.bf16.vlgmr.msra.gmra.mrb[216].mxu1 %v17714_v32  ;;  %v17738_v54 = vld [vmem:[%s20225_s5 + $0x58] ss:$8 sps:$4 sm:$0xff]  }
 0x528   : > { %5568 = vmatpush1.bf16.msra.mxu0 %v17343_v60  ;;  %5649 = vmatpush1.bf16.msra.mxu1 %v17538_v28 }
 0x529   : > { %5569 = vmatprep.subr.bf16.mxu0 %v17365_v18  ;;  %5650 = vmatprep.subr.bf16.mxu1 %v20340_v44 }
 0x52a   : > { %12403 = vmatprep.mubr.msk.bf16.mxu0 %vm4984_vm3, %v17528_v7  ;;  %12427 = vmatprep.mubr.msk.bf16.mxu1 %vm4984_vm3, %v17723_v4  ;;  %v17747_v7 = vld [vmem:[%s20225_s5 + $0x6c] ss:$8 sps:$4 sm:$0xff]  }
 0x52c   : > { %5570 = vmatpush1.bf16.msra.mxu0 %v17361_v50  ;;  %5651 = vmatpush1.bf16.msra.mxu1 %v17563_v26 }
 0x52d   : > { %5571 = vmatprep.subr.bf16.mxu0 %v17383_v59  ;;  %5652 = vmatprep.subr.bf16.mxu1 %v20340_v44 }
 0x52f   : > { %5203 = vmatmul.mubr.bf16.gmra.mrb[164].mxu0 %v17543_v24  ;;  %5529 = vmatmul.mubr.bf16.gmra.mrb[220].mxu1 %v17738_v54  ;;  %v17762_v24 = vld [vmem:[%s20225_s5 + $0x68] ss:$8 sps:$4 sm:$0xff]  }
 0x530   : > { %5572 = vmatpush1.bf16.msra.mxu0 %v17379_v45  ;;  %5653 = vmatpush1.bf16.msra.mxu1 %v17591_v34 }
 0x531   : > { %5573 = vmatprep.subr.bf16.mxu0 %v17401_v56  ;;  %5654 = vmatprep.subr.bf16.mxu1 %v20340_v44 }
 0x532   : > { %12404 = vmatprep.mubr.msk.bf16.mxu0 %vm4984_vm3, %v17552_v47  ;;  %12428 = vmatprep.mubr.msk.bf16.mxu1 %vm4984_vm3, %v17747_v7  ;;  %v17771_v47 = vld [vmem:[%s20225_s5 + $0x7c] ss:$8 sps:$4 sm:$0xff]  }
 0x534   : > { %5574 = vmatpush1.bf16.msra.mxu0 %v17397_v2  ;;  %5655 = vmatpush1.bf16.msra.mxu1 %v17613_v1 }
 0x535   : > { %5575 = vmatprep.subr.bf16.mxu0 %v17419_v9  ;;  %5656 = vmatprep.subr.bf16.mxu1 %v20340_v44 }
 0x537   : > { %5211 = vmatmul.mubr.bf16.gmra.mrb[168].mxu0 %v17568_v51  ;;  %5539 = vmatmul.mubr.bf16.gmra.mrb[224].mxu1 %v17762_v24  ;;  %v17786_v51 = vld [vmem:[%s20225_s5 + $0x78] ss:$8 sps:$4 sm:$0xff]  }
 0x538   : > { %5576 = vmatpush1.bf16.msra.mxu0 %v17415_v36  ;;  %5657 = vmatpush1.bf16.msra.mxu1 %v17630_v17 }
 0x539   : > { %5577 = vmatprep.subr.bf16.mxu0 %v17437_v10  ;;  %5658 = vmatprep.subr.bf16.mxu1 %v20340_v44 }
 0x53a   : > { %12405 = vmatprep.mubr.msk.bf16.mxu0 %vm4984_vm3, %v17577_v57  ;;  %12429 = vmatprep.mubr.msk.bf16.mxu1 %vm4984_vm3, %v17771_v47  ;;  %v17795_v57 = vcombine.high %v12415_v19, %v12415_v19  ;;  %v15146_v19 = vld [vmem:[%s20224_s4 + $0x3e0] ss:$12 sps:$4 sm:$0xff]  }
 0x53c   : > { %5578 = vmatpush1.bf16.msra.mxu0 %v17433_v5  ;;  %5659 = vmatpush1.bf16.msra.mxu1 %v17645_v14 }
 0x53d   : > { %5579 = vmatprep.subr.bf16.mxu0 %v17455_v40  ;;  %5660 = vmatprep.subr.bf16.mxu1 %v20340_v44 }
 0x53f   : > { %5219 = vmatmul.mubr.bf16.gmra.mrb[172].mxu0 %v17596_v25  ;;  %5549 = vmatmul.mubr.bf16.gmra.mrb[228].mxu1 %v17786_v51  ;;  %v15118_v25 = vld [vmem:[%s20224_s4 + $0x3c4] ss:$12 sps:$4 sm:$0xff]  }
 0x540   : > { %5580 = vmatpush1.bf16.msra.mxu0 %v17451_v41  ;;  %5661 = vmatpush1.bf16.msra.mxu1 %v17660_v49 }
 0x541   : > { %5581 = vmatprep.subr.bf16.mxu0 %v17473_v42  ;;  %5662 = vmatprep.subr.bf16.mxu1 %v20340_v44 }
 0x542   : > { %12406 = vmatprep.mubr.msk.bf16.mxu0 %vm4984_vm3, %v17602_v33  ;;  %12430 = vmatprep.mubr.msk.bf16.mxu1 %vm4984_vm3, %v17795_v57  ;;  %v15116_v33 = vld [vmem:[%s20224_s4 + $0x3c0] ss:$12 sps:$4 sm:$0xff]  }
 0x544   : > { %5582 = vmatpush1.bf16.msra.mxu0 %v17469_v11  ;;  %5663 = vmatpush1.bf16.msra.mxu1 %v17675_v35 }
 0x545   : > { %5583 = vmatprep.subr.bf16.mxu0 %v17491_v21  ;;  %5664 = vmatprep.subr.bf16.mxu1 %v20340_v44 }
 0x547   : > { %5227 = vmatmul.mubr.bf16.gmra.mrb[176].mxu0 %v17615_v13  ;;  %5559 = vmatmul.mubr.bf16.gmra.mrb[232].mxu1 %v17807_v48  ;;  %v15121_v13 = vld [vmem:[%s20224_s4 + $0x3dc] ss:$12 sps:$4 sm:$0xff]  }
 0x548   : > { %5584 = vmatpush1.bf16.msra.mxu0 %v17487_v16  ;;  %5665 = vmatpush1.bf16.msra.mxu1 %v17690_v27 }
 0x549   : > { %5585 = vmatprep.subr.bf16.mxu0 %v17513_v52  ;;  %5666 = vmatprep.subr.bf16.mxu1 %v20340_v44 }
 0x54a   : > { %12431 = vmatprep.mubr.msk.bf16.mxu0 %vm4984_vm3, %v17699_v61  ;;  %12436 = vmatprep.mubr.msk.bf16.mxu1 %vm4984_vm3, %v17699_v61  ;;  %v15119_v61 = vld [vmem:[%s20224_s4 + $0x3d8] ss:$12 sps:$4 sm:$0xff]  }
 0x54c   : > { %5586 = vmatpush1.bf16.msra.mxu0 %v17506_v6  ;;  %5667 = vmatpush1.bf16.msra.mxu1 %v17709_v29 }
 0x54d   : > { %6546 = vmatprep.subr.bf16.mxu0 %v15118_v25  ;;  %13417 = vmatprep.subr.bf16.mxu1 %v15140_v39  ;;  %v15139_v25 = vld [vmem:[%s20224_s4 + $0x46c] ss:$12 sps:$4 sm:$0xff]   ;;  %v15153_v39 = vld [vmem:[%s20224_s4 + $0x4b4] ss:$12 sps:$4 sm:$0xff]  }
 0x54f   : > { %5600 = vmatmul.mubr.bf16.vlgmr.msra.gmra.mrb[180].mxu0 %v17714_v32  ;;  %5681 = vmatmul.mubr.bf16.vlgmr.msra.gmra.mrb[236].mxu1 %v17714_v32  ;;  %v15133_v32 = vld [vmem:[%s20224_s4 + $0x43c] ss:$12 sps:$4 sm:$0xff]  }
 0x550   : > { %12432 = vmatprep.mubr.msk.bf16.mxu0 %vm4984_vm3, %v17723_v4  ;;  %12437 = vmatprep.mubr.msk.bf16.mxu1 %vm4984_vm3, %v17723_v4  ;;  %v15141_v4 = vld [vmem:[%s20224_s4 + $0x3c8] ss:$12 sps:$4 sm:$0xff]  }
 0x551   : > { %6547 = vmatpush1.bf16.msra.mxu0 %v15116_v33  ;;  %13418 = vmatpush3.bf16.msra.mxu1 %v15141_v4  ;;  %v15150_v33 = vld [vmem:[%s20224_s4 + $0x4b8] ss:$12 sps:$4 sm:$0xff]   ;;  %v15151_v4 = vld [vmem:[%s20224_s4 + $0x4b0] ss:$12 sps:$4 sm:$0xff]  }
 0x552   : > { %6548 = vmatprep.subr.bf16.mxu0 %v15121_v13  ;;  %v15154_v13 = vld [vmem:[%s20224_s4 + $0x3f8] ss:$12 sps:$4 sm:$0xff]  }
 0x555   : > { %6549 = vmatpush1.bf16.msra.mxu0 %v15119_v61  ;;  %v15137_v61 = vld [vmem:[%s20224_s4 + $0x468] ss:$12 sps:$4 sm:$0xff]  }
 0x556   : > { %6550 = vmatprep.subr.bf16.mxu0 %v15124_v23  ;;  %v15158_v23 = vld [vmem:[%s20224_s4 + $0x4d0] ss:$12 sps:$4 sm:$0xff]  }
 0x557   : > { %5610 = vmatmul.mubr.bf16.gmra.mrb[184].mxu0 %v17738_v54  ;;  %5689 = vmatmul.mubr.bf16.gmra.mrb[240].mxu1 %v17738_v54  ;;  %v15145_v54 = vld [vmem:[%s20224_s4 + $0x4a0] ss:$12 sps:$4 sm:$0xff]  }
 0x558   : > { %12433 = vmatprep.mubr.msk.bf16.mxu0 %vm4984_vm3, %v17747_v7  ;;  %12438 = vmatprep.mubr.msk.bf16.mxu1 %vm4984_vm3, %v17747_v7  ;;  %v15131_v7 = vld [vmem:[%s20224_s4 + $0x438] ss:$12 sps:$4 sm:$0xff]  }
 0x559   : > { %6551 = vmatpush1.bf16.msra.mxu0 %v15122_v58  ;;  %13419 = vmatprep.subr.bf16.mxu1 %v15145_v54  ;;  %v15142_v58 = vld [vmem:[%s20224_s4 + $0x480] ss:$12 sps:$4 sm:$0xff]   ;;  %v15173_v54 = vld [vmem:[%s20224_s4 + $0x518] ss:$12 sps:$4 sm:$0xff]  }
 0x55a   : > { %6552 = vmatprep.subr.bf16.mxu0 %v15127_v0  ;;  %13420 = vmatpush3.bf16.msra.mxu1 %v15146_v19  ;;  %v15149_v0 = vld [vmem:[%s20224_s4 + $0x49c] ss:$12 sps:$4 sm:$0xff]  }
 0x55b   : > { %13421 = vmatprep.subr.bf16.mxu1 %v15150_v33  ;;  %v15155_v19 = vld [vmem:[%s20224_s4 + $0x4c8] ss:$12 sps:$4 sm:$0xff]   ;;  %v15179_v33 = vld [vmem:[%s20224_s4 + $0x470] ss:$12 sps:$4 sm:$0xff]  }
 0x55d   : > { %6553 = vmatpush1.bf16.msra.mxu0 %v15125_v62  ;;  %v15163_v62 = vld [vmem:[%s20224_s4 + $0x4e8] ss:$12 sps:$4 sm:$0xff]  }
 0x55e   : > { %6554 = vmatprep.subr.bf16.mxu0 %v15130_v55  ;;  %13422 = vmatpush3.bf16.msra.mxu1 %v15154_v13  ;;  %v15164_v55 = vld [vmem:[%s20224_s4 + $0x428] ss:$12 sps:$4 sm:$0xff]   ;;  %v15160_v13 = vld [vmem:[%s20224_s4 + $0x4e0] ss:$12 sps:$4 sm:$0xff]  }
 0x55f   : > { %5620 = vmatmul.mubr.bf16.gmra.mrb[188].mxu0 %v17762_v24  ;;  %5697 = vmatmul.mubr.bf16.gmra.mrb[244].mxu1 %v17762_v24  ;;  %v15136_v24 = vld [vmem:[%s20224_s4 + $0x454] ss:$12 sps:$4 sm:$0xff]  }
 0x560   : > { %12434 = vmatprep.mubr.msk.bf16.mxu0 %vm4984_vm3, %v17771_v47  ;;  %12439 = vmatprep.mubr.msk.bf16.mxu1 %vm4984_vm3, %v17771_v47  ;;  %v15134_v47 = vld [vmem:[%s20224_s4 + $0x450] ss:$12 sps:$4 sm:$0xff]  }
 0x561   : > { %6555 = vmatpush1.bf16.msra.mxu0 %v15128_v31  ;;  %13423 = vmatprep.subr.bf16.mxu1 %v15158_v23  ;;  %v15147_v31 = vld [vmem:[%s20224_s4 + $0x498] ss:$12 sps:$4 sm:$0xff]   ;;  %v15172_v23 = vld [vmem:[%s20224_s4 + $0x514] ss:$12 sps:$4 sm:$0xff]  }
 0x562   : > { %6556 = vmatprep.subr.bf16.mxu0 %v15133_v32  ;;  %v15169_v32 = vld [vmem:[%s20224_s4 + $0x440] ss:$12 sps:$4 sm:$0xff]  }
 0x565   : > { %6557 = vmatpush1.bf16.msra.mxu0 %v15131_v7  ;;  %v15157_v7 = vld [vmem:[%s20224_s4 + $0x4cc] ss:$12 sps:$4 sm:$0xff]  }
 0x566   : > { %6558 = vmatprep.subr.bf16.mxu0 %v15136_v24  ;;  %v15174_v24 = vld [vmem:[%s20224_s4 + $0x458] ss:$12 sps:$4 sm:$0xff]  }
 0x567   : > { %5630 = vmatmul.mubr.bf16.gmra.mrb[192].mxu0 %v17786_v51  ;;  %5705 = vmatmul.mubr.bf16.gmra.mrb[248].mxu1 %v17786_v51  ;;  %v15144_v51 = vld [vmem:[%s20224_s4 + $0x484] ss:$12 sps:$4 sm:$0xff]  }
 0x568   : > { %12435 = vmatprep.mubr.msk.bf16.mxu0 %vm4984_vm3, %v17795_v57  ;;  %12440 = vmatprep.mubr.msk.bf16.mxu1 %vm4984_vm3, %v17795_v57  ;;  %v15159_v57 = vld [vmem:[%s20224_s4 + $0x410] ss:$12 sps:$4 sm:$0xff]  }
 0x569   : > { %6559 = vmatpush1.bf16.msra.mxu0 %v15134_v47  ;;  %13424 = vmatpush3.bf16.msra.mxu1 %v15159_v57  ;;  %v15162_v47 = vld [vmem:[%s20224_s4 + $0x4e4] ss:$12 sps:$4 sm:$0xff]  }
 0x56a   : > { %6560 = vmatprep.subr.bf16.mxu0 %v15139_v25  ;;  %13425 = vmatprep.subr.bf16.mxu1 %v15163_v62  ;;  %v15178_v25 = vld [vmem:[%s20224_s4 + $0x530] ss:$12 sps:$4 sm:$0xff]   ;;  %v15175_v62 = vld [vmem:[%s20224_s4 + $0x528] ss:$12 sps:$4 sm:$0xff]  }
 0x56b   : > { %v15170_v57 = vld [vmem:[%s20224_s4 + $0x510] ss:$12 sps:$4 sm:$0xff]  }
 0x56d   : > { %6561 = vmatpush1.bf16.msra.mxu0 %v15137_v61  ;;  %13426 = vmatpush3.bf16.msra.mxu1 %v15164_v55  ;;  %v15167_v61 = vld [vmem:[%s20224_s4 + $0x4fc] ss:$12 sps:$4 sm:$0xff]   ;;  %v15182_v55 = vld [vmem:[%s20224_s4 + $0x544] ss:$12 sps:$4 sm:$0xff]  }
 0x56e   : > { %6562 = vmatprep.subr.bf16.mxu0 %v15144_v51  ;;  %v15165_v51 = vld [vmem:[%s20224_s4 + $0x4f8] ss:$12 sps:$4 sm:$0xff]  }
 0x56f   : > { %5640 = vmatmul.mubr.bf16.gmra.mrb[196].mxu0 %v17807_v48  ;;  %5713 = vmatmul.mubr.bf16.gmra.mrb[252].mxu1 %v17807_v48  ;;  %v15168_v48 = vld [vmem:[%s20224_s4 + $0x500] ss:$12 sps:$4 sm:$0xff]  }
 0x570   : > { %13427 = vmatprep.subr.bf16.mxu1 %v15168_v48 }
 0x571   : > { %6563 = vmatpush1.bf16.msra.mxu0 %v15142_v58  ;;  %13428 = vmatpush3.bf16.msra.mxu1 %v15169_v32  ;;  %v15177_v58 = vld [vmem:[%s20224_s4 + $0x52c] ss:$12 sps:$4 sm:$0xff]  }
 0x572   : > { %6564 = vmatprep.subr.bf16.mxu0 %v15149_v0  ;;  %13429 = vmatprep.subr.bf16.mxu1 %v15173_v54  ;;  %v15186_v0 = vld [vmem:[%s20224_s4 + $0x608] ss:$12 sps:$4 sm:$0xff]  }
 0x575   : > { %6565 = vmatpush1.bf16.msra.mxu0 %v15147_v31  ;;  %13430 = vmatpush3.bf16.msra.mxu1 %v15174_v24 }
 0x576   : > { %6566 = vmatprep.subr.bf16.mxu0 %v15153_v39  ;;  %13431 = vmatprep.subr.bf16.mxu1 %v15178_v25 }
 0x579   : > { %6567 = vmatpush1.bf16.msra.mxu0 %v15151_v4  ;;  %13432 = vmatpush3.bf16.msra.mxu1 %v15179_v33 }
 0x57a   : > { %6568 = vmatprep.subr.bf16.mxu0 %v15157_v7  ;;  %13463 = vmatprep.subr.bf16.mxu1 %v15186_v0 }
 0x57d   : > { %6569 = vmatpush1.bf16.msra.mxu0 %v15155_v19 }
 0x57e   : > { %6570 = vmatprep.subr.bf16.mxu0 %v15162_v47 }
 0x581   : > { %6571 = vmatpush1.bf16.msra.mxu0 %v15160_v13 }
 0x582   : > { %6572 = vmatprep.subr.bf16.mxu0 %v15167_v61 }
 0x585   : > { %6573 = vmatpush1.bf16.msra.mxu0 %v15165_v51 }
 0x586   : > { %6574 = vmatprep.subr.bf16.mxu0 %v15172_v23 }
 0x589   : > { %6575 = vmatpush1.bf16.msra.mxu0 %v15170_v57 }
 0x58a   : > { %6576 = vmatprep.subr.bf16.mxu0 %v15177_v58 }
 0x58d   : > { %6577 = vmatpush1.bf16.msra.mxu0 %v15175_v62 }
 0x58e   : > { %6627 = vmatprep.subr.bf16.mxu0 %v15182_v55 }
 0x5aa   : > { %v5034_v31 = vpop.f32.mrb[176].mxu1 }
 0x5ab   : > { %v5036_v39 = vpop.f32.mrb[177].mxu1 }
 0x5ac   : > { %v5038_v48 = vpop.f32.mrb[178].mxu1 }
 0x5ad   : > { %v18001_v32 = vpack.c.bf16 %v5038_v48, %v5034_v31  ;;  %v5040_v4 = vpop.f32.mrb[179].mxu1 }
 0x5ae   : > { %v18003_v54 = vpack.c.bf16 %v5040_v4, %v5036_v39 }
 0x5b2   : > { %v5044_v7 = vpop.f32.mrb[180].mxu1 }
 0x5b3   : > { %v5046_v24 = vpop.f32.mrb[181].mxu1 }
 0x5b4   : > { %v5048_v19 = vpop.f32.mrb[182].mxu1 }
 0x5b5   : > { %v18005_v47 = vpack.c.bf16 %v5048_v19, %v5044_v7  ;;  %v5050_v25 = vpop.f32.mrb[183].mxu1 }
 0x5b6   : > { %v18007_v33 = vpack.c.bf16 %v5050_v25, %v5046_v24 }
 0x5ba   : > { %v5054_v13 = vpop.f32.mrb[184].mxu1 }
 0x5bb   : > { %v5056_v61 = vpop.f32.mrb[185].mxu1 }
 0x5bc   : > { %v5058_v51 = vpop.f32.mrb[186].mxu1 }
 0x5bd   : > { %v18009_v23 = vpack.c.bf16 %v5058_v51, %v5054_v13  ;;  %v5060_v57 = vpop.f32.mrb[187].mxu1 }
 0x5be   : > { %v18011_v58 = vpack.c.bf16 %v5060_v57, %v5056_v61 }
 0x5c2   : > { %v5064_v0 = vpop.f32.mrb[188].mxu1 }
 0x5c3   : > { %v5066_v62 = vpop.f32.mrb[189].mxu1 }
 0x5c4   : > { %v5068_v55 = vpop.f32.mrb[190].mxu1 }
 0x5c5   : > { %v18013_v31 = vpack.c.bf16 %v5068_v55, %v5064_v0  ;;  %v5070_v39 = vpop.f32.mrb[191].mxu1 }
 0x5c6   : > { %v18015_v48 = vpack.c.bf16 %v5070_v39, %v5066_v62 }
 0x5ca   : > { %v18017_v4 = vpop.f32.mrb[192].mxu1 }
 0x5cb   : > { %v18019_v7 = vpop.f32.mrb[193].mxu1 }
 0x5cc   : > { %v5078_v24 = vpop.f32.mrb[194].mxu1 }
 0x5cd   : > { %v5079_v19 = vpop.f32.mrb[195].mxu1 }
 0x5d2   : > { %v5115_v25 = vpop.f32.mrb[196].mxu1 }
 0x5d3   : > { %v5117_v13 = vpop.f32.mrb[197].mxu1 }
 0x5d4   : > { %v5119_v51 = vpop.f32.mrb[198].mxu1 }
 0x5d5   : > { %v18021_v29 = vpack.c.bf16 %v5119_v51, %v5115_v25  ;;  %v5121_v61 = vpop.f32.mrb[199].mxu1 }
 0x5d6   : > { %v18023_v57 = vpack.c.bf16 %v5121_v61, %v5117_v13 }
 0x5da   : > { %v5125_v27 = vpop.f32.mrb[200].mxu1 }
 0x5db   : > { %v5127_v0 = vpop.f32.mrb[201].mxu1 }
 0x5dc   : > { %v5129_v55 = vpop.f32.mrb[202].mxu1 }
 0x5dd   : > { %v18025_v35 = vpack.c.bf16 %v5129_v55, %v5125_v27  ;;  %v5131_v62 = vpop.f32.mrb[203].mxu1 }
 0x5de   : > { %v18027_v39 = vpack.c.bf16 %v5131_v62, %v5127_v0 }
 0x5e2   : > { %v5135_v49 = vpop.f32.mrb[204].mxu1 }
 0x5e3   : > { %v5137_v14 = vpop.f32.mrb[205].mxu1 }
 0x5e4   : > { %v5139_v24 = vpop.f32.mrb[206].mxu1 }
 0x5e5   : > { %v18029_v19 = vpack.c.bf16 %v5139_v24, %v5135_v49  ;;  %v5141_v17 = vpop.f32.mrb[207].mxu1 }
 0x5e6   : > { %v18031_v1 = vpack.c.bf16 %v5141_v17, %v5137_v14 }
 0x5ea   : > { %v5145_v25 = vpop.f32.mrb[208].mxu1 }
 0x5eb   : > { %v5147_v51 = vpop.f32.mrb[209].mxu1 }
 0x5ec   : > { %v5149_v13 = vpop.f32.mrb[210].mxu1 }
 0x5ed   : > { %v18033_v61 = vpack.c.bf16 %v5149_v13, %v5145_v25  ;;  %v5151_v34 = vpop.f32.mrb[211].mxu1 }
 0x5ee   : > { %v18035_v26 = vpack.c.bf16 %v5151_v34, %v5147_v51  ;;  %v15180_v34 = vld [vmem:[%s20224_s4 + $0x540] ss:$12 sps:$4 sm:$0xff]   ;;  %v15187_v51 = vld [vmem:[%s20224_s4 + $0x548] ss:$12 sps:$4 sm:$0xff]  }
 0x5f2   : > { %v18037_v27 = vpop.f32.mrb[212].mxu1 }
 0x5f3   : > { %v18039_v0 = vpop.f32.mrb[213].mxu1 }
 0x5f4   : > { %v5159_v55 = vpop.f32.mrb[214].mxu1 }
 0x5f5   : > { %v5160_v62 = vpop.f32.mrb[215].mxu1 }
 0x5fa   : > { %v5520_v28 = vpop.f32.mrb[216].mxu1  ;;  %v5196_v49 = vpop.f32.mrb[160].mxu0 }
 0x5fb   : > { %v5522_v24 = vpop.f32.mrb[217].mxu1  ;;  %v5198_v6 = vpop.f32.mrb[161].mxu0 }
 0x5fc   : > { %v5524_v17 = vpop.f32.mrb[218].mxu1  ;;  %v5199_v14 = vpop.f32.mrb[162].mxu0  ;;  %v15185_v6 = vld [vmem:[%s20224_s4 + $0x55c] ss:$12 sps:$4 sm:$0xff]  }
 0x5fd   : > { %v5720_v52 = vpack.c.bf16 %v5524_v17, %v5520_v28  ;;  %v18041_v16 = vpack.c.bf16 %v5199_v14, %v5196_v49  ;;  %v5526_v25 = vpop.f32.mrb[219].mxu1  ;;  %v5201_v13 = vpop.f32.mrb[163].mxu0  ;;  %v15191_v28 = vld [vmem:[%s20224_s4 + $0x620] ss:$12 sps:$4 sm:$0xff]   ;;  %v15183_v49 = vld [vmem:[%s20224_s4 + $0x558] ss:$12 sps:$4 sm:$0xff]  }
 0x5fe   : > { %v5721_v21 = vpack.c.bf16 %v5526_v25, %v5522_v24  ;;  %v15192_v24 = vld [vmem:[%s20224_s4 + $0x560] ss:$12 sps:$4 sm:$0xff]  }
 0x600   : > { %6578 = vmatprep.mubr.bf16.mxu0 %v5721_v21  ;;  %6821 = vmatprep.mubr.bf16.mxu1 %v5721_v21  ;;  %v15190_v21 = vld [vmem:[%s20224_s4 + $0x574] ss:$12 sps:$4 sm:$0xff]  }
 0x601   : > { %6579 = vmatmul.mubr.bf16.vlgmr.msra.gmra.mrb[200].mxu0 %v5720_v52  ;;  %6822 = vmatmul.mubr.bf16.vlgmr.msra.gmra.mrb[0].mxu1 %v5720_v52  ;;  %v15196_v52 = vld [vmem:[%s20224_s4 + $0x638] ss:$12 sps:$4 sm:$0xff]  }
 0x602   : > { %6628 = vmatpush1.bf16.msra.mxu0 %v15180_v34  ;;  %v5530_v55 = vpop.f32.mrb[220].mxu1  ;;  %v5204_v62 = vpop.f32.mrb[164].mxu0  ;;  %13464 = vmatpush3.bf16.msra.mxu1 %v15187_v51 }
 0x603   : > { %v5532_v17 = vpop.f32.mrb[221].mxu1  ;;  %v5206_v14 = vpop.f32.mrb[165].mxu0  ;;  %6629 = vmatprep.subr.bf16.mxu0 %v15185_v6  ;;  %13465 = vmatprep.subr.bf16.mxu1 %v15191_v28  ;;  %v15188_v6 = vld [vmem:[%s20224_s4 + $0x570] ss:$12 sps:$4 sm:$0xff]   ;;  %v15200_v28 = vld [vmem:[%s20224_s4 + $0x578] ss:$12 sps:$4 sm:$0xff]  }
 0x604   : > { %v5534_v25 = vpop.f32.mrb[222].mxu1  ;;  %v5207_v13 = vpop.f32.mrb[166].mxu0 }
 0x605   : > { %v5725_v34 = vpack.c.bf16 %v5534_v25, %v5530_v55  ;;  %v18067_v51 = vpack.c.bf16 %v5207_v13, %v5204_v62  ;;  %v5536_v11 = vpop.f32.mrb[223].mxu1  ;;  %v5209_v42 = vpop.f32.mrb[167].mxu0  ;;  %v15195_v55 = vld [vmem:[%s20224_s4 + $0x58c] ss:$12 sps:$4 sm:$0xff]  }
 0x606   : > { %v5726_v41 = vpack.c.bf16 %v5536_v11, %v5532_v17  ;;  %6630 = vmatpush1.bf16.msra.mxu0 %v15183_v49  ;;  %13466 = vmatpush3.bf16.msra.mxu1 %v15192_v24  ;;  %v15204_v42 = vld [vmem:[%s20224_s4 + $0x650] ss:$12 sps:$4 sm:$0xff]   ;;  %v15193_v49 = vld [vmem:[%s20224_s4 + $0x588] ss:$12 sps:$4 sm:$0xff]  }
 0x607   : > { %6631 = vmatprep.subr.bf16.mxu0 %v15190_v21  ;;  %13467 = vmatprep.subr.bf16.mxu1 %v15196_v52  ;;  %v15205_v24 = vld [vmem:[%s20224_s4 + $0x590] ss:$12 sps:$4 sm:$0xff]   ;;  %v15209_v21 = vld [vmem:[%s20224_s4 + $0x668] ss:$12 sps:$4 sm:$0xff]  }
 0x608   : > { %6588 = vmatprep.mubr.bf16.mxu0 %v5726_v41  ;;  %6829 = vmatprep.mubr.bf16.mxu1 %v5726_v41  ;;  %v15199_v41 = vld [vmem:[%s20224_s4 + $0x5a4] ss:$12 sps:$4 sm:$0xff]  }
 0x609   : > { %6589 = vmatmul.mubr.bf16.gmra.mrb[204].mxu0 %v5725_v34  ;;  %6830 = vmatmul.mubr.bf16.gmra.mrb[4].mxu1 %v5725_v34 }
 0x60a   : > { %6632 = vmatpush1.bf16.msra.mxu0 %v15188_v6  ;;  %v5540_v11 = vpop.f32.mrb[224].mxu1  ;;  %v5212_v62 = vpop.f32.mrb[168].mxu0  ;;  %13468 = vmatpush3.bf16.msra.mxu1 %v15200_v28 }
 0x60b   : > { %v5542_v17 = vpop.f32.mrb[225].mxu1  ;;  %v5214_v14 = vpop.f32.mrb[169].mxu0  ;;  %6633 = vmatprep.subr.bf16.mxu0 %v15195_v55  ;;  %13469 = vmatprep.subr.bf16.mxu1 %v15204_v42  ;;  %v15197_v55 = vld [vmem:[%s20224_s4 + $0x5a0] ss:$12 sps:$4 sm:$0xff]   ;;  %v15210_v42 = vld [vmem:[%s20224_s4 + $0x5a8] ss:$12 sps:$4 sm:$0xff]  }
 0x60c   : > { %v5544_v52 = vpop.f32.mrb[226].mxu1  ;;  %v5215_v25 = vpop.f32.mrb[170].mxu0  ;;  %v15215_v14 = vld [vmem:[%s20224_s4 + $0x5c0] ss:$12 sps:$4 sm:$0xff]  }
 0x60d   : > { %v5730_v13 = vpack.c.bf16 %v5544_v52, %v5540_v11  ;;  %v18093_v34 = vpack.c.bf16 %v5215_v25, %v5212_v62  ;;  %v5546_v6 = vpop.f32.mrb[227].mxu1  ;;  %v5217_v28 = vpop.f32.mrb[171].mxu0  ;;  %v15203_v11 = vld [vmem:[%s20224_s4 + $0x5bc] ss:$12 sps:$4 sm:$0xff]   ;;  %v15214_v62 = vld [vmem:[%s20224_s4 + $0x680] ss:$12 sps:$4 sm:$0xff]  }
 0x60e   : > { %v5731_v40 = vpack.c.bf16 %v5546_v6, %v5542_v17  ;;  %6634 = vmatpush1.bf16.msra.mxu0 %v15193_v49  ;;  %13470 = vmatpush3.bf16.msra.mxu1 %v15205_v24  ;;  %v15201_v17 = vld [vmem:[%s20224_s4 + $0x5b8] ss:$12 sps:$4 sm:$0xff]  }
 0x60f   : > { %6635 = vmatprep.subr.bf16.mxu0 %v15199_v41  ;;  %13471 = vmatprep.subr.bf16.mxu1 %v15209_v21  ;;  %v15219_v52 = vld [vmem:[%s20224_s4 + $0x698] ss:$12 sps:$4 sm:$0xff]  }
 0x610   : > { %6598 = vmatprep.mubr.bf16.mxu0 %v5731_v40  ;;  %6837 = vmatprep.mubr.bf16.mxu1 %v5731_v40  ;;  %v15208_v40 = vld [vmem:[%s20224_s4 + $0x5d4] ss:$12 sps:$4 sm:$0xff]  }
 0x611   : > { %6599 = vmatmul.mubr.bf16.gmra.mrb[208].mxu0 %v5730_v13  ;;  %6838 = vmatmul.mubr.bf16.gmra.mrb[8].mxu1 %v5730_v13 }
 0x612   : > { %6636 = vmatpush1.bf16.msra.mxu0 %v15197_v55  ;;  %v5550_v49 = vpop.f32.mrb[228].mxu1  ;;  %v5220_v24 = vpop.f32.mrb[172].mxu0  ;;  %13472 = vmatpush3.bf16.msra.mxu1 %v15210_v42 }
 0x613   : > { %v5552_v41 = vpop.f32.mrb[229].mxu1  ;;  %v5222_v21 = vpop.f32.mrb[173].mxu0  ;;  %6637 = vmatprep.subr.bf16.mxu0 %v15203_v11  ;;  %13473 = vmatprep.subr.bf16.mxu1 %v15214_v62  ;;  %v15206_v11 = vld [vmem:[%s20224_s4 + $0x5d0] ss:$12 sps:$4 sm:$0xff]   ;;  %v15220_v62 = vld [vmem:[%s20224_s4 + $0x5d8] ss:$12 sps:$4 sm:$0xff]  }
 0x614   : > { %v5554_v25 = vpop.f32.mrb[230].mxu1  ;;  %v5223_v13 = vpop.f32.mrb[174].mxu0 }
 0x615   : > { %v5735_v6 = vpack.c.bf16 %v5554_v25, %v5550_v49  ;;  %v18119_v28 = vpack.c.bf16 %v5223_v13, %v5220_v24  ;;  %v5556_v55 = vpop.f32.mrb[231].mxu1  ;;  %v5225_v42 = vpop.f32.mrb[175].mxu0  ;;  %v15213_v49 = vld [vmem:[%s20224_s4 + $0x5ec] ss:$12 sps:$4 sm:$0xff]   ;;  %v15224_v24 = vld [vmem:[%s20224_s4 + $0x6b0] ss:$12 sps:$4 sm:$0xff]  }
 0x616   : > { %v5736_v5 = vpack.c.bf16 %v5556_v55, %v5552_v41  ;;  %6638 = vmatpush1.bf16.msra.mxu0 %v15201_v17  ;;  %13474 = vmatpush3.bf16.msra.mxu1 %v15215_v14  ;;  %v15211_v41 = vld [vmem:[%s20224_s4 + $0x5e8] ss:$12 sps:$4 sm:$0xff]  }
 0x617   : > { %6639 = vmatprep.subr.bf16.mxu0 %v15208_v40  ;;  %13475 = vmatprep.subr.bf16.mxu1 %v15219_v52  ;;  %v15218_v52 = vld [vmem:[%s20224_s4 + $0x604] ss:$12 sps:$4 sm:$0xff]  }
 0x618   : > { %6608 = vmatprep.mubr.bf16.mxu0 %v5736_v5  ;;  %6845 = vmatprep.mubr.bf16.mxu1 %v5736_v5 }
 0x619   : > { %6609 = vmatmul.mubr.bf16.gmra.mrb[212].mxu0 %v5735_v6  ;;  %6846 = vmatmul.mubr.bf16.gmra.mrb[12].mxu1 %v5735_v6  ;;  %v15225_v6 = vld [vmem:[%s20224_s4 + $0x5f0] ss:$12 sps:$4 sm:$0xff]  }
 0x61a   : > { %6640 = vmatpush1.bf16.msra.mxu0 %v15206_v11  ;;  %v18133_v17 = vpop.f32.mrb[176].mxu0  ;;  %v5560_v14 = vpop.f32.mrb[232].mxu1  ;;  %13476 = vmatpush3.bf16.msra.mxu1 %v15220_v62  ;;  %v15216_v11 = vld [vmem:[%s20224_s4 + $0x600] ss:$12 sps:$4 sm:$0xff]  }
 0x61b   : > { %v5230_v21 = vpop.f32.mrb[177].mxu0  ;;  %6641 = vmatprep.subr.bf16.mxu0 %v15213_v49  ;;  %v5562_v40 = vpop.f32.mrb[233].mxu1  ;;  %13477 = vmatprep.subr.bf16.mxu1 %v15224_v24  ;;  %v5740_v62 = vpack.c.bf16 %v5560_v14, %v5560_v14  ;;  %v15223_v49 = vld [vmem:[%s20224_s4 + $0x61c] ss:$12 sps:$4 sm:$0xff]  }
 0x61c   : > { %v5231_v5 = vpop.f32.mrb[178].mxu0  ;;  %v5741_v25 = vpack.c.bf16 %v5562_v40, %v5562_v40  ;;  %v5564_v13 = vpop.f32.mrb[234].mxu1  ;;  %v20288_v21 = vmov 0.0  }
 0x61d   : > { %v5232_v55 = vpop.f32.mrb[179].mxu0  ;;  %v5565_v42 = vpop.f32.mrb[235].mxu1 }
 0x61e   : > { %6642 = vmatpush1.bf16.msra.mxu0 %v15211_v41  ;;  %6618 = vmatprep.mubr.bf16.mxu0 %v5741_v25  ;;  %v15221_v41 = vld [vmem:[%s20224_s4 + $0x618] ss:$12 sps:$4 sm:$0xff]  }
 0x61f   : > { %6643 = vmatprep.subr.bf16.mxu0 %v15218_v52  ;;  %6853 = vmatprep.mubr.bf16.mxu1 %v5741_v25  ;;  %v15228_v52 = vld [vmem:[%s20224_s4 + $0x634] ss:$12 sps:$4 sm:$0xff]  }
 0x620   : > { %13478 = vmatpush3.bf16.msra.mxu1 %v15225_v6 }
 0x621   : > { %6619 = vmatmul.mubr.bf16.gmra.mrb[216].mxu0 %v5740_v62  ;;  %6854 = vmatmul.mubr.bf16.gmra.mrb[16].mxu1 %v5740_v62 }
 0x622   : > { %6644 = vmatpush1.bf16.msra.mxu0 %v15216_v11  ;;  %v5601_v24 = vpop.f32.mrb[180].mxu0  ;;  %13906 = vmatprep.subr.bf16.mxu1 %v20288_v21  ;;  %v5682_v40 = vpop.f32.mrb[236].mxu1  ;;  %v15226_v21 = vld [vmem:[%s20224_s4 + $0x630] ss:$12 sps:$4 sm:$0xff]  }
 0x623   : > { %v5603_v14 = vpop.f32.mrb[181].mxu0  ;;  %6645 = vmatprep.subr.bf16.mxu0 %v15223_v49  ;;  %v5684_v5 = vpop.f32.mrb[237].mxu1  ;;  %v15232_v49 = vld [vmem:[%s20224_s4 + $0x6c8] ss:$12 sps:$4 sm:$0xff]  }
 0x624   : > { %v5605_v25 = vpop.f32.mrb[182].mxu0  ;;  %v5685_v13 = vpop.f32.mrb[238].mxu1 }
 0x625   : > { %v18157_v6 = vpack.c.bf16 %v5605_v25, %v5601_v24  ;;  %v5607_v55 = vpop.f32.mrb[183].mxu0  ;;  %v18159_v42 = vpack.c.bf16 %v5685_v13, %v5682_v40  ;;  %v5687_v11 = vpop.f32.mrb[239].mxu1  ;;  %v15231_v24 = vld [vmem:[%s20224_s4 + $0x64c] ss:$12 sps:$4 sm:$0xff]   ;;  %v15235_v25 = vld [vmem:[%s20224_s4 + $0x664] ss:$12 sps:$4 sm:$0xff]  }
 0x626   : > { %v5723_v62 = vpack.c.bf16 %v5607_v55, %v5603_v14  ;;  %6646 = vmatpush1.bf16.msra.mxu0 %v15221_v41  ;;  %v15229_v41 = vld [vmem:[%s20224_s4 + $0x648] ss:$12 sps:$4 sm:$0xff]   ;;  %v15236_v14 = vld [vmem:[%s20224_s4 + $0x6e0] ss:$12 sps:$4 sm:$0xff]   ;;  %v20369_v13 = vmov 0.0  }
 0x627   : > { %6647 = vmatprep.subr.bf16.mxu0 %v15228_v52 }
 0x628   : > { %6893 = vmatprep.mubr.bf16.mxu1 %v5723_v62  ;;  %6659 = vmatprep.mubr.bf16.mxu0 %v5723_v62 }
 0x629   : > { %6894 = vmatmul.mubr.bf16.vlgmr.msra.gmra.mrb[20].mxu1 %v18157_v6 }
 0x62a   : > { %6648 = vmatpush1.bf16.msra.mxu0 %v15226_v21  ;;  %v5611_v40 = vpop.f32.mrb[184].mxu0  ;;  %13907 = vmatpush3.bf16.msra.mxu1 %v15232_v49  ;;  %v5690_v52 = vpop.f32.mrb[240].mxu1 }
 0x62b   : > { %v5613_v5 = vpop.f32.mrb[185].mxu0  ;;  %6649 = vmatprep.subr.bf16.mxu0 %v15231_v24  ;;  %13908 = vmatprep.subr.bf16.mxu1 %v20369_v13  ;;  %v5692_v21 = vpop.f32.mrb[241].mxu1  ;;  %v15233_v24 = vld [vmem:[%s20224_s4 + $0x660] ss:$12 sps:$4 sm:$0xff]  }
 0x62c   : > { %v5615_v55 = vpop.f32.mrb[186].mxu0  ;;  %v5693_v11 = vpop.f32.mrb[242].mxu1  ;;  %v15243_v21 = vld [vmem:[%s20224_s4 + $0x6f8] ss:$12 sps:$4 sm:$0xff]  }
 0x62d   : > { %v18181_v62 = vpack.c.bf16 %v5615_v55, %v5611_v40  ;;  %v5617_v10 = vpop.f32.mrb[187].mxu0  ;;  %v18183_v49 = vpack.c.bf16 %v5693_v11, %v5690_v52  ;;  %v5695_v36 = vpop.f32.mrb[243].mxu1  ;;  %v15239_v40 = vld [vmem:[%s20224_s4 + $0x67c] ss:$12 sps:$4 sm:$0xff]  }
 0x62e   : > { %v18185_v9 = vpack.c.bf16 %v5617_v10, %v5613_v5  ;;  %6650 = vmatpush1.bf16.msra.mxu0 %v15229_v41  ;;  %13909 = vmatpush3.bf16.msra.mxu1 %v15236_v14  ;;  %v15237_v36 = vld [vmem:[%s20224_s4 + $0x678] ss:$12 sps:$4 sm:$0xff]   ;;  %v15247_v41 = vld [vmem:[%s20224_s4 + $0x710] ss:$12 sps:$4 sm:$0xff]   ;;  %v15242_v5 = vld [vmem:[%s20224_s4 + $0x694] ss:$12 sps:$4 sm:$0xff]  }
 0x62f   : > { %6651 = vmatprep.subr.bf16.mxu0 %v15235_v25  ;;  %13910 = vmatprep.subr.bf16.mxu1 %v20369_v13 }
 0x630   : > { %6901 = vmatprep.mubr.bf16.mxu1 %v18185_v9 }
 0x631   : > { %6902 = vmatmul.mubr.bf16.gmra.mrb[24].mxu1 %v18181_v62 }
 0x632   : > { %6652 = vmatpush1.bf16.msra.mxu0 %v15233_v24  ;;  %v5621_v10 = vpop.f32.mrb[188].mxu0  ;;  %13911 = vmatpush3.bf16.msra.mxu1 %v15243_v21  ;;  %v5698_v14 = vpop.f32.mrb[244].mxu1 }
 0x633   : > { %v5623_v52 = vpop.f32.mrb[189].mxu0  ;;  %6653 = vmatprep.subr.bf16.mxu0 %v15239_v40  ;;  %13912 = vmatprep.subr.bf16.mxu1 %v20369_v13  ;;  %v5700_v25 = vpop.f32.mrb[245].mxu1  ;;  %v15240_v40 = vld [vmem:[%s20224_s4 + $0x690] ss:$12 sps:$4 sm:$0xff]  }
 0x634   : > { %v5625_v55 = vpop.f32.mrb[190].mxu0  ;;  %v5701_v11 = vpop.f32.mrb[246].mxu1  ;;  %v15248_v25 = vld [vmem:[%s20224_s4 + $0x728] ss:$12 sps:$4 sm:$0xff]  }
 0x635   : > { %v18209_v24 = vpack.c.bf16 %v5625_v55, %v5621_v10  ;;  %v5627_v2 = vpop.f32.mrb[191].mxu0  ;;  %v18211_v21 = vpack.c.bf16 %v5701_v11, %v5698_v14  ;;  %v5703_v56 = vpop.f32.mrb[247].mxu1  ;;  %v15246_v10 = vld [vmem:[%s20224_s4 + $0x6ac] ss:$12 sps:$4 sm:$0xff]  }
 0x636   : > { %v18213_v45 = vpack.c.bf16 %v5627_v2, %v5623_v52  ;;  %6654 = vmatpush1.bf16.msra.mxu0 %v15237_v36  ;;  %13913 = vmatpush3.bf16.msra.mxu1 %v15247_v41  ;;  %v15244_v2 = vld [vmem:[%s20224_s4 + $0x6a8] ss:$12 sps:$4 sm:$0xff]   ;;  %v15249_v36 = vld [vmem:[%s20224_s4 + $0x740] ss:$12 sps:$4 sm:$0xff]   ;;  %v15252_v52 = vld [vmem:[%s20224_s4 + $0x6c4] ss:$12 sps:$4 sm:$0xff]  }
 0x637   : > { %6655 = vmatprep.subr.bf16.mxu0 %v15242_v5  ;;  %13914 = vmatprep.subr.bf16.mxu1 %v20369_v13 }
 0x638   : > { %6909 = vmatprep.mubr.bf16.mxu1 %v18213_v45 }
 0x639   : > { %6910 = vmatmul.mubr.bf16.gmra.mrb[28].mxu1 %v18209_v24 }
 0x63a   : > { %6656 = vmatpush1.bf16.msra.mxu0 %v15240_v40  ;;  %v5631_v56 = vpop.f32.mrb[192].mxu0  ;;  %13915 = vmatpush3.bf16.msra.mxu1 %v15248_v25  ;;  %v5706_v41 = vpop.f32.mrb[248].mxu1 }
 0x63b   : > { %v5633_v14 = vpop.f32.mrb[193].mxu0  ;;  %6657 = vmatprep.subr.bf16.mxu0 %v15246_v10  ;;  %13916 = vmatprep.subr.bf16.mxu1 %v20369_v13  ;;  %v5708_v5 = vpop.f32.mrb[249].mxu1  ;;  %v15250_v10 = vld [vmem:[%s20224_s4 + $0x6c0] ss:$12 sps:$4 sm:$0xff]  }
 0x63c   : > { %v5635_v55 = vpop.f32.mrb[194].mxu0  ;;  %v5709_v11 = vpop.f32.mrb[250].mxu1  ;;  %v15253_v5 = vld [vmem:[%s20224_s4 + $0x758] ss:$12 sps:$4 sm:$0xff]  }
 0x63d   : > { %v18237_v40 = vpack.c.bf16 %v5635_v55, %v5631_v56  ;;  %v5637_v59 = vpop.f32.mrb[195].mxu0  ;;  %v18239_v25 = vpack.c.bf16 %v5709_v11, %v5706_v41  ;;  %v5711_v50 = vpop.f32.mrb[251].mxu1  ;;  %v15256_v56 = vld [vmem:[%s20224_s4 + $0x6dc] ss:$12 sps:$4 sm:$0xff]  }
 0x63e   : > { %v5738_v18 = vpack.c.bf16 %v5637_v59, %v5633_v14  ;;  %6658 = vmatpush1.bf16.msra.mxu0 %v15244_v2  ;;  %13917 = vmatpush3.bf16.msra.mxu1 %v15249_v36  ;;  %v15254_v59 = vld [vmem:[%s20224_s4 + $0x6d8] ss:$12 sps:$4 sm:$0xff]   ;;  %v15257_v41 = vld [vmem:[%s20224_s4 + $0x770] ss:$12 sps:$4 sm:$0xff]   ;;  %v15264_v55 = vld [vmem:[%s20224_s4 + $0xc8] ss:$12 sps:$4 sm:$0xff]  }
 0x63f   : > { %6708 = vmatprep.subr.bf16.mxu0 %v15252_v52  ;;  %13918 = vmatprep.subr.bf16.mxu1 %v20369_v13 }
 0x640   : > { %6917 = vmatprep.mubr.bf16.mxu1 %v5738_v18 }
 0x641   : > { %6660 = vmatmul.mubr.bf16.vlgmr.msra.gmra.mrb[200].mxu0 %v18157_v6  ;;  %6918 = vmatmul.mubr.bf16.gmra.mrb[32].mxu1 %v18237_v40  ;;  %v15260_v6 = vld [vmem:[%s20224_s4 + $0x6f4] ss:$12 sps:$4 sm:$0xff]  }
 0x642   : > { %6669 = vmatprep.mubr.bf16.mxu0 %v18185_v9  ;;  %v5641_v50 = vpop.f32.mrb[196].mxu0  ;;  %6709 = vmatpush1.bf16.msra.mxu0 %v15250_v10  ;;  %v18257_v2 = vpop.f32.mrb[252].mxu1 }
 0x643   : > { %v5643_v36 = vpop.f32.mrb[197].mxu0  ;;  %13919 = vmatpush3.bf16.msra.mxu1 %v15253_v5  ;;  %6710 = vmatprep.subr.bf16.mxu0 %v15256_v56  ;;  %v5716_v9 = vpop.f32.mrb[253].mxu1  ;;  %v15258_v56 = vld [vmem:[%s20224_s4 + $0x6f0] ss:$12 sps:$4 sm:$0xff]   ;;  %v5742_v60 = vpack.c.bf16 %v5641_v50, %v5641_v50 }
 0x644   : > { %v5743_v14 = vpack.c.bf16 %v5643_v36, %v5643_v36  ;;  %v5645_v52 = vpop.f32.mrb[198].mxu0  ;;  %13920 = vmatprep.subr.bf16.mxu1 %v20369_v13  ;;  %v5717_v11 = vpop.f32.mrb[254].mxu1  ;;  %v15263_v36 = vld [vmem:[%s20224_s4 + $0x70c] ss:$12 sps:$4 sm:$0xff]   ;;  %v15268_v50 = vld [vmem:[%s20224_s4 + $0x724] ss:$12 sps:$4 sm:$0xff]  }
 0x645   : > { %v5646_v10 = vpop.f32.mrb[199].mxu0  ;;  %v5718_v5 = vpop.f32.mrb[255].mxu1  ;;  %v15273_v9 = vld [vmem:[%s20224_s4 + $0x20] ss:$12 sps:$4 sm:$0xff]   ;;  %v15270_v52 = vld [vmem:[%s20224_s4 + $0x738] ss:$12 sps:$4 sm:$0xff]  }
 0x646   : > { %6925 = vmatprep.mubr.bf16.mxu1 %v5743_v14  ;;  %6711 = vmatpush1.bf16.msra.mxu0 %v15254_v59  ;;  %v15261_v59 = vld [vmem:[%s20224_s4 + $0x708] ss:$12 sps:$4 sm:$0xff]   ;;  %v15278_v11 = vld [vmem:[%s20224_s4 + $0x38] ss:$12 sps:$4 sm:$0xff]   ;;  %v15282_v5 = vld [vmem:[%s20224_s4 + $0x110] ss:$12 sps:$4 sm:$0xff]  }
 0x647   : > { %13921 = vmatpush3.bf16.msra.mxu1 %v15257_v41  ;;  %6712 = vmatprep.subr.bf16.mxu0 %v15260_v6  ;;  %v15269_v41 = vld [vmem:[%s20224_s4 + $0xe0] ss:$12 sps:$4 sm:$0xff]   ;;  %v15272_v6 = vld [vmem:[%s20224_s4 + $0x73c] ss:$12 sps:$4 sm:$0xff]  }
 0x648   : > { %13522 = vmatprep.subr.bf16.mxu1 %v15264_v55  ;;  %v15274_v55 = vld [vmem:[%s20224_s4 + $0x750] ss:$12 sps:$4 sm:$0xff]   ;;  %v15281_v10 = vld [vmem:[%s20224_s4 + $0x76c] ss:$12 sps:$4 sm:$0xff]  }
 0x649   : > { %6670 = vmatmul.mubr.bf16.gmra.mrb[204].mxu0 %v18181_v62  ;;  %6926 = vmatmul.mubr.bf16.gmra.mrb[36].mxu1 %v5742_v60  ;;  %v15265_v62 = vld [vmem:[%s20224_s4 + $0x8] ss:$12 sps:$4 sm:$0xff]  }
 0x64a   : > { %6679 = vmatprep.mubr.bf16.mxu0 %v18213_v45  ;;  %6713 = vmatpush1.bf16.msra.mxu0 %v15258_v56  ;;  %v15266_v45 = vld [vmem:[%s20224_s4 + $0x720] ss:$12 sps:$4 sm:$0xff]   ;;  %v15279_v56 = vld [vmem:[%s20224_s4 + $0x768] ss:$12 sps:$4 sm:$0xff]  }
 0x64b   : > { %13922 = vmatprep.mubr.msk.bf16.mxu1 %vm15762_vm4, %v20369_v13  ;;  %6714 = vmatprep.subr.bf16.mxu0 %v15263_v36  ;;  %v15283_v36 = vld [vmem:[%s20224_s4 + $0x50] ss:$12 sps:$4 sm:$0xff]  }
 0x64e   : > { %6715 = vmatpush1.bf16.msra.mxu0 %v15261_v59  ;;  %v15288_v59 = vld [vmem:[%s20224_s4 + $0x68] ss:$12 sps:$4 sm:$0xff]  }
 0x64f   : > { %6716 = vmatprep.subr.bf16.mxu0 %v15268_v50  ;;  %v15292_v50 = vld [vmem:[%s20224_s4 + $0x140] ss:$12 sps:$4 sm:$0xff]  }
 0x651   : > { %6680 = vmatmul.mubr.bf16.gmra.mrb[208].mxu0 %v18209_v24  ;;  %13923 = vmatmul.mubr.bf16.vlgmr.msra.gmra.mrb[40].mxu1 %v18159_v42  ;;  %v15277_v24 = vld [vmem:[%s20224_s4 + $0xf8] ss:$12 sps:$4 sm:$0xff]  }
 0x652   : > { %6689 = vmatprep.mubr.bf16.mxu0 %v5738_v18  ;;  %13523 = vmatpush3.bf16.msra.mxu1 %v15265_v62  ;;  %v15276_v18 = vld [vmem:[%s20224_s4 + $0x754] ss:$12 sps:$4 sm:$0xff]  }
 0x653   : > { %6717 = vmatpush1.bf16.msra.mxu0 %v15266_v45  ;;  %13926 = vmatprep.mubr.msk.bf16.mxu1 %vm15762_vm4, %v20369_v13  ;;  %v15293_v62 = vld [vmem:[%s20224_s4 + $0x80] ss:$12 sps:$4 sm:$0xff]   ;;  %v15297_v45 = vld [vmem:[%s20224_s4 + $0x158] ss:$12 sps:$4 sm:$0xff]  }
 0x654   : > { %13524 = vmatprep.subr.bf16.mxu1 %v15269_v41  ;;  %6718 = vmatprep.subr.bf16.mxu0 %v15272_v6  ;;  %v15291_v41 = vld [vmem:[%s20224_s4 + $0x1c] ss:$12 sps:$4 sm:$0xff]   ;;  %v15298_v6 = vld [vmem:[%s20224_s4 + $0x98] ss:$12 sps:$4 sm:$0xff]  }
 0x656   : > { %13525 = vmatpush3.bf16.msra.mxu1 %v15273_v9  ;;  %v15302_v9 = vld [vmem:[%s20224_s4 + $0x170] ss:$12 sps:$4 sm:$0xff]  }
 0x657   : > { %6719 = vmatpush1.bf16.msra.mxu0 %v15270_v52  ;;  %13526 = vmatprep.subr.bf16.mxu1 %v15277_v24  ;;  %v15289_v52 = vld [vmem:[%s20224_s4 + $0x18] ss:$12 sps:$4 sm:$0xff]   ;;  %v15296_v24 = vld [vmem:[%s20224_s4 + $0x34] ss:$12 sps:$4 sm:$0xff]  }
 0x658   : > { %6720 = vmatprep.subr.bf16.mxu0 %v15276_v18  ;;  %v5744_v18 = vpack.c.bf16 %v18257_v2, %v18257_v2  ;;  %v15299_v2 = vld [vmem:[%s20224_s4 + $0x48] ss:$12 sps:$4 sm:$0xff]  }
 0x659   : > { %6690 = vmatmul.mubr.bf16.gmra.mrb[212].mxu0 %v18237_v40  ;;  %13927 = vmatmul.mubr.bf16.gmra.mrb[44].mxu1 %v18183_v49  ;;  %v15286_v40 = vld [vmem:[%s20224_s4 + $0x4] ss:$12 sps:$4 sm:$0xff]  }
 0x65a   : > { %6699 = vmatprep.mubr.bf16.mxu0 %v5743_v14  ;;  %13930 = vmatprep.mubr.msk.bf16.mxu1 %vm15762_vm4, %v20369_v13  ;;  %v15287_v14 = vld [vmem:[%s20224_s4 + $0x128] ss:$12 sps:$4 sm:$0xff]  }
 0x65b   : > { %6721 = vmatpush1.bf16.msra.mxu0 %v15274_v55  ;;  %13527 = vmatpush3.bf16.msra.mxu1 %v15278_v11  ;;  %v15294_v55 = vld [vmem:[%s20224_s4 + $0x30] ss:$12 sps:$4 sm:$0xff]   ;;  %v15301_v11 = vld [vmem:[%s20224_s4 + $0x4c] ss:$12 sps:$4 sm:$0xff]  }
 0x65c   : > { %6722 = vmatprep.subr.bf16.mxu0 %v15281_v10  ;;  %13528 = vmatprep.subr.bf16.mxu1 %v15282_v5  ;;  %v15310_v10 = vld [vmem:[%s20224_s4 + $0x248] ss:$12 sps:$4 sm:$0xff]   ;;  %v15306_v5 = vld [vmem:[%s20224_s4 + $0x64] ss:$12 sps:$4 sm:$0xff]  }
 0x65f   : > { %6723 = vmatpush1.bf16.msra.mxu0 %v15279_v56  ;;  %13529 = vmatpush3.bf16.msra.mxu1 %v15283_v36  ;;  %v15309_v56 = vld [vmem:[%s20224_s4 + $0x7c] ss:$12 sps:$4 sm:$0xff]  }
 0x660   : > { %7645 = vmatprep.subr.bf16.mxu0 %v15286_v40  ;;  %13530 = vmatprep.subr.bf16.mxu1 %v15287_v14  ;;  %v15311_v36 = vld [vmem:[%s20224_s4 + $0x188] ss:$12 sps:$4 sm:$0xff]   ;;  %v15315_v40 = vld [vmem:[%s20224_s4 + $0x260] ss:$12 sps:$4 sm:$0xff]   ;;  %v15307_v14 = vld [vmem:[%s20224_s4 + $0x78] ss:$12 sps:$4 sm:$0xff]  }
 0x661   : > { %6700 = vmatmul.mubr.bf16.gmra.mrb[220].mxu0 %v5742_v60  ;;  %13931 = vmatmul.mubr.bf16.gmra.mrb[48].mxu1 %v18211_v21  ;;  %v15284_v60 = vld [vmem:[%s20224_s4] ss:$12 sps:$4 sm:$0xff]  }
 0x662   : > { %6740 = vmatprep.mubr.bf16.mxu0 %v20340_v44  ;;  %13934 = vmatprep.mubr.msk.bf16.mxu1 %vm15762_vm4, %v20369_v13 }
 0x663   : > { %13531 = vmatpush3.bf16.msra.mxu1 %v15288_v59  ;;  %v15314_v59 = vld [vmem:[%s20224_s4 + $0x94] ss:$12 sps:$4 sm:$0xff]  }
 0x664   : > { %13532 = vmatprep.subr.bf16.mxu1 %v15292_v50  ;;  %v15319_v50 = vld [vmem:[%s20224_s4 + $0x1a0] ss:$12 sps:$4 sm:$0xff]  }
 0x667   : > { %13533 = vmatpush3.bf16.msra.mxu1 %v15293_v62  ;;  %v15312_v62 = vld [vmem:[%s20224_s4 + $0x90] ss:$12 sps:$4 sm:$0xff]  }
 0x668   : > { %13534 = vmatprep.subr.bf16.mxu1 %v15297_v45  ;;  %v15318_v45 = vld [vmem:[%s20224_s4 + $0xac] ss:$12 sps:$4 sm:$0xff]  }
 0x669   : > { %6741 = vmatmul.mubr.bf16.vlgmr.msra.gmra.mrb[200].mxu0 %v18159_v42  ;;  %13935 = vmatmul.mubr.bf16.gmra.mrb[52].mxu1 %v18239_v25  ;;  %v15303_v42 = vld [vmem:[%s20224_s4 + $0xb0] ss:$12 sps:$4 sm:$0xff]  }
 0x66a   : > { %7646 = vmatpush1.bf16.msra.mxu0 %v15284_v60  ;;  %6750 = vmatprep.mubr.bf16.mxu0 %v20340_v44  ;;  %v15324_v60 = vld [vmem:[%s20224_s4 + $0x1b8] ss:$12 sps:$4 sm:$0xff]  }
 0x66b   : > { %7647 = vmatprep.subr.bf16.mxu0 %v15291_v41  ;;  %13938 = vmatprep.mubr.msk.bf16.mxu1 %vm15762_vm4, %v20369_v13  ;;  %v15328_v41 = vld [vmem:[%s20224_s4 + $0x290] ss:$12 sps:$4 sm:$0xff]  }
 0x66c   : > { %13535 = vmatpush3.bf16.msra.mxu1 %v15298_v6  ;;  %v15316_v6 = vld [vmem:[%s20224_s4 + $0xa8] ss:$12 sps:$4 sm:$0xff]  }
 0x66d   : > { %13536 = vmatprep.subr.bf16.mxu1 %v15302_v9  ;;  %v15329_v9 = vld [vmem:[%s20224_s4 + $0x1d0] ss:$12 sps:$4 sm:$0xff]  }
 0x66e   : > { %7648 = vmatpush1.bf16.msra.mxu0 %v15289_v52  ;;  %v15320_v52 = vld [vmem:[%s20224_s4 + $0xc0] ss:$12 sps:$4 sm:$0xff]  }
 0x66f   : > { %7649 = vmatprep.subr.bf16.mxu0 %v15296_v24  ;;  %v15327_v24 = vld [vmem:[%s20224_s4 + $0xdc] ss:$12 sps:$4 sm:$0xff]  }
 0x670   : > { %13537 = vmatpush3.bf16.msra.mxu1 %v15303_v42  ;;  %v15333_v42 = vld [vmem:[%s20224_s4 + $0x2a8] ss:$12 sps:$4 sm:$0xff]  }
 0x671   : > { %6751 = vmatmul.mubr.bf16.gmra.mrb[204].mxu0 %v18183_v49  ;;  %13939 = vmatmul.mubr.bf16.gmra.mrb[96].mxu1 %v5744_v18  ;;  %v15304_v49 = vld [vmem:[%s20224_s4 + $0x60] ss:$12 sps:$4 sm:$0xff]  }
 0x672   : > { %7650 = vmatpush1.bf16.msra.mxu0 %v15294_v55  ;;  %7920 = vmatprep.mubr.bf16.mxu1 %v18003_v54  ;;  %v15334_v55 = vld [vmem:[%s20224_s4 + $0x1e8] ss:$12 sps:$4 sm:$0xff]  }
 0x673   : > { %7651 = vmatprep.subr.bf16.mxu0 %v15301_v11  ;;  %6760 = vmatprep.mubr.bf16.mxu0 %v20340_v44  ;;  %v15325_v11 = vld [vmem:[%s20224_s4 + $0xd8] ss:$12 sps:$4 sm:$0xff]  }
 0x674   : > { %13568 = vmatprep.subr.bf16.mxu1 %v15310_v10  ;;  %v15338_v10 = vld [vmem:[%s20224_s4 + $0x2c0] ss:$12 sps:$4 sm:$0xff]  }
 0x676   : > { %7652 = vmatpush1.bf16.msra.mxu0 %v15299_v2  ;;  %v15337_v2 = vld [vmem:[%s20224_s4 + $0x10c] ss:$12 sps:$4 sm:$0xff]  }
 0x677   : > { %7653 = vmatprep.subr.bf16.mxu0 %v15306_v5  ;;  %v15339_v5 = vld [vmem:[%s20224_s4 + $0x200] ss:$12 sps:$4 sm:$0xff]  }
 0x679   : > { %6761 = vmatmul.mubr.bf16.gmra.mrb[208].mxu0 %v18211_v21  ;;  %7921 = vmatmul.mubr.bf16.vlgmr.msra.gmra.mrb[100].mxu1 %v18001_v32  ;;  %v15323_v21 = vld [vmem:[%s20224_s4 + $0x278] ss:$12 sps:$4 sm:$0xff]  }
 0x67a   : > { %7654 = vmatpush1.bf16.msra.mxu0 %v15304_v49  ;;  %7928 = vmatprep.mubr.bf16.mxu1 %v18007_v33  ;;  %v18491_v49 = vpack.c.bf16 %v18019_v7, %v18019_v7  ;;  %v15342_v7 = vld [vmem:[%s20224_s4 + $0x124] ss:$12 sps:$4 sm:$0xff]  }
 0x67b   : > { %7655 = vmatprep.subr.bf16.mxu0 %v15309_v56  ;;  %13569 = vmatpush3.bf16.msra.mxu1 %v15311_v36  ;;  %v15343_v56 = vld [vmem:[%s20224_s4 + $0x2d8] ss:$12 sps:$4 sm:$0xff]   ;;  %v15335_v36 = vld [vmem:[%s20224_s4 + $0x108] ss:$12 sps:$4 sm:$0xff]  }
 0x67c   : > { %6770 = vmatprep.mubr.bf16.mxu0 %v20340_v44  ;;  %13570 = vmatprep.subr.bf16.mxu1 %v15315_v40  ;;  %v15344_v40 = vld [vmem:[%s20224_s4 + $0x218] ss:$12 sps:$4 sm:$0xff]  }
 0x67e   : > { %7656 = vmatpush1.bf16.msra.mxu0 %v15307_v14  ;;  %v15348_v14 = vld [vmem:[%s20224_s4 + $0x2f0] ss:$12 sps:$4 sm:$0xff]  }
 0x67f   : > { %7657 = vmatprep.subr.bf16.mxu0 %v15314_v59  ;;  %13571 = vmatpush3.bf16.msra.mxu1 %v15319_v50  ;;  %v15340_v59 = vld [vmem:[%s20224_s4 + $0x120] ss:$12 sps:$4 sm:$0xff]   ;;  %v18515_v50 = vpack.c.bf16 %v18017_v4, %v18017_v4  ;;  %v15345_v4 = vld [vmem:[%s20224_s4 + $0x138] ss:$12 sps:$4 sm:$0xff]  }
 0x680   : > { %13572 = vmatprep.subr.bf16.mxu1 %v15323_v21  ;;  %v15347_v21 = vld [vmem:[%s20224_s4 + $0x13c] ss:$12 sps:$4 sm:$0xff]  }
 0x681   : > { %6771 = vmatmul.mubr.bf16.gmra.mrb[212].mxu0 %v18239_v25  ;;  %7929 = vmatmul.mubr.bf16.gmra.mrb[104].mxu1 %v18005_v47  ;;  %v15322_v25 = vld [vmem:[%s20224_s4 + $0xc4] ss:$12 sps:$4 sm:$0xff]  }
 0x682   : > { %7658 = vmatpush1.bf16.msra.mxu0 %v15312_v62  ;;  %7936 = vmatprep.mubr.bf16.mxu1 %v18011_v58  ;;  %v15349_v62 = vld [vmem:[%s20224_s4 + $0x230] ss:$12 sps:$4 sm:$0xff]  }
 0x683   : > { %7659 = vmatprep.subr.bf16.mxu0 %v15318_v45  ;;  %6780 = vmatprep.mubr.bf16.mxu0 %v20340_v44  ;;  %v15352_v45 = vld [vmem:[%s20224_s4 + $0x154] ss:$12 sps:$4 sm:$0xff]  }
 0x684   : > { %13573 = vmatpush3.bf16.msra.mxu1 %v15324_v60  ;;  %v15350_v60 = vld [vmem:[%s20224_s4 + $0x150] ss:$12 sps:$4 sm:$0xff]  }
 0x685   : > { %13574 = vmatprep.subr.bf16.mxu1 %v15328_v41  ;;  %v15353_v41 = vld [vmem:[%s20224_s4 + $0x308] ss:$12 sps:$4 sm:$0xff]  }
 0x686   : > { %7660 = vmatpush1.bf16.msra.mxu0 %v15316_v6  ;;  %v15356_v6 = vld [vmem:[%s20224_s4 + $0x16c] ss:$12 sps:$4 sm:$0xff]  }
 0x687   : > { %7661 = vmatprep.subr.bf16.mxu0 %v15322_v25  ;;  %v15354_v25 = vld [vmem:[%s20224_s4 + $0x168] ss:$12 sps:$4 sm:$0xff]  }
 0x688   : > { %13575 = vmatpush3.bf16.msra.mxu1 %v15329_v9  ;;  %v15357_v9 = vld [vmem:[%s20224_s4 + $0x320] ss:$12 sps:$4 sm:$0xff]  }
 0x689   : > { %6781 = vmatmul.mubr.bf16.gmra.mrb[224].mxu0 %v5744_v18  ;;  %7937 = vmatmul.mubr.bf16.gmra.mrb[108].mxu1 %v18009_v23  ;;  %v15332_v18 = vld [vmem:[%s20224_s4 + $0xf4] ss:$12 sps:$4 sm:$0xff]  }
 0x68a   : > { %7662 = vmatpush1.bf16.msra.mxu0 %v15320_v52  ;;  %7677 = vmatprep.mubr.bf16.mxu0 %v18003_v54  ;;  %v15330_v54 = vld [vmem:[%s20224_s4 + $0xf0] ss:$12 sps:$4 sm:$0xff]  }
 0x68b   : > { %7944 = vmatprep.mubr.bf16.mxu1 %v18015_v48  ;;  %7663 = vmatprep.subr.bf16.mxu0 %v15327_v24  ;;  %v15360_v52 = vld [vmem:[%s20224_s4 + $0x184] ss:$12 sps:$4 sm:$0xff]   ;;  %v15358_v24 = vld [vmem:[%s20224_s4 + $0x180] ss:$12 sps:$4 sm:$0xff]  }
 0x68c   : > { %13576 = vmatprep.subr.bf16.mxu1 %v15333_v42  ;;  %v15361_v42 = vld [vmem:[%s20224_s4 + $0x338] ss:$12 sps:$4 sm:$0xff]  }
 0x68d   : > { %13577 = vmatpush3.bf16.msra.mxu1 %v15334_v55  ;;  %v15364_v55 = vld [vmem:[%s20224_s4 + $0x19c] ss:$12 sps:$4 sm:$0xff]  }
 0x68e   : > { %7664 = vmatpush1.bf16.msra.mxu0 %v15325_v11  ;;  %13578 = vmatprep.subr.bf16.mxu1 %v15338_v10  ;;  %v15362_v11 = vld [vmem:[%s20224_s4 + $0x198] ss:$12 sps:$4 sm:$0xff]   ;;  %v15365_v10 = vld [vmem:[%s20224_s4 + $0x350] ss:$12 sps:$4 sm:$0xff]  }
 0x68f   : > { %7665 = vmatprep.subr.bf16.mxu0 %v15332_v18  ;;  %v15369_v18 = vld [vmem:[%s20224_s4 + $0x368] ss:$12 sps:$4 sm:$0xff]  }
 0x691   : > { %7945 = vmatmul.mubr.bf16.gmra.mrb[112].mxu1 %v18013_v31 }
 0x692   : > { %7666 = vmatpush1.bf16.msra.mxu0 %v15330_v54  ;;  %7952 = vmatprep.mubr.bf16.mxu1 %v18491_v49  ;;  %v15372_v54 = vld [vmem:[%s20224_s4 + $0x1cc] ss:$12 sps:$4 sm:$0xff]  }
 0x693   : > { %7667 = vmatprep.subr.bf16.mxu0 %v15337_v2  ;;  %13579 = vmatpush3.bf16.msra.mxu1 %v15339_v5  ;;  %v15370_v2 = vld [vmem:[%s20224_s4 + $0x1c8] ss:$12 sps:$4 sm:$0xff]   ;;  %v15373_v5 = vld [vmem:[%s20224_s4 + $0x380] ss:$12 sps:$4 sm:$0xff]  }
 0x694   : > { %13580 = vmatprep.subr.bf16.mxu1 %v15343_v56  ;;  %v15377_v56 = vld [vmem:[%s20224_s4 + $0x398] ss:$12 sps:$4 sm:$0xff]  }
 0x696   : > { %7668 = vmatpush1.bf16.msra.mxu0 %v15335_v36  ;;  %v15380_v36 = vld [vmem:[%s20224_s4 + $0x1fc] ss:$12 sps:$4 sm:$0xff]  }
 0x697   : > { %7669 = vmatprep.subr.bf16.mxu0 %v15342_v7  ;;  %13581 = vmatpush3.bf16.msra.mxu1 %v15344_v40  ;;  %v18613_v7 = vpack.c.bf16 %v18039_v0, %v18039_v0  ;;  %v15378_v40 = vld [vmem:[%s20224_s4 + $0x1f8] ss:$12 sps:$4 sm:$0xff]   ;;  %v18634_v0 = vpack.c.bf16 %v18037_v27, %v18037_v27  ;;  %v15385_v27 = vld [vmem:[%s20224_s4 + $0x228] ss:$12 sps:$4 sm:$0xff]  }
 0x698   : > { %13582 = vmatprep.subr.bf16.mxu1 %v15348_v14  ;;  %v15381_v14 = vld [vmem:[%s20224_s4 + $0x3b0] ss:$12 sps:$4 sm:$0xff]  }
 0x699   : > { %7953 = vmatmul.mubr.bf16.gmra.mrb[116].mxu1 %v18515_v50 }
 0x69a   : > { %7670 = vmatpush1.bf16.msra.mxu0 %v15340_v59  ;;  %7992 = vmatprep.mubr.bf16.mxu1 %v18023_v57  ;;  %v15387_v59 = vld [vmem:[%s20224_s4 + $0x22c] ss:$12 sps:$4 sm:$0xff]  }
 0x69b   : > { %7671 = vmatprep.subr.bf16.mxu0 %v15347_v21  ;;  %13583 = vmatpush3.bf16.msra.mxu1 %v15349_v62  ;;  %v15390_v21 = vld [vmem:[%s20224_s4 + $0x244] ss:$12 sps:$4 sm:$0xff]   ;;  %v15396_v62 = vld [vmem:[%s20224_s4 + $0x274] ss:$12 sps:$4 sm:$0xff]  }
 0x69c   : > { %13942 = vmatprep.subr.bf16.mxu1 %v20369_v13 }
 0x69e   : > { %7672 = vmatpush1.bf16.msra.mxu0 %v15345_v4 }
 0x69f   : > { %7673 = vmatprep.subr.bf16.mxu0 %v15352_v45 }
 0x6a1   : > { %7993 = vmatmul.mubr.bf16.vlgmr.msra.gmra.mrb[120].mxu1 %v18021_v29 }
 0x6a2   : > { %7674 = vmatpush1.bf16.msra.mxu0 %v15350_v60  ;;  %13943 = vmatpush3.bf16.msra.mxu1 %v15353_v41  ;;  %v15400_v41 = vld [vmem:[%s20224_s4 + $0x2a0] ss:$12 sps:$4 sm:$0xff]  }
 0x6a3   : > { %8000 = vmatprep.mubr.bf16.mxu1 %v18027_v39  ;;  %7675 = vmatprep.subr.bf16.mxu0 %v15356_v6  ;;  %v20371_v6 = vld [vmem:[#allocation17_spill] sm:$0xff] }
 0x6a4   : > { %13944 = vmatprep.subr.bf16.mxu1 %v20369_v13 }
 0x6a6   : > { %7676 = vmatpush1.bf16.msra.mxu0 %v15354_v25  ;;  %13945 = vmatpush3.bf16.msra.mxu1 %v15357_v9  ;;  %v15405_v25 = vld [vmem:[%s20224_s4 + $0x2bc] ss:$12 sps:$4 sm:$0xff]  }
 0x6a7   : > { %7726 = vmatprep.subr.bf16.mxu0 %v15360_v52  ;;  %13946 = vmatprep.subr.bf16.mxu1 %v20369_v13  ;;  %v20372_v9 = vld [vmem:[#allocation23_spill] sm:$0xff] }
 0x6a9   : > { %7678 = vmatmul.mubr.bf16.vlgmr.msra.gmra.mrb[200].mxu0 %v18001_v32  ;;  %8001 = vmatmul.mubr.bf16.gmra.mrb[124].mxu1 %v18025_v35  ;;  %v15368_v32 = vld [vmem:[%s20224_s4 + $0x1b4] ss:$12 sps:$4 sm:$0xff]  }
 0x6aa   : > { %7687 = vmatprep.mubr.bf16.mxu0 %v18007_v33  ;;  %7727 = vmatpush1.bf16.msra.mxu0 %v15358_v24  ;;  %v15366_v33 = vld [vmem:[%s20224_s4 + $0x1b0] ss:$12 sps:$4 sm:$0xff]   ;;  %v15403_v24 = vld [vmem:[%s20224_s4 + $0x2b8] ss:$12 sps:$4 sm:$0xff]  }
 0x6ab   : > { %13947 = vmatpush3.bf16.msra.mxu1 %v15361_v42  ;;  %8008 = vmatprep.mubr.bf16.mxu1 %v18031_v1  ;;  %v20373_v42 = vld [vmem:[#allocation21_spill] sm:$0xff] }
 0x6ac   : > { %7728 = vmatprep.subr.bf16.mxu0 %v15364_v55  ;;  %13948 = vmatprep.subr.bf16.mxu1 %v20369_v13  ;;  %v15408_v55 = vld [vmem:[%s20224_s4 + $0x2d4] ss:$12 sps:$4 sm:$0xff]  }
 0x6ae   : > { %7729 = vmatpush1.bf16.msra.mxu0 %v15362_v11  ;;  %v20374_v11 = vld [vmem:[#allocation27_spill] sm:$0xff] }
 0x6af   : > { %13949 = vmatpush3.bf16.msra.mxu1 %v15365_v10  ;;  %7730 = vmatprep.subr.bf16.mxu0 %v15368_v32 }
 0x6b0   : > { %13950 = vmatprep.subr.bf16.mxu1 %v20369_v13 }
 0x6b1   : > { %7688 = vmatmul.mubr.bf16.gmra.mrb[204].mxu0 %v18005_v47  ;;  %8009 = vmatmul.mubr.bf16.gmra.mrb[128].mxu1 %v18029_v19  ;;  %v15376_v47 = vld [vmem:[%s20224_s4 + $0x1e4] ss:$12 sps:$4 sm:$0xff]  }
 0x6b2   : > { %7697 = vmatprep.mubr.bf16.mxu0 %v18011_v58  ;;  %7731 = vmatpush1.bf16.msra.mxu0 %v15366_v33  ;;  %v15374_v58 = vld [vmem:[%s20224_s4 + $0x1e0] ss:$12 sps:$4 sm:$0xff]  }
 0x6b3   : > { %13951 = vmatpush3.bf16.msra.mxu1 %v15369_v18  ;;  %8016 = vmatprep.mubr.bf16.mxu1 %v18035_v26 }
 0x6b4   : > { %7732 = vmatprep.subr.bf16.mxu0 %v15372_v54  ;;  %13952 = vmatprep.subr.bf16.mxu1 %v20369_v13  ;;  %v15406_v54 = vld [vmem:[%s20224_s4 + $0x2d0] ss:$12 sps:$4 sm:$0xff]  }
 0x6b6   : > { %7733 = vmatpush1.bf16.msra.mxu0 %v15370_v2  ;;  %v20375_v2 = vld [vmem:[#allocation25_spill] sm:$0xff] }
 0x6b7   : > { %13953 = vmatpush3.bf16.msra.mxu1 %v15373_v5  ;;  %7734 = vmatprep.subr.bf16.mxu0 %v15376_v47  ;;  %v15411_v47 = vld [vmem:[%s20224_s4 + $0x2ec] ss:$12 sps:$4 sm:$0xff]  }
 0x6b8   : > { %13954 = vmatprep.subr.bf16.mxu1 %v20369_v13 }
 0x6b9   : > { %7698 = vmatmul.mubr.bf16.gmra.mrb[208].mxu0 %v18009_v23  ;;  %8017 = vmatmul.mubr.bf16.gmra.mrb[132].mxu1 %v18033_v61  ;;  %v15384_v23 = vld [vmem:[%s20224_s4 + $0x214] ss:$12 sps:$4 sm:$0xff]  }
 0x6ba   : > { %7707 = vmatprep.mubr.bf16.mxu0 %v18015_v48  ;;  %7735 = vmatpush1.bf16.msra.mxu0 %v15374_v58  ;;  %v15382_v48 = vld [vmem:[%s20224_s4 + $0x210] ss:$12 sps:$4 sm:$0xff]   ;;  %v20376_v58 = vld [vmem:[#allocation31_spill] sm:$0xff] }
 0x6bb   : > { %13955 = vmatpush3.bf16.msra.mxu1 %v15377_v56  ;;  %8024 = vmatprep.mubr.bf16.mxu1 %v18613_v7 }
 0x6bc   : > { %7736 = vmatprep.subr.bf16.mxu0 %v15380_v36  ;;  %13956 = vmatprep.subr.bf16.mxu1 %v20369_v13  ;;  %v15409_v36 = vld [vmem:[%s20224_s4 + $0x2e8] ss:$12 sps:$4 sm:$0xff]  }
 0x6be   : > { %7737 = vmatpush1.bf16.msra.mxu0 %v15378_v40  ;;  %v20377_v40 = vld [vmem:[#allocation29_spill] sm:$0xff] }
 0x6bf   : > { %13957 = vmatpush3.bf16.msra.mxu1 %v15381_v14  ;;  %7738 = vmatprep.subr.bf16.mxu0 %v15384_v23  ;;  %v15414_v14 = vld [vmem:[%s20224_s4 + $0x304] ss:$12 sps:$4 sm:$0xff]  }
 0x6c0   : > { %8171 = vmatprep.subr.bf16.mxu1 %v17345_v8  ;;  %v15388_v8 = vld [vmem:[%s20224_s4 + $0x240] ss:$12 sps:$4 sm:$0xff]  }
 0x6c1   : > { %7708 = vmatmul.mubr.bf16.gmra.mrb[212].mxu0 %v18013_v31  ;;  %8025 = vmatmul.mubr.bf16.gmra.mrb[56].mxu1 %v18634_v0  ;;  %v15393_v31 = vld [vmem:[%s20224_s4 + $0x25c] ss:$12 sps:$4 sm:$0xff]  }
 0x6c2   : > { %7717 = vmatprep.mubr.bf16.mxu0 %v18491_v49  ;;  %7739 = vmatpush1.bf16.msra.mxu0 %v15382_v48  ;;  %v15391_v49 = vld [vmem:[%s20224_s4 + $0x258] ss:$12 sps:$4 sm:$0xff]  }
 0x6c3   : > { %7740 = vmatprep.subr.bf16.mxu0 %v15387_v59  ;;  %13958 = vmatprep.mubr.msk.bf16.mxu1 %vm15762_vm4, %v20369_v13 }
 0x6c6   : > { %7741 = vmatpush1.bf16.msra.mxu0 %v15385_v27 }
 0x6c7   : > { %7742 = vmatprep.subr.bf16.mxu0 %v15390_v21  ;;  %v15412_v21 = vld [vmem:[%s20224_s4 + $0x300] ss:$12 sps:$4 sm:$0xff]  }
 0x6c9   : > { %7718 = vmatmul.mubr.bf16.gmra.mrb[228].mxu0 %v18515_v50  ;;  %13959 = vmatmul.mubr.bf16.vlgmr.msra.gmra.mrb[60].mxu1 %v18041_v16  ;;  %v20370_v50 = vld [vmem:[#allocation19_spill] sm:$0xff] }
 0x6ca   : > { %7743 = vmatpush1.bf16.msra.mxu0 %v15388_v8  ;;  %7758 = vmatprep.mubr.bf16.mxu0 %v18023_v57  ;;  %v15394_v57 = vld [vmem:[%s20224_s4 + $0x270] ss:$12 sps:$4 sm:$0xff]   ;;  %v18742_v8 = vpack.c.bf16 %v18133_v17, %v18133_v17 }
 0x6cb   : > { %8172 = vmatpush1.bf16.msra.mxu1 %v17341_v38  ;;  %7744 = vmatprep.subr.bf16.mxu0 %v15393_v31  ;;  %v15399_v38 = vld [vmem:[%s20224_s4 + $0x28c] ss:$12 sps:$4 sm:$0xff]  }
 0x6cc   : > { %8173 = vmatprep.subr.bf16.mxu1 %v17363_v15  ;;  %13962 = vmatprep.mubr.msk.bf16.mxu1 %vm15762_vm4, %v20369_v13  ;;  %v15397_v15 = vld [vmem:[%s20224_s4 + $0x288] ss:$12 sps:$4 sm:$0xff]  }
 0x6ce   : > { %7745 = vmatpush1.bf16.msra.mxu0 %v15391_v49 }
 0x6cf   : > { %8174 = vmatpush1.bf16.msra.mxu1 %v20346_v46  ;;  %7746 = vmatprep.subr.bf16.mxu0 %v15396_v62  ;;  %v15402_v46 = vld [vmem:[%s20224_s4 + $0x2a4] ss:$12 sps:$4 sm:$0xff]   ;;  %v15420_v62 = vld [vmem:[%s20224_s4 + $0x31c] ss:$12 sps:$4 sm:$0xff]  }
 0x6d0   : > { %8175 = vmatprep.subr.bf16.mxu1 %v20347_v37 }
 0x6d1   : > { %13963 = vmatmul.mubr.bf16.gmra.mrb[64].mxu1 %v18067_v51 }
 0x6d2   : > { %7747 = vmatpush1.bf16.msra.mxu0 %v15394_v57  ;;  %13966 = vmatprep.mubr.msk.bf16.mxu1 %vm15762_vm4, %v20369_v13 }
 0x6d3   : > { %8176 = vmatpush1.bf16.msra.mxu1 %v20348_v3  ;;  %7748 = vmatprep.subr.bf16.mxu0 %v15399_v38  ;;  %v18774_v38 = vld [vmem:[%s20225_s5 + $0x90] ss:$8 sps:$4 sm:$0xff]  }
 0x6d4   : > { %8177 = vmatprep.subr.bf16.mxu1 %v20370_v50  ;;  %v13433_v37 = vpop.f32.mrb[0].mxu1  ;;  %v20378_v50 = vld [vmem:[#allocation9_spill] sm:$0xff] }
 0x6d5   : > { %v13434_v4 = vpop.f32.mrb[1].mxu1 }
 0x6d6   : > { %7749 = vmatpush1.bf16.msra.mxu0 %v15397_v15  ;;  %v18689_v45 = vadd.f32 %v13434_v4, %v13433_v37  ;;  %v13436_v60 = vpop.f32.mrb[2].mxu1  ;;  %v15421_v15 = vld [vmem:[%s20224_s4 + $0x330] ss:$12 sps:$4 sm:$0xff]  }
 0x6d7   : > { %8178 = vmatpush1.bf16.msra.mxu1 %v20371_v6  ;;  %v13437_v3 = vpop.f32.mrb[3].mxu1  ;;  %7750 = vmatprep.subr.bf16.mxu0 %v15402_v46  ;;  %v18786_v46 = vld [vmem:[%s20225_s5 + $0xa4] ss:$8 sps:$4 sm:$0xff]   ;;  %v20379_v37 = vld [vmem:[#allocation12_spill] sm:$0xff] }
 0x6d8   : > { %8179 = vmatprep.subr.bf16.mxu1 %v20372_v9  ;;  %v18699_v52 = vadd.f32 %v13437_v3, %v13436_v60  ;;  %v18813_v9 = vld [vmem:[%s20225_s5 + $0xa0] ss:$8 sps:$4 sm:$0xff]  }
 0x6d9   : > { %13967 = vmatmul.mubr.bf16.gmra.mrb[68].mxu1 %v18093_v34 }
 0x6da   : > { %7751 = vmatpush1.bf16.msra.mxu0 %v15400_v41  ;;  %13970 = vmatprep.mubr.msk.bf16.mxu1 %vm15762_vm4, %v20369_v13 }
 0x6db   : > { %8180 = vmatpush1.bf16.msra.mxu1 %v20373_v42  ;;  %7752 = vmatprep.subr.bf16.mxu0 %v15405_v25 }
 0x6dc   : > { %8181 = vmatprep.subr.bf16.mxu1 %v20374_v11  ;;  %v13439_v10 = vpop.f32.mrb[4].mxu1  ;;  %v15430_v11 = vld [vmem:[%s20224_s4 + $0x360] ss:$12 sps:$4 sm:$0xff]  }
 0x6dd   : > { %v13440_v32 = vpop.f32.mrb[5].mxu1 }
 0x6de   : > { %7753 = vmatpush1.bf16.msra.mxu0 %v15403_v24  ;;  %v18712_v33 = vadd.f32 %v13440_v32, %v13439_v10  ;;  %v13442_v18 = vpop.f32.mrb[6].mxu1  ;;  %v20380_v24 = vld [vmem:[#allocation11_spill] sm:$0xff]  ;;  %v20381_v10 = vld [vmem:[#allocation16_spill] sm:$0xff] }
 0x6df   : > { %8182 = vmatpush1.bf16.msra.mxu1 %v20375_v2  ;;  %v13443_v5 = vpop.f32.mrb[7].mxu1  ;;  %7754 = vmatprep.subr.bf16.mxu0 %v15408_v55  ;;  %v18823_v32 = vld [vmem:[%s20225_s5 + $0xb4] ss:$8 sps:$4 sm:$0xff]   ;;  %v15436_v2 = vld [vmem:[%s20224_s4 + $0x378] ss:$12 sps:$4 sm:$0xff]  }
 0x6e0   : > { %8183 = vmatprep.subr.bf16.mxu1 %v20376_v58  ;;  %v18722_v56 = vadd.f32 %v13443_v5, %v13442_v18  ;;  %v15438_v18 = vld [vmem:[%s20224_s4 + $0x37c] ss:$12 sps:$4 sm:$0xff]   ;;  %v20383_v5 = vld [vmem:[#allocation20_spill] sm:$0xff] }
 0x6e1   : > { %13971 = vmatmul.mubr.bf16.gmra.mrb[72].mxu1 %v18119_v28 }
 0x6e2   : > { %7755 = vmatpush1.bf16.msra.mxu0 %v15406_v54  ;;  %13974 = vmatprep.mubr.msk.bf16.mxu1 %vm15762_vm4, %v20369_v13  ;;  %v20382_v54 = vld [vmem:[#allocation14_spill] sm:$0xff] }
 0x6e3   : > { %8184 = vmatpush1.bf16.msra.mxu1 %v20377_v40  ;;  %7756 = vmatprep.subr.bf16.mxu0 %v15411_v47  ;;  %v18844_v40 = vld [vmem:[%s20225_s5 + $0xb0] ss:$8 sps:$4 sm:$0xff]  }
 0x6e4   : > { %8185 = vmatprep.subr.bf16.mxu1 %v20363_v30  ;;  %v13445_v23 = vpop.f32.mrb[8].mxu1  ;;  %v18748_v30 = vld [vmem:[%s20225_s5 + $0x94] ss:$8 sps:$4 sm:$0xff]  }
 0x6e5   : > { %v13446_v48 = vpop.f32.mrb[9].mxu1 }
 0x6e6   : > { %7757 = vmatpush1.bf16.msra.mxu0 %v15409_v36  ;;  %v18735_v59 = vadd.f32 %v13446_v48, %v13445_v23  ;;  %v13448_v27 = vpop.f32.mrb[10].mxu1  ;;  %v15439_v48 = vld [vmem:[%s20224_s4 + $0x390] ss:$12 sps:$4 sm:$0xff]  }
 0x6e7   : > { %8186 = vmatpush1.bf16.msra.mxu1 %v20367_v22  ;;  %v13449_v31 = vpop.f32.mrb[11].mxu1  ;;  %7807 = vmatprep.subr.bf16.mxu0 %v15414_v14  ;;  %v15418_v22 = vld [vmem:[%s20224_s4 + $0x318] ss:$12 sps:$4 sm:$0xff]  }
 0x6e8   : > { %8187 = vmatprep.subr.bf16.mxu1 %v17489_v53  ;;  %v18751_v49 = vadd.f32 %v13449_v31, %v13448_v27  ;;  %v15423_v53 = vld [vmem:[%s20224_s4 + $0x334] ss:$12 sps:$4 sm:$0xff]   ;;  %v18854_v31 = vld [vmem:[%s20225_s5 + $0xc4] ss:$8 sps:$4 sm:$0xff]  }
 0x6e9   : > { %7759 = vmatmul.mubr.bf16.vlgmr.msra.gmra.mrb[200].mxu0 %v18021_v29  ;;  %13975 = vmatmul.mubr.bf16.gmra.mrb[76].mxu1 %v18742_v8  ;;  %v20384_v14 = vld [vmem:[#allocation18_spill] sm:$0xff]  ;;  %v20385_v27 = vld [vmem:[#allocation24_spill] sm:$0xff] }
 0x6ea   : > { %7768 = vmatprep.mubr.bf16.mxu0 %v18027_v39  ;;  %7808 = vmatpush1.bf16.msra.mxu0 %v15412_v21 }
 0x6eb   : > { %8188 = vmatpush1.bf16.msra.mxu1 %v17485_v12  ;;  %12860 = vmatprep.mubr.msk.bf16.mxu1 %vm4984_vm3, %v18748_v30 }
 0x6ec   : > { %8189 = vmatprep.subr.bf16.mxu1 %v17511_v20  ;;  %v13451_v29 = vpop.f32.mrb[12].mxu1  ;;  %7809 = vmatprep.subr.bf16.mxu0 %v15420_v62 }
 0x6ed   : > { %v13452_v17 = vpop.f32.mrb[13].mxu1 }
 0x6ee   : > { %v18769_v39 = vadd.f32 %v13452_v17, %v13451_v29  ;;  %v13454_v57 = vpop.f32.mrb[14].mxu1  ;;  %7810 = vmatpush1.bf16.msra.mxu0 %v15418_v22  ;;  %v15447_v22 = vld [vmem:[%s20224_s4 + $0x3ac] ss:$12 sps:$4 sm:$0xff]   ;;  %v20386_v29 = vld [vmem:[#allocation22_spill] sm:$0xff]  ;;  %v20387_v17 = vld [vmem:[#allocation28_spill] sm:$0xff] }
 0x6ef   : > { %8190 = vmatpush1.bf16.msra.mxu1 %v17504_v63  ;;  %v13455_v12 = vpop.f32.mrb[15].mxu1  ;;  %7811 = vmatprep.subr.bf16.mxu0 %v15423_v53  ;;  %v15429_v63 = vld [vmem:[%s20224_s4 + $0x34c] ss:$12 sps:$4 sm:$0xff]  }
 0x6f0   : > { %8252 = vmatprep.subr.bf16.mxu1 %v17347_v43  ;;  %v18781_v20 = vadd.f32 %v13455_v12, %v13454_v57  ;;  %v15427_v43 = vld [vmem:[%s20224_s4 + $0x348] ss:$12 sps:$4 sm:$0xff]  }
 0x6f1   : > { %7769 = vmatmul.mubr.bf16.gmra.mrb[204].mxu0 %v18025_v35 }
 0x6f2   : > { %7778 = vmatprep.mubr.bf16.mxu0 %v18031_v1  ;;  %8204 = vmatmul.mubr.bf16.vlgmr.msra.gmra.mrb[80].mxu1 %v18774_v38  ;;  %v15432_v1 = vld [vmem:[%s20224_s4 + $0x364] ss:$12 sps:$4 sm:$0xff]  }
 0x6f3   : > { %8253 = vmatpush1.bf16.msra.mxu1 %v20378_v50  ;;  %7812 = vmatpush1.bf16.msra.mxu0 %v15421_v15  ;;  %v18881_v15 = vld [vmem:[%s20225_s5 + $0xc0] ss:$8 sps:$4 sm:$0xff]  }
 0x6f4   : > { %8254 = vmatprep.subr.bf16.mxu1 %v20379_v37  ;;  %v18799_v4 = vpop.f32.mrb[216].mxu0  ;;  %v13457_v35 = vpop.f32.mrb[16].mxu1  ;;  %12861 = vmatprep.mubr.msk.bf16.mxu1 %vm4984_vm3, %v18786_v46  ;;  %v20389_v37 = vld [vmem:[#allocation32_spill] sm:$0xff] }
 0x6f5   : > { %v18806_v60 = vpop.f32.mrb[217].mxu0  ;;  %v13458_v41 = vpop.f32.mrb[17].mxu1  ;;  %7813 = vmatprep.subr.bf16.mxu0 %v15429_v63  ;;  %v20388_v63 = vld [vmem:[#allocation26_spill] sm:$0xff] }
 0x6f6   : > { %v18808_v6 = vadd.f32 %v13458_v41, %v13457_v35  ;;  %v6624_v3 = vpop.f32.mrb[218].mxu0  ;;  %v13460_v25 = vpop.f32.mrb[18].mxu1  ;;  %v15452_v41 = vld [vmem:[%s20224_s4 + $0x784] ss:$12 sps:$4 sm:$0xff]  }
 0x6f7   : > { %8255 = vmatpush1.bf16.msra.mxu1 %v20380_v24  ;;  %v6625_v42 = vpop.f32.mrb[219].mxu0  ;;  %v13461_v55 = vpop.f32.mrb[19].mxu1  ;;  %7814 = vmatpush1.bf16.msra.mxu0 %v15427_v43  ;;  %v20390_v25 = vld [vmem:[#allocation30_spill] sm:$0xff] }
 0x6f8   : > { %8256 = vmatprep.subr.bf16.mxu1 %v20381_v10  ;;  %7815 = vmatprep.subr.bf16.mxu0 %v15432_v1  ;;  %v20392_v10 = vld [vmem:[#allocation34_spill] sm:$0xff] }
 0x6f9   : > { %7779 = vmatmul.mubr.bf16.gmra.mrb[208].mxu0 %v18029_v19  ;;  %v15441_v19 = vld [vmem:[%s20224_s4 + $0x394] ss:$12 sps:$4 sm:$0xff]  }
 0x6fa   : > { %7788 = vmatprep.mubr.bf16.mxu0 %v18035_v26  ;;  %8214 = vmatmul.mubr.bf16.gmra.mrb[84].mxu1 %v18813_v9 }
 0x6fb   : > { %8257 = vmatpush1.bf16.msra.mxu1 %v20382_v54  ;;  %7816 = vmatpush1.bf16.msra.mxu0 %v15430_v11  ;;  %v20393_v54 = vld [vmem:[#allocation38_spill] sm:$0xff] }
 0x6fc   : > { %8258 = vmatprep.subr.bf16.mxu1 %v20383_v5  ;;  %v13479_v47 = vpop.f32.mrb[20].mxu1  ;;  %12862 = vmatprep.mubr.msk.bf16.mxu1 %vm4984_vm3, %v18823_v32  ;;  %v15450_v5 = vld [vmem:[%s20224_s4 + $0x780] ss:$12 sps:$4 sm:$0xff]  }
 0x6fd   : > { %v13480_v26 = vpop.f32.mrb[21].mxu1  ;;  %7817 = vmatprep.subr.bf16.mxu0 %v15438_v18 }
 0x6fe   : > { %v13481_v58 = vadd.f32 %v13480_v26, %v13479_v47  ;;  %v13482_v36 = vpop.f32.mrb[22].mxu1  ;;  %v15455_v47 = vld [vmem:[%s20224_s4 + $0x79c] ss:$12 sps:$4 sm:$0xff]  }
 0x6ff   : > { %8259 = vmatpush1.bf16.msra.mxu1 %v20384_v14  ;;  %v13483_v23 = vpop.f32.mrb[23].mxu1  ;;  %7818 = vmatpush1.bf16.msra.mxu0 %v15436_v2  ;;  %v20394_v26 = vld [vmem:[#allocation37_spill] sm:$0xff] }
 0x700   : > { %8260 = vmatprep.subr.bf16.mxu1 %v20385_v27  ;;  %v13484_v21 = vadd.f32 %v13483_v23, %v13482_v36  ;;  %7819 = vmatprep.subr.bf16.mxu0 %v15441_v19  ;;  %v18857_v62 = vadd.f32 %v13481_v58, %v18689_v45  ;;  %v15445_v45 = vld [vmem:[%s20224_s4 + $0x3a8] ss:$12 sps:$4 sm:$0xff]  }
 0x701   : > { %7789 = vmatmul.mubr.bf16.gmra.mrb[212].mxu0 %v18033_v61 }
 0x702   : > { %7798 = vmatprep.mubr.bf16.mxu0 %v18613_v7  ;;  %8224 = vmatmul.mubr.bf16.gmra.mrb[88].mxu1 %v18844_v40  ;;  %v18866_v53 = vadd.f32 %v13484_v21, %v18699_v52  ;;  %v12849_v7 = vld [vmem:[%s20225_s5 + $0xd0] sm:$0xff] }
 0x703   : > { %8261 = vmatpush1.bf16.msra.mxu1 %v20386_v29  ;;  %7820 = vmatpush1.bf16.msra.mxu0 %v15439_v48  ;;  %v18884_v43 = vcombine.high %v12849_v7, %v12849_v7  ;;  %v20396_v48 = vld [vmem:[#allocation39_spill] sm:$0xff]  ;;  %v15456_v29 = vld [vmem:[%s20224_s4 + $0x7b0] ss:$12 sps:$4 sm:$0xff]  }
 0x704   : > { %8262 = vmatprep.subr.bf16.mxu1 %v20387_v17  ;;  %v13485_v61 = vpop.f32.mrb[24].mxu1  ;;  %12863 = vmatprep.mubr.msk.bf16.mxu1 %vm4984_vm3, %v18854_v31 }
 0x705   : > { %v13486_v57 = vpop.f32.mrb[25].mxu1  ;;  %7821 = vmatprep.subr.bf16.mxu0 %v15447_v22 }
 0x706   : > { %v13487_v52 = vadd.f32 %v13486_v57, %v13485_v61  ;;  %v13488_v12 = vpop.f32.mrb[26].mxu1 }
 0x707   : > { %8263 = vmatpush1.bf16.msra.mxu1 %v20388_v63  ;;  %v13489_v50 = vpop.f32.mrb[27].mxu1  ;;  %7822 = vmatpush1.bf16.msra.mxu0 %v15445_v45  ;;  %v15461_v45 = vld [vmem:[%s20224_s4 + $0x7cc] ss:$12 sps:$4 sm:$0xff]  }
 0x708   : > { %8264 = vmatprep.subr.bf16.mxu1 %v20389_v37  ;;  %v13490_v35 = vadd.f32 %v13489_v50, %v13488_v12  ;;  %v18888_v1 = vadd.f32 %v13487_v52, %v18712_v33  ;;  %v20391_v33 = vld [vmem:[#allocation36_spill] sm:$0xff]  ;;  %9231 = vmatprep.subr.bf16.mxu0 %v15452_v41  ;;  %v20398_v12 = vld [vmem:[#allocation42_spill] sm:$0xff]  ;;  %v20399_v41 = vld [vmem:[#allocation43_spill] sm:$0xff] }
 0x709   : > { %7799 = vmatmul.mubr.bf16.gmra.mrb[232].mxu0 %v18634_v0  ;;  %v18903_v0 = vcombine.low %v12849_v7, %v12849_v7  ;;  %v15462_v37 = vld [vmem:[%s20224_s4 + $0x7e0] ss:$12 sps:$4 sm:$0xff]  }
 0x70a   : > { %8234 = vmatmul.mubr.bf16.gmra.mrb[92].mxu1 %v18881_v15  ;;  %7839 = vmatprep.mubr.bf16.mxu0 %v20340_v44  ;;  %v18897_v3 = vadd.f32 %v13490_v35, %v18722_v56  ;;  %v15467_v35 = vld [vmem:[%s20224_s4 + $0x7fc] ss:$12 sps:$4 sm:$0xff]  }
 0x70b   : > { %8265 = vmatpush1.bf16.msra.mxu1 %v20390_v25  ;;  %12864 = vmatprep.mubr.msk.bf16.mxu1 %vm4984_vm3, %v18884_v43 }
 0x70c   : > { %8266 = vmatprep.subr.bf16.mxu1 %v20391_v33  ;;  %v13491_v24 = vpop.f32.mrb[28].mxu1 }
 0x70d   : > { %v13492_v42 = vpop.f32.mrb[29].mxu1 }
 0x70e   : > { %v13493_v55 = vadd.f32 %v13492_v42, %v13491_v24  ;;  %v13494_v11 = vpop.f32.mrb[30].mxu1  ;;  %v15470_v24 = vld [vmem:[%s20224_s4 + $0x814] ss:$12 sps:$4 sm:$0xff]  }
 0x70f   : > { %8267 = vmatpush1.bf16.msra.mxu1 %v20392_v10  ;;  %v13495_v18 = vpop.f32.mrb[31].mxu1 }
 0x710   : > { %8268 = vmatprep.subr.bf16.mxu1 %v20393_v54  ;;  %v13496_v56 = vadd.f32 %v13495_v18, %v13494_v11  ;;  %v18908_v2 = vadd.f32 %v13493_v55, %v18735_v59  ;;  %v20395_v59 = vld [vmem:[#allocation40_spill] sm:$0xff]  ;;  %v15473_v18 = vld [vmem:[%s20224_s4 + $0x82c] ss:$12 sps:$4 sm:$0xff]  }
 0x711   : > { %7840 = vmatmul.mubr.bf16.vlgmr.msra.gmra.mrb[200].mxu0 %v18041_v16  ;;  %v15453_v16 = vld [vmem:[%s20224_s4 + $0x798] ss:$12 sps:$4 sm:$0xff]   ;;  %v20400_v55 = vld [vmem:[#allocation44_spill] sm:$0xff] }
 0x712   : > { %8244 = vmatmul.mubr.bf16.gmra.mrb[136].mxu1 %v18903_v0  ;;  %7849 = vmatprep.mubr.bf16.mxu0 %v20340_v44  ;;  %v18920_v19 = vadd.f32 %v13496_v56, %v18751_v49  ;;  %v15458_v49 = vld [vmem:[%s20224_s4 + $0x7b4] ss:$12 sps:$4 sm:$0xff]  }
 0x713   : > { %8269 = vmatpush1.bf16.msra.mxu1 %v20394_v26  ;;  %12865 = vmatprep.mubr.msk.bf16.mxu1 %vm4984_vm3, %v18748_v30 }
 0x714   : > { %8270 = vmatprep.subr.bf16.mxu1 %v20395_v59  ;;  %v13497_v58 = vpop.f32.mrb[32].mxu1  ;;  %9232 = vmatpush1.bf16.msra.mxu0 %v15450_v5  ;;  %v20402_v59 = vld [vmem:[#allocation46_spill] sm:$0xff] }
 0x715   : > { %v13498_v36 = vpop.f32.mrb[33].mxu1  ;;  %9233 = vmatprep.subr.bf16.mxu0 %v15455_v47  ;;  %v15476_v47 = vld [vmem:[%s20224_s4 + $0x844] ss:$12 sps:$4 sm:$0xff]  }
 0x716   : > { %v13499_v14 = vadd.f32 %v13498_v36, %v13497_v58  ;;  %v13500_v23 = vpop.f32.mrb[34].mxu1  ;;  %v15479_v36 = vld [vmem:[%s20224_s4 + $0x85c] ss:$12 sps:$4 sm:$0xff]  }
 0x717   : > { %8271 = vmatpush1.bf16.msra.mxu1 %v20396_v48  ;;  %v13501_v27 = vpop.f32.mrb[35].mxu1 }
 0x718   : > { %v13502_v21 = vadd.f32 %v13501_v27, %v13500_v23  ;;  %8333 = vmatprep.subr.bf16.mxu1 %v20340_v44  ;;  %v18935_v22 = vadd.f32 %v13499_v14, %v18769_v39  ;;  %9234 = vmatpush1.bf16.msra.mxu0 %v15453_v16  ;;  %v20397_v39 = vld [vmem:[#allocation41_spill] sm:$0xff] }
 0x719   : > { %7850 = vmatmul.mubr.bf16.gmra.mrb[204].mxu0 %v18067_v51  ;;  %9235 = vmatprep.subr.bf16.mxu0 %v15458_v49  ;;  %v15459_v51 = vld [vmem:[%s20224_s4 + $0x7c8] ss:$12 sps:$4 sm:$0xff]   ;;  %v20403_v49 = vld [vmem:[#allocation10_spill] sm:$0xff] }
 0x71a   : > { %8285 = vmatmul.mubr.bf16.vlgmr.msra.gmra.mrb[140].mxu1 %v18774_v38  ;;  %7859 = vmatprep.mubr.bf16.mxu0 %v20340_v44  ;;  %v18947_v17 = vadd.f32 %v13502_v21, %v18781_v20  ;;  %v15464_v20 = vld [vmem:[%s20224_s4 + $0x7e4] ss:$12 sps:$4 sm:$0xff]  }
 0x71b   : > { %8334 = vmatpush1.bf16.msra.mxu1 %v20397_v39  ;;  %12866 = vmatprep.mubr.msk.bf16.mxu1 %vm4984_vm3, %v18786_v46 }
 0x71c   : > { %v13503_v61 = vpop.f32.mrb[36].mxu1  ;;  %8335 = vmatprep.subr.bf16.mxu1 %v20340_v44  ;;  %9236 = vmatpush1.bf16.msra.mxu0 %v15456_v29  ;;  %v15482_v29 = vld [vmem:[%s20224_s4 + $0x874] ss:$12 sps:$4 sm:$0xff]  }
 0x71d   : > { %v13504_v7 = vpop.f32.mrb[37].mxu1  ;;  %9237 = vmatprep.subr.bf16.mxu0 %v15461_v45 }
 0x71e   : > { %v13505_v57 = vadd.f32 %v13504_v7, %v13503_v61  ;;  %v13506_v52 = vpop.f32.mrb[38].mxu1 }
 0x71f   : > { %8336 = vmatpush1.bf16.msra.mxu1 %v20398_v12  ;;  %v13507_v63 = vpop.f32.mrb[39].mxu1  ;;  %v19064_v52 = vld [vmem:[%s20224_s4 + $0x848] ss:$12 sps:$4 sm:$0xff]  }
 0x720   : > { %8337 = vmatprep.subr.bf16.mxu1 %v20340_v44  ;;  %v18962_v50 = vadd.f32 %v13505_v57, %v18808_v6  ;;  %9238 = vmatpush1.bf16.msra.mxu0 %v15459_v51  ;;  %v20404_v51 = vld [vmem:[#allocation15_spill] sm:$0xff]  ;;  %v20405_v57 = vld [vmem:[#allocation13_spill] sm:$0xff] }
 0x721   : > { %7860 = vmatmul.mubr.bf16.gmra.mrb[208].mxu0 %v18093_v34  ;;  %9239 = vmatprep.subr.bf16.mxu0 %v15464_v20  ;;  %v15465_v34 = vld [vmem:[%s20224_s4 + $0x7f8] ss:$12 sps:$4 sm:$0xff]   ;;  %v15485_v12 = vld [vmem:[%s20224_s4 + $0x888] ss:$12 sps:$4 sm:$0xff]  }
 0x722   : > { %8295 = vmatmul.mubr.bf16.gmra.mrb[144].mxu1 %v18813_v9  ;;  %7869 = vmatprep.mubr.bf16.mxu0 %v20340_v44 }
 0x723   : > { %8338 = vmatpush1.bf16.msra.mxu1 %v20399_v41  ;;  %12867 = vmatprep.mubr.msk.bf16.mxu1 %vm4984_vm3, %v18823_v32  ;;  %v20406_v41 = vld [vmem:[#allocation2_spill] sm:$0xff] }
 0x724   : > { %v6967_v6 = vpop.f32.mrb[40].mxu1  ;;  %8339 = vmatprep.subr.bf16.mxu1 %v20340_v44  ;;  %9240 = vmatpush1.bf16.msra.mxu0 %v15462_v37 }
 0x725   : > { %v18981_v25 = vadd.f32 %v6967_v6, %v18857_v62  ;;  %v13924_v33 = vpop.f32.mrb[41].mxu1  ;;  %9241 = vmatprep.subr.bf16.mxu0 %v15467_v35  ;;  %v15468_v62 = vld [vmem:[%s20224_s4 + $0x810] ss:$12 sps:$4 sm:$0xff]  }
 0x726   : > { %v6970_v42 = vpop.f32.mrb[42].mxu1  ;;  %v19082_v33 = vld [vmem:[%s20224_s4 + $0x788] ss:$12 sps:$4 sm:$0xff]  }
 0x727   : > { %8340 = vmatpush1.bf16.msra.mxu1 %v20400_v55  ;;  %v18988_v11 = vadd.f32 %v6970_v42, %v18866_v53  ;;  %v13925_v10 = vpop.f32.mrb[43].mxu1  ;;  %v20401_v53 = vld [vmem:[#allocation45_spill] sm:$0xff]  ;;  %v19103_v42 = vld [vmem:[%s20224_s4 + $0x7a0] ss:$12 sps:$4 sm:$0xff]  }
 0x728   : > { %8341 = vmatprep.subr.bf16.mxu1 %v20340_v44  ;;  %9242 = vmatpush1.bf16.msra.mxu0 %v15465_v34  ;;  %v19109_v10 = vld [vmem:[%s20224_s4 + $0x878] ss:$12 sps:$4 sm:$0xff]  }
 0x729   : > { %7870 = vmatmul.mubr.bf16.gmra.mrb[212].mxu0 %v18119_v28  ;;  %9243 = vmatprep.subr.bf16.mxu0 %v15470_v24  ;;  %v15471_v28 = vld [vmem:[%s20224_s4 + $0x828] ss:$12 sps:$4 sm:$0xff]   ;;  %v15490_v24 = vld [vmem:[%s20224_s4 + $0x8a0] ss:$12 sps:$4 sm:$0xff]  }
 0x72a   : > { %8305 = vmatmul.mubr.bf16.gmra.mrb[148].mxu1 %v18844_v40  ;;  %7879 = vmatprep.mubr.bf16.mxu0 %v20340_v44 }
 0x72b   : > { %8342 = vmatpush1.bf16.msra.mxu1 %v20401_v53  ;;  %12868 = vmatprep.mubr.msk.bf16.mxu1 %vm4984_vm3, %v18854_v31 }
 0x72c   : > { %v6975_v54 = vpop.f32.mrb[44].mxu1  ;;  %8343 = vmatprep.subr.bf16.mxu1 %v20340_v44  ;;  %9244 = vmatpush1.bf16.msra.mxu0 %v15468_v62 }
 0x72d   : > { %v19008_v56 = vadd.f32 %v6975_v54, %v18888_v1  ;;  %v13928_v5 = vpop.f32.mrb[45].mxu1  ;;  %9245 = vmatprep.subr.bf16.mxu0 %v15473_v18  ;;  %v15474_v1 = vld [vmem:[%s20224_s4 + $0x840] ss:$12 sps:$4 sm:$0xff]  }
 0x72e   : > { %v6978_v26 = vpop.f32.mrb[46].mxu1  ;;  %v15502_v18 = vld [vmem:[%s20224_s4 + $0x8d4] ss:$12 sps:$4 sm:$0xff]   ;;  %v15500_v5 = vld [vmem:[%s20224_s4 + $0x8d0] ss:$12 sps:$4 sm:$0xff]  }
 0x72f   : > { %8344 = vmatpush1.bf16.msra.mxu1 %v20402_v59  ;;  %v19015_v58 = vadd.f32 %v6978_v26, %v18897_v3  ;;  %v13929_v16 = vpop.f32.mrb[47].mxu1  ;;  %v19145_v26 = vld [vmem:[%s20224_s4 + $0x7d0] ss:$12 sps:$4 sm:$0xff]  }
 0x730   : > { %8345 = vmatprep.subr.bf16.mxu1 %v20340_v44  ;;  %9246 = vmatpush1.bf16.msra.mxu0 %v15471_v28  ;;  %v19124_v28 = vld [vmem:[%s20224_s4 + $0x7b8] ss:$12 sps:$4 sm:$0xff]   ;;  %v19151_v16 = vld [vmem:[%s20224_s4 + $0x8a8] ss:$12 sps:$4 sm:$0xff]  }
 0x731   : > { %7880 = vmatmul.mubr.bf16.gmra.mrb[236].mxu0 %v18742_v8  ;;  %9247 = vmatprep.subr.bf16.mxu0 %v15476_v47  ;;  %v15477_v8 = vld [vmem:[%s20224_s4 + $0x858] ss:$12 sps:$4 sm:$0xff]  }
 0x732   : > { %8315 = vmatmul.mubr.bf16.gmra.mrb[152].mxu1 %v18881_v15  ;;  %v15507_v47 = vld [vmem:[%s20224_s4 + $0x8ec] ss:$12 sps:$4 sm:$0xff]  }
 0x733   : > { %8346 = vmatpush1.bf16.msra.mxu1 %v20403_v49  ;;  %12869 = vmatprep.mubr.msk.bf16.mxu1 %vm4984_vm3, %v18884_v43 }
 0x734   : > { %v6701_v3 = vpop.f32.mrb[220].mxu0  ;;  %v6983_v14 = vpop.f32.mrb[48].mxu1  ;;  %8347 = vmatprep.subr.bf16.mxu1 %v20340_v44  ;;  %9248 = vmatpush1.bf16.msra.mxu0 %v15474_v1  ;;  %v15512_v1 = vld [vmem:[%s20224_s4 + $0x904] ss:$12 sps:$4 sm:$0xff]  }
 0x735   : > { %v19034_v23 = vadd.f32 %v6701_v3, %v18799_v4  ;;  %v6703_v48 = vpop.f32.mrb[221].mxu0  ;;  %v19037_v27 = vadd.f32 %v6983_v14, %v18908_v2  ;;  %v13932_v21 = vpop.f32.mrb[49].mxu1  ;;  %9249 = vmatprep.subr.bf16.mxu0 %v15479_v36  ;;  %v15480_v2 = vld [vmem:[%s20224_s4 + $0x870] ss:$12 sps:$4 sm:$0xff]   ;;  %v19163_v14 = vld [vmem:[%s20224_s4 + $0x7e8] ss:$12 sps:$4 sm:$0xff]  }
 0x736   : > { %v19043_v45 = vadd.f32 %v6703_v48, %v18806_v60  ;;  %v6705_v39 = vpop.f32.mrb[222].mxu0  ;;  %v6986_v61 = vpop.f32.mrb[50].mxu1  ;;  %v15487_v60 = vld [vmem:[%s20224_s4 + $0x88c] ss:$12 sps:$4 sm:$0xff]  }
 0x737   : > { %8348 = vmatpush1.bf16.msra.mxu1 %v20404_v51  ;;  %v6706_v7 = vpop.f32.mrb[223].mxu0  ;;  %v19047_v4 = vadd.f32 %v6986_v61, %v18920_v19  ;;  %v13933_v20 = vpop.f32.mrb[51].mxu1  ;;  %v19172_v21 = vld [vmem:[%s20224_s4 + $0x8c0] ss:$12 sps:$4 sm:$0xff]  }
 0x738   : > { %8349 = vmatprep.subr.bf16.mxu1 %v20340_v44  ;;  %9250 = vmatpush1.bf16.msra.mxu0 %v15477_v8 }
 0x739   : > { %9251 = vmatprep.subr.bf16.mxu0 %v15482_v29 }
 0x73a   : > { %8325 = vmatmul.mubr.bf16.gmra.mrb[156].mxu1 %v18903_v0 }
 0x73b   : > { %8350 = vmatpush1.bf16.msra.mxu1 %v20405_v57  ;;  %12870 = vmatprep.mubr.msk.bf16.mxu1 %vm4984_vm3, %v18748_v30  ;;  %v15492_v30 = vld [vmem:[%s20224_s4 + $0x8a4] ss:$12 sps:$4 sm:$0xff]  }
 0x73c   : > { %v6991_v19 = vpop.f32.mrb[52].mxu1  ;;  %8351 = vmatprep.subr.bf16.mxu1 %v20340_v44  ;;  %9252 = vmatpush1.bf16.msra.mxu0 %v15480_v2 }
 0x73d   : > { %v19070_v63 = vadd.f32 %v6991_v19, %v18935_v22  ;;  %v13936_v37 = vpop.f32.mrb[53].mxu1  ;;  %9253 = vmatprep.subr.bf16.mxu0 %v15487_v60  ;;  %v19088_v22 = vld [vmem:[%s20224_s4 + $0x860] ss:$12 sps:$4 sm:$0xff]   ;;  %v19203_v60 = vld [vmem:[%s20224_s4 + $0x8f0] ss:$12 sps:$4 sm:$0xff]  }
 0x73e   : > { %v6994_v35 = vpop.f32.mrb[54].mxu1 }
 0x73f   : > { %8352 = vmatpush1.bf16.msra.mxu1 %v20406_v41  ;;  %v19077_v6 = vadd.f32 %v6994_v35, %v18947_v17  ;;  %v13937_v34 = vpop.f32.mrb[55].mxu1  ;;  %v15497_v17 = vld [vmem:[%s20224_s4 + $0x8bc] ss:$12 sps:$4 sm:$0xff]  }
 0x740   : > { %14222 = vmatprep.subr.bf16.mxu1 %v19064_v52  ;;  %9254 = vmatpush1.bf16.msra.mxu0 %v15485_v12 }
 0x741   : > { %9255 = vmatprep.subr.bf16.mxu0 %v15492_v30 }
 0x742   : > { %8366 = vmatmul.mubr.bf16.vlgmr.msra.gmra.mrb[160].mxu1 %v18774_v38  ;;  %v15495_v38 = vld [vmem:[%s20224_s4 + $0x8b8] ss:$12 sps:$4 sm:$0xff]  }
 0x743   : > { %12871 = vmatprep.mubr.msk.bf16.mxu1 %vm4984_vm3, %v18786_v46  ;;  %14230 = vmatpush3.bf16.msra.mxu1 %v19082_v33 }
 0x744   : > { %v6999_v55 = vpop.f32.mrb[96].mxu1  ;;  %14223 = vmatprep.subr.bf16.mxu1 %v19088_v22  ;;  %9256 = vmatpush1.bf16.msra.mxu0 %v15490_v24 }
 0x745   : > { %v19115_v46 = vadd.f32 %v6999_v55, %v18962_v50  ;;  %v13940_v62 = vpop.f32.mrb[97].mxu1  ;;  %9257 = vmatprep.subr.bf16.mxu0 %v15497_v17  ;;  %v19130_v50 = vld [vmem:[%s20224_s4 + $0x890] ss:$12 sps:$4 sm:$0xff]  }
 0x746   : > { %v7002_v53 = vpop.f32.mrb[98].mxu1 }
 0x747   : > { %v13941_v54 = vpop.f32.mrb[99].mxu1  ;;  %14231 = vmatpush3.bf16.msra.mxu1 %v19103_v42 }
 0x748   : > { %14224 = vmatprep.subr.bf16.mxu1 %v19109_v10  ;;  %9258 = vmatpush1.bf16.msra.mxu0 %v15495_v38 }
 0x749   : > { %9259 = vmatprep.subr.bf16.mxu0 %v15502_v18 }
 0x74a   : > { %8374 = vmatmul.mubr.bf16.gmra.mrb[164].mxu1 %v18813_v9  ;;  %v15505_v9 = vld [vmem:[%s20224_s4 + $0x8e8] ss:$12 sps:$4 sm:$0xff]  }
 0x74b   : > { %12872 = vmatprep.mubr.msk.bf16.mxu1 %vm4984_vm3, %v18823_v32  ;;  %14232 = vmatpush3.bf16.msra.mxu1 %v19124_v28 }
 0x74c   : > { %v13538_v59 = vpop.f32.mrb[100].mxu1  ;;  %14225 = vmatprep.subr.bf16.mxu1 %v19130_v50  ;;  %9260 = vmatpush1.bf16.msra.mxu0 %v15500_v5 }
 0x74d   : > { %v13539_v32 = vpop.f32.mrb[101].mxu1  ;;  %9261 = vmatprep.subr.bf16.mxu0 %v15507_v47 }
 0x74e   : > { %v13540_v36 = vadd.f32 %v13539_v32, %v13538_v59  ;;  %v13541_v49 = vpop.f32.mrb[102].mxu1 }
 0x74f   : > { %v13542_v3 = vpop.f32.mrb[103].mxu1  ;;  %14233 = vmatpush3.bf16.msra.mxu1 %v19145_v26 }
 0x750   : > { %v19166_v8 = vadd.f32 %v13540_v36, %v18981_v25  ;;  %v13543_v48 = vadd.f32 %v13542_v3, %v13541_v49  ;;  %14226 = vmatprep.subr.bf16.mxu1 %v19151_v16  ;;  %9262 = vmatpush1.bf16.msra.mxu0 %v15505_v9  ;;  %v19184_v25 = vld [vmem:[%s20224_s4 + $0x800] ss:$12 sps:$4 sm:$0xff]  }
 0x751   : > { %9312 = vmatprep.subr.bf16.mxu0 %v15512_v1 }
 0x752   : > { %v19175_v29 = vadd.f32 %v13543_v48, %v18988_v11  ;;  %8382 = vmatmul.mubr.bf16.gmra.mrb[168].mxu1 %v18844_v40  ;;  %v19190_v11 = vld [vmem:[%s20224_s4 + $0x8d8] ss:$12 sps:$4 sm:$0xff]  }
 0x753   : > { %12873 = vmatprep.mubr.msk.bf16.mxu1 %vm4984_vm3, %v18854_v31  ;;  %14234 = vmatpush3.bf16.msra.mxu1 %v19163_v14  ;;  %v19196_v31 = vld [vmem:[%s20224_s4 + $0x818] ss:$12 sps:$4 sm:$0xff]  }
 0x754   : > { %v13544_v39 = vpop.f32.mrb[104].mxu1  ;;  %14227 = vmatprep.subr.bf16.mxu1 %v19172_v21 }
 0x755   : > { %v13545_v61 = vpop.f32.mrb[105].mxu1 }
 0x756   : > { %v13546_v40 = vadd.f32 %v13545_v61, %v13544_v39  ;;  %v13547_v51 = vpop.f32.mrb[106].mxu1 }
 0x757   : > { %v13548_v7 = vpop.f32.mrb[107].mxu1  ;;  %14235 = vmatpush3.bf16.msra.mxu1 %v19184_v25 }
 0x758   : > { %v7931_v20 = vadd.f32 %v13546_v40, %v19008_v56  ;;  %v13549_v2 = vadd.f32 %v13548_v7, %v13547_v51  ;;  %14228 = vmatprep.subr.bf16.mxu1 %v19190_v11  ;;  %v19213_v56 = vld [vmem:[%s20224_s4 + $0x830] ss:$12 sps:$4 sm:$0xff]  }
 0x75a   : > { %v7934_v57 = vadd.f32 %v13549_v2, %v19015_v58  ;;  %8390 = vmatmul.mubr.bf16.gmra.mrb[172].mxu1 %v18881_v15  ;;  %v15523_v58 = vld [vmem:[%s20224_s4 + $0x9c8] ss:$12 sps:$4 sm:$0xff]  }
 0x75b   : > { %12874 = vmatprep.mubr.msk.bf16.mxu1 %vm4984_vm3, %v18884_v43  ;;  %14236 = vmatpush3.bf16.msra.mxu1 %v19196_v31 }
 0x75c   : > { %v6782_v19 = vpop.f32.mrb[224].mxu0  ;;  %v13550_v12 = vpop.f32.mrb[108].mxu1  ;;  %14229 = vmatprep.subr.bf16.mxu1 %v19203_v60 }
 0x75d   : > { %v19220_v15 = vadd.f32 %v6782_v19, %v19034_v23  ;;  %v6784_v37 = vpop.f32.mrb[225].mxu0  ;;  %v13551_v43 = vpop.f32.mrb[109].mxu1 }
 0x75e   : > { %v19223_v30 = vadd.f32 %v6784_v37, %v19043_v45  ;;  %v6786_v35 = vpop.f32.mrb[226].mxu0  ;;  %v13552_v41 = vadd.f32 %v13551_v43, %v13550_v12  ;;  %v13553_v34 = vpop.f32.mrb[110].mxu1 }
 0x75f   : > { %v6787_v24 = vpop.f32.mrb[227].mxu0  ;;  %v13554_v17 = vpop.f32.mrb[111].mxu1  ;;  %14237 = vmatpush3.bf16.msra.mxu1 %v19213_v56 }
 0x760   : > { %v7939_v55 = vadd.f32 %v13552_v41, %v19037_v27  ;;  %v13555_v38 = vadd.f32 %v13554_v17, %v13553_v34  ;;  %13673 = vmatprep.subr.bf16.mxu1 %v15523_v58 }
 0x762   : > { %v7942_v62 = vadd.f32 %v13555_v38, %v19047_v4  ;;  %8398 = vmatmul.mubr.bf16.gmra.mrb[176].mxu1 %v18903_v0 }
 0x764   : > { %v13556_v23 = vpop.f32.mrb[112].mxu1 }
 0x765   : > { %v13557_v18 = vpop.f32.mrb[113].mxu1 }
 0x766   : > { %v13558_v53 = vadd.f32 %v13557_v18, %v13556_v23  ;;  %v13559_v45 = vpop.f32.mrb[114].mxu1 }
 0x767   : > { %v13560_v54 = vpop.f32.mrb[115].mxu1 }
 0x768   : > { %v7947_v5 = vadd.f32 %v13558_v53, %v19070_v63  ;;  %v13561_v47 = vadd.f32 %v13560_v54, %v13559_v45 }
 0x76a   : > { %v7950_v59 = vadd.f32 %v13561_v47, %v19077_v6 }
 0x76c   : > { %v13562_v9 = vpop.f32.mrb[116].mxu1 }
 0x76d   : > { %v13563_v32 = vpop.f32.mrb[117].mxu1 }
 0x76e   : > { %v13564_v1 = vadd.f32 %v13563_v32, %v13562_v9  ;;  %v13565_v27 = vpop.f32.mrb[118].mxu1 }
 0x76f   : > { %v13566_v36 = vpop.f32.mrb[119].mxu1 }
 0x770   : > { %v7955_v49 = vadd.f32 %v13564_v1, %v19115_v46 }
 0x774   : > { %v13584_v4 = vpop.f32.mrb[120].mxu1 }
 0x775   : > { %v13585_v3 = vpop.f32.mrb[121].mxu1 }
 0x776   : > { %v13586_v0 = vadd.f32 %v13585_v3, %v13584_v4  ;;  %v13587_v48 = vpop.f32.mrb[122].mxu1 }
 0x777   : > { %v13588_v39 = vpop.f32.mrb[123].mxu1 }
 0x778   : > { %v13589_v61 = vadd.f32 %v13588_v39, %v13587_v48  ;;  %v7995_v40 = vadd.f32 %v13586_v0, %v19166_v8 }
 0x77a   : > { %v7998_v63 = vadd.f32 %v13589_v61, %v19175_v29 }
 0x77c   : > { %v13590_v51 = vpop.f32.mrb[124].mxu1 }
 0x77d   : > { %v13591_v7 = vpop.f32.mrb[125].mxu1 }
 0x77e   : > { %v13592_v6 = vadd.f32 %v13591_v7, %v13590_v51  ;;  %v13593_v2 = vpop.f32.mrb[126].mxu1 }
 0x77f   : > { %v13594_v19 = vpop.f32.mrb[127].mxu1 }
 0x780   : > { %v13595_v12 = vadd.f32 %v13594_v19, %v13593_v2  ;;  %v8003_v58 = vadd.f32 %v13592_v6, %v7931_v20 }
 0x782   : > { %v8006_v37 = vadd.f32 %v13595_v12, %v7934_v57 }
 0x784   : > { %v13596_v43 = vpop.f32.mrb[128].mxu1 }
 0x785   : > { %v13597_v46 = vpop.f32.mrb[129].mxu1 }
 0x786   : > { %v13598_v35 = vadd.f32 %v13597_v46, %v13596_v43  ;;  %v13599_v41 = vpop.f32.mrb[130].mxu1 }
 0x787   : > { %v13600_v34 = vpop.f32.mrb[131].mxu1 }
 0x788   : > { %v13601_v24 = vadd.f32 %v13600_v34, %v13599_v41  ;;  %v8011_v17 = vadd.f32 %v13598_v35, %v7939_v55 }
 0x78a   : > { %v8014_v38 = vadd.f32 %v13601_v24, %v7942_v62 }
 0x78c   : > { %v13602_v23 = vpop.f32.mrb[132].mxu1 }
 0x78d   : > { %v13603_v8 = vpop.f32.mrb[133].mxu1 }
 0x78e   : > { %v13604_v18 = vadd.f32 %v13603_v8, %v13602_v23  ;;  %v13605_v29 = vpop.f32.mrb[134].mxu1 }
 0x78f   : > { %v13606_v53 = vpop.f32.mrb[135].mxu1 }
 0x790   : > { %v13607_v45 = vadd.f32 %v13606_v53, %v13605_v29  ;;  %v8019_v54 = vadd.f32 %v13604_v18, %v7947_v5 }
 0x792   : > { %v8022_v47 = vadd.f32 %v13607_v45, %v7950_v59 }
 0x794   : > { %v13608_v9 = vpop.f32.mrb[56].mxu1 }
 0x795   : > { %v13609_v32 = vpop.f32.mrb[57].mxu1 }
 0x796   : > { %v13610_v20 = vadd.f32 %v13609_v32, %v13608_v9  ;;  %v13611_v57 = vpop.f32.mrb[58].mxu1 }
 0x797   : > { %v13612_v1 = vpop.f32.mrb[59].mxu1 }
 0x798   : > { %v8027_v27 = vadd.f32 %v13610_v20, %v7955_v49  ;;  %v15515_v1 = vld [vmem:[%s20224_s4 + $0x918] ss:$12 sps:$4 sm:$0xff]  }
 0x79c   : > { %v7719_v36 = vpop.f32.mrb[228].mxu0  ;;  %v8066_v4 = vpop.f32.mrb[60].mxu1 }
 0x79d   : > { %v19235_v3 = vadd.f32 %v7719_v36, %v19220_v15  ;;  %v7721_v55 = vpop.f32.mrb[229].mxu0  ;;  %v19237_v62 = vadd.f32 %v8066_v4, %v7995_v40  ;;  %v13960_v0 = vpop.f32.mrb[61].mxu1  ;;  %v15522_v36 = vld [vmem:[%s20224_s4 + $0x934] ss:$12 sps:$4 sm:$0xff]  }
 0x79e   : > { %v19240_v48 = vadd.f32 %v7721_v55, %v19223_v30  ;;  %v7723_v5 = vpop.f32.mrb[230].mxu0  ;;  %v8069_v59 = vpop.f32.mrb[62].mxu1 }
 0x79f   : > { %v7724_v39 = vpop.f32.mrb[231].mxu0  ;;  %v19242_v61 = vadd.f32 %v8069_v59, %v7998_v63  ;;  %v13961_v51 = vpop.f32.mrb[63].mxu1  ;;  %v15520_v59 = vld [vmem:[%s20224_s4 + $0x930] ss:$12 sps:$4 sm:$0xff]  }
 0x7a0   : > { %v15524_v39 = vld [vmem:[%s20224_s4 + $0x908] ss:$12 sps:$4 sm:$0xff]   ;;  %v15527_v51 = vld [vmem:[%s20224_s4 + $0x94c] ss:$12 sps:$4 sm:$0xff]  }
 0x7a4   : > { %v8074_v7 = vpop.f32.mrb[64].mxu1 }
 0x7a5   : > { %v19244_v49 = vadd.f32 %v8074_v7, %v8003_v58  ;;  %v13964_v6 = vpop.f32.mrb[65].mxu1  ;;  %v15528_v7 = vld [vmem:[%s20224_s4 + $0x9e0] ss:$12 sps:$4 sm:$0xff]  }
 0x7a6   : > { %v8077_v2 = vpop.f32.mrb[66].mxu1 }
 0x7a7   : > { %v19246_v15 = vadd.f32 %v8077_v2, %v8006_v37  ;;  %v13965_v19 = vpop.f32.mrb[67].mxu1  ;;  %v15525_v2 = vld [vmem:[%s20224_s4 + $0x948] ss:$12 sps:$4 sm:$0xff]  }
 0x7a8   : > { %v15529_v19 = vld [vmem:[%s20224_s4 + $0x920] ss:$12 sps:$4 sm:$0xff]  }
 0x7ac   : > { %v8082_v40 = vpop.f32.mrb[68].mxu1 }
 0x7ad   : > { %v19248_v12 = vadd.f32 %v8082_v40, %v8011_v17  ;;  %v13968_v43 = vpop.f32.mrb[69].mxu1 }
 0x7ae   : > { %v8085_v30 = vpop.f32.mrb[70].mxu1  ;;  %v15532_v43 = vld [vmem:[%s20224_s4 + $0x964] ss:$12 sps:$4 sm:$0xff]  }
 0x7af   : > { %v19250_v46 = vadd.f32 %v8085_v30, %v8014_v38  ;;  %v13969_v35 = vpop.f32.mrb[71].mxu1  ;;  %v15533_v30 = vld [vmem:[%s20224_s4 + $0x9f8] ss:$12 sps:$4 sm:$0xff]  }
 0x7b4   : > { %v8090_v41 = vpop.f32.mrb[72].mxu1 }
 0x7b5   : > { %v19252_v63 = vadd.f32 %v8090_v41, %v8019_v54  ;;  %v13972_v34 = vpop.f32.mrb[73].mxu1  ;;  %v15510_v54 = vld [vmem:[%s20224_s4 + $0x900] ss:$12 sps:$4 sm:$0xff]  }
 0x7b6   : > { %v8093_v24 = vpop.f32.mrb[74].mxu1 }
 0x7b7   : > { %v19254_v58 = vadd.f32 %v8093_v24, %v8022_v47  ;;  %v13973_v23 = vpop.f32.mrb[75].mxu1  ;;  %v15517_v47 = vld [vmem:[%s20224_s4 + $0x91c] ss:$12 sps:$4 sm:$0xff]  }
 0x7b8   : > { %v15530_v23 = vld [vmem:[%s20224_s4 + $0x960] ss:$12 sps:$4 sm:$0xff]  }
 0x7bc   : > { %v8098_v8 = vpop.f32.mrb[76].mxu1 }
 0x7bd   : > { %v19256_v37 = vadd.f32 %v8098_v8, %v8027_v27  ;;  %v13976_v18 = vpop.f32.mrb[77].mxu1  ;;  %v15534_v8 = vld [vmem:[%s20224_s4 + $0x938] ss:$12 sps:$4 sm:$0xff]  }
 0x7be   : > { %v8101_v29 = vpop.f32.mrb[78].mxu1  ;;  %v15537_v18 = vld [vmem:[%s20224_s4 + $0x97c] ss:$12 sps:$4 sm:$0xff]  }
 0x7bf   : > { %v13977_v17 = vpop.f32.mrb[79].mxu1  ;;  %v15538_v29 = vld [vmem:[%s20224_s4 + $0xa10] ss:$12 sps:$4 sm:$0xff]  }
 0x7c5   : > { %v8205_v53 = vpop.f32.mrb[80].mxu1 }
 0x7c6   : > { %v8207_v45 = vpop.f32.mrb[81].mxu1 }
 0x7c7   : > { %v8209_v9 = vpop.f32.mrb[82].mxu1 }
 0x7c8   : > { %v19258_v38 = vpack.c.bf16 %v8209_v9, %v8205_v53  ;;  %v8211_v32 = vpop.f32.mrb[83].mxu1 }
 0x7c9   : > { %v19260_v20 = vpack.c.bf16 %v8211_v32, %v8207_v45  ;;  %v15535_v32 = vld [vmem:[%s20224_s4 + $0x978] ss:$12 sps:$4 sm:$0xff]  }
 0x7cb   : > { %9263 = vmatprep.mubr.bf16.mxu0 %v19260_v20 }
 0x7cc   : > { %9264 = vmatmul.mubr.bf16.vlgmr.msra.gmra.mrb[200].mxu0 %v19258_v38 }
 0x7cd   : > { %9313 = vmatpush1.bf16.msra.mxu0 %v15510_v54  ;;  %v8215_v57 = vpop.f32.mrb[84].mxu1  ;;  %v15539_v54 = vld [vmem:[%s20224_s4 + $0x950] ss:$12 sps:$4 sm:$0xff]  }
 0x7ce   : > { %v8217_v27 = vpop.f32.mrb[85].mxu1  ;;  %9314 = vmatprep.subr.bf16.mxu0 %v15517_v47 }
 0x7cf   : > { %v8219_v4 = vpop.f32.mrb[86].mxu1 }
 0x7d0   : > { %v8410_v55 = vpack.c.bf16 %v8219_v4, %v8215_v57  ;;  %v8221_v0 = vpop.f32.mrb[87].mxu1 }
 0x7d1   : > { %v8411_v5 = vpack.c.bf16 %v8221_v0, %v8217_v27  ;;  %9315 = vmatpush1.bf16.msra.mxu0 %v15515_v1  ;;  %v15543_v27 = vld [vmem:[%s20224_s4 + $0xa28] ss:$12 sps:$4 sm:$0xff]  }
 0x7d2   : > { %9316 = vmatprep.subr.bf16.mxu0 %v15522_v36 }
 0x7d3   : > { %9514 = vmatprep.mubr.bf16.mxu1 %v8411_v5  ;;  %9273 = vmatprep.mubr.bf16.mxu0 %v8411_v5 }
 0x7d4   : > { %9515 = vmatmul.mubr.bf16.vlgmr.msra.gmra.mrb[180].mxu1 %v8410_v55  ;;  %9274 = vmatmul.mubr.bf16.gmra.mrb[204].mxu0 %v8410_v55 }
 0x7d5   : > { %9317 = vmatpush1.bf16.msra.mxu0 %v15520_v59  ;;  %v8225_v6 = vpop.f32.mrb[88].mxu1  ;;  %13674 = vmatpush3.bf16.msra.mxu1 %v15524_v39  ;;  %v15544_v59 = vld [vmem:[%s20224_s4 + $0x968] ss:$12 sps:$4 sm:$0xff]   ;;  %v15547_v39 = vld [vmem:[%s20224_s4 + $0x9ac] ss:$12 sps:$4 sm:$0xff]  }
 0x7d6   : > { %v8227_v40 = vpop.f32.mrb[89].mxu1  ;;  %9318 = vmatprep.subr.bf16.mxu0 %v15527_v51  ;;  %13675 = vmatprep.subr.bf16.mxu1 %v15528_v7  ;;  %v15548_v51 = vld [vmem:[%s20224_s4 + $0xa40] ss:$12 sps:$4 sm:$0xff]  }
 0x7d7   : > { %v8229_v35 = vpop.f32.mrb[90].mxu1 }
 0x7d8   : > { %v8415_v41 = vpack.c.bf16 %v8229_v35, %v8225_v6  ;;  %v8231_v34 = vpop.f32.mrb[91].mxu1  ;;  %v15545_v6 = vld [vmem:[%s20224_s4 + $0x9a8] ss:$12 sps:$4 sm:$0xff]   ;;  %v15553_v35 = vld [vmem:[%s20224_s4 + $0xa58] ss:$12 sps:$4 sm:$0xff]  }
 0x7d9   : > { %v8416_v24 = vpack.c.bf16 %v8231_v34, %v8227_v40  ;;  %9319 = vmatpush1.bf16.msra.mxu0 %v15525_v2  ;;  %13676 = vmatpush3.bf16.msra.mxu1 %v15529_v19  ;;  %v15549_v2 = vld [vmem:[%s20224_s4 + $0x980] ss:$12 sps:$4 sm:$0xff]   ;;  %v15552_v40 = vld [vmem:[%s20224_s4 + $0x9c4] ss:$12 sps:$4 sm:$0xff]  }
 0x7da   : > { %9320 = vmatprep.subr.bf16.mxu0 %v15532_v43  ;;  %13677 = vmatprep.subr.bf16.mxu1 %v15533_v30 }
 0x7db   : > { %9522 = vmatprep.mubr.bf16.mxu1 %v8416_v24  ;;  %9283 = vmatprep.mubr.bf16.mxu0 %v8416_v24  ;;  %v15550_v24 = vld [vmem:[%s20224_s4 + $0x9c0] ss:$12 sps:$4 sm:$0xff]  }
 0x7dc   : > { %v7800_v17 = vpop.f32.mrb[232].mxu0  ;;  %9523 = vmatmul.mubr.bf16.gmra.mrb[184].mxu1 %v8415_v41  ;;  %9284 = vmatmul.mubr.bf16.gmra.mrb[208].mxu0 %v8415_v41 }
 0x7dd   : > { %v19313_v53 = vadd.f32 %v7800_v17, %v19235_v3  ;;  %v7802_v45 = vpop.f32.mrb[233].mxu0  ;;  %9321 = vmatpush1.bf16.msra.mxu0 %v15530_v23  ;;  %v8235_v9 = vpop.f32.mrb[92].mxu1  ;;  %13678 = vmatpush3.bf16.msra.mxu1 %v15534_v8  ;;  %v15542_v3 = vld [vmem:[%s20224_s4 + $0x994] ss:$12 sps:$4 sm:$0xff]   ;;  %v15554_v23 = vld [vmem:[%s20224_s4 + $0x998] ss:$12 sps:$4 sm:$0xff]  }
 0x7de   : > { %v19322_v47 = vadd.f32 %v7802_v45, %v19240_v48  ;;  %v7804_v57 = vpop.f32.mrb[234].mxu0  ;;  %v8237_v1 = vpop.f32.mrb[93].mxu1  ;;  %9322 = vmatprep.subr.bf16.mxu0 %v15537_v18  ;;  %13679 = vmatprep.subr.bf16.mxu1 %v15538_v29  ;;  %v15540_v48 = vld [vmem:[%s20224_s4 + $0x990] ss:$12 sps:$4 sm:$0xff]   ;;  %v15555_v17 = vld [vmem:[%s20224_s4 + $0x9d8] ss:$12 sps:$4 sm:$0xff]  }
 0x7df   : > { %v7805_v36 = vpop.f32.mrb[235].mxu0  ;;  %v8239_v4 = vpop.f32.mrb[94].mxu1  ;;  %v15557_v8 = vld [vmem:[%s20224_s4 + $0x9dc] ss:$12 sps:$4 sm:$0xff]  }
 0x7e0   : > { %v8420_v55 = vpack.c.bf16 %v8239_v4, %v8235_v9  ;;  %v8241_v0 = vpop.f32.mrb[95].mxu1  ;;  %v15558_v18 = vld [vmem:[%s20224_s4 + $0xa70] ss:$12 sps:$4 sm:$0xff]   ;;  %v15569_v36 = vld [vmem:[%s20224_s4 + $0xa88] ss:$12 sps:$4 sm:$0xff]  }
 0x7e1   : > { %v8421_v5 = vpack.c.bf16 %v8241_v0, %v8237_v1  ;;  %9323 = vmatpush1.bf16.msra.mxu0 %v15535_v32  ;;  %13680 = vmatpush3.bf16.msra.mxu1 %v15539_v54  ;;  %v15559_v45 = vld [vmem:[%s20224_s4 + $0x9b0] ss:$12 sps:$4 sm:$0xff]   ;;  %v15562_v32 = vld [vmem:[%s20224_s4 + $0x9f4] ss:$12 sps:$4 sm:$0xff]   ;;  %v15565_v4 = vld [vmem:[%s20224_s4 + $0xa0c] ss:$12 sps:$4 sm:$0xff]  }
 0x7e2   : > { %9324 = vmatprep.subr.bf16.mxu0 %v15542_v3  ;;  %13681 = vmatprep.subr.bf16.mxu1 %v15543_v27  ;;  %v15560_v27 = vld [vmem:[%s20224_s4 + $0x9f0] ss:$12 sps:$4 sm:$0xff]   ;;  %v15563_v0 = vld [vmem:[%s20224_s4 + $0xa08] ss:$12 sps:$4 sm:$0xff]  }
 0x7e3   : > { %9530 = vmatprep.mubr.bf16.mxu1 %v8421_v5  ;;  %9293 = vmatprep.mubr.bf16.mxu0 %v8421_v5  ;;  %v15573_v5 = vld [vmem:[%s20224_s4 + $0xaa0] ss:$12 sps:$4 sm:$0xff]  }
 0x7e4   : > { %9531 = vmatmul.mubr.bf16.gmra.mrb[188].mxu1 %v8420_v55  ;;  %9294 = vmatmul.mubr.bf16.gmra.mrb[212].mxu0 %v8420_v55 }
 0x7e5   : > { %9325 = vmatpush1.bf16.msra.mxu0 %v15540_v48  ;;  %13682 = vmatpush3.bf16.msra.mxu1 %v15544_v59  ;;  %v8245_v7 = vpop.f32.mrb[136].mxu1  ;;  %v15568_v59 = vld [vmem:[%s20224_s4 + $0xa24] ss:$12 sps:$4 sm:$0xff]  }
 0x7e6   : > { %9326 = vmatprep.subr.bf16.mxu0 %v15547_v39  ;;  %v8247_v19 = vpop.f32.mrb[137].mxu1  ;;  %13683 = vmatprep.subr.bf16.mxu1 %v15548_v51  ;;  %v8425_v41 = vpack.c.bf16 %v8245_v7, %v8245_v7 }
 0x7e7   : > { %v8426_v43 = vpack.c.bf16 %v8247_v19, %v8247_v19  ;;  %v8249_v30 = vpop.f32.mrb[138].mxu1  ;;  %v15577_v19 = vld [vmem:[%s20224_s4 + $0xab8] ss:$12 sps:$4 sm:$0xff]  }
 0x7e8   : > { %v8250_v34 = vpop.f32.mrb[139].mxu1  ;;  %v15570_v30 = vld [vmem:[%s20224_s4 + $0xa38] ss:$12 sps:$4 sm:$0xff]  }
 0x7e9   : > { %9327 = vmatpush1.bf16.msra.mxu0 %v15545_v6  ;;  %13684 = vmatpush3.bf16.msra.mxu1 %v15549_v2  ;;  %v15566_v2 = vld [vmem:[%s20224_s4 + $0xa20] ss:$12 sps:$4 sm:$0xff]  }
 0x7ea   : > { %9328 = vmatprep.subr.bf16.mxu0 %v15552_v40  ;;  %9538 = vmatprep.mubr.bf16.mxu1 %v8426_v43  ;;  %v15572_v40 = vld [vmem:[%s20224_s4 + $0xa3c] ss:$12 sps:$4 sm:$0xff]   ;;  %v15576_v34 = vld [vmem:[%s20224_s4 + $0xa54] ss:$12 sps:$4 sm:$0xff]  }
 0x7eb   : > { %13685 = vmatprep.subr.bf16.mxu1 %v15553_v35  ;;  %9303 = vmatprep.mubr.bf16.mxu0 %v8426_v43  ;;  %v15581_v35 = vld [vmem:[%s20224_s4 + $0xad0] ss:$12 sps:$4 sm:$0xff]  }
 0x7ec   : > { %9539 = vmatmul.mubr.bf16.gmra.mrb[192].mxu1 %v8425_v41  ;;  %9304 = vmatmul.mubr.bf16.gmra.mrb[240].mxu0 %v8425_v41 }
 0x7ed   : > { %9329 = vmatpush1.bf16.msra.mxu0 %v15550_v24  ;;  %v8286_v29 = vpop.f32.mrb[140].mxu1  ;;  %13686 = vmatpush3.bf16.msra.mxu1 %v15554_v23 }
 0x7ee   : > { %v8288_v9 = vpop.f32.mrb[141].mxu1  ;;  %9330 = vmatprep.subr.bf16.mxu0 %v15557_v8  ;;  %13687 = vmatprep.subr.bf16.mxu1 %v15558_v18 }
 0x7ef   : > { %v8290_v54 = vpop.f32.mrb[142].mxu1 }
 0x7f0   : > { %v19375_v57 = vpack.c.bf16 %v8290_v54, %v8286_v29  ;;  %v8292_v1 = vpop.f32.mrb[143].mxu1  ;;  %v15574_v29 = vld [vmem:[%s20224_s4 + $0xa50] ss:$12 sps:$4 sm:$0xff]  }
 0x7f1   : > { %v8408_v3 = vpack.c.bf16 %v8292_v1, %v8288_v9  ;;  %9331 = vmatpush1.bf16.msra.mxu0 %v15555_v17  ;;  %13688 = vmatpush3.bf16.msra.mxu1 %v15559_v45  ;;  %v15582_v17 = vld [vmem:[%s20224_s4 + $0xae8] ss:$12 sps:$4 sm:$0xff]   ;;  %v15580_v45 = vld [vmem:[%s20224_s4 + $0xa6c] ss:$12 sps:$4 sm:$0xff]  }
 0x7f2   : > { %9332 = vmatprep.subr.bf16.mxu0 %v15562_v32  ;;  %13978 = vmatprep.subr.bf16.mxu1 %v20369_v13 }
 0x7f3   : > { %9578 = vmatprep.mubr.bf16.mxu1 %v8408_v3  ;;  %9344 = vmatprep.mubr.bf16.mxu0 %v8408_v3  ;;  %v15578_v3 = vld [vmem:[%s20224_s4 + $0xa68] ss:$12 sps:$4 sm:$0xff]  }
 0x7f4   : > { %9579 = vmatmul.mubr.bf16.vlgmr.msra.gmra.mrb[196].mxu1 %v19375_v57 }
 0x7f5   : > { %9333 = vmatpush1.bf16.msra.mxu0 %v15560_v27  ;;  %v8296_v55 = vpop.f32.mrb[144].mxu1  ;;  %13979 = vmatpush3.bf16.msra.mxu1 %v15569_v36  ;;  %v15586_v27 = vld [vmem:[%s20224_s4 + $0xb00] ss:$12 sps:$4 sm:$0xff]  }
 0x7f6   : > { %v8298_v48 = vpop.f32.mrb[145].mxu1  ;;  %9334 = vmatprep.subr.bf16.mxu0 %v15565_v4  ;;  %13980 = vmatprep.subr.bf16.mxu1 %v20369_v13 }
 0x7f7   : > { %v8300_v39 = vpop.f32.mrb[146].mxu1 }
 0x7f8   : > { %v19398_v51 = vpack.c.bf16 %v8300_v39, %v8296_v55  ;;  %v8302_v7 = vpop.f32.mrb[147].mxu1 }
 0x7f9   : > { %v8413_v6 = vpack.c.bf16 %v8302_v7, %v8298_v48  ;;  %9335 = vmatpush1.bf16.msra.mxu0 %v15563_v0  ;;  %13981 = vmatpush3.bf16.msra.mxu1 %v15573_v5  ;;  %v15589_v7 = vld [vmem:[%s20224_s4 + $0xa9c] ss:$12 sps:$4 sm:$0xff]  }
 0x7fa   : > { %9336 = vmatprep.subr.bf16.mxu0 %v15568_v59  ;;  %13982 = vmatprep.subr.bf16.mxu1 %v20369_v13 }
 0x7fb   : > { %9586 = vmatprep.mubr.bf16.mxu1 %v8413_v6 }
 0x7fc   : > { %9587 = vmatmul.mubr.bf16.gmra.mrb[200].mxu1 %v19398_v51 }
 0x7fd   : > { %9337 = vmatpush1.bf16.msra.mxu0 %v15566_v2  ;;  %v8306_v43 = vpop.f32.mrb[148].mxu1  ;;  %13983 = vmatpush3.bf16.msra.mxu1 %v15577_v19  ;;  %v15590_v2 = vld [vmem:[%s20224_s4 + $0xb18] ss:$12 sps:$4 sm:$0xff]  }
 0x7fe   : > { %v8308_v41 = vpop.f32.mrb[149].mxu1  ;;  %9338 = vmatprep.subr.bf16.mxu0 %v15572_v40  ;;  %13984 = vmatprep.subr.bf16.mxu1 %v20369_v13  ;;  %v15587_v40 = vld [vmem:[%s20224_s4 + $0xa98] ss:$12 sps:$4 sm:$0xff]  }
 0x7ff   : > { %v8310_v24 = vpop.f32.mrb[150].mxu1 }
 0x800   : > { %v19421_v23 = vpack.c.bf16 %v8310_v24, %v8306_v43  ;;  %v8312_v8 = vpop.f32.mrb[151].mxu1  ;;  %v15591_v24 = vld [vmem:[%s20224_s4 + $0xab0] ss:$12 sps:$4 sm:$0xff]  }
 0x801   : > { %v8418_v18 = vpack.c.bf16 %v8312_v8, %v8308_v41  ;;  %9339 = vmatpush1.bf16.msra.mxu0 %v15570_v30  ;;  %13985 = vmatpush3.bf16.msra.mxu1 %v15581_v35  ;;  %v15593_v30 = vld [vmem:[%s20224_s4 + $0xab4] ss:$12 sps:$4 sm:$0xff]   ;;  %v15597_v8 = vld [vmem:[%s20224_s4 + $0xacc] ss:$12 sps:$4 sm:$0xff]  }
 0x802   : > { %9340 = vmatprep.subr.bf16.mxu0 %v15576_v34  ;;  %13986 = vmatprep.subr.bf16.mxu1 %v20369_v13 }
 0x803   : > { %9594 = vmatprep.mubr.bf16.mxu1 %v8418_v18 }
 0x804   : > { %v7881_v9 = vpop.f32.mrb[236].mxu0  ;;  %9595 = vmatmul.mubr.bf16.gmra.mrb[204].mxu1 %v19421_v23 }
 0x805   : > { %v19435_v32 = vadd.f32 %v7881_v9, %v19313_v53  ;;  %v7883_v54 = vpop.f32.mrb[237].mxu0  ;;  %9341 = vmatpush1.bf16.msra.mxu0 %v15574_v29  ;;  %v8316_v1 = vpop.f32.mrb[152].mxu1  ;;  %13987 = vmatpush3.bf16.msra.mxu1 %v15582_v17  ;;  %v15585_v53 = vld [vmem:[%s20224_s4 + $0xa84] ss:$12 sps:$4 sm:$0xff]   ;;  %v15595_v17 = vld [vmem:[%s20224_s4 + $0xac8] ss:$12 sps:$4 sm:$0xff]  }
 0x806   : > { %v19444_v36 = vadd.f32 %v7883_v54, %v19322_v47  ;;  %v7885_v4 = vpop.f32.mrb[238].mxu0  ;;  %v8318_v55 = vpop.f32.mrb[153].mxu1  ;;  %9342 = vmatprep.subr.bf16.mxu0 %v15580_v45  ;;  %13988 = vmatprep.subr.bf16.mxu1 %v20369_v13  ;;  %v15583_v47 = vld [vmem:[%s20224_s4 + $0xa80] ss:$12 sps:$4 sm:$0xff]   ;;  %v15600_v9 = vld [vmem:[%s20224_s4 + $0xae4] ss:$12 sps:$4 sm:$0xff]  }
 0x807   : > { %v7886_v0 = vpop.f32.mrb[239].mxu0  ;;  %v8320_v5 = vpop.f32.mrb[154].mxu1 }
 0x808   : > { %v19450_v48 = vpack.c.bf16 %v8320_v5, %v8316_v1  ;;  %v8322_v59 = vpop.f32.mrb[155].mxu1  ;;  %v15606_v0 = vld [vmem:[%s20224_s4 + $0xb14] ss:$12 sps:$4 sm:$0xff]  }
 0x809   : > { %v8423_v39 = vpack.c.bf16 %v8322_v59, %v8318_v55  ;;  %9343 = vmatpush1.bf16.msra.mxu0 %v15578_v3  ;;  %13989 = vmatpush3.bf16.msra.mxu1 %v15586_v27  ;;  %v15603_v3 = vld [vmem:[%s20224_s4 + $0xafc] ss:$12 sps:$4 sm:$0xff]   ;;  %v15601_v55 = vld [vmem:[%s20224_s4 + $0xaf8] ss:$12 sps:$4 sm:$0xff]  }
 0x80a   : > { %9393 = vmatprep.subr.bf16.mxu0 %v15585_v53  ;;  %13990 = vmatprep.subr.bf16.mxu1 %v20369_v13  ;;  %v15604_v59 = vld [vmem:[%s20224_s4 + $0xb10] ss:$12 sps:$4 sm:$0xff]  }
 0x80b   : > { %9602 = vmatprep.mubr.bf16.mxu1 %v8423_v39 }
 0x80c   : > { %9345 = vmatmul.mubr.bf16.vlgmr.msra.gmra.mrb[200].mxu0 %v19375_v57  ;;  %9603 = vmatmul.mubr.bf16.gmra.mrb[208].mxu1 %v19450_v48  ;;  %v15594_v57 = vld [vmem:[%s20224_s4 + $0xb30] ss:$12 sps:$4 sm:$0xff]  }
 0x80d   : > { %v8326_v19 = vpop.f32.mrb[156].mxu1  ;;  %9394 = vmatpush1.bf16.msra.mxu0 %v15583_v47  ;;  %9354 = vmatprep.mubr.bf16.mxu0 %v8413_v6 }
 0x80e   : > { %v8328_v43 = vpop.f32.mrb[157].mxu1  ;;  %9395 = vmatprep.subr.bf16.mxu0 %v15589_v7  ;;  %13991 = vmatpush3.bf16.msra.mxu1 %v15590_v2  ;;  %v8427_v6 = vpack.c.bf16 %v8326_v19, %v8326_v19  ;;  %v15607_v2 = vld [vmem:[%s20224_s4 + $0xb28] ss:$12 sps:$4 sm:$0xff]  }
 0x80f   : > { %v8428_v35 = vpack.c.bf16 %v8328_v43, %v8328_v43  ;;  %v8330_v41 = vpop.f32.mrb[158].mxu1  ;;  %13992 = vmatprep.subr.bf16.mxu1 %v20369_v13 }
 0x810   : > { %v8331_v34 = vpop.f32.mrb[159].mxu1 }
 0x811   : > { %9610 = vmatprep.mubr.bf16.mxu1 %v8428_v35  ;;  %9396 = vmatpush1.bf16.msra.mxu0 %v15587_v40 }
 0x812   : > { %9397 = vmatprep.subr.bf16.mxu0 %v15593_v30  ;;  %13993 = vmatpush3.bf16.msra.mxu1 %v15594_v57 }
 0x814   : > { %9355 = vmatmul.mubr.bf16.gmra.mrb[204].mxu0 %v19398_v51  ;;  %9611 = vmatmul.mubr.bf16.gmra.mrb[212].mxu1 %v8427_v6 }
 0x815   : > { %v8367_v29 = vpop.f32.mrb[160].mxu1  ;;  %9364 = vmatprep.mubr.bf16.mxu0 %v8418_v18  ;;  %9398 = vmatpush1.bf16.msra.mxu0 %v15591_v24  ;;  %v15598_v18 = vld [vmem:[%s20224_s4 + $0xae0] ss:$12 sps:$4 sm:$0xff]  }
 0x816   : > { %v8369_v45 = vpop.f32.mrb[161].mxu1  ;;  %13994 = vmatprep.mubr.msk.bf16.mxu1 %vm15762_vm4, %v20369_v13  ;;  %9399 = vmatprep.subr.bf16.mxu0 %v15597_v8 }
 0x817   : > { %v8370_v54 = vpop.f32.mrb[162].mxu1 }
 0x818   : > { %v8409_v1 = vpack.c.bf16 %v8370_v54, %v8367_v29  ;;  %v8372_v51 = vpop.f32.mrb[163].mxu1 }
 0x819   : > { %9400 = vmatpush1.bf16.msra.mxu0 %v15595_v17 }
 0x81a   : > { %9401 = vmatprep.subr.bf16.mxu0 %v15600_v9 }
 0x81c   : > { %9365 = vmatmul.mubr.bf16.gmra.mrb[208].mxu0 %v19421_v23  ;;  %13995 = vmatmul.mubr.bf16.vlgmr.msra.gmra.mrb[216].mxu1 %v8409_v1 }
 0x81d   : > { %v8375_v27 = vpop.f32.mrb[164].mxu1  ;;  %9374 = vmatprep.mubr.bf16.mxu0 %v8423_v39  ;;  %13998 = vmatprep.mubr.msk.bf16.mxu1 %vm15762_vm4, %v20369_v13  ;;  %v15609_v39 = vld [vmem:[%s20224_s4 + $0xb2c] ss:$12 sps:$4 sm:$0xff]  }
 0x81e   : > { %v8377_v4 = vpop.f32.mrb[165].mxu1  ;;  %9402 = vmatpush1.bf16.msra.mxu0 %v15598_v18 }
 0x81f   : > { %v8378_v53 = vpop.f32.mrb[166].mxu1  ;;  %9403 = vmatprep.subr.bf16.mxu0 %v15603_v3 }
 0x820   : > { %v8414_v5 = vpack.c.bf16 %v8378_v53, %v8375_v27  ;;  %v8380_v23 = vpop.f32.mrb[167].mxu1 }
 0x822   : > { %9404 = vmatpush1.bf16.msra.mxu0 %v15601_v55 }
 0x823   : > { %9405 = vmatprep.subr.bf16.mxu0 %v15606_v0 }
 0x824   : > { %9375 = vmatmul.mubr.bf16.gmra.mrb[212].mxu0 %v19450_v48  ;;  %13999 = vmatmul.mubr.bf16.gmra.mrb[220].mxu1 %v8414_v5 }
 0x825   : > { %v8383_v47 = vpop.f32.mrb[168].mxu1  ;;  %9384 = vmatprep.mubr.bf16.mxu0 %v8428_v35  ;;  %14002 = vmatprep.mubr.msk.bf16.mxu1 %vm15762_vm4, %v20369_v13 }
 0x826   : > { %v8385_v7 = vpop.f32.mrb[169].mxu1  ;;  %9406 = vmatpush1.bf16.msra.mxu0 %v15604_v59 }
 0x827   : > { %v8386_v19 = vpop.f32.mrb[170].mxu1  ;;  %9407 = vmatprep.subr.bf16.mxu0 %v15609_v39 }
 0x828   : > { %v8419_v40 = vpack.c.bf16 %v8386_v19, %v8383_v47  ;;  %v8388_v43 = vpop.f32.mrb[171].mxu1 }
 0x82a   : > { %9408 = vmatpush1.bf16.msra.mxu0 %v15607_v2 }
 0x82b   : > { %13627 = vmatprep.subr.bf16.mxu0 %v19064_v52 }
 0x82c   : > { %9385 = vmatmul.mubr.bf16.gmra.mrb[244].mxu0 %v8427_v6  ;;  %14003 = vmatmul.mubr.bf16.gmra.mrb[224].mxu1 %v8419_v40 }
 0x82d   : > { %v8391_v48 = vpop.f32.mrb[172].mxu1  ;;  %9425 = vmatprep.mubr.bf16.mxu0 %v20340_v44  ;;  %14006 = vmatprep.mubr.msk.bf16.mxu1 %vm15762_vm4, %v20369_v13 }
 0x82e   : > { %v8393_v30 = vpop.f32.mrb[173].mxu1 }
 0x82f   : > { %v8394_v57 = vpop.f32.mrb[174].mxu1 }
 0x830   : > { %v8424_v35 = vpack.c.bf16 %v8394_v57, %v8391_v48  ;;  %v8396_v41 = vpop.f32.mrb[175].mxu1 }
 0x834   : > { %9426 = vmatmul.mubr.bf16.vlgmr.msra.gmra.mrb[200].mxu0 %v8409_v1  ;;  %14007 = vmatmul.mubr.bf16.gmra.mrb[228].mxu1 %v8424_v35 }
 0x835   : > { %v8399_v34 = vpop.f32.mrb[176].mxu1  ;;  %9435 = vmatprep.mubr.bf16.mxu0 %v20340_v44  ;;  %14010 = vmatprep.mubr.msk.bf16.mxu1 %vm15762_vm4, %v20369_v13 }
 0x836   : > { %13628 = vmatpush3.bf16.msra.mxu0 %v19082_v33  ;;  %v8401_v52 = vpop.f32.mrb[177].mxu1  ;;  %v8429_v24 = vpack.c.bf16 %v8399_v34, %v8399_v34 }
 0x837   : > { %13629 = vmatprep.subr.bf16.mxu0 %v19088_v22  ;;  %v8402_v6 = vpop.f32.mrb[178].mxu1 }
 0x838   : > { %v8403_v8 = vpop.f32.mrb[179].mxu1 }
 0x83a   : > { %13630 = vmatpush3.bf16.msra.mxu0 %v19103_v42 }
 0x83b   : > { %13631 = vmatprep.subr.bf16.mxu0 %v19109_v10 }
 0x83c   : > { %9436 = vmatmul.mubr.bf16.gmra.mrb[204].mxu0 %v8414_v5  ;;  %14011 = vmatmul.mubr.bf16.gmra.mrb[232].mxu1 %v8429_v24 }
 0x83d   : > { %9445 = vmatprep.mubr.bf16.mxu0 %v20340_v44  ;;  %9865 = vmatprep.mubr.bf16.mxu1 %v20340_v44 }
 0x83e   : > { %13632 = vmatpush3.bf16.msra.mxu0 %v19124_v28 }
 0x83f   : > { %13633 = vmatprep.subr.bf16.mxu0 %v19130_v50 }
 0x842   : > { %13634 = vmatpush3.bf16.msra.mxu0 %v19145_v26 }
 0x843   : > { %13635 = vmatprep.subr.bf16.mxu0 %v19151_v16 }
 0x844   : > { %9446 = vmatmul.mubr.bf16.gmra.mrb[208].mxu0 %v8419_v40 }
 0x845   : > { %9455 = vmatprep.mubr.bf16.mxu0 %v20340_v44 }
 0x846   : > { %13636 = vmatpush3.bf16.msra.mxu0 %v19163_v14 }
 0x847   : > { %13637 = vmatprep.subr.bf16.mxu0 %v19172_v21 }
 0x84a   : > { %13638 = vmatpush3.bf16.msra.mxu0 %v19184_v25 }
 0x84b   : > { %13639 = vmatprep.subr.bf16.mxu0 %v19190_v11 }
 0x84c   : > { %9456 = vmatmul.mubr.bf16.gmra.mrb[212].mxu0 %v8424_v35 }
 0x84d   : > { %9465 = vmatprep.mubr.bf16.mxu0 %v20340_v44 }
 0x84e   : > { %13640 = vmatpush3.bf16.msra.mxu0 %v19196_v31 }
 0x84f   : > { %13641 = vmatprep.subr.bf16.mxu0 %v19203_v60 }
 0x852   : > { %13642 = vmatpush3.bf16.msra.mxu0 %v19213_v56 }
 0x854   : > { %9466 = vmatmul.mubr.bf16.gmra.mrb[248].mxu0 %v8429_v24 }
 0x855   : > { %9506 = vmatprep.mubr.bf16.mxu0 %v19260_v20 }
 0x85c   : > { %9507 = vmatmul.mubr.bf16.vlgmr.msra.gmra.mrb[252].mxu0 %v19258_v38 }
 0x85d   : > { %10030 = vmatprep.mubr.bf16.mxu0 %v20340_v44 }
 0x8a7   : > { %v13649_v33 = vpop.f32.mrb[180].mxu1 }
 0x8a8   : > { %v13650_v22 = vpop.f32.mrb[181].mxu1 }
 0x8a9   : > { %v13651_v42 = vadd.f32 %v13650_v22, %v13649_v33  ;;  %v13652_v10 = vpop.f32.mrb[182].mxu1 }
 0x8aa   : > { %v13653_v28 = vpop.f32.mrb[183].mxu1 }
 0x8ab   : > { %v13654_v50 = vadd.f32 %v13653_v28, %v13652_v10 }
 0x8af   : > { %v13655_v26 = vpop.f32.mrb[184].mxu1 }
 0x8b0   : > { %v13656_v16 = vpop.f32.mrb[185].mxu1 }
 0x8b1   : > { %v13657_v14 = vadd.f32 %v13656_v16, %v13655_v26  ;;  %v13658_v21 = vpop.f32.mrb[186].mxu1 }
 0x8b2   : > { %v13659_v25 = vpop.f32.mrb[187].mxu1 }
 0x8b3   : > { %v13660_v11 = vadd.f32 %v13659_v25, %v13658_v21 }
 0x8b7   : > { %v13661_v31 = vpop.f32.mrb[188].mxu1 }
 0x8b8   : > { %v13662_v60 = vpop.f32.mrb[189].mxu1 }
 0x8b9   : > { %v13663_v56 = vadd.f32 %v13662_v60, %v13661_v31  ;;  %v13664_v20 = vpop.f32.mrb[190].mxu1 }
 0x8ba   : > { %v13665_v29 = vpop.f32.mrb[191].mxu1 }
 0x8bb   : > { %v13666_v38 = vadd.f32 %v13665_v29, %v13664_v20 }
 0x8bf   : > { %v13667_v17 = vpop.f32.mrb[192].mxu1  ;;  %v19545_v45 = vpop.f32.mrb[240].mxu0 }
 0x8c0   : > { %v13668_v9 = vpop.f32.mrb[193].mxu1  ;;  %v19547_v54 = vpop.f32.mrb[241].mxu0 }
 0x8c1   : > { %v13669_v1 = vadd.f32 %v13668_v9, %v13667_v17  ;;  %v13670_v51 = vpop.f32.mrb[194].mxu1  ;;  %v9309_v18 = vpop.f32.mrb[242].mxu0  ;;  %v9717_v17 = vld [vmem:[%s20226_s6] sm:$0x7] }
 0x8c2   : > { %v13671_v3 = vpop.f32.mrb[195].mxu1  ;;  %v9310_v27 = vpop.f32.mrb[243].mxu0 }
 0x8c7   : > { %v13689_v4 = vpop.f32.mrb[196].mxu1 }
 0x8c8   : > { %v13690_v55 = vpop.f32.mrb[197].mxu1 }
 0x8c9   : > { %v19549_v53 = vadd.f32 %v13690_v55, %v13689_v4  ;;  %v13692_v0 = vpop.f32.mrb[198].mxu1 }
 0x8ca   : > { %v13693_v5 = vpop.f32.mrb[199].mxu1 }
 0x8cb   : > { %v19551_v23 = vadd.f32 %v13693_v5, %v13692_v0 }
 0x8cf   : > { %v13695_v59 = vpop.f32.mrb[200].mxu1 }
 0x8d0   : > { %v13696_v39 = vpop.f32.mrb[201].mxu1 }
 0x8d1   : > { %v13697_v47 = vadd.f32 %v13696_v39, %v13695_v59  ;;  %v13698_v7 = vpop.f32.mrb[202].mxu1 }
 0x8d2   : > { %v13699_v2 = vpop.f32.mrb[203].mxu1 }
 0x8d3   : > { %v13700_v19 = vadd.f32 %v13699_v2, %v13698_v7  ;;  %v9589_v40 = vadd.f32 %v13697_v47, %v13651_v42 }
 0x8d5   : > { %v9592_v43 = vadd.f32 %v13700_v19, %v13654_v50 }
 0x8d7   : > { %v13701_v48 = vpop.f32.mrb[204].mxu1 }
 0x8d8   : > { %v13702_v30 = vpop.f32.mrb[205].mxu1 }
 0x8d9   : > { %v13703_v57 = vadd.f32 %v13702_v30, %v13701_v48  ;;  %v13704_v35 = vpop.f32.mrb[206].mxu1 }
 0x8da   : > { %v13705_v41 = vpop.f32.mrb[207].mxu1 }
 0x8db   : > { %v13706_v34 = vadd.f32 %v13705_v41, %v13704_v35  ;;  %v9597_v52 = vadd.f32 %v13703_v57, %v13657_v14 }
 0x8dd   : > { %v9600_v6 = vadd.f32 %v13706_v34, %v13660_v11 }
 0x8df   : > { %v13707_v24 = vpop.f32.mrb[208].mxu1 }
 0x8e0   : > { %v13708_v8 = vpop.f32.mrb[209].mxu1 }
 0x8e1   : > { %v13709_v33 = vadd.f32 %v13708_v8, %v13707_v24  ;;  %v13710_v22 = vpop.f32.mrb[210].mxu1 }
 0x8e2   : > { %v13711_v10 = vpop.f32.mrb[211].mxu1 }
 0x8e3   : > { %v13712_v28 = vadd.f32 %v13711_v10, %v13710_v22  ;;  %v9605_v26 = vadd.f32 %v13709_v33, %v13663_v56 }
 0x8e5   : > { %v9608_v16 = vadd.f32 %v13712_v28, %v13666_v38  ;;  %v20407_v38 = vld [vmem:[#allocation8_spill] sm:$0xff] }
 0x8e6   : > { %v20408_v51 = vsub.s32 2, %v20407_v38  ;;  %v20409_v33 = vsub.s32 0, %v20407_v38 }
 0x8e7   : > { %v13713_v21 = vpop.f32.mrb[212].mxu1 }
 0x8e8   : > { %v13714_v25 = vpop.f32.mrb[213].mxu1  ;;  %v19564_v18 = vrot.slane %v9717_v17, %v20408_v51 }
 0x8e9   : > { %v13715_v42 = vadd.f32 %v13714_v25, %v13713_v21  ;;  %v13716_v50 = vpop.f32.mrb[214].mxu1 }
 0x8ea   : > { %v13717_v31 = vpop.f32.mrb[215].mxu1 }
 0x8eb   : > { %v19553_v60 = vadd.f32 %v13715_v42, %v13669_v1 }
 0x8ef   : > { %v19555_v20 = vpop.f32.mrb[216].mxu1 }
 0x8f0   : > { %v13996_v29 = vpop.f32.mrb[217].mxu1 }
 0x8f1   : > { %v19557_v14 = vpop.f32.mrb[218].mxu1 }
 0x8f2   : > { %v13997_v11 = vpop.f32.mrb[219].mxu1 }
 0x8f7   : > { %v9660_v9 = vpop.f32.mrb[220].mxu1 }
 0x8f8   : > { %v9661_v56 = vadd.f32 %v9660_v9, %v9589_v40  ;;  %v14000_v3 = vpop.f32.mrb[221].mxu1 }
 0x8f9   : > { %v9663_v27 = vpop.f32.mrb[222].mxu1 }
 0x8fa   : > { %v9698_v1 = vadd.f32 %v9661_v56, %v19244_v49  ;;  %v9664_v4 = vadd.f32 %v9663_v27, %v9592_v43  ;;  %v14001_v55 = vpop.f32.mrb[223].mxu1 }
 0x8fc   : > { %v9742_v0 = vadd.f32 %v19564_v18, %v9698_v1  ;;  %v9701_v5 = vadd.f32 %v9664_v4, %v19246_v15 }
 0x8fe   : > { %v9745_v59 = vadd.f32 %v19564_v18, %v9701_v5  ;;  %v9769_v7 = vmax.f32 %v9742_v0, 0.0 }
 0x8ff   : > { %v9386_v39 = vpop.f32.mrb[244].mxu0  ;;  %v9668_v47 = vpop.f32.mrb[224].mxu1 }
 0x900   : > { %v9772_v2 = vmax.f32 %v9745_v59, 0.0  ;;  %v19571_v19 = vadd.f32 %v9386_v39, %v19545_v45  ;;  %v9388_v40 = vpop.f32.mrb[245].mxu0  ;;  %v9669_v48 = vadd.f32 %v9668_v47, %v9597_v52  ;;  %v14004_v30 = vpop.f32.mrb[225].mxu1  ;;  %v19583_v52 = vrot.slane %v9717_v17, %v20409_v33 }
 0x901   : > { %v19574_v49 = vadd.f32 %v9388_v40, %v19547_v54  ;;  %v9390_v43 = vpop.f32.mrb[246].mxu0  ;;  %v9671_v57 = vpop.f32.mrb[226].mxu1  ;;  %v20410_v54 = vsub.s32 1, %v20407_v38 }
 0x902   : > { %v19576_v35 = vpack.c.bf16 %v9772_v2, %v9769_v7  ;;  %v9704_v15 = vadd.f32 %v9669_v48, %v19248_v12  ;;  %v9391_v41 = vpop.f32.mrb[247].mxu0  ;;  %v9672_v34 = vadd.f32 %v9671_v57, %v9600_v6  ;;  %v14005_v24 = vpop.f32.mrb[227].mxu1 }
 0x903   : > { %v19587_v22 = vrot.slane %v9717_v17, %v20410_v54 }
 0x904   : > { %v9748_v8 = vadd.f32 %v19564_v18, %v9704_v15  ;;  %v9707_v45 = vadd.f32 %v9672_v34, %v19250_v46 }
 0x906   : > { %v9751_v10 = vadd.f32 %v19564_v18, %v9707_v45  ;;  %v9775_v12 = vmax.f32 %v9748_v8, 0.0 }
 0x907   : > { %v9427_v28 = vpop.f32.mrb[200].mxu0  ;;  %v9676_v21 = vpop.f32.mrb[228].mxu1 }
 0x908   : > { %v9778_v25 = vmax.f32 %v9751_v10, 0.0  ;;  %v9734_v6 = vadd.f32 %v19583_v52, %v9427_v28  ;;  %v9429_v42 = vpop.f32.mrb[201].mxu0  ;;  %v9677_v50 = vadd.f32 %v9676_v21, %v9605_v26  ;;  %v14008_v31 = vpop.f32.mrb[229].mxu1 }
 0x909   : > { %v9735_v46 = vadd.f32 %v19587_v22, %v9429_v42  ;;  %v9431_v29 = vpop.f32.mrb[202].mxu0  ;;  %v9679_v11 = vpop.f32.mrb[230].mxu1 }
 0x90a   : > { %v19592_v9 = vpack.c.bf16 %v9778_v25, %v9775_v12  ;;  %v9710_v17 = vadd.f32 %v9677_v50, %v19252_v63  ;;  %v9737_v56 = vadd.f32 %v19583_v52, %v9431_v29  ;;  %v9433_v38 = vpop.f32.mrb[203].mxu0  ;;  %v14009_v51 = vpop.f32.mrb[231].mxu1  ;;  %v9680_v27 = vadd.f32 %v9679_v11, %v9608_v16 }
 0x90b   : > { %v9738_v3 = vadd.f32 %v19587_v22, %v9433_v38  ;;  %v9761_v1 = vmax.f32 %v9734_v6, 0.0  ;;  %v9762_v55 = vmax.f32 %v9735_v46, 0.0 }
 0x90c   : > { %v9764_v4 = vmax.f32 %v9737_v56, 0.0  ;;  %v9754_v26 = vadd.f32 %v19564_v18, %v9710_v17  ;;  %v9713_v5 = vadd.f32 %v9680_v27, %v19254_v58 }
 0x90d   : > { %v9765_v0 = vmax.f32 %v9738_v3, 0.0 }
 0x90e   : > { %v19599_v59 = vpack.c.bf16 %v9764_v4, %v9761_v1  ;;  %v9757_v63 = vadd.f32 %v19564_v18, %v9713_v5  ;;  %v9781_v30 = vmax.f32 %v9754_v26, 0.0 }
 0x90f   : > { %v19601_v39 = vpack.c.bf16 %v9765_v0, %v9762_v55  ;;  %v9437_v47 = vpop.f32.mrb[204].mxu0  ;;  %v9684_v7 = vpop.f32.mrb[232].mxu1 }
 0x910   : > { %v9740_v2 = vadd.f32 %v19583_v52, %v9437_v47  ;;  %v9439_v40 = vpop.f32.mrb[205].mxu0  ;;  %v9685_v16 = vadd.f32 %v9684_v7, %v19553_v60  ;;  %v14012_v48 = vpop.f32.mrb[233].mxu1  ;;  %v9784_v43 = vmax.f32 %v9757_v63, 0.0 }
 0x911   : > { %v9741_v57 = vadd.f32 %v19587_v22, %v9439_v40  ;;  %v9441_v15 = vpop.f32.mrb[206].mxu0  ;;  %9833 = vmatprep.subr.bf16.mxu1 %v19601_v39  ;;  %9998 = vmatprep.subr.bf16.mxu0 %v19601_v39  ;;  %v9687_v58 = vpop.f32.mrb[234].mxu1 }
 0x912   : > { %v19610_v41 = vadd.f32 %v9685_v16, %v19256_v37  ;;  %v9743_v34 = vadd.f32 %v19583_v52, %v9441_v15  ;;  %v9443_v24 = vpop.f32.mrb[207].mxu0  ;;  %9834 = vmatpush1.bf16.msra.mxu1 %v19599_v59  ;;  %9999 = vmatpush1.bf16.msra.mxu0 %v19599_v59  ;;  %v14013_v60 = vpop.f32.mrb[235].mxu1  ;;  %v19615_v8 = vpack.c.bf16 %v9784_v43, %v9781_v30  ;;  %v9767_v33 = vmax.f32 %v9740_v2, 0.0 }
 0x913   : > { %v9744_v45 = vadd.f32 %v19587_v22, %v9443_v24  ;;  %v9768_v10 = vmax.f32 %v9741_v57, 0.0 }
 0x914   : > { %v9770_v54 = vmax.f32 %v9743_v34, 0.0 }
 0x915   : > { %v9771_v28 = vmax.f32 %v9744_v45, 0.0 }
 0x916   : > { %v19618_v21 = vpack.c.bf16 %v9770_v54, %v9767_v33 }
 0x917   : > { %v19620_v37 = vpack.c.bf16 %v9771_v28, %v9768_v10  ;;  %v9447_v12 = vpop.f32.mrb[208].mxu0 }
 0x918   : > { %v9746_v25 = vadd.f32 %v19583_v52, %v9447_v12  ;;  %v9449_v6 = vpop.f32.mrb[209].mxu0 }
 0x919   : > { %v9747_v42 = vadd.f32 %v19587_v22, %v9449_v6  ;;  %v9451_v50 = vpop.f32.mrb[210].mxu0  ;;  %9835 = vmatprep.subr.bf16.mxu1 %v19620_v37  ;;  %10000 = vmatprep.subr.bf16.mxu0 %v19620_v37  ;;  %v15611_v6 = vld [vmem:[%s20227_s7 + $0xd0] sm:$0xff]  }
 0x91a   : > { %v9749_v31 = vadd.f32 %v19583_v52, %v9451_v50  ;;  %v9453_v46 = vpop.f32.mrb[211].mxu0  ;;  %9836 = vmatpush1.bf16.msra.mxu1 %v19618_v21  ;;  %10001 = vmatpush1.bf16.msra.mxu0 %v19618_v21  ;;  %v9773_v11 = vmax.f32 %v9746_v25, 0.0  ;;  %v19672_v50 = vld [vmem:[%s20228_s8 + $0x10] sm:$0xff]  }
 0x91b   : > { %v9750_v29 = vadd.f32 %v19587_v22, %v9453_v46  ;;  %v9774_v56 = vmax.f32 %v9747_v42, 0.0 }
 0x91c   : > { %v9776_v17 = vmax.f32 %v9749_v31, 0.0  ;;  %v15618_v31 = vld [vmem:[%s20228_s8] sm:$0xff]  }
 0x91d   : > { %v9777_v38 = vmax.f32 %v9750_v29, 0.0 }
 0x91e   : > { %v19630_v51 = vpack.c.bf16 %v9776_v17, %v9773_v11  ;;  %v15613_v11 = vld [vmem:[%s20227_s7 + $0xd8] sm:$0xff]  }
 0x91f   : > { %v19632_v3 = vpack.c.bf16 %v9777_v38, %v9774_v56  ;;  %v9457_v27 = vpop.f32.mrb[212].mxu0 }
 0x920   : > { %v9752_v1 = vadd.f32 %v19583_v52, %v9457_v27  ;;  %v9459_v4 = vpop.f32.mrb[213].mxu0  ;;  %v15616_v27 = vld [vmem:[%s20228_s8 + $0x18] sm:$0xff]  }
 0x921   : > { %v9753_v55 = vadd.f32 %v19587_v22, %v9459_v4  ;;  %v9461_v26 = vpop.f32.mrb[214].mxu0  ;;  %9837 = vmatprep.subr.bf16.mxu1 %v19632_v3  ;;  %10002 = vmatprep.subr.bf16.mxu0 %v19632_v3 }
 0x922   : > { %v9755_v0 = vadd.f32 %v19583_v52, %v9461_v26  ;;  %v9463_v5 = vpop.f32.mrb[215].mxu0  ;;  %9838 = vmatpush1.bf16.msra.mxu1 %v19630_v51  ;;  %10003 = vmatpush1.bf16.msra.mxu0 %v19630_v51  ;;  %v9779_v47 = vmax.f32 %v9752_v1, 0.0  ;;  %v15625_v1 = vld [vmem:[%s20228_s8 + $0x8] sm:$0xff]  }
 0x923   : > { %v9756_v63 = vadd.f32 %v19587_v22, %v9463_v5  ;;  %v9780_v2 = vmax.f32 %v9753_v55, 0.0  ;;  %v15619_v26 = vld [vmem:[%s20227_s7 + $0xe8] sm:$0xff]  }
 0x924   : > { %v9782_v7 = vmax.f32 %v9755_v0, 0.0  ;;  %v15620_v5 = vld [vmem:[%s20227_s7 + $0xa8] sm:$0xff]  }
 0x925   : > { %v9783_v40 = vmax.f32 %v9756_v63, 0.0  ;;  %v15621_v63 = vld [vmem:[%s20227_s7 + $0xf0] sm:$0xff]  }
 0x926   : > { %v19642_v16 = vpack.c.bf16 %v9782_v7, %v9779_v47  ;;  %v15622_v47 = vld [vmem:[%s20227_s7 + $0xb0] sm:$0xff]   ;;  %v9760_v7 = vadd.f32 %v19564_v18, %v19610_v41  ;;  %v15627_v41 = vld [vmem:[%s20227_s7 + $0xc0] sm:$0xff]  }
 0x927   : > { %v19644_v48 = vpack.c.bf16 %v9783_v40, %v9780_v2  ;;  %v9467_v30 = vpop.f32.mrb[248].mxu0  ;;  %v15623_v2 = vld [vmem:[%s20227_s7 + $0xf8] sm:$0xff]  }
 0x928   : > { %v9468_v43 = vadd.f32 %v9467_v30, %v19571_v19  ;;  %v9469_v57 = vpop.f32.mrb[249].mxu0  ;;  %v15624_v40 = vld [vmem:[%s20227_s7 + $0xb8] sm:$0xff]   ;;  %v9787_v30 = vmax.f32 %v9760_v7, 0.0  ;;  %v15643_v7 = vld [vmem:[%s20227_s7 + $0x20] sm:$0xff]  }
 0x929   : > { %v9470_v15 = vadd.f32 %v9469_v57, %v19574_v49  ;;  %9839 = vmatprep.subr.bf16.mxu1 %v19644_v48  ;;  %10004 = vmatprep.subr.bf16.mxu0 %v19644_v48  ;;  %v9471_v58 = vpop.f32.mrb[250].mxu0  ;;  %v15628_v57 = vld [vmem:[%s20227_s7 + $0x108] sm:$0xff]  }
 0x92a   : > { %v9714_v34 = vadd.f32 %v9468_v43, %v19435_v32  ;;  %9840 = vmatpush1.bf16.msra.mxu1 %v19642_v16  ;;  %10005 = vmatpush1.bf16.msra.mxu0 %v19642_v16  ;;  %v9472_v24 = vpop.f32.mrb[251].mxu0  ;;  %v19750_v43 = vpack.c.bf16 %v9787_v30, %v9787_v30  ;;  %v15646_v30 = vld [vmem:[%s20227_s7 + $0x70] sm:$0xff]  }
 0x92b   : > { %v9715_v60 = vadd.f32 %v9470_v15, %v19444_v36  ;;  %v15629_v15 = vld [vmem:[%s20227_s7 + $0xc8] sm:$0xff]   ;;  %v15634_v24 = vld [vmem:[%s20227_s7 + $0x40] sm:$0xff]  }
 0x92c   : > { %v9758_v45 = vadd.f32 %v19583_v52, %v9714_v34  ;;  %v19763_v58 = vsel %vm2196_vm1, %v19750_v43, 0  ;;  %v15633_v34 = vld [vmem:[%s20227_s7 + $0x118] sm:$0xff]  }
 0x92d   : > { %v9759_v19 = vadd.f32 %v19587_v22, %v9715_v60 }
 0x92e   : > { %v9785_v33 = vmax.f32 %v9758_v45, 0.0 }
 0x92f   : > { %v9786_v49 = vmax.f32 %v9759_v19, 0.0  ;;  %v13643_v54 = vpop.f32.mrb[252].mxu0 }
 0x930   : > { %v13644_v10 = vpop.f32.mrb[253].mxu0  ;;  %v9800_v28 = vpack.c.bf16 %v9785_v33, %v9785_v33 }
 0x931   : > { %v19656_v12 = vpack.c.bf16 %v9786_v49, %v9786_v49  ;;  %v13645_v25 = vadd.f32 %v13644_v10, %v13643_v54  ;;  %v13646_v32 = vpop.f32.mrb[254].mxu0 }
 0x932   : > { %v13647_v42 = vpop.f32.mrb[255].mxu0  ;;  %v19662_v36 = vsel %vm2196_vm1, %v9800_v28, 0 }
 0x933   : > { %v9581_v52 = vadd.f32 %v19549_v53, %v13645_v25  ;;  %v13648_v22 = vadd.f32 %v13647_v42, %v13646_v32  ;;  %13157 = vmatprep.subr.msk.bf16.mxu1 %vm2196_vm1, %v19656_v12  ;;  %13168 = vmatprep.subr.msk.bf16.mxu0 %vm2196_vm1, %v19656_v12  ;;  %v15612_v53 = vld [vmem:[%s20227_s7 + $0x90] sm:$0xff]  }
 0x934   : > { %9842 = vmatpush1.bf16.msra.mxu1 %v19662_v36  ;;  %10007 = vmatpush1.bf16.msra.mxu0 %v19662_v36 }
 0x935   : > { %v9653_v46 = vadd.f32 %v19555_v20, %v9581_v52  ;;  %v9584_v29 = vadd.f32 %v19551_v23, %v13648_v22  ;;  %13746 = vmatprep.subr.bf16.mxu0 %v15611_v6  ;;  %v15614_v20 = vld [vmem:[%s20227_s7 + $0x98] sm:$0xff]  }
 0x937   : > { %v9692_v17 = vadd.f32 %v9653_v46, %v19237_v62  ;;  %v9656_v56 = vadd.f32 %v19557_v14, %v9584_v29  ;;  %13169 = vmatmul.mubr.msk.bf16.vlgmr.msra.gmra.mrb[0].mxu0 %vm9817_vm5, %v19672_v50  ;;  %13158 = vmatmul.mubr.msk.bf16.vlgmr.msra.gmra.mrb[236].mxu1 %vm9817_vm5, %v15618_v31  ;;  %v15615_v62 = vld [vmem:[%s20227_s7 + $0xe0] sm:$0xff]  }
 0x938   : > { %13747 = vmatpush3.bf16.msra.mxu0 %v15612_v53  ;;  %10040 = vmatprep.mubr.bf16.mxu0 %v20340_v44 }
 0x939   : > { %v9736_v23 = vadd.f32 %v19564_v18, %v9692_v17  ;;  %v9695_v38 = vadd.f32 %v9656_v56, %v19242_v61  ;;  %13748 = vmatprep.subr.bf16.mxu0 %v15613_v11  ;;  %9875 = vmatprep.mubr.bf16.mxu1 %v20340_v44  ;;  %v15617_v61 = vld [vmem:[%s20227_s7 + $0xa0] sm:$0xff]  }
 0x93b   : > { %v9739_v14 = vadd.f32 %v19564_v18, %v9695_v38  ;;  %v9763_v4 = vmax.f32 %v9736_v23, 0.0  ;;  %v15626_v18 = vld [vmem:[%s20227_s7 + $0x100] sm:$0xff]  }
 0x93c   : > { %13749 = vmatpush3.bf16.msra.mxu0 %v15614_v20 }
 0x93d   : > { %v9766_v55 = vmax.f32 %v9739_v14, 0.0  ;;  %13750 = vmatprep.subr.bf16.mxu0 %v15615_v62 }
 0x93f   : > { %v19715_v0 = vpack.c.bf16 %v9766_v55, %v9763_v4  ;;  %13170 = vmatmul.mubr.msk.bf16.gmra.mrb[4].mxu0 %vm9817_vm5, %v15616_v27  ;;  %13159 = vmatmul.mubr.msk.bf16.gmra.mrb[240].mxu1 %vm9817_vm5, %v15625_v1  ;;  %v15636_v4 = vld [vmem:[%s20227_s7 + $0x48] sm:$0xff]  }
 0x940   : > { %13751 = vmatpush3.bf16.msra.mxu0 %v15617_v61  ;;  %14024 = vmatprep.mubr.msk.bf16.mxu1 %vm9817_vm5, %v15618_v31  ;;  %v15635_v61 = vld [vmem:[%s20227_s7] sm:$0xff]   ;;  %v15637_v55 = vld [vmem:[%s20227_s7 + $0x8] sm:$0xff]  }
 0x941   : > { %14014 = vmatprep.subr.bf16.mxu1 %v19715_v0  ;;  %13752 = vmatprep.subr.bf16.mxu0 %v15619_v26  ;;  %v15638_v26 = vld [vmem:[%s20227_s7 + $0x50] sm:$0xff]  }
 0x942   : > { %14015 = vmatpush3.bf16.msra.mxu1 %v19715_v0 }
 0x943   : > { %14016 = vmatprep.subr.bf16.mxu1 %v19576_v35 }
 0x944   : > { %13753 = vmatpush3.bf16.msra.mxu0 %v15620_v5  ;;  %v15640_v5 = vld [vmem:[%s20227_s7 + $0x58] sm:$0xff]  }
 0x945   : > { %13754 = vmatprep.subr.bf16.mxu0 %v15621_v63  ;;  %v15641_v63 = vld [vmem:[%s20227_s7 + $0x18] sm:$0xff]  }
 0x946   : > { %14017 = vmatpush3.bf16.msra.mxu1 %v19576_v35 }
 0x947   : > { %14018 = vmatprep.subr.bf16.mxu1 %v19592_v9 }
 0x948   : > { %13755 = vmatpush3.bf16.msra.mxu0 %v15622_v47  ;;  %v15642_v47 = vld [vmem:[%s20227_s7 + $0x60] sm:$0xff]  }
 0x949   : > { %13756 = vmatprep.subr.bf16.mxu0 %v15623_v2  ;;  %v15644_v2 = vld [vmem:[%s20227_s7 + $0x68] sm:$0xff]  }
 0x94a   : > { %14019 = vmatpush3.bf16.msra.mxu1 %v19592_v9 }
 0x94b   : > { %14020 = vmatprep.subr.bf16.mxu1 %v19615_v8 }
 0x94c   : > { %13757 = vmatpush3.bf16.msra.mxu0 %v15624_v40  ;;  %v15645_v40 = vld [vmem:[%s20227_s7 + $0x28] sm:$0xff]  }
 0x94d   : > { %13758 = vmatprep.subr.bf16.mxu0 %v15626_v18  ;;  %v15647_v18 = vld [vmem:[%s20227_s7 + $0x30] sm:$0xff]  }
 0x94e   : > { %14021 = vmatpush3.bf16.msra.mxu1 %v19615_v8 }
 0x94f   : > { %14666 = vmatprep.subr.msk.bf16.mxu1 %vm2196_vm1, %v19750_v43 }
 0x950   : > { %13759 = vmatpush3.bf16.msra.mxu0 %v15627_v41  ;;  %v15648_v41 = vld [vmem:[%s20227_s7 + $0x78] sm:$0xff]  }
 0x951   : > { %13760 = vmatprep.subr.bf16.mxu0 %v15628_v57  ;;  %v15650_v57 = vld [vmem:[%s20227_s7 + $0x80] sm:$0xff]  }
 0x952   : > { %14023 = vmatpush3.bf16.msra.mxu1 %v19763_v58 }
 0x953   : > { %14028 = vmatprep.subr.bf16.mxu1 %v19715_v0 }
 0x954   : > { %13761 = vmatpush3.bf16.msra.mxu0 %v15629_v15  ;;  %v15651_v15 = vld [vmem:[%s20227_s7 + $0x88] sm:$0xff]  }
 0x955   : > { %10588 = vmatprep.subr.bf16.mxu0 %v19601_v39  ;;  %14025 = vmatmul.mubr.msk.bf16.vlgmr.msra.gmra.mrb[244].mxu1 %vm9817_vm5, %v15625_v1  ;;  %v15632_v39 = vld [vmem:[%s20227_s7 + $0x110] sm:$0xff]  }
 0x956   : > { %14029 = vmatpush3.bf16.msra.mxu1 %v19715_v0  ;;  %14038 = vmatprep.mubr.msk.bf16.mxu1 %vm9817_vm5, %v19672_v50 }
 0x957   : > { %14030 = vmatprep.subr.bf16.mxu1 %v19576_v35 }
 0x95a   : > { %14031 = vmatpush3.bf16.msra.mxu1 %v19576_v35 }
 0x95b   : > { %14032 = vmatprep.subr.bf16.mxu1 %v19592_v9 }
 0x95e   : > { %14033 = vmatpush3.bf16.msra.mxu1 %v19592_v9 }
 0x95f   : > { %14034 = vmatprep.subr.bf16.mxu1 %v19615_v8 }
 0x962   : > { %14035 = vmatpush3.bf16.msra.mxu1 %v19615_v8 }
 0x963   : > { %14667 = vmatprep.subr.msk.bf16.mxu1 %vm2196_vm1, %v19750_v43 }
 0x966   : > { %14037 = vmatpush3.bf16.msra.mxu1 %v19763_v58 }
 0x967   : > { %14042 = vmatprep.subr.bf16.mxu1 %v15632_v39 }
 0x969   : > { %14039 = vmatmul.mubr.msk.bf16.vlgmr.msra.gmra.mrb[248].mxu1 %vm9817_vm5, %v15616_v27 }
 0x96a   : > { %14043 = vmatpush3.bf16.msra.mxu1 %v15632_v39  ;;  %v15657_v39 = vld [vmem:[%s20227_s7 + $0x130] sm:$0xff]  }
 0x96b   : > { %14044 = vmatprep.subr.bf16.mxu1 %v15633_v34 }
 0x96e   : > { %14045 = vmatpush3.bf16.msra.mxu1 %v15633_v34  ;;  %v15658_v34 = vld [vmem:[%s20227_s7 + $0x178] sm:$0xff]  }
 0x96f   : > { %13778 = vmatprep.subr.bf16.mxu1 %v15634_v24  ;;  %v15659_v24 = vld [vmem:[%s20227_s7 + $0x138] sm:$0xff]  }
 0xa0a   : > { %v10032_v60 = vpop.f32.mrb[0].mxu0  ;;  %v19791_v45 = vpop.f32.mrb[236].mxu1 }
 0xa0b   : > { %v10034_v19 = vpop.f32.mrb[1].mxu0  ;;  %v19793_v33 = vpop.f32.mrb[237].mxu1 }
 0xa0c   : > { %v10036_v49 = vpop.f32.mrb[2].mxu0  ;;  %v19795_v54 = vpop.f32.mrb[238].mxu1 }
 0xa0d   : > { %v10100_v10 = vpack.c.bf16 %v10036_v49, %v10032_v60  ;;  %v10038_v28 = vpop.f32.mrb[3].mxu0  ;;  %v9935_v25 = vpack.c.bf16 %v19795_v54, %v19791_v45  ;;  %v19799_v32 = vpop.f32.mrb[239].mxu1  ;;  %v15660_v60 = vld [vmem:[%s20227_s7 + $0x180] sm:$0xff]   ;;  %v15664_v49 = vld [vmem:[%s20227_s7 + $0x190] sm:$0xff]  }
 0xa0e   : > { %v10101_v6 = vpack.c.bf16 %v10038_v28, %v10034_v19  ;;  %v9936_v42 = vpack.c.bf16 %v19799_v32, %v19793_v33  ;;  %v15661_v45 = vld [vmem:[%s20227_s7 + $0x140] sm:$0xff]   ;;  %v15662_v19 = vld [vmem:[%s20227_s7 + $0x188] sm:$0xff]   ;;  %v15665_v54 = vld [vmem:[%s20227_s7 + $0x150] sm:$0xff]  }
 0xa0f   : > { %v15663_v33 = vld [vmem:[%s20227_s7 + $0x148] sm:$0xff]   ;;  %v15667_v28 = vld [vmem:[%s20227_s7 + $0x158] sm:$0xff]  }
 0xa10   : > { %10289 = vmatprep.mubr.bf16.mxu0 %v10101_v6  ;;  %v15669_v32 = vld [vmem:[%s20227_s7 + $0x1a8] sm:$0xff]  }
 0xa11   : > { %10290 = vmatmul.mubr.bf16.vlgmr.msra.gmra.mrb[8].mxu0 %v10100_v10  ;;  %v15666_v10 = vld [vmem:[%s20227_s7 + $0x198] sm:$0xff]  }
 0xa12   : > { %10589 = vmatpush1.bf16.msra.mxu0 %v19599_v59  ;;  %v10042_v52 = vpop.f32.mrb[4].mxu0  ;;  %v19804_v22 = vpop.f32.mrb[240].mxu1 }
 0xa13   : > { %10590 = vmatprep.subr.bf16.mxu0 %v19620_v37  ;;  %v10044_v50 = vpop.f32.mrb[5].mxu0  ;;  %v19807_v31 = vpop.f32.mrb[241].mxu1 }
 0xa14   : > { %v10046_v53 = vpop.f32.mrb[6].mxu0  ;;  %v19809_v46 = vpop.f32.mrb[242].mxu1 }
 0xa15   : > { %v10103_v29 = vpack.c.bf16 %v10046_v53, %v10042_v52  ;;  %v10048_v11 = vpop.f32.mrb[7].mxu0  ;;  %v9938_v17 = vpack.c.bf16 %v19809_v46, %v19804_v22  ;;  %v19813_v56 = vpop.f32.mrb[243].mxu1 }
 0xa16   : > { %10591 = vmatpush1.bf16.msra.mxu0 %v19618_v21  ;;  %v10104_v59 = vpack.c.bf16 %v10048_v11, %v10044_v50  ;;  %v9939_v20 = vpack.c.bf16 %v19813_v56, %v19807_v31  ;;  %v15630_v21 = vld [vmem:[%s20228_s8 + $0x20] sm:$0xff]  }
 0xa17   : > { %10592 = vmatprep.subr.bf16.mxu0 %v19632_v3 }
 0xa18   : > { %10297 = vmatprep.mubr.bf16.mxu0 %v10104_v59 }
 0xa19   : > { %10298 = vmatmul.mubr.bf16.gmra.mrb[12].mxu0 %v10103_v29 }
 0xa1a   : > { %10593 = vmatpush1.bf16.msra.mxu0 %v19630_v51  ;;  %10620 = vmatprep.mubr.bf16.mxu0 %v20340_v44  ;;  %v15631_v51 = vld [vmem:[%s20228_s8 + $0x28] sm:$0xff]  }
 0xa1b   : > { %10594 = vmatprep.subr.bf16.mxu0 %v19644_v48 }
 0xa1e   : > { %10595 = vmatpush1.bf16.msra.mxu0 %v19642_v16 }
 0xa1f   : > { %13255 = vmatprep.subr.msk.bf16.mxu0 %vm2196_vm1, %v19656_v12 }
 0xa22   : > { %10597 = vmatpush1.bf16.msra.mxu0 %v19662_v36  ;;  %v15653_v36 = vld [vmem:[%s20227_s7 + $0x120] sm:$0xff]  }
 0xa23   : > { %14058 = vmatprep.subr.bf16.mxu0 %v19715_v0 }
 0xa25   : > { %13256 = vmatmul.mubr.msk.bf16.vlgmr.msra.gmra.mrb[16].mxu0 %vm9817_vm5, %v15630_v21 }
 0xa26   : > { %14059 = vmatpush3.bf16.msra.mxu0 %v19715_v0  ;;  %10630 = vmatprep.mubr.bf16.mxu0 %v20340_v44  ;;  %v15639_v0 = vld [vmem:[%s20227_s7 + $0x10] sm:$0xff]  }
 0xa27   : > { %14060 = vmatprep.subr.bf16.mxu0 %v19576_v35 }
 0xa28   : > { %v19834_v37 = vpop.f32.mrb[244].mxu1 }
 0xa29   : > { %v19839_v3 = vpop.f32.mrb[245].mxu1 }
 0xa2a   : > { %14061 = vmatpush3.bf16.msra.mxu0 %v19576_v35  ;;  %v19842_v16 = vpop.f32.mrb[246].mxu1  ;;  %v15652_v35 = vld [vmem:[%s20227_s7 + $0x160] sm:$0xff]  }
 0xa2b   : > { %14062 = vmatprep.subr.bf16.mxu0 %v19592_v9  ;;  %v9940_v48 = vpack.c.bf16 %v19842_v16, %v19834_v37  ;;  %v19847_v44 = vpop.f32.mrb[247].mxu1 }
 0xa2c   : > { %v9937_v12 = vpack.c.bf16 %v19847_v44, %v19839_v3 }
 0xa2d   : > { %13257 = vmatmul.mubr.msk.bf16.gmra.mrb[24].mxu0 %vm9817_vm5, %v15631_v51 }
 0xa2e   : > { %14063 = vmatpush3.bf16.msra.mxu0 %v19592_v9  ;;  %14068 = vmatprep.mubr.msk.bf16.mxu0 %vm9817_vm5, %v15630_v21  ;;  %v15654_v9 = vld [vmem:[%s20227_s7 + $0x168] sm:$0xff]  }
 0xa2f   : > { %14064 = vmatprep.subr.bf16.mxu0 %v19615_v8 }
 0xa32   : > { %14065 = vmatpush3.bf16.msra.mxu0 %v19615_v8  ;;  %v15655_v8 = vld [vmem:[%s20227_s7 + $0x128] sm:$0xff]  }
 0xa33   : > { %14668 = vmatprep.subr.msk.bf16.mxu0 %vm2196_vm1, %v19750_v43  ;;  %v15649_v43 = vld [vmem:[%s20227_s7 + $0x38] sm:$0xff]  }
 0xa36   : > { %14067 = vmatpush3.bf16.msra.mxu0 %v19763_v58  ;;  %v15656_v58 = vld [vmem:[%s20227_s7 + $0x170] sm:$0xff]  }
 0xa37   : > { %13817 = vmatprep.subr.bf16.mxu0 %v15652_v35 }
 0xa39   : > { %14069 = vmatmul.mubr.msk.bf16.vlgmr.msra.gmra.mrb[20].mxu0 %vm9817_vm5, %v15631_v51 }
 0xa3a   : > { %13818 = vmatpush3.bf16.msra.mxu0 %v15653_v36 }
 0xa3b   : > { %13819 = vmatprep.subr.bf16.mxu0 %v15654_v9 }
 0xa3c   : > { %v14040_v23 = vpop.f32.mrb[248].mxu1 }
 0xa3d   : > { %v10085_v38 = vpop.f32.mrb[249].mxu1 }
 0xa3e   : > { %v14041_v62 = vpop.f32.mrb[250].mxu1  ;;  %13820 = vmatpush3.bf16.msra.mxu0 %v15655_v8 }
 0xa3f   : > { %v10105_v14 = vpack.c.bf16 %v14041_v62, %v14040_v23  ;;  %v10088_v27 = vpop.f32.mrb[251].mxu1  ;;  %13821 = vmatprep.subr.bf16.mxu0 %v15656_v58  ;;  %v15675_v58 = vld [vmem:[%s20230_s10 + $0x18] sm:$0xff]  }
 0xa40   : > { %v10102_v1 = vpack.c.bf16 %v10088_v27, %v10085_v38 }
 0xa42   : > { %14046 = vmatprep.mubr.msk.bf16.mxu1 %vm4984_vm3, %v10102_v1  ;;  %13822 = vmatpush3.bf16.msra.mxu0 %v15657_v39  ;;  %v15677_v39 = vld [vmem:[%s20230_s10 + $0x20] sm:$0xff]  }
 0xa43   : > { %14047 = vmatmul.mubr.msk.bf16.vlgmr.msra.gmra.mrb[252].mxu1 %vm4984_vm3, %v10105_v14  ;;  %13823 = vmatprep.subr.bf16.mxu0 %v15658_v34  ;;  %v15679_v34 = vld [vmem:[%s20230_s10 + $0x28] sm:$0xff]  }
 0xa44   : > { %13779 = vmatpush3.bf16.msra.mxu1 %v15635_v61  ;;  %10501 = vmatprep.mubr.bf16.mxu1 %v9936_v42 }
 0xa45   : > { %13780 = vmatprep.subr.bf16.mxu1 %v15636_v4 }
 0xa46   : > { %13824 = vmatpush3.bf16.msra.mxu0 %v15659_v24  ;;  %v15681_v24 = vld [vmem:[%s20230_s10 + $0x30] sm:$0xff]  }
 0xa47   : > { %13825 = vmatprep.subr.bf16.mxu0 %v15660_v60 }
 0xa48   : > { %13781 = vmatpush3.bf16.msra.mxu1 %v15637_v55 }
 0xa49   : > { %13782 = vmatprep.subr.bf16.mxu1 %v15638_v26 }
 0xa4a   : > { %13826 = vmatpush3.bf16.msra.mxu0 %v15661_v45 }
 0xa4b   : > { %13827 = vmatprep.subr.bf16.mxu0 %v15662_v19 }
 0xa4c   : > { %13783 = vmatpush3.bf16.msra.mxu1 %v15639_v0 }
 0xa4d   : > { %13784 = vmatprep.subr.bf16.mxu1 %v15640_v5 }
 0xa4e   : > { %13828 = vmatpush3.bf16.msra.mxu0 %v15663_v33 }
 0xa4f   : > { %13829 = vmatprep.subr.bf16.mxu0 %v15664_v49 }
 0xa50   : > { %13785 = vmatpush3.bf16.msra.mxu1 %v15641_v63 }
 0xa51   : > { %13786 = vmatprep.subr.bf16.mxu1 %v15642_v47 }
 0xa52   : > { %13830 = vmatpush3.bf16.msra.mxu0 %v15665_v54 }
 0xa53   : > { %13831 = vmatprep.subr.bf16.mxu0 %v15666_v10 }
 0xa54   : > { %13787 = vmatpush3.bf16.msra.mxu1 %v15643_v7 }
 0xa55   : > { %13788 = vmatprep.subr.bf16.mxu1 %v15644_v2 }
 0xa56   : > { %13832 = vmatpush3.bf16.msra.mxu0 %v15667_v28 }
 0xa57   : > { %14116 = vmatprep.subr.bf16.mxu0 %v20369_v13 }
 0xa58   : > { %13789 = vmatpush3.bf16.msra.mxu1 %v15645_v40 }
 0xa59   : > { %13790 = vmatprep.subr.bf16.mxu1 %v15646_v30 }
 0xa5c   : > { %13791 = vmatpush3.bf16.msra.mxu1 %v15647_v18 }
 0xa5d   : > { %13792 = vmatprep.subr.bf16.mxu1 %v15648_v41 }
 0xa60   : > { %13793 = vmatpush3.bf16.msra.mxu1 %v15649_v43  ;;  %v15670_v43 = vld [vmem:[%s20230_s10] sm:$0xff]  }
 0xa61   : > { %14050 = vmatprep.subr.bf16.mxu1 %v15650_v57 }
 0xa63   : > { %10502 = vmatmul.mubr.bf16.vlgmr.msra.gmra.mrb[0].mxu1 %v9935_v25  ;;  %v15668_v25 = vld [vmem:[%s20227_s7 + $0x1a0] sm:$0xff]  }
 0xa64   : > { %10509 = vmatprep.mubr.bf16.mxu1 %v9939_v20  ;;  %14051 = vmatpush3.bf16.msra.mxu1 %v15650_v57  ;;  %v15671_v57 = vld [vmem:[%s20230_s10 + $0x8] sm:$0xff]  }
 0xa65   : > { %14052 = vmatprep.subr.bf16.mxu1 %v15651_v15 }
 0xa68   : > { %14053 = vmatpush3.bf16.msra.mxu1 %v15651_v15  ;;  %v15673_v15 = vld [vmem:[%s20230_s10 + $0x10] sm:$0xff]  }
 0xa69   : > { %14072 = vmatprep.subr.bf16.mxu1 %v15668_v25 }
 0xa6b   : > { %10510 = vmatmul.mubr.bf16.gmra.mrb[4].mxu1 %v9938_v17 }
 0xa6c   : > { %14054 = vmatprep.mubr.msk.bf16.mxu1 %vm4984_vm3, %v9937_v12 }
 0xa73   : > { %14055 = vmatmul.mubr.msk.bf16.vlgmr.msra.gmra.mrb[252].mxu1 %vm4984_vm3, %v9940_v48 }
 0xa74   : > { %14073 = vmatpush3.bf16.msra.mxu1 %v15668_v25 }
 0xa75   : > { %14074 = vmatprep.subr.bf16.mxu1 %v15669_v32 }
 0xa78   : > { %14075 = vmatpush3.bf16.msra.mxu1 %v15669_v32 }
 0xa79   : > { %14080 = vmatprep.subr.bf16.mxu1 %v20369_v13 }
 0xae4   : > { %v13762_v6 = vpop.f32.mrb[8].mxu0 }
 0xae5   : > { %v13763_v42 = vpop.f32.mrb[9].mxu0 }
 0xae6   : > { %v13764_v52 = vadd.f32 %v13763_v42, %v13762_v6  ;;  %v13765_v22 = vpop.f32.mrb[10].mxu0 }
 0xae7   : > { %v13766_v50 = vpop.f32.mrb[11].mxu0 }
 0xae8   : > { %v13767_v31 = vadd.f32 %v13766_v50, %v13765_v22 }
 0xaec   : > { %v13768_v53 = vpop.f32.mrb[12].mxu0 }
 0xaed   : > { %v13769_v46 = vpop.f32.mrb[13].mxu0 }
 0xaee   : > { %v13770_v29 = vadd.f32 %v13769_v46, %v13768_v53  ;;  %v13771_v11 = vpop.f32.mrb[14].mxu0  ;;  %v13316_v46 = vld [vmem:[%s20229_s9] ss:$0 sm:$0xff] }
 0xaef   : > { %v13772_v17 = vpop.f32.mrb[15].mxu0 }
 0xaf0   : > { %v13773_v56 = vadd.f32 %v13772_v17, %v13771_v11 }
 0xaf8   : > { %v10622_v59 = vpop.f32.mrb[16].mxu0 }
 0xaf9   : > { %v10624_v20 = vpop.f32.mrb[17].mxu0 }
 0xafa   : > { %v10626_v21 = vpop.f32.mrb[18].mxu0 }
 0xafb   : > { %v10690_v37 = vpack.c.bf16 %v10626_v21, %v10622_v59  ;;  %v10628_v51 = vpop.f32.mrb[19].mxu0 }
 0xafc   : > { %v10691_v3 = vpack.c.bf16 %v10628_v51, %v10624_v20 }
 0xafe   : > { %10879 = vmatprep.mubr.bf16.mxu0 %v10691_v3 }
 0xaff   : > { %10880 = vmatmul.mubr.bf16.vlgmr.msra.gmra.mrb[28].mxu0 %v10690_v37 }
 0xb00   : > { %v10632_v16 = vpop.f32.mrb[24].mxu0  ;;  %14117 = vmatpush3.bf16.msra.mxu0 %v15670_v43  ;;  %v15688_v43 = vld [vmem:[%s20230_s10 + $0x90] sm:$0xff]  }
 0xb01   : > { %v10634_v48 = vpop.f32.mrb[25].mxu0  ;;  %14118 = vmatprep.subr.bf16.mxu0 %v20369_v13 }
 0xb02   : > { %v10636_v44 = vpop.f32.mrb[26].mxu0 }
 0xb03   : > { %v10693_v12 = vpack.c.bf16 %v10636_v44, %v10632_v16  ;;  %v10638_v35 = vpop.f32.mrb[27].mxu0 }
 0xb04   : > { %v10694_v36 = vpack.c.bf16 %v10638_v35, %v10634_v48  ;;  %14119 = vmatpush3.bf16.msra.mxu0 %v15671_v57 }
 0xb05   : > { %14120 = vmatprep.subr.bf16.mxu0 %v20369_v13 }
 0xb06   : > { %10887 = vmatprep.mubr.bf16.mxu0 %v10694_v36 }
 0xb07   : > { %10888 = vmatmul.mubr.bf16.gmra.mrb[32].mxu0 %v10693_v12 }
 0xb08   : > { %14132 = vmatprep.mubr.msk.bf16.mxu0 %vm15762_vm4, %v20369_v13  ;;  %14121 = vmatpush3.bf16.msra.mxu0 %v15673_v15 }
 0xb09   : > { %14122 = vmatprep.subr.bf16.mxu0 %v20369_v13 }
 0xb0c   : > { %v14070_v9 = vpop.f32.mrb[20].mxu0  ;;  %14123 = vmatpush3.bf16.msra.mxu0 %v15675_v58  ;;  %v15690_v58 = vld [vmem:[%s20230_s10 + $0x98] sm:$0xff]  }
 0xb0d   : > { %v10675_v8 = vpop.f32.mrb[21].mxu0  ;;  %14124 = vmatprep.subr.bf16.mxu0 %v20369_v13 }
 0xb0e   : > { %v14071_v23 = vpop.f32.mrb[22].mxu0 }
 0xb0f   : > { %v10695_v38 = vpack.c.bf16 %v14071_v23, %v14070_v9  ;;  %v10678_v62 = vpop.f32.mrb[23].mxu0  ;;  %v13318_v23 = vld [vmem:[%s20231_s11 + $0x4] sm:$0xf] }
 0xb10   : > { %v10692_v14 = vpack.c.bf16 %v10678_v62, %v10675_v8  ;;  %14125 = vmatpush3.bf16.msra.mxu0 %v15677_v39  ;;  %v10966_v8 = vld [vmem:[%s20231_s11] sm:$0xf]  ;;  %v15674_v62 = vld [vmem:[%s20230_s10 + $0x48] sm:$0xff]  }
 0xb11   : > { %14126 = vmatprep.subr.bf16.mxu0 %v20369_v13  ;;  %v13352_v39 = vld [vmem:[%s20231_s11 + $0x8] sm:$0xf] }
 0xb12   : > { %14076 = vmatprep.mubr.msk.bf16.mxu1 %vm4984_vm3, %v10692_v14  ;;  %v15676_v14 = vld [vmem:[%s20230_s10 + $0x50] sm:$0xff]  }
 0xb13   : > { %14077 = vmatmul.mubr.msk.bf16.vlgmr.msra.gmra.mrb[252].mxu1 %vm4984_vm3, %v10695_v38  ;;  %v15672_v38 = vld [vmem:[%s20230_s10 + $0x40] sm:$0xff]  }
 0xb14   : > { %14084 = vmatprep.mubr.msk.bf16.mxu1 %vm15762_vm4, %v20369_v13  ;;  %14127 = vmatpush3.bf16.msra.mxu0 %v15679_v34  ;;  %v13378_v34 = vld [vmem:[%s20231_s11 + $0xc] sm:$0xf] }
 0xb15   : > { %14128 = vmatprep.subr.bf16.mxu0 %v20369_v13 }
 0xb18   : > { %14129 = vmatpush3.bf16.msra.mxu0 %v15681_v24  ;;  %v15689_v24 = vld [vmem:[%s20230_s10 + $0xc0] sm:$0xff]  }
 0xb19   : > { %14130 = vmatprep.subr.bf16.mxu0 %v20369_v13 }
 0xb36   : > { %v13794_v27 = vpop.f32.mrb[0].mxu1 }
 0xb37   : > { %v13795_v1 = vpop.f32.mrb[1].mxu1 }
 0xb38   : > { %v13796_v61 = vadd.f32 %v13795_v1, %v13794_v27  ;;  %v13797_v4 = vpop.f32.mrb[2].mxu1  ;;  %v15678_v27 = vld [vmem:[%s20230_s10 + $0x58] sm:$0xff]   ;;  %v15680_v1 = vld [vmem:[%s20230_s10 + $0x60] sm:$0xff]  }
 0xb39   : > { %v13798_v55 = vpop.f32.mrb[3].mxu1 }
 0xb3a   : > { %v14257_v26 = vadd.f32 %v13796_v61, %v13764_v52  ;;  %v13799_v0 = vadd.f32 %v13798_v55, %v13797_v4  ;;  %v15682_v61 = vld [vmem:[%s20230_s10 + $0x68] sm:$0xff]   ;;  %v15683_v4 = vld [vmem:[%s20230_s10 + $0x38] sm:$0xff]   ;;  %v15684_v55 = vld [vmem:[%s20230_s10 + $0x70] sm:$0xff]  }
 0xb3b   : > { %14131 = vmatpush3.bf16.msra.mxu0 %v15683_v4 }
 0xb3c   : > { %v14263_v5 = vadd.f32 %v13799_v0, %v13767_v31  ;;  %14144 = vmatprep.subr.bf16.mxu0 %v20369_v13 }
 0xb3e   : > { %v13800_v63 = vpop.f32.mrb[4].mxu1 }
 0xb3f   : > { %v13801_v47 = vpop.f32.mrb[5].mxu1 }
 0xb40   : > { %v13802_v7 = vadd.f32 %v13801_v47, %v13800_v63  ;;  %v13803_v2 = vpop.f32.mrb[6].mxu1 }
 0xb41   : > { %v13804_v40 = vpop.f32.mrb[7].mxu1 }
 0xb42   : > { %v14254_v30 = vadd.f32 %v13802_v7, %v13770_v29  ;;  %v13805_v18 = vadd.f32 %v13804_v40, %v13803_v2  ;;  %v15687_v40 = vld [vmem:[%s20230_s10 + $0x88] sm:$0xff]  }
 0xb44   : > { %v14260_v41 = vadd.f32 %v13805_v18, %v13773_v56 }
 0xbd2   : > { %v13833_v60 = vpop.f32.mrb[28].mxu0 }
 0xbd3   : > { %v13834_v45 = vpop.f32.mrb[29].mxu0 }
 0xbd4   : > { %v13835_v19 = vadd.f32 %v13834_v45, %v13833_v60  ;;  %v13836_v33 = vpop.f32.mrb[30].mxu0  ;;  %v15691_v60 = vld [vmem:[%s20230_s10 + $0xc8] sm:$0xff]   ;;  %v15692_v45 = vld [vmem:[%s20230_s10 + $0xa0] sm:$0xff]  }
 0xbd5   : > { %v13837_v49 = vpop.f32.mrb[31].mxu0 }
 0xbd6   : > { %v13838_v54 = vadd.f32 %v13837_v49, %v13836_v33  ;;  %v14258_v10 = vadd.f32 %v14257_v26, %v13835_v19  ;;  %v15685_v26 = vld [vmem:[%s20230_s10 + $0x78] sm:$0xff]   ;;  %v15693_v19 = vld [vmem:[%s20230_s10 + $0xd0] sm:$0xff]   ;;  %v15694_v33 = vld [vmem:[%s20230_s10 + $0xa8] sm:$0xff]  }
 0xbd7   : > { %v15695_v49 = vld [vmem:[%s20230_s10 + $0xd8] sm:$0xff]  }
 0xbd8   : > { %v14264_v28 = vadd.f32 %v14263_v5, %v13838_v54  ;;  %v15686_v5 = vld [vmem:[%s20230_s10 + $0x80] sm:$0xff]   ;;  %v15696_v54 = vld [vmem:[%s20230_s10 + $0xb0] sm:$0xff]  }
 0xbda   : > { %v13839_v25 = vpop.f32.mrb[32].mxu0 }
 0xbdb   : > { %v13840_v32 = vpop.f32.mrb[33].mxu0 }
 0xbdc   : > { %v13841_v6 = vadd.f32 %v13840_v32, %v13839_v25  ;;  %v13842_v42 = vpop.f32.mrb[34].mxu0  ;;  %v15699_v25 = vld [vmem:[%s20230_s10 + $0xe8] sm:$0xff]   ;;  %v15700_v32 = vld [vmem:[%s20230_s10 + $0xf0] sm:$0xff]  }
 0xbdd   : > { %v13843_v52 = vpop.f32.mrb[35].mxu0 }
 0xbde   : > { %v13844_v22 = vadd.f32 %v13843_v52, %v13842_v42  ;;  %v14255_v50 = vadd.f32 %v14254_v30, %v13841_v6  ;;  %v15701_v6 = vld [vmem:[%s20230_s10 + $0xf8] sm:$0xff]  }
 0xbe0   : > { %v14261_v31 = vadd.f32 %v14260_v41, %v13844_v22 }
 0xbe6   : > { %v14078_v53 = vpop.f32.mrb[252].mxu1 }
 0xbe7   : > { %v14256_v29 = vadd.f32 %v14255_v50, %v14078_v53  ;;  %v10930_v11 = vpop.f32.mrb[253].mxu1 }
 0xbe8   : > { %v14259_v17 = vadd.f32 %v14258_v10, %v10930_v11  ;;  %v14079_v56 = vpop.f32.mrb[254].mxu1  ;;  %v15697_v10 = vld [vmem:[%s20230_s10 + $0xe0] sm:$0xff]  }
 0xbe9   : > { %v10958_v59 = vadd.f32 %v14256_v29, %v13316_v46  ;;  %v14262_v20 = vadd.f32 %v14261_v31, %v14079_v56  ;;  %v10933_v21 = vpop.f32.mrb[255].mxu1  ;;  %v15702_v56 = vld [vmem:[%s20233_s13] sm:$0xff]  }
 0xbea   : > { %v10956_v37 = vadd.f32 %v14259_v17, %v13316_v46  ;;  %v14265_v51 = vadd.f32 %v14264_v28, %v10933_v21  ;;  %v15698_v28 = vld [vmem:[%s20230_s10 + $0xb8] sm:$0xff]  }
 0xbeb   : > { %v10959_v3 = vadd.f32 %v14262_v20, %v13316_v46  ;;  %v10962_v48 = vmax.f32 %v10958_v59, 0.0 }
 0xbec   : > { %v10957_v16 = vadd.f32 %v14265_v51, %v13316_v46  ;;  %v10960_v12 = vmax.f32 %v10956_v37, 0.0  ;;  %v15703_v51 = vld [vmem:[%s20233_s13 + $0x8] sm:$0xff]  }
 0xbed   : > { %v10963_v44 = vmax.f32 %v10959_v3, 0.0 }
 0xbee   : > { %v10961_v35 = vmax.f32 %v10957_v16, 0.0  ;;  %v15704_v16 = vld [vmem:[%s20233_s13 + $0x10] sm:$0xff]  }
 0xbef   : > { %v20026_v36 = vpack.c.bf16 %v10963_v44, %v10962_v48 }
 0xbf0   : > { %v20028_v9 = vpack.c.bf16 %v10961_v35, %v10960_v12 }
 0xbf2   : > { %14081 = vmatpush3.bf16.msra.mxu1 %v20028_v9 }
 0xbf3   : > { %14082 = vmatprep.subr.bf16.mxu1 %v20369_v13 }
 0xbf6   : > { %14083 = vmatpush3.bf16.msra.mxu1 %v20026_v36 }
 0xbf7   : > { %14088 = vmatprep.subr.bf16.mxu1 %v20369_v13 }
 0xbf9   : > { %14085 = vmatmul.mubr.msk.bf16.vlgmr.msra.gmra.mrb[8].mxu1 %vm4984_vm3, %v10966_v8  ;;  %v15707_v8 = vld [vmem:[%s20233_s13 + $0x28] sm:$0xff]  }
 0xbfa   : > { %14089 = vmatpush3.bf16.msra.mxu1 %v20028_v9  ;;  %14092 = vmatprep.mubr.msk.bf16.mxu1 %vm15762_vm4, %v20369_v13 }
 0xbfb   : > { %14090 = vmatprep.subr.bf16.mxu1 %v20369_v13 }
 0xbfe   : > { %14091 = vmatpush3.bf16.msra.mxu1 %v20026_v36 }
 0xbff   : > { %14096 = vmatprep.subr.bf16.mxu1 %v20369_v13 }
 0xc01   : > { %14093 = vmatmul.mubr.msk.bf16.vlgmr.msra.gmra.mrb[12].mxu1 %vm4984_vm3, %v13318_v23  ;;  %v15708_v23 = vld [vmem:[%s20233_s13 + $0x30] sm:$0xff]  }
 0xc02   : > { %14097 = vmatpush3.bf16.msra.mxu1 %v15672_v38  ;;  %14112 = vmatprep.mubr.msk.bf16.mxu1 %vm15762_vm4, %v20369_v13  ;;  %v15709_v38 = vld [vmem:[%s20233_s13 + $0x38] sm:$0xff]  }
 0xc03   : > { %14098 = vmatprep.subr.bf16.mxu1 %v20369_v13 }
 0xc06   : > { %14099 = vmatpush3.bf16.msra.mxu1 %v15674_v62 }
 0xc07   : > { %14100 = vmatprep.subr.bf16.mxu1 %v20369_v13 }
 0xc0a   : > { %14101 = vmatpush3.bf16.msra.mxu1 %v15676_v14 }
 0xc0b   : > { %14102 = vmatprep.subr.bf16.mxu1 %v20369_v13 }
 0xc0e   : > { %14103 = vmatpush3.bf16.msra.mxu1 %v15678_v27 }
 0xc0f   : > { %14104 = vmatprep.subr.bf16.mxu1 %v20369_v13 }
 0xc12   : > { %14105 = vmatpush3.bf16.msra.mxu1 %v15680_v1 }
 0xc13   : > { %14106 = vmatprep.subr.bf16.mxu1 %v20369_v13 }
 0xc16   : > { %14107 = vmatpush3.bf16.msra.mxu1 %v15682_v61 }
 0xc17   : > { %14108 = vmatprep.subr.bf16.mxu1 %v20369_v13 }
 0xc1a   : > { %14109 = vmatpush3.bf16.msra.mxu1 %v15684_v55  ;;  %v13404_v55 = vld [vmem:[%s20232_s12] ss:$0 sm:$0xff] }
 0xc1b   : > { %14110 = vmatprep.subr.bf16.mxu1 %v20369_v13 }
 0xc1e   : > { %14111 = vmatpush3.bf16.msra.mxu1 %v15685_v26 }
 0xc1f   : > { %14136 = vmatprep.subr.bf16.mxu1 %v20369_v13 }
 0xccc   : > { %v11004_v0 = vpop.f32.mrb[8].mxu1 }
 0xccd   : > { %v11010_v63 = vpack.c.bf16 %v11004_v0, %v11004_v0  ;;  %v14086_v47 = vpop.f32.mrb[9].mxu1 }
 0xcce   : > { %v11007_v7 = vpop.f32.mrb[10].mxu1 }
 0xccf   : > { %v14087_v2 = vpop.f32.mrb[11].mxu1  ;;  %14133 = vmatmul.mubr.bf16.vlgmr.msra.gmra.mrb[36].mxu0 %v11010_v63 }
 0xcd0   : > { %14145 = vmatpush3.bf16.msra.mxu0 %v15686_v5  ;;  %14160 = vmatprep.mubr.msk.bf16.mxu0 %vm15762_vm4, %v20369_v13  ;;  %v13405_v2 = vld [vmem:[%s20234_s14] ss:$0 sm:$0xff] }
 0xcd1   : > { %14146 = vmatprep.subr.bf16.mxu0 %v20369_v13 }
 0xcd4   : > { %v11066_v30 = vpop.f32.mrb[12].mxu1  ;;  %14147 = vmatpush3.bf16.msra.mxu0 %v15687_v40 }
 0xcd5   : > { %v11072_v18 = vpack.c.bf16 %v11066_v30, %v11066_v30  ;;  %v14094_v41 = vpop.f32.mrb[13].mxu1  ;;  %14148 = vmatprep.subr.bf16.mxu0 %v20369_v13 }
 0xcd6   : > { %v11069_v57 = vpop.f32.mrb[14].mxu1 }
 0xcd7   : > { %14113 = vmatmul.mubr.bf16.vlgmr.msra.gmra.mrb[16].mxu1 %v11072_v18  ;;  %v14095_v15 = vpop.f32.mrb[15].mxu1 }
 0xcd8   : > { %14137 = vmatpush3.bf16.msra.mxu1 %v20028_v9  ;;  %14140 = vmatprep.mubr.msk.bf16.mxu1 %vm15762_vm4, %v20369_v13 }
 0xcd9   : > { %14138 = vmatprep.subr.bf16.mxu1 %v20369_v13  ;;  %14149 = vmatpush3.bf16.msra.mxu0 %v15688_v43 }
 0xcda   : > { %14150 = vmatprep.subr.bf16.mxu0 %v20369_v13 }
 0xcdc   : > { %14139 = vmatpush3.bf16.msra.mxu1 %v20026_v36 }
 0xcdd   : > { %14164 = vmatprep.subr.bf16.mxu1 %v20369_v13  ;;  %14151 = vmatpush3.bf16.msra.mxu0 %v15690_v58 }
 0xcde   : > { %14152 = vmatprep.subr.bf16.mxu0 %v20369_v13 }
 0xcdf   : > { %14141 = vmatmul.mubr.msk.bf16.vlgmr.msra.gmra.mrb[20].mxu1 %vm4984_vm3, %v13352_v39 }
 0xce0   : > { %14165 = vmatpush3.bf16.msra.mxu1 %v20028_v9  ;;  %14168 = vmatprep.mubr.msk.bf16.mxu1 %vm15762_vm4, %v20369_v13  ;;  %v15706_v9 = vld [vmem:[%s20233_s13 + $0x20] sm:$0xff]  }
 0xce1   : > { %14166 = vmatprep.subr.bf16.mxu1 %v20369_v13  ;;  %14153 = vmatpush3.bf16.msra.mxu0 %v15692_v45 }
 0xce2   : > { %14154 = vmatprep.subr.bf16.mxu0 %v20369_v13 }
 0xce4   : > { %14167 = vmatpush3.bf16.msra.mxu1 %v20026_v36  ;;  %v15705_v36 = vld [vmem:[%s20233_s13 + $0x18] sm:$0xff]  }
 0xce5   : > { %14172 = vmatprep.subr.bf16.mxu1 %v20369_v13  ;;  %14155 = vmatpush3.bf16.msra.mxu0 %v15694_v33 }
 0xce6   : > { %14156 = vmatprep.subr.bf16.mxu0 %v20369_v13 }
 0xce7   : > { %14169 = vmatmul.mubr.msk.bf16.vlgmr.msra.gmra.mrb[24].mxu1 %vm4984_vm3, %v13378_v34 }
 0xce8   : > { %14173 = vmatpush3.bf16.msra.mxu1 %v15689_v24  ;;  %14188 = vmatprep.mubr.msk.bf16.mxu1 %vm15762_vm4, %v20369_v13 }
 0xce9   : > { %14174 = vmatprep.subr.bf16.mxu1 %v20369_v13  ;;  %14157 = vmatpush3.bf16.msra.mxu0 %v15696_v54 }
 0xcea   : > { %14158 = vmatprep.subr.bf16.mxu0 %v20369_v13 }
 0xcec   : > { %14175 = vmatpush3.bf16.msra.mxu1 %v15691_v60 }
 0xced   : > { %14176 = vmatprep.subr.bf16.mxu1 %v20369_v13  ;;  %14159 = vmatpush3.bf16.msra.mxu0 %v15698_v28 }
 0xcee   : > { %14192 = vmatprep.subr.bf16.mxu0 %v20369_v13 }
 0xcf0   : > { %14177 = vmatpush3.bf16.msra.mxu1 %v15693_v19 }
 0xcf1   : > { %14178 = vmatprep.subr.bf16.mxu1 %v20369_v13 }
 0xcf4   : > { %14179 = vmatpush3.bf16.msra.mxu1 %v15695_v49 }
 0xcf5   : > { %14180 = vmatprep.subr.bf16.mxu1 %v20369_v13 }
 0xcf8   : > { %14181 = vmatpush3.bf16.msra.mxu1 %v15697_v10 }
 0xcf9   : > { %14182 = vmatprep.subr.bf16.mxu1 %v20369_v13 }
 0xcfc   : > { %14183 = vmatpush3.bf16.msra.mxu1 %v15699_v25 }
 0xcfd   : > { %14184 = vmatprep.subr.bf16.mxu1 %v20369_v13 }
 0xd00   : > { %14185 = vmatpush3.bf16.msra.mxu1 %v15700_v32 }
 0xd01   : > { %14186 = vmatprep.subr.bf16.mxu1 %v20369_v13 }
 0xd04   : > { %14187 = vmatpush3.bf16.msra.mxu1 %v15701_v6 }
 0xda2   : > { %v11260_v42 = vpop.f32.mrb[36].mxu0 }
 0xda3   : > { %v14134_v52 = vpop.f32.mrb[37].mxu0 }
 0xda4   : > { %v11263_v22 = vpop.f32.mrb[38].mxu0 }
 0xda5   : > { %v14135_v50 = vpop.f32.mrb[39].mxu0 }
 0xdaa   : > { %v11172_v31 = vpop.f32.mrb[16].mxu1 }
 0xdab   : > { %v11261_v53 = vadd.f32 %v11260_v42, %v11172_v31  ;;  %v14114_v46 = vpop.f32.mrb[17].mxu1 }
 0xdac   : > { %v11175_v29 = vpop.f32.mrb[18].mxu1 }
 0xdad   : > { %v14115_v11 = vpop.f32.mrb[19].mxu1 }
 0xdb2   : > { %v11305_v17 = vpop.f32.mrb[20].mxu1 }
 0xdb3   : > { %v11311_v59 = vpack.c.bf16 %v11305_v17, %v11305_v17  ;;  %v14142_v20 = vpop.f32.mrb[21].mxu1 }
 0xdb4   : > { %v11308_v21 = vpop.f32.mrb[22].mxu1 }
 0xdb5   : > { %14161 = vmatmul.mubr.bf16.vlgmr.msra.gmra.mrb[80].mxu0 %v11311_v59  ;;  %v14143_v37 = vpop.f32.mrb[23].mxu1 }
 0xdb6   : > { %14193 = vmatpush3.bf16.msra.mxu0 %v15702_v56  ;;  %14208 = vmatprep.mubr.msk.bf16.mxu0 %vm15762_vm4, %v20369_v13 }
 0xdb7   : > { %14194 = vmatprep.subr.bf16.mxu0 %v20369_v13 }
 0xdba   : > { %v11457_v3 = vpop.f32.mrb[24].mxu1  ;;  %14195 = vmatpush3.bf16.msra.mxu0 %v15703_v51 }
 0xdbb   : > { %v11463_v48 = vpack.c.bf16 %v11457_v3, %v11457_v3  ;;  %v14170_v44 = vpop.f32.mrb[25].mxu1  ;;  %14196 = vmatprep.subr.bf16.mxu0 %v20369_v13 }
 0xdbc   : > { %v11460_v12 = vpop.f32.mrb[26].mxu1 }
 0xdbd   : > { %14189 = vmatmul.mubr.bf16.vlgmr.msra.gmra.mrb[28].mxu1 %v11463_v48  ;;  %v14171_v35 = vpop.f32.mrb[27].mxu1 }
 0xdbe   : > { %14197 = vmatpush3.bf16.msra.mxu0 %v15704_v16 }
 0xdbf   : > { %14198 = vmatprep.subr.bf16.mxu0 %v20369_v13 }
 0xdc2   : > { %14199 = vmatpush3.bf16.msra.mxu0 %v15705_v36 }
 0xdc3   : > { %14200 = vmatprep.subr.bf16.mxu0 %v20369_v13 }
 0xdc6   : > { %14201 = vmatpush3.bf16.msra.mxu0 %v15706_v9 }
 0xdc7   : > { %14202 = vmatprep.subr.bf16.mxu0 %v20369_v13 }
 0xdca   : > { %14203 = vmatpush3.bf16.msra.mxu0 %v15707_v8 }
 0xdcb   : > { %14204 = vmatprep.subr.bf16.mxu0 %v20369_v13 }
 0xdce   : > { %14205 = vmatpush3.bf16.msra.mxu0 %v15708_v23 }
 0xdcf   : > { %14206 = vmatprep.subr.bf16.mxu0 %v20369_v13 }
 0xdd2   : > { %14207 = vmatpush3.bf16.msra.mxu0 %v15709_v38 }
 0xe88   : > { %v11411_v62 = vpop.f32.mrb[80].mxu0 }
 0xe89   : > { %v11417_v14 = vadd.f32 %v11411_v62, %v11261_v53  ;;  %v14162_v27 = vpop.f32.mrb[81].mxu0 }
 0xe8a   : > { %v11414_v1 = vpop.f32.mrb[82].mxu0 }
 0xe8b   : > { %v14163_v61 = vpop.f32.mrb[83].mxu0 }
 0xe90   : > { %v11563_v4 = vpop.f32.mrb[28].mxu1 }
 0xe91   : > { %v11569_v26 = vadd.f32 %v11563_v4, %v11417_v14  ;;  %v14190_v0 = vpop.f32.mrb[29].mxu1 }
 0xe92   : > { %v11566_v13 = vpop.f32.mrb[30].mxu1 }
 0xe93   : > { %v11577_v5 = vadd.f32 %v13404_v55, %v11569_v26  ;;  %v14191_v63 = vpop.f32.mrb[31].mxu1 }
 0xe95   : > { %v11578_v47 = vmax.f32 %v11577_v5, 0.0 }
 0xe97   : > { %v11579_v7 = vpack.c.bf16 %v11578_v47, %v11578_v47 }
 0xe99   : > { %14209 = vmatmul.mubr.bf16.vlgmr.msra.gmra.mrb[84].mxu0 %v11579_v7 }
 0xf6c   : > { %v11685_v40 = vpop.f32.mrb[84].mxu0 }
 0xf6d   : > { %v11686_v30 = vadd.f32 %v13405_v2, %v11685_v40  ;;  %v14210_v18 = vpop.f32.mrb[85].mxu0 }
 0xf6e   : > { %v11688_v41 = vpop.f32.mrb[86].mxu0 }
 0xf6f   : > { %11691 = vst [vmem:[%s497_s25] sm:$0xff] %v11686_v30  ;;  %v14211_v43 = vpop.f32.mrb[87].mxu0 }
 0xf70 PF: > { %s25_s18 = sadd.s32 1, %s15758_s18  }
 0xf71   : > { %p22_p5 = scmp.ge.s32.totalorder %s25_s18, 4  }
 0xf73   :  { %24 = sbr.rel (!%p22_p5) target bundleno = 1 (0x1), region = 128 }

</bundles_post_ra>
